<compile_context>
chip_gen: v7x
topology: tpu7x:2x2x1
jax: 0.10.0
libtpu: 0.0.40
codegen_flags: <defaults>
</compile_context>

<pallas_src>
import jax
import jax.numpy as jnp
from jax.experimental import pallas as pl
from jax.experimental.pallas import tpu as pltpu

EPS = 1e-5


# ------------------------------ kernel math ---------------------------------

def _ln(h):
    """LayerNorm without affine (gamma/beta are folded into downstream W/b)."""
    mu = jnp.mean(h, axis=-1, keepdims=True)
    var = jnp.mean((h - mu) ** 2, axis=-1, keepdims=True)
    return (h - mu) * jax.lax.rsqrt(var + EPS)


def _gelu(h):
    # tanh-approx GELU -> EUP slot (exact-erf polynomial binds the VALU slot).
    return jax.nn.gelu(h, approximate=True)


def _block_math(x, wp, bp, w1, b1, w2, b2, out_dtype):
    """One TransformerBlock applied to a row slab x (f32)."""
    # Attention branch (faithful to the reference bug): proj(norm1(x)) + x.
    h1 = _ln(x)
    y = (jnp.dot(h1.astype(jnp.bfloat16), wp,
                 preferred_element_type=jnp.float32) + bp + x)
    # MLP branch: gelu(gelu(norm2(y) @ W1 + b1) @ W2 + b2) + y.
    h2 = _ln(y)
    u = _gelu((jnp.dot(h2.astype(jnp.bfloat16), w1,
                       preferred_element_type=jnp.float32)
               + b1).astype(jnp.bfloat16))            # bf16 GELU on the 4D-wide hidden
    m = _gelu(jnp.dot(u, w2, preferred_element_type=jnp.float32) + b2)
    return (m + y).astype(out_dtype)


def block_kernel(x_ref, wp_ref, bp_ref, w1_ref, b1_ref, w2_ref, b2_ref, o_ref):
    """Row-tiled single-layer kernel (weights resident, single-buffered)."""
    x = x_ref[...].astype(jnp.float32)
    o_ref[...] = _block_math(x, wp_ref[...], bp_ref[...], w1_ref[...],
                             b1_ref[...], w2_ref[...], b2_ref[...], o_ref.dtype)


def fused_layers_kernel(x_ref, wp_ref, bp_ref, w1_ref, b1_ref, w2_ref, b2_ref,
                        o_ref):
    """All L layers in one grid; activation resident in the output block."""
    @pl.when(pl.program_id(0) == 0)
    def _():
        o_ref[...] = x_ref[...]
    x = o_ref[...].astype(jnp.float32)
    o_ref[...] = _block_math(x, wp_ref[...], bp_ref[...], w1_ref[...],
                             b1_ref[...], w2_ref[...], b2_ref[...], o_ref.dtype)


# --------------------------- VMEM / tiling policy ----------------------------

def _vmem_cap_bytes():
    """Usable VMEM budget (generation aware, ~20% headroom for the compiler)."""
    try:
        cap = int(pltpu.get_tpu_info().vmem_capacity_bytes)
    except Exception:
        cap = 64 * 1024 * 1024            # conservative fallback (v7x size)
    return int(0.8 * cap)


def _vmem_limit(needed_bytes):
    cap = _vmem_cap_bytes()
    return max(min(int(1.25 * needed_bytes), cap), min(32 * 1024 * 1024, cap))


def _block_vmem_bytes(tm, D, H):
    w = 2 * (D * D + 2 * D * H)           # resident bf16 weights (1 buffer)
    b = 4 * (2 * D + H)                   # f32 biases
    io = 2 * 2 * tm * D * 2               # double-buffered bf16 in/out tiles
    tmp = 4 * tm * (4 * D + 2 * H)        # f32 intermediates (upper bound)
    return w + b + io + tmp


def _fused_vmem_bytes(M_pad, D, H):
    io = 3 * M_pad * D * 2                            # resident x + out, bf16
    w = 2 * 2 * (D * D + 2 * D * H) + 2 * 4 * (2 * D + H)  # streamed (2 bufs)
    tmp = 4 * M_pad * (4 * D + 2 * H)                 # f32 intermediates
    return io + w + tmp


def should_fuse(M, D, H):
    """Fuse all layers into one kernel when the activation slab fits VMEM."""
    M_pad = pl.cdiv(M, 8) * 8
    return _fused_vmem_bytes(M_pad, D, H) <= 0.5 * _vmem_cap_bytes()


def _pick_tm(M, tm_max=1024, tm_min=128, target_steps=8):
    """Row tile: 512-1024 to amortize per-grid-step overhead, but keep the grid
    >= ~8 steps (feeds v7x's 2 TensorCores) and prefer divisors of M (no pad)."""
    candidates = list(range(tm_max, tm_min - 1, -128))
    for t in candidates:                   # exact divisor + enough grid steps
        if M % t == 0 and M // t >= target_steps:
            return t
    for t in candidates:                   # enough grid steps (may pad)
        if pl.cdiv(M, t) >= target_steps:
            return t
    for t in candidates:                   # small M: biggest exact divisor
        if M % t == 0:
            return t
    return tm_min


# ------------------------------ call builders --------------------------------

def _make_block_call(M_pad, D, H, tm):
    # TODO(synk): for very wide models (bf16 D*D + 2*D*H resident weights above
    # the VMEM cap, e.g. D >~ 1300 on v7x) stream W1/W2 over an H-chunk grid
    # axis with a VMEM f32 accumulator instead of keeping MLP weights resident.
    def resident(shape):   # constant index map + single buffer -> resident
        return pl.BlockSpec(shape, lambda i: (0, 0),
                            pipeline_mode=pl.Buffered(1))

    in_specs = [
        pl.BlockSpec((tm, D), lambda i: (i, 0)),      # activation row tile
        resident((D, D)), resident((1, D)),           # proj W / b (LN1 folded)
        resident((D, H)), resident((1, H)),           # mlp0 W / b (LN2 folded)
        resident((H, D)), resident((1, D)),           # mlp3 W / b
    ]
    return pl.pallas_call(
        block_kernel,
        out_shape=jax.ShapeDtypeStruct((M_pad, D), jnp.bfloat16),
        grid_spec=pltpu.PrefetchScalarGridSpec(
            num_scalar_prefetch=0,
            grid=(M_pad // tm,),
            in_specs=in_specs,
            out_specs=pl.BlockSpec((tm, D), lambda i: (i, 0)),
        ),
        input_output_aliases={0: 0},                  # update slab in place
        compiler_params=pltpu.CompilerParams(
            dimension_semantics=("parallel",),
            vmem_limit_bytes=_vmem_limit(_block_vmem_bytes(tm, D, H)),
        ),
    )


def _make_fused_call(L, M_pad, D, H):
    def streamed(shape):   # per-layer stacked param, leading L dim squeezed
        return pl.BlockSpec((None,) + shape, lambda l: (l,) + (0,) * len(shape))

    in_specs = [
        pl.BlockSpec((M_pad, D), lambda l: (0, 0),
                     pipeline_mode=pl.Buffered(1)),   # slab fetched once
        streamed((D, D)), streamed((1, D)),
        streamed((D, H)), streamed((1, H)),
        streamed((H, D)), streamed((1, D)),
    ]
    return pl.pallas_call(
        fused_layers_kernel,
        out_shape=jax.ShapeDtypeStruct((M_pad, D), jnp.bfloat16),
        grid_spec=pltpu.PrefetchScalarGridSpec(
            num_scalar_prefetch=0,
            grid=(L,),
            in_specs=in_specs,
            out_specs=pl.BlockSpec((M_pad, D), lambda l: (0, 0)),
        ),
        input_output_aliases={0: 0},
        compiler_params=pltpu.CompilerParams(
            dimension_semantics=("arbitrary",),       # layers are sequential
            vmem_limit_bytes=_vmem_limit(_fused_vmem_bytes(M_pad, D, H)),
        ),
    )


# --------------------------- params & forward pass ---------------------------

def _fold_layer(p):
    """Fold the LayerNorm affines into downstream weights; cast weights bf16."""
    D = p["wp"].shape[0]
    return dict(
        wp=(p["g1"].reshape(D, 1) * p["wp"]).astype(jnp.bfloat16),
        bp=(p["bp"] + p["be1"] @ p["wp"]).astype(jnp.float32),
        w1=(p["g2"].reshape(D, 1) * p["w1"]).astype(jnp.bfloat16),
        b1=(p["b1"] + p["be2"] @ p["w1"]).astype(jnp.float32),
        w2=p["w2"].astype(jnp.bfloat16),
        b2=p["b2"].astype(jnp.float32),
    )


def prepare_params(layers, *, fused):
    """One-time host-side prep: fold + cast hoisted out of the forward pass."""
    folded = [_fold_layer(p) for p in layers]
    if not fused:
        return folded
    return {k: jnp.stack([f[k] for f in folded]) for k in folded[0]}


def transformer_forward(x, prepared, *, fused):
    """x: [B, T, N, D]; prepared: output of prepare_params(..., fused=fused)."""
    B, T, N, D = x.shape
    assert D % 128 == 0, "embed_dim must be lane-dense (multiple of 128)"
    M = B * T * N
    x2 = x.reshape(M, D).astype(jnp.bfloat16)          # bf16 inter-layer carry

    if fused:
        L, _, H = prepared["w1"].shape
        M_pad = pl.cdiv(M, 8) * 8
        if M_pad != M:
            x2 = jnp.pad(x2, ((0, M_pad - M), (0, 0)))
        out = _make_fused_call(L, M_pad, D, H)(
            x2, prepared["wp"], prepared["bp"], prepared["w1"],
            prepared["b1"], prepared["w2"], prepared["b2"])
    else:
        H = prepared[0]["w1"].shape[1]
        tm = _pick_tm(M)
        M_pad = pl.cdiv(M, tm) * tm
        if M_pad != M:                                 # _pick_tm prefers divisors
            x2 = jnp.pad(x2, ((0, M_pad - M), (0, 0)))
        call = _make_block_call(M_pad, D, H, tm)
        out = x2
        for p in prepared:
            out = call(out, p["wp"], p["bp"], p["w1"], p["b1"],
                       p["w2"], p["b2"])
    return out[:M].astype(x.dtype).reshape(B, T, N, D)


# ------------------------------ reference ------------------------------------

def _gelu_exact(h):
    # torch.nn.GELU() default: exact erf formulation (reference only).
    return 0.5 * h * (1.0 + jax.lax.erf(h * (1.0 / jnp.sqrt(2.0))))


def reference(x, layers):
    """Pure-JAX f32 reference mirroring the (buggy) PyTorch forward, eval mode."""
    B, T, N, D = x.shape
    h = x.reshape(-1, D)
    for p in layers:
        h1 = _ln(h) * p["g1"] + p["be1"]
        y = h1 @ p["wp"] + p["bp"] + h
        h2 = _ln(y) * p["g2"] + p["be2"]
        m = _gelu_exact(_gelu_exact(h2 @ p["w1"] + p["b1"]) @ p["w2"] + p["b2"])
        h = m + y
    return h.reshape(B, T, N, D)


def make_params(key, D, expansion_factor=4):
    H = D * expansion_factor
    ks = jax.random.split(key, 10)
    s = 0.02
    return {
        "g1": 1.0 + 0.1 * jax.random.normal(ks[0], (1, D), jnp.float32),
        "be1": 0.05 * jax.random.normal(ks[1], (1, D), jnp.float32),
        "wp": s * jax.random.normal(ks[2], (D, D), jnp.float32),
        "bp": s * jax.random.normal(ks[3], (1, D), jnp.float32),
        "g2": 1.0 + 0.1 * jax.random.normal(ks[4], (1, D), jnp.float32),
        "be2": 0.05 * jax.random.normal(ks[5], (1, D), jnp.float32),
        "w1": s * jax.random.normal(ks[6], (D, H), jnp.float32),
        "b1": s * jax.random.normal(ks[7], (1, H), jnp.float32),
        "w2": s * jax.random.normal(ks[8], (H, D), jnp.float32),
        "b2": s * jax.random.normal(ks[9], (1, D), jnp.float32),
    }


if __name__ == "__main__":
    key = jax.random.PRNGKey(0)
    kx, kp = jax.random.split(key)

    # Small shapes consistent with [batch, num_frames, seq_len, embed_dim].
    B, T, N, D = 2, 3, 64, 128
    L = 2
    x = jax.random.normal(kx, (B, T, N, D), jnp.float32)
    layers = [make_params(k, D, expansion_factor=4)
              for k in jax.random.split(kp, L)]
    H = layers[0]["w1"].shape[1]

    ref = reference(x, layers)
    fwd = jax.jit(transformer_forward, static_argnames=("fused",))

    # Path 1: slab fits VMEM -> all L layers fused into a single pallas_call.
    fused = should_fuse(B * T * N, D, H)
    out = jax.block_until_ready(
        fwd(x, prepare_params(layers, fused=fused), fused=fused))
    assert out.shape == (B, T, N, D)
    # bf16 inter-layer carry + bf16 matmul operands + tanh GELU vs f32/erf ref.
    assert jnp.allclose(out, ref, rtol=3e-2, atol=3e-2), "fused path mismatch"

    # Path 2: row-tiled per-layer kernel (large-model path), validated on the
    # same data against the same reference.
    out2 = jax.block_until_ready(
        fwd(x, prepare_params(layers, fused=False), fused=False))
    assert jnp.allclose(out2, ref, rtol=3e-2, atol=3e-2), "tiled path mismatch"

    print("KERNEL_OK")
</pallas_src>

<mosaic_0001>
module attributes {stable_mosaic.version = 11 : i64} {
  func.func @fused_layers_kernel(%arg0: i32, %arg1: memref<384x128xbf16, #tpu.memory_space<vmem>>, %arg2: memref<1x128x128xbf16, #tpu.memory_space<vmem>>, %arg3: memref<1x1x128xf32, #tpu.memory_space<vmem>>, %arg4: memref<1x128x512xbf16, #tpu.memory_space<vmem>>, %arg5: memref<1x1x512xf32, #tpu.memory_space<vmem>>, %arg6: memref<1x512x128xbf16, #tpu.memory_space<vmem>>, %arg7: memref<1x1x128xf32, #tpu.memory_space<vmem>>, %arg8: memref<384x128xbf16, #tpu.memory_space<vmem>>) attributes {dimension_semantics = [#tpu.dimension_semantics<arbitrary>], iteration_bounds = array<i64: 2>, scalar_prefetch = 0 : i64, scratch_operands = 0 : i64, tpu.core_type = #tpu.core_type<tc>, window_params = [{pipeline_mode = #tpu.pipeline_mode<synchronous>, transform_indices = @transform_0, window_bounds = array<i64: 384, 128>}, {transform_indices = @transform_1, window_bounds = array<i64: 1, 128, 128>}, {transform_indices = @transform_2, window_bounds = array<i64: 1, 1, 128>}, {transform_indices = @transform_3, window_bounds = array<i64: 1, 128, 512>}, {transform_indices = @transform_4, window_bounds = array<i64: 1, 1, 512>}, {transform_indices = @transform_5, window_bounds = array<i64: 1, 512, 128>}, {transform_indices = @transform_6, window_bounds = array<i64: 1, 1, 128>}, {pipeline_mode = #tpu.pipeline_mode<synchronous>, transform_indices = @transform_7, window_bounds = array<i64: 384, 128>}]} {
    %c0_i32 = arith.constant 0 : i32
    %0 = arith.cmpi eq, %arg0, %c0_i32 : i32
    %1 = arith.extui %0 : i1 to i32
    %c0_i32_0 = arith.constant 0 : i32
    %2 = arith.cmpi ne, %1, %c0_i32_0 : i32
    scf.if %2 {
      %c0_42 = arith.constant 0 : index
      %c0_43 = arith.constant 0 : index
      %95 = vector.load %arg1[%c0_42, %c0_43] : memref<384x128xbf16, #tpu.memory_space<vmem>>, vector<384x128xbf16>
      %c0_44 = arith.constant 0 : index
      %c0_45 = arith.constant 0 : index
      %96 = vector.load %arg8[%c0_44, %c0_45] : memref<384x128xbf16, #tpu.memory_space<vmem>>, vector<384x128xbf16>
      tpu.vector_store %arg8[%c0_44, %c0_45], %95 {strides = array<i32>} : memref<384x128xbf16, #tpu.memory_space<vmem>>, vector<384x128xbf16>,
    } else {
    }
    %c0 = arith.constant 0 : index
    %c0_1 = arith.constant 0 : index
    %3 = vector.load %arg8[%c0, %c0_1] : memref<384x128xbf16, #tpu.memory_space<vmem>>, vector<384x128xbf16>
    %4 = arith.extf %3 : vector<384x128xbf16> to vector<384x128xf32>
    %c0_2 = arith.constant 0 : index
    %c0_3 = arith.constant 0 : index
    %c0_4 = arith.constant 0 : index
    %5 = vector.load %arg2[%c0_2, %c0_3, %c0_4] : memref<1x128x128xbf16, #tpu.memory_space<vmem>>, vector<1x128x128xbf16>
    %6 = vector.shape_cast %5 : vector<1x128x128xbf16> to vector<128x128xbf16>
    %c0_5 = arith.constant 0 : index
    %c0_6 = arith.constant 0 : index
    %c0_7 = arith.constant 0 : index
    %7 = vector.load %arg3[%c0_5, %c0_6, %c0_7] : memref<1x1x128xf32, #tpu.memory_space<vmem>>, vector<1x1x128xf32>
    %8 = vector.shape_cast %7 : vector<1x1x128xf32> to vector<1x128xf32>
    %c0_8 = arith.constant 0 : index
    %c0_9 = arith.constant 0 : index
    %c0_10 = arith.constant 0 : index
    %9 = vector.load %arg4[%c0_8, %c0_9, %c0_10] : memref<1x128x512xbf16, #tpu.memory_space<vmem>>, vector<1x128x512xbf16>
    %10 = vector.shape_cast %9 : vector<1x128x512xbf16> to vector<128x512xbf16>
    %c0_11 = arith.constant 0 : index
    %c0_12 = arith.constant 0 : index
    %c0_13 = arith.constant 0 : index
    %11 = vector.load %arg5[%c0_11, %c0_12, %c0_13] : memref<1x1x512xf32, #tpu.memory_space<vmem>>, vector<1x1x512xf32>
    %12 = vector.shape_cast %11 : vector<1x1x512xf32> to vector<1x512xf32>
    %c0_14 = arith.constant 0 : index
    %c0_15 = arith.constant 0 : index
    %c0_16 = arith.constant 0 : index
    %13 = vector.load %arg6[%c0_14, %c0_15, %c0_16] : memref<1x512x128xbf16, #tpu.memory_space<vmem>>, vector<1x512x128xbf16>
    %14 = vector.shape_cast %13 : vector<1x512x128xbf16> to vector<512x128xbf16>
    %c0_17 = arith.constant 0 : index
    %c0_18 = arith.constant 0 : index
    %c0_19 = arith.constant 0 : index
    %15 = vector.load %arg7[%c0_17, %c0_18, %c0_19] : memref<1x1x128xf32, #tpu.memory_space<vmem>>, vector<1x1x128xf32>
    %16 = vector.shape_cast %15 : vector<1x1x128xf32> to vector<1x128xf32>
    %cst = arith.constant dense<0.000000e+00> : vector<384xf32>
    %17 = vector.multi_reduction <add>, %4, %cst [1] : vector<384x128xf32> to vector<384xf32>
    %18 = vector.shape_cast %17 : vector<384xf32> to vector<384x1xf32>
    %cst_20 = arith.constant 1.280000e+02 : f32
    %19 = vector.broadcast %cst_20 : f32 to vector<384x1xf32>
    %20 = arith.divf %18, %19 : vector<384x1xf32>
    %21 = vector.broadcast %20 : vector<384x1xf32> to vector<384x128xf32>
    %22 = arith.subf %4, %21 : vector<384x128xf32>
    %23 = arith.mulf %22, %22 : vector<384x128xf32>
    %cst_21 = arith.constant dense<0.000000e+00> : vector<384xf32>
    %24 = vector.multi_reduction <add>, %23, %cst_21 [1] : vector<384x128xf32> to vector<384xf32>
    %25 = vector.shape_cast %24 : vector<384xf32> to vector<384x1xf32>
    %cst_22 = arith.constant 1.280000e+02 : f32
    %26 = vector.broadcast %cst_22 : f32 to vector<384x1xf32>
    %27 = arith.divf %25, %26 : vector<384x1xf32>
    %28 = vector.broadcast %20 : vector<384x1xf32> to vector<384x128xf32>
    %29 = arith.subf %4, %28 : vector<384x128xf32>
    %cst_23 = arith.constant 9.99999974E-6 : f32
    %30 = vector.broadcast %cst_23 : f32 to vector<384x1xf32>
    %31 = arith.addf %27, %30 : vector<384x1xf32>
    %32 = math.rsqrt %31 : vector<384x1xf32>
    %33 = vector.broadcast %32 : vector<384x1xf32> to vector<384x128xf32>
    %34 = arith.mulf %29, %33 : vector<384x128xf32>
    %35 = arith.truncf %34 : vector<384x128xf32> to vector<384x128xbf16>
    %cst_24 = arith.constant dense<0.000000e+00> : vector<384x128xf32>
    %36 = tpu.matmul %35, %6, %cst_24 {dimension_numbers = #tpu.dot_dimension_numbers<[1], [0], [0], [1], [0, 0, 1, 1], [], []>} : vector<384x128xbf16>, vector<128x128xbf16>, vector<384x128xf32> -> vector<384x128xf32>
    %37 = vector.broadcast %8 : vector<1x128xf32> to vector<384x128xf32>
    %38 = arith.addf %36, %37 : vector<384x128xf32>
    %39 = arith.addf %38, %4 : vector<384x128xf32>
    %cst_25 = arith.constant dense<0.000000e+00> : vector<384xf32>
    %40 = vector.multi_reduction <add>, %39, %cst_25 [1] : vector<384x128xf32> to vector<384xf32>
    %41 = vector.shape_cast %40 : vector<384xf32> to vector<384x1xf32>
    %cst_26 = arith.constant 1.280000e+02 : f32
    %42 = vector.broadcast %cst_26 : f32 to vector<384x1xf32>
    %43 = arith.divf %41, %42 : vector<384x1xf32>
    %44 = vector.broadcast %43 : vector<384x1xf32> to vector<384x128xf32>
    %45 = arith.subf %39, %44 : vector<384x128xf32>
    %46 = arith.mulf %45, %45 : vector<384x128xf32>
    %cst_27 = arith.constant dense<0.000000e+00> : vector<384xf32>
    %47 = vector.multi_reduction <add>, %46, %cst_27 [1] : vector<384x128xf32> to vector<384xf32>
    %48 = vector.shape_cast %47 : vector<384xf32> to vector<384x1xf32>
    %cst_28 = arith.constant 1.280000e+02 : f32
    %49 = vector.broadcast %cst_28 : f32 to vector<384x1xf32>
    %50 = arith.divf %48, %49 : vector<384x1xf32>
    %51 = vector.broadcast %43 : vector<384x1xf32> to vector<384x128xf32>
    %52 = arith.subf %39, %51 : vector<384x128xf32>
    %cst_29 = arith.constant 9.99999974E-6 : f32
    %53 = vector.broadcast %cst_29 : f32 to vector<384x1xf32>
    %54 = arith.addf %50, %53 : vector<384x1xf32>
    %55 = math.rsqrt %54 : vector<384x1xf32>
    %56 = vector.broadcast %55 : vector<384x1xf32> to vector<384x128xf32>
    %57 = arith.mulf %52, %56 : vector<384x128xf32>
    %58 = arith.truncf %57 : vector<384x128xf32> to vector<384x128xbf16>
    %cst_30 = arith.constant dense<0.000000e+00> : vector<384x512xf32>
    %59 = tpu.matmul %58, %10, %cst_30 {dimension_numbers = #tpu.dot_dimension_numbers<[1], [0], [0], [1], [0, 0, 1, 1], [], []>} : vector<384x128xbf16>, vector<128x512xbf16>, vector<384x512xf32> -> vector<384x512xf32>
    %60 = vector.broadcast %12 : vector<1x512xf32> to vector<384x512xf32>
    %61 = arith.addf %59, %60 : vector<384x512xf32>
    %62 = arith.truncf %61 : vector<384x512xf32> to vector<384x512xbf16>
    %63 = arith.mulf %62, %62 : vector<384x512xbf16>
    %64 = arith.mulf %62, %63 : vector<384x512xbf16>
    %cst_31 = arith.constant 4.467770e-02 : bf16
    %65 = vector.broadcast %cst_31 : bf16 to vector<384x512xbf16>
    %66 = arith.mulf %65, %64 : vector<384x512xbf16>
    %67 = arith.addf %62, %66 : vector<384x512xbf16>
    %cst_32 = arith.constant 7.968750e-01 : bf16
    %68 = vector.broadcast %cst_32 : bf16 to vector<384x512xbf16>
    %69 = arith.mulf %68, %67 : vector<384x512xbf16>
    %70 = math.tanh %69 : vector<384x512xbf16>
    %cst_33 = arith.constant 1.000000e+00 : bf16
    %71 = vector.broadcast %cst_33 : bf16 to vector<384x512xbf16>
    %72 = arith.addf %71, %70 : vector<384x512xbf16>
    %cst_34 = arith.constant 5.000000e-01 : bf16
    %73 = vector.broadcast %cst_34 : bf16 to vector<384x512xbf16>
    %74 = arith.mulf %73, %72 : vector<384x512xbf16>
    %75 = arith.mulf %62, %74 : vector<384x512xbf16>
    %cst_35 = arith.constant dense<0.000000e+00> : vector<384x128xf32>
    %76 = tpu.matmul %75, %14, %cst_35 {dimension_numbers = #tpu.dot_dimension_numbers<[1], [0], [0], [1], [0, 0, 1, 1], [], []>} : vector<384x512xbf16>, vector<512x128xbf16>, vector<384x128xf32> -> vector<384x128xf32>
    %77 = vector.broadcast %16 : vector<1x128xf32> to vector<384x128xf32>
    %78 = arith.addf %76, %77 : vector<384x128xf32>
    %79 = arith.mulf %78, %78 : vector<384x128xf32>
    %80 = arith.mulf %78, %79 : vector<384x128xf32>
    %cst_36 = arith.constant 4.471500e-02 : f32
    %81 = vector.broadcast %cst_36 : f32 to vector<384x128xf32>
    %82 = arith.mulf %81, %80 : vector<384x128xf32>
    %83 = arith.addf %78, %82 : vector<384x128xf32>
    %cst_37 = arith.constant 0.797884583 : f32
    %84 = vector.broadcast %cst_37 : f32 to vector<384x128xf32>
    %85 = arith.mulf %84, %83 : vector<384x128xf32>
    %86 = math.tanh %85 : vector<384x128xf32>
    %cst_38 = arith.constant 1.000000e+00 : f32
    %87 = vector.broadcast %cst_38 : f32 to vector<384x128xf32>
    %88 = arith.addf %87, %86 : vector<384x128xf32>
    %cst_39 = arith.constant 5.000000e-01 : f32
    %89 = vector.broadcast %cst_39 : f32 to vector<384x128xf32>
    %90 = arith.mulf %89, %88 : vector<384x128xf32>
    %91 = arith.mulf %78, %90 : vector<384x128xf32>
    %92 = arith.addf %91, %39 : vector<384x128xf32>
    %93 = arith.truncf %92 : vector<384x128xf32> to vector<384x128xbf16>
    %c0_40 = arith.constant 0 : index
    %c0_41 = arith.constant 0 : index
    %94 = vector.load %arg8[%c0_40, %c0_41] : memref<384x128xbf16, #tpu.memory_space<vmem>>, vector<384x128xbf16>
    tpu.vector_store %arg8[%c0_40, %c0_41], %93 {strides = array<i32>} : memref<384x128xbf16, #tpu.memory_space<vmem>>, vector<384x128xbf16>,
    return
  }
  func.func @transform_0(%arg0: i32) -> (i32, i32) {
    %c0_i32 = arith.constant 0 : i32
    %c0_i32_0 = arith.constant 0 : i32
    %c0_i32_1 = arith.constant 0 : i32
    return %c0_i32, %c0_i32_0 : i32, i32
  }
  func.func @transform_1(%arg0: i32) -> (i32, i32, i32) {
    %c0_i32 = arith.constant 0 : i32
    %c0_i32_0 = arith.constant 0 : i32
    %c0_i32_1 = arith.constant 0 : i32
    return %arg0, %c0_i32, %c0_i32_0 : i32, i32, i32
  }
  func.func @transform_2(%arg0: i32) -> (i32, i32, i32) {
    %c0_i32 = arith.constant 0 : i32
    %c0_i32_0 = arith.constant 0 : i32
    %c0_i32_1 = arith.constant 0 : i32
    return %arg0, %c0_i32, %c0_i32_0 : i32, i32, i32
  }
  func.func @transform_3(%arg0: i32) -> (i32, i32, i32) {
    %c0_i32 = arith.constant 0 : i32
    %c0_i32_0 = arith.constant 0 : i32
    %c0_i32_1 = arith.constant 0 : i32
    return %arg0, %c0_i32, %c0_i32_0 : i32, i32, i32
  }
  func.func @transform_4(%arg0: i32) -> (i32, i32, i32) {
    %c0_i32 = arith.constant 0 : i32
    %c0_i32_0 = arith.constant 0 : i32
    %c0_i32_1 = arith.constant 0 : i32
    return %arg0, %c0_i32, %c0_i32_0 : i32, i32, i32
  }
  func.func @transform_5(%arg0: i32) -> (i32, i32, i32) {
    %c0_i32 = arith.constant 0 : i32
    %c0_i32_0 = arith.constant 0 : i32
    %c0_i32_1 = arith.constant 0 : i32
    return %arg0, %c0_i32, %c0_i32_0 : i32, i32, i32
  }
  func.func @transform_6(%arg0: i32) -> (i32, i32, i32) {
    %c0_i32 = arith.constant 0 : i32
    %c0_i32_0 = arith.constant 0 : i32
    %c0_i32_1 = arith.constant 0 : i32
    return %arg0, %c0_i32, %c0_i32_0 : i32, i32, i32
  }
  func.func @transform_7(%arg0: i32) -> (i32, i32) {
    %c0_i32 = arith.constant 0 : i32
    %c0_i32_0 = arith.constant 0 : i32
    %c0_i32_1 = arith.constant 0 : i32
    return %c0_i32, %c0_i32_0 : i32, i32
  }
}

</mosaic_0001>

<bundles_post_ra>
// kernel: transformer_forward.1
= control target key start
LH: loop header
LB: loop body
LE: loop exit
PB: predicated region body
PF: predicated region fallthrough
CT: control target
= control target key end

     0   :  { %12 = vsyncpa [#allocation3], 0  ;;  %s10392_s0 = inlined_call_operand.vmem [shape: bf16[384,128], index: 0, kind: input, shape index: {}, may-alias: {0,7}]   ;;  %s10393_s1 = inlined_call_operand.hbm [shape: bf16[2,128,128], index: 1, kind: input, shape index: {}]   ;;  %s10394_s2 = inlined_call_operand.vmem [shape: f32[2,1,128], index: 2, kind: input, shape index: {}]   ;;  %s10395_s3 = inlined_call_operand.vmem [shape: bf16[2,128,512], index: 3, kind: input, shape index: {}]   ;;  %s10396_s4 = inlined_call_operand.vmem [shape: f32[2,1,512], index: 4, kind: input, shape index: {}]   ;;  %s10397_s5 = inlined_call_operand.hbm [shape: bf16[2,512,128], index: 5, kind: input, shape index: {}]   ;;  %s10398_s6 = inlined_call_operand.vmem [shape: f32[2,1,128], index: 6, kind: input, shape index: {}]   ;;  %s10399_s7 = inlined_call_operand.vmem [shape: bf16[384,128], index: 7, kind: output, shape index: {}, may-alias: {0,7}]  }
   0x1   :  { %14 = vsyncpa [#allocation3 + $0x1], 0 }
   0x2   :  { %15 = vsyncpa [#allocation5], 0 }
   0x3   :  { %17 = vsyncpa [#allocation5 + $0x1], 0  ;;  %s6762_s24 = smov 0   ;;  %s6764_s25 = smov 0  }
   0x4   :  { %s6766_s26 = smov 0   ;;  %s6768_s27 = smov 0  }
   0x5 LB: > { %s6781_s28 = sadd.s32 4294967295, %s6715_s27   ;;  %s6784_s29 = sadd.s32 1, %s6715_s27   ;;  %s6715_s27 = sphi %s6768_s27, %s10861_s27   ;;  %s6711_s26 = sphi %s6766_s26, %s10860_s26   ;;  %s6707_s25 = sphi %s6764_s25, %s10859_s25   ;;  %s6703_s24 = sphi %s6762_s24, %s10858_s24  }
   0x6   : > { %s48_s30 = ssub.s32 %s6715_s27, %s6784_s29  ;;  %s51_s8 = sadd.s32 1, %s6711_s26 }
   0x7   : > { %p49_p0 = scmp.eq.s32.totalorder %s48_s30, 0  ;;  %p58_p1 = scmp.ne.s32.totalorder %s6711_s26, %s6707_s25 }
   0x8   : > { %p59_p2 = scmp.eq.s32.totalorder %s6715_s27, 0  ;;  %p64_p3 = scmp.ne.s32.totalorder %s6707_s25, %s6703_s24 }
   0x9   : > { %s6794_s9 = scalar_select %p49_p0, %s6711_s26, %s51_s8  }
   0xa   : > { %p60_p4 = por %p59_p2, %p58_p1  ;;  %p65_p5 = scmp.eq.s32.totalorder %s6781_s28, 0 }
   0xb   : > { %p5996_p6 = scmp.lt.s32.totalorder %s6715_s27, 2  ;;  %s6803_s11 = sand.u32 1, %s6711_s26  }
   0xc   : > { %p6798_p7 = por %p65_p5, %p64_p3  ;;  %s5299_s12 = sshll.u32 %s6803_s11, 6 }
   0xd   : > { %s5436_s13 = sshll.u32 %s6715_s27, 10  ;;  %s246_s17 = scalar_lea.vmem [#allocation2], %s5299_s12 }
   0xe   : > { %s10541_s10 = scalar_select %p6798_p7, 1, 0 }
   0xf   : > { %s6810_s16 = scalar_lea.hbm %s10393_s1, %s5436_s13  ;;  %s253_s18 = sshll.u32 %s246_s17, 4  ;;  %s6812_s18 = int_to_ptr.vmem [resolvable:$true] %s253_s18 }
  0x10   : > { %p6814_p8 = pnand %p5996_p6, %p60_p4  ;;  %s243_s20 = scalar_lea.sflag [#allocation3], %s6803_s11 }
  0x11   : > { %s6617_s21 = scalar_lea.hbm %s6810_s16, 1024  ;;  %s6622_s24 = scalar_lea.hbm %s10393_s1, 2048 }
  0x12   : > { %p6618_p10 = scmp.ne.s32.totalorder %s6810_s16, %s6617_s21  ;;  %p6619_p11 = pneg %p6814_p8 }
  0x13   : > { %p6623_p0 = scmp.lt.u32.totalorder %s6810_s16, %s10393_s1  ;;  %p6624_p1 = scmp.lt.u32.totalorder %s6622_s24, %s6617_s21 }
  0x14   : > { %p6620_p12 = pnand %p6619_p11, %p6618_p10  ;;  %p6626_p3 = scmp.lt.u32.totalorder %s6617_s21, %s6810_s16 }
  0x15   : > { %p6625_p2 = por %p6624_p1, %p6623_p0 }
  0x16   : > { %p6621_p13 = pneg %p6620_p12 }
  0x17   : > { %p6627_p4 = por %p6626_p3, %p6625_p2 }
  0x19   : > { %p6628_p5 = pnand %p6627_p4, %p6621_p13 }
  0x1b   : > { %6631 = shalt.err (!%p6628_p5)
}
  0x1c   : > { %s6632_s12 = scalar_lea.vmem %s6812_s18, 1024  ;;  %s6717_s13 = smov [#allocation2]  }
  0x1d   : > { %p6633_p6 = scmp.ne.s32.totalorder %s6812_s18, %s6632_s12  ;;  %s6637_s14 = sshll.u32 %s6717_s13, 4  ;;  %s6638_s14 = int_to_ptr.vmem [resolvable:$false] %s6637_s14 }
  0x1e   : > { %s6639_s15 = scalar_lea.vmem %s6638_s14, 2048  ;;  %p6640_p9 = scmp.lt.s32.totalorder %s6812_s18, %s6638_s14 }
  0x1f   : > { %p6635_p10 = pnand %p6633_p6, %p6619_p11  ;;  %p6641_p0 = scmp.lt.s32.totalorder %s6639_s15, %s6632_s12 }
  0x21   : > { %p6636_p12 = pneg %p6635_p10  ;;  %p6642_p1 = por %p6641_p0, %p6640_p9 }
  0x23   : > { %p6643_p2 = pnand %p6642_p1, %p6636_p12 }
  0x25   : > { %6646 = shalt.err (!%p6643_p2)
}
  0x26   : > { %s6718_s17 = smov 64   ;;  %s6719_s21 = smov 4  }
  0x27   : > { %5992 = dma.hbm_to_vmem [thread:$0]  (!%p6814_p8), %s6810_s16, 1024, %s6812_s18, %s243_s20, %s6718_s17, %s6718_s17, %s6719_s21  }
  0x28   : > { %p309_p9 = scmp.lt.s32.totalorder %s6715_s27, 3  ;;  %s5302_s22 = sshll.u32 %s6803_s11, 8 }
  0x29   : > { %s5437_s23 = sshll.u32 %s6715_s27, 12  ;;  %p10543_p13 = scmp.ge.s32.totalorder %s6715_s27, 1 }
  0x2a   : > { %s6862_s12 = scalar_lea.hbm %s10397_s5, %s5437_s23  ;;  %s288_s13 = scalar_lea.vmem [#allocation4], %s5302_s22 }
  0x2b   : > { %p6855_p3 = pnand %p10543_p13, %p309_p9  ;;  %s295_s14 = sshll.u32 %s288_s13, 4  ;;  %s6864_s14 = int_to_ptr.vmem [resolvable:$true] %s295_s14 }
  0x2c   : > { %s285_s16 = scalar_lea.sflag [#allocation5], %s6803_s11  ;;  %s6647_s18 = scalar_lea.hbm %s6862_s12, 4096 }
  0x2d   : > { %p6648_p4 = scmp.ne.s32.totalorder %s6862_s12, %s6647_s18  ;;  %s6652_s15 = scalar_lea.hbm %s10397_s5, 8192 }
  0x2e   : > { %p6653_p10 = scmp.lt.u32.totalorder %s6862_s12, %s10397_s5  ;;  %p6654_p12 = scmp.lt.u32.totalorder %s6652_s15, %s6647_s18 }
  0x2f   : > { %p6650_p5 = pnand %p6648_p4, %p6619_p11  ;;  %p6656_p1 = scmp.lt.u32.totalorder %s6647_s18, %s6862_s12 }
  0x30   : > { %p6655_p0 = por %p6654_p12, %p6653_p10 }
  0x31   : > { %p6651_p6 = pneg %p6650_p5 }
  0x32   : > { %p6657_p2 = por %p6656_p1, %p6655_p0 }
  0x34   : > { %p6658_p9 = pnand %p6657_p2, %p6651_p6 }
  0x36   : > { %6661 = shalt.err (!%p6658_p9)
}
  0x37   : > { %s6662_s22 = scalar_lea.vmem %s6864_s14, 4096  ;;  %s6720_s8 = smov [#allocation4]  }
  0x38   : > { %p6663_p13 = scmp.ne.s32.totalorder %s6864_s14, %s6662_s22  ;;  %s6667_s13 = sshll.u32 %s6720_s8, 4  ;;  %s6668_s13 = int_to_ptr.vmem [resolvable:$false] %s6667_s13 }
  0x39   : > { %s6669_s27 = scalar_lea.vmem %s6668_s13, 8192  ;;  %p6670_p7 = scmp.lt.s32.totalorder %s6864_s14, %s6668_s13 }
  0x3a   : > { %p6665_p4 = pnand %p6663_p13, %p6619_p11  ;;  %p6671_p10 = scmp.lt.s32.totalorder %s6669_s27, %s6662_s22 }
  0x3c   : > { %p6666_p5 = pneg %p6665_p4  ;;  %p6672_p12 = por %p6671_p10, %p6670_p7 }
  0x3e   : > { %p6673_p0 = pnand %p6672_p12, %p6666_p5 }
  0x40   : > { %6676 = shalt.err (!%p6673_p0)
}
  0x41   : > { %5995 = dma.hbm_to_vmem [thread:$0]  (!%p6814_p8), %s6862_s12, 4096, %s6864_s14, %s285_s16, %s6718_s17, %s6718_s17, %s6719_s21  }
  0x42   : > { %313 = sbr.rel (%p6855_p3) target bundleno = 1946 (0x79a), region = 48 }
  0x49   : > { %s315_s18 = sand.u32 1, %s6707_s25   ;;  %p10545_p7 = scmp.ne.s32.totalorder %s10541_s10, 0 }
  0x4a   : > { %s5306_s20 = sshll.u32 %s315_s18, 6  ;;  %s316_s15 = scalar_lea.sflag [#allocation3], %s315_s18 }
  0x4b   : > { %s6898_s23 = scalar_lea.vmem [#allocation2], %s5306_s20 }
  0x4c   : > { %6694 = dma.done.wait (%p10545_p7), %s316_s15, 1024  }
  0x4d   : > { %6696 = vsyncadd (%p10545_p7), %s316_s15, 4294966272  ;;  %s5307_s11 = sshll.u32 %s315_s18, 8  ;;  %s325_s19 = scalar_lea.sflag [#allocation5], %s315_s18 }
  0x4e   : > { %s6904_s30 = scalar_lea.vmem [#allocation4], %s5307_s11 }
  0x4f   : > { %6698 = dma.done.wait (%p10545_p7), %s325_s19, 4096  }
  0x50   : > { %6700 = vsyncadd (%p10545_p7), %s325_s19, 4294963200  ;;  %p374_p8 = scmp.lt.s32.totalorder %s6781_s28, 1  ;;  %p5311_p11 = scmp.ne.s32.totalorder %s6781_s28, 0 }
  0x51   : > { %v398_v0 = vld [vmem:[%s10392_s0] sm:$0xf] (!%p5311_p11)  ;;  %v399_v1 = vld [vmem:[%s10392_s0 + $0x4] sm:$0xf] (!%p5311_p11)  ;;  %v400_v2 = vld [vmem:[%s10392_s0 + $0x8] sm:$0xf] (!%p5311_p11) }
  0x52   : > { %s6912_s17 = scalar_select %p374_p8, %s6781_s28, 1 }
  0x53   : > { %397 = sbr.rel (%p5311_p11) target bundleno = 220 (0xdc), region = 60  ;;  %446 = vst [vmem:[%s10399_s7] sm:$0xf] (!%p5311_p11), %v398_v0  ;;  %447 = vst [vmem:[%s10399_s7 + $0x4] sm:$0xf] (!%p5311_p11), %v399_v1 }
  0x54   : > { %s376_s12 = scalar_lea.vmem %s10394_s2, %s6912_s17  ;;  %s5438_s14 = sshll.u32 %s6912_s17, 8  ;;  %448 = vst [vmem:[%s10399_s7 + $0x8] sm:$0xf] (!%p5311_p11), %v400_v2 }
  0x55   : > { %s6922_s8 = scalar_lea.vmem %s10395_s3, %s5438_s14  ;;  %s5310_s10 = sshll.u32 %s6912_s17, 2 }
  0x56   : > { %s6928_s18 = scalar_lea.vmem %s10396_s4, %s5310_s10  ;;  %s6934_s11 = scalar_lea.vmem %s10398_s6, %s6912_s17 }
  0x5b   : > { %v401_v3 = vld [vmem:[%s10392_s0 + $0xc] sm:$0xf]  ;;  %v402_v4 = vld [vmem:[%s10392_s0 + $0x10] sm:$0xf]  ;;  %v403_v5 = vld [vmem:[%s10392_s0 + $0x14] sm:$0xf] }
  0x5c   : > { %449 = vst [vmem:[%s10399_s7 + $0xc] sm:$0xf] %v401_v3  ;;  %450 = vst [vmem:[%s10399_s7 + $0x10] sm:$0xf] %v402_v4 }
  0x5d   : > { %451 = vst [vmem:[%s10399_s7 + $0x14] sm:$0xf] %v403_v5 }
  0x64   : > { %v404_v6 = vld [vmem:[%s10392_s0 + $0x18] sm:$0xf]  ;;  %v405_v7 = vld [vmem:[%s10392_s0 + $0x1c] sm:$0xf]  ;;  %v406_v8 = vld [vmem:[%s10392_s0 + $0x20] sm:$0xf] }
  0x65   : > { %452 = vst [vmem:[%s10399_s7 + $0x18] sm:$0xf] %v404_v6  ;;  %453 = vst [vmem:[%s10399_s7 + $0x1c] sm:$0xf] %v405_v7 }
  0x66   : > { %454 = vst [vmem:[%s10399_s7 + $0x20] sm:$0xf] %v406_v8 }
  0x6d   : > { %v407_v9 = vld [vmem:[%s10392_s0 + $0x24] sm:$0xf]  ;;  %v408_v10 = vld [vmem:[%s10392_s0 + $0x28] sm:$0xf]  ;;  %v409_v11 = vld [vmem:[%s10392_s0 + $0x2c] sm:$0xf] }
  0x6e   : > { %455 = vst [vmem:[%s10399_s7 + $0x24] sm:$0xf] %v407_v9  ;;  %456 = vst [vmem:[%s10399_s7 + $0x28] sm:$0xf] %v408_v10 }
  0x6f   : > { %457 = vst [vmem:[%s10399_s7 + $0x2c] sm:$0xf] %v409_v11 }
  0x76   : > { %v410_v12 = vld [vmem:[%s10392_s0 + $0x30] sm:$0xf]  ;;  %v411_v13 = vld [vmem:[%s10392_s0 + $0x34] sm:$0xf]  ;;  %v412_v14 = vld [vmem:[%s10392_s0 + $0x38] sm:$0xf] }
  0x77   : > { %458 = vst [vmem:[%s10399_s7 + $0x30] sm:$0xf] %v410_v12  ;;  %459 = vst [vmem:[%s10399_s7 + $0x34] sm:$0xf] %v411_v13 }
  0x78   : > { %460 = vst [vmem:[%s10399_s7 + $0x38] sm:$0xf] %v412_v14 }
  0x7f   : > { %v413_v15 = vld [vmem:[%s10392_s0 + $0x3c] sm:$0xf]  ;;  %v414_v16 = vld [vmem:[%s10392_s0 + $0x40] sm:$0xf]  ;;  %v415_v17 = vld [vmem:[%s10392_s0 + $0x44] sm:$0xf] }
  0x80   : > { %461 = vst [vmem:[%s10399_s7 + $0x3c] sm:$0xf] %v413_v15  ;;  %462 = vst [vmem:[%s10399_s7 + $0x40] sm:$0xf] %v414_v16 }
  0x81   : > { %463 = vst [vmem:[%s10399_s7 + $0x44] sm:$0xf] %v415_v17 }
  0x88   : > { %v416_v18 = vld [vmem:[%s10392_s0 + $0x48] sm:$0xf]  ;;  %v417_v19 = vld [vmem:[%s10392_s0 + $0x4c] sm:$0xf]  ;;  %v418_v20 = vld [vmem:[%s10392_s0 + $0x50] sm:$0xf] }
  0x89   : > { %464 = vst [vmem:[%s10399_s7 + $0x48] sm:$0xf] %v416_v18  ;;  %465 = vst [vmem:[%s10399_s7 + $0x4c] sm:$0xf] %v417_v19 }
  0x8a   : > { %466 = vst [vmem:[%s10399_s7 + $0x50] sm:$0xf] %v418_v20 }
  0x91   : > { %v419_v21 = vld [vmem:[%s10392_s0 + $0x54] sm:$0xf]  ;;  %v420_v22 = vld [vmem:[%s10392_s0 + $0x58] sm:$0xf]  ;;  %v421_v23 = vld [vmem:[%s10392_s0 + $0x5c] sm:$0xf] }
  0x92   : > { %467 = vst [vmem:[%s10399_s7 + $0x54] sm:$0xf] %v419_v21  ;;  %468 = vst [vmem:[%s10399_s7 + $0x58] sm:$0xf] %v420_v22 }
  0x93   : > { %469 = vst [vmem:[%s10399_s7 + $0x5c] sm:$0xf] %v421_v23 }
  0x9a   : > { %v422_v24 = vld [vmem:[%s10392_s0 + $0x60] sm:$0xf]  ;;  %v423_v25 = vld [vmem:[%s10392_s0 + $0x64] sm:$0xf]  ;;  %v424_v26 = vld [vmem:[%s10392_s0 + $0x68] sm:$0xf] }
  0x9b   : > { %470 = vst [vmem:[%s10399_s7 + $0x60] sm:$0xf] %v422_v24  ;;  %471 = vst [vmem:[%s10399_s7 + $0x64] sm:$0xf] %v423_v25 }
  0x9c   : > { %472 = vst [vmem:[%s10399_s7 + $0x68] sm:$0xf] %v424_v26 }
  0xa3   : > { %v425_v27 = vld [vmem:[%s10392_s0 + $0x6c] sm:$0xf]  ;;  %v426_v28 = vld [vmem:[%s10392_s0 + $0x70] sm:$0xf]  ;;  %v427_v29 = vld [vmem:[%s10392_s0 + $0x74] sm:$0xf] }
  0xa4   : > { %473 = vst [vmem:[%s10399_s7 + $0x6c] sm:$0xf] %v425_v27  ;;  %474 = vst [vmem:[%s10399_s7 + $0x70] sm:$0xf] %v426_v28 }
  0xa5   : > { %475 = vst [vmem:[%s10399_s7 + $0x74] sm:$0xf] %v427_v29 }
  0xac   : > { %v428_v30 = vld [vmem:[%s10392_s0 + $0x78] sm:$0xf]  ;;  %v429_v31 = vld [vmem:[%s10392_s0 + $0x7c] sm:$0xf]  ;;  %v430_v32 = vld [vmem:[%s10392_s0 + $0x80] sm:$0xf] }
  0xad   : > { %476 = vst [vmem:[%s10399_s7 + $0x78] sm:$0xf] %v428_v30  ;;  %477 = vst [vmem:[%s10399_s7 + $0x7c] sm:$0xf] %v429_v31 }
  0xae   : > { %478 = vst [vmem:[%s10399_s7 + $0x80] sm:$0xf] %v430_v32 }
  0xb5   : > { %v431_v33 = vld [vmem:[%s10392_s0 + $0x84] sm:$0xf]  ;;  %v432_v34 = vld [vmem:[%s10392_s0 + $0x88] sm:$0xf]  ;;  %v433_v35 = vld [vmem:[%s10392_s0 + $0x8c] sm:$0xf] }
  0xb6   : > { %479 = vst [vmem:[%s10399_s7 + $0x84] sm:$0xf] %v431_v33  ;;  %480 = vst [vmem:[%s10399_s7 + $0x88] sm:$0xf] %v432_v34 }
  0xb7   : > { %481 = vst [vmem:[%s10399_s7 + $0x8c] sm:$0xf] %v433_v35 }
  0xbe   : > { %v434_v36 = vld [vmem:[%s10392_s0 + $0x90] sm:$0xf]  ;;  %v435_v37 = vld [vmem:[%s10392_s0 + $0x94] sm:$0xf]  ;;  %v436_v38 = vld [vmem:[%s10392_s0 + $0x98] sm:$0xf] }
  0xbf   : > { %482 = vst [vmem:[%s10399_s7 + $0x90] sm:$0xf] %v434_v36  ;;  %483 = vst [vmem:[%s10399_s7 + $0x94] sm:$0xf] %v435_v37 }
  0xc0   : > { %484 = vst [vmem:[%s10399_s7 + $0x98] sm:$0xf] %v436_v38 }
  0xc7   : > { %v437_v39 = vld [vmem:[%s10392_s0 + $0x9c] sm:$0xf]  ;;  %v438_v40 = vld [vmem:[%s10392_s0 + $0xa0] sm:$0xf]  ;;  %v439_v41 = vld [vmem:[%s10392_s0 + $0xa4] sm:$0xf] }
  0xc8   : > { %485 = vst [vmem:[%s10399_s7 + $0x9c] sm:$0xf] %v437_v39  ;;  %486 = vst [vmem:[%s10399_s7 + $0xa0] sm:$0xf] %v438_v40 }
  0xc9   : > { %487 = vst [vmem:[%s10399_s7 + $0xa4] sm:$0xf] %v439_v41 }
  0xd0   : > { %v440_v42 = vld [vmem:[%s10392_s0 + $0xa8] sm:$0xf]  ;;  %v441_v43 = vld [vmem:[%s10392_s0 + $0xac] sm:$0xf]  ;;  %v442_v44 = vld [vmem:[%s10392_s0 + $0xb0] sm:$0xf] }
  0xd1   : > { %488 = vst [vmem:[%s10399_s7 + $0xa8] sm:$0xf] %v440_v42  ;;  %489 = vst [vmem:[%s10399_s7 + $0xac] sm:$0xf] %v441_v43 }
  0xd2   : > { %490 = vst [vmem:[%s10399_s7 + $0xb0] sm:$0xf] %v442_v44 }
  0xd9   : > { %v443_v45 = vld [vmem:[%s10392_s0 + $0xb4] sm:$0xf]  ;;  %v444_v46 = vld [vmem:[%s10392_s0 + $0xb8] sm:$0xf]  ;;  %v445_v47 = vld [vmem:[%s10392_s0 + $0xbc] sm:$0xf] }
  0xda   : > { %491 = vst [vmem:[%s10399_s7 + $0xb4] sm:$0xf] %v443_v45  ;;  %492 = vst [vmem:[%s10399_s7 + $0xb8] sm:$0xf] %v444_v46 }
  0xdb   : > { %493 = vst [vmem:[%s10399_s7 + $0xbc] sm:$0xf] %v445_v47 }
  0xdc PF: > { %v5488_v48 = vld [vmem:[%s10399_s7] sm:$0xff]   ;;  %v5704_v54 = vld [vmem:[%s10399_s7 + $0x10] sm:$0xff]   ;;  %v5705_v55 = vld [vmem:[%s10399_s7 + $0x18] sm:$0xff]  }
  0xdd   : > { %v5703_v49 = vld [vmem:[%s10399_s7 + $0x8] sm:$0xff]   ;;  %v7231_v50 = vunpack.c.l.bf16 %v5488_v48  ;;  %v7237_v52 = vunpack.c.h.bf16 %v5488_v48  ;;  %v7249_v56 = vunpack.c.l.bf16 %v5704_v54  ;;  %v7251_v57 = vunpack.c.h.bf16 %v5704_v54  ;;  %v5706_v58 = vld [vmem:[%s10399_s7 + $0x20] sm:$0xff]   ;;  %v5708_v0 = vld [vmem:[%s10399_s7 + $0x30] sm:$0xff]  }
  0xde   : > { %v7233_v51 = vunpack.c.l.bf16 %v5703_v49  ;;  %v7239_v53 = vunpack.c.h.bf16 %v5703_v49  ;;  %v7258_v59 = vunpack.c.l.bf16 %v5705_v55  ;;  %v7260_v60 = vunpack.c.h.bf16 %v5705_v55  ;;  %v5707_v61 = vld [vmem:[%s10399_s7 + $0x28] sm:$0xff]   ;;  %v5709_v3 = vld [vmem:[%s10399_s7 + $0x38] sm:$0xff]   ;;  %v5710_v8 = vld [vmem:[%s10399_s7 + $0x40] sm:$0xff]  }
  0xdf   : > { %10546 = vst [vmem:[#allocation8_spill] sm:$0xff] %v7231_v50  ;;  %705 = vadd.xlane.f32.xlu0 %v7231_v50  ;;  %10548 = vst [vmem:[#allocation10_spill] sm:$0xff] %v7237_v52  ;;  %v7267_v62 = vunpack.c.l.bf16 %v5706_v58  ;;  %v7269_v63 = vunpack.c.h.bf16 %v5706_v58  ;;  %v7276_v1 = vunpack.c.l.bf16 %v5707_v61  ;;  %v7278_v2 = vunpack.c.h.bf16 %v5707_v61  ;;  %v5711_v11 = vld [vmem:[%s10399_s7 + $0x48] sm:$0xff]   ;;  %v5712_v12 = vld [vmem:[%s10399_s7 + $0x50] sm:$0xff]  }
  0xe0   : > { %10547 = vst [vmem:[#allocation9_spill] sm:$0xff] %v7233_v51  ;;  %709 = vadd.xlane.f32.xlu1 %v7233_v51  ;;  %10549 = vst [vmem:[#allocation11_spill] sm:$0xff] %v7239_v53  ;;  %v7285_v4 = vunpack.c.l.bf16 %v5708_v0  ;;  %v7287_v5 = vunpack.c.h.bf16 %v5708_v0  ;;  %v7291_v6 = vunpack.c.l.bf16 %v5709_v3  ;;  %v7293_v7 = vunpack.c.h.bf16 %v5709_v3  ;;  %v6032_v17 = vld [vmem:[%s6898_s23] sm:$0xff]   ;;  %v6033_v18 = vld [vmem:[%s6898_s23 + $0x8] sm:$0xff]  }
  0xe1   : > { %10550 = vst [vmem:[#allocation12_spill] sm:$0xff] %v7249_v56  ;;  %10551 = vst [vmem:[#allocation13_spill] sm:$0xff] %v7251_v57  ;;  %v7300_v9 = vunpack.c.l.bf16 %v5710_v8  ;;  %v7302_v10 = vunpack.c.h.bf16 %v5710_v8  ;;  %v7312_v13 = vunpack.c.l.bf16 %v5711_v11  ;;  %v7314_v14 = vunpack.c.h.bf16 %v5711_v11  ;;  %5781 = vmatprep.subr.bf16.mxu0 %v6032_v17  ;;  %v5713_v33 = vld [vmem:[%s10399_s7 + $0x58] sm:$0xff]   ;;  %v5714_v40 = vld [vmem:[%s10399_s7 + $0x60] sm:$0xff]  }
  0xe2   : > { %10552 = vst [vmem:[#allocation14_spill] sm:$0xff] %v7258_v59  ;;  %10553 = vst [vmem:[#allocation15_spill] sm:$0xff] %v7260_v60  ;;  %v7318_v15 = vunpack.c.l.bf16 %v5712_v12  ;;  %v7320_v16 = vunpack.c.h.bf16 %v5712_v12  ;;  %5782 = vmatpush3.bf16.msra.mxu0 %v6032_v17  ;;  %v7347_v37 = vunpack.c.l.bf16 %v5713_v33  ;;  %v7354_v42 = vunpack.c.l.bf16 %v5714_v40  ;;  %v6034_v0 = vld [vmem:[%s6898_s23 + $0x10] sm:$0xff]   ;;  %v5715_v12 = vld [vmem:[%s10399_s7 + $0x68] sm:$0xff]  }
  0xe3   : > { %707 = vadd.xlane.f32.xlu0 %v7237_v52  ;;  %10554 = vst [vmem:[#allocation16_spill] sm:$0xff] %v7267_v62  ;;  %10555 = vst [vmem:[#allocation17_spill] sm:$0xff] %v7269_v63  ;;  %5783 = vmatprep.subr.bf16.mxu0 %v6033_v18  ;;  %v7357_v43 = vunpack.c.h.bf16 %v5713_v33  ;;  %v7362_v48 = vunpack.c.h.bf16 %v5714_v40  ;;  %v6036_v33 = vld [vmem:[%s6898_s23 + $0x20] sm:$0xff]  }
  0xe4   : > { %711 = vadd.xlane.f32.xlu1 %v7239_v53  ;;  %10556 = vst [vmem:[#allocation18_spill] sm:$0xff] %v7276_v1  ;;  %10557 = vst [vmem:[#allocation19_spill] sm:$0xff] %v7278_v2 }
  0xe5   : > { %10558 = vst [vmem:[#allocation20_spill] sm:$0xff] %v7285_v4  ;;  %10559 = vst [vmem:[#allocation21_spill] sm:$0xff] %v7287_v5 }
  0xe6   : > { %10560 = vst [vmem:[#allocation22_spill] sm:$0xff] %v7291_v6  ;;  %10561 = vst [vmem:[#allocation23_spill] sm:$0xff] %v7293_v7  ;;  %5784 = vmatpush3.bf16.msra.mxu0 %v6033_v18 }
  0xe7   : > { %713 = vadd.xlane.f32.xlu0 %v7249_v56  ;;  %10562 = vst [vmem:[#allocation24_spill] sm:$0xff] %v7300_v9  ;;  %10563 = vst [vmem:[#allocation25_spill] sm:$0xff] %v7302_v10  ;;  %5785 = vmatprep.subr.bf16.mxu0 %v6034_v0 }
  0xe8   : > { %715 = vadd.xlane.f32.xlu1 %v7251_v57  ;;  %10564 = vst [vmem:[#allocation26_spill] sm:$0xff] %v7312_v13  ;;  %10565 = vst [vmem:[#allocation27_spill] sm:$0xff] %v7314_v14 }
  0xe9   : > { %10566 = vst [vmem:[#allocation28_spill] sm:$0xff] %v7318_v15  ;;  %10567 = vst [vmem:[#allocation29_spill] sm:$0xff] %v7320_v16 }
  0xea   : > { %10568 = vst [vmem:[#allocation30_spill] sm:$0xff] %v7347_v37  ;;  %10569 = vst [vmem:[#allocation31_spill] sm:$0xff] %v7357_v43  ;;  %5786 = vmatpush3.bf16.msra.mxu0 %v6034_v0 }
  0xeb   : > { %717 = vadd.xlane.f32.xlu0 %v7258_v59 }
  0xec   : > { %719 = vadd.xlane.f32.xlu1 %v7260_v60 }
  0xef   : > { %721 = vadd.xlane.f32.xlu0 %v7267_v62 }
  0xf0   : > { %723 = vadd.xlane.f32.xlu1 %v7269_v63 }
  0xf3   : > { %725 = vadd.xlane.f32.xlu0 %v7276_v1 }
  0xf4   : > { %727 = vadd.xlane.f32.xlu1 %v7278_v2 }
  0xf7   : > { %729 = vadd.xlane.f32.xlu0 %v7285_v4 }
  0xf8   : > { %731 = vadd.xlane.f32.xlu1 %v7287_v5 }
  0xfb   : > { %733 = vadd.xlane.f32.xlu0 %v7291_v6 }
  0xfc   : > { %735 = vadd.xlane.f32.xlu1 %v7293_v7 }
  0xff   : > { %737 = vadd.xlane.f32.xlu0 %v7300_v9 }
 0x100   : > { %739 = vadd.xlane.f32.xlu1 %v7302_v10 }
 0x103   : > { %741 = vadd.xlane.f32.xlu0 %v7312_v13 }
 0x104   : > { %743 = vadd.xlane.f32.xlu1 %v7314_v14 }
 0x107   : > { %745 = vadd.xlane.f32.xlu0 %v7318_v15 }
 0x108   : > { %747 = vadd.xlane.f32.xlu1 %v7320_v16 }
 0x16c   : > { %v706_v19 = vpop.xlane.xlu0 %705 }
 0x16d   : > { %v710_v20 = vpop.xlane.xlu1 %709  ;;  %v802_v21 = vmul.f32 0.0078125, %v706_v19  ;;  %v7388_v19 = vunpack.c.l.bf16 %v5715_v12 }
 0x16e   : > { %v804_v22 = vmul.f32 0.0078125, %v710_v20 }
 0x16f   : > { %v7327_v23 = vsub.f32 %v7231_v50, %v802_v21  ;;  %10570 = vst [vmem:[#allocation32_spill] sm:$0xff] %v7388_v19  ;;  %v6035_v21 = vld [vmem:[%s6898_s23 + $0x18] sm:$0xff]  }
 0x170   : > { %v7330_v24 = vsub.f32 %v7233_v51, %v804_v22  ;;  %v708_v25 = vpop.xlane.xlu0 %707  ;;  %v5716_v22 = vld [vmem:[%s10399_s7 + $0x70] sm:$0xff]   ;;  %5787 = vmatprep.subr.bf16.mxu0 %v6035_v21 }
 0x171   : > { %v712_v26 = vpop.xlane.xlu1 %711  ;;  %v803_v27 = vmul.f32 0.0078125, %v708_v25  ;;  %v898_v28 = vmul.f32 %v7327_v23, %v7327_v23  ;;  %5788 = vmatpush3.bf16.msra.mxu0 %v6035_v21 }
 0x172   : > { %v805_v29 = vmul.f32 0.0078125, %v712_v26  ;;  %v900_v30 = vmul.f32 %v7330_v24, %v7330_v24  ;;  %v7394_v26 = vunpack.c.h.bf16 %v5715_v12  ;;  %5789 = vmatprep.subr.bf16.mxu0 %v6036_v33 }
 0x173   : > { %946 = vadd.xlane.f32.xlu0 %v898_v28  ;;  %v7337_v31 = vsub.f32 %v7237_v52, %v803_v27  ;;  %v7397_v27 = vunpack.c.l.bf16 %v5716_v22 }
 0x174   : > { %v7340_v32 = vsub.f32 %v7239_v53, %v805_v29  ;;  %v714_v34 = vpop.xlane.xlu0 %713  ;;  %10571 = vst [vmem:[#allocation33_spill] sm:$0xff] %v7394_v26 }
 0x175   : > { %v899_v35 = vmul.f32 %v7337_v31, %v7337_v31  ;;  %v716_v36 = vpop.xlane.xlu1 %715  ;;  %v806_v39 = vmul.f32 0.0078125, %v714_v34  ;;  %10572 = vst [vmem:[#allocation34_spill] sm:$0xff] %v7397_v27  ;;  %5790 = vmatpush3.bf16.msra.mxu0 %v6036_v33 }
 0x176   : > { %v901_v38 = vmul.f32 %v7340_v32, %v7340_v32  ;;  %v807_v44 = vmul.f32 0.0078125, %v716_v36 }
 0x177   : > { %950 = vadd.xlane.f32.xlu0 %v900_v30  ;;  %948 = vadd.xlane.f32.xlu1 %v899_v35  ;;  %v7360_v46 = vsub.f32 %v7249_v56, %v806_v39  ;;  %v7403_v35 = vunpack.c.h.bf16 %v5716_v22 }
 0x178   : > { %v718_v41 = vpop.xlane.xlu0 %717  ;;  %v7369_v55 = vsub.f32 %v7251_v57, %v807_v44 }
 0x179   : > { %v808_v45 = vmul.f32 0.0078125, %v718_v41  ;;  %v720_v47 = vpop.xlane.xlu1 %719  ;;  %v902_v49 = vmul.f32 %v7360_v46, %v7360_v46  ;;  %10573 = vst [vmem:[#allocation35_spill] sm:$0xff] %v7403_v35  ;;  %v6037_v41 = vld [vmem:[%s6898_s23 + $0x28] sm:$0xff]  }
 0x17a   : > { %v809_v54 = vmul.f32 0.0078125, %v720_v47  ;;  %v903_v3 = vmul.f32 %v7369_v55, %v7369_v55  ;;  %5791 = vmatprep.subr.bf16.mxu0 %v6037_v41 }
 0x17b   : > { %749 = vadd.xlane.f32.xlu0 %v7347_v37  ;;  %952 = vadd.xlane.f32.xlu1 %v901_v38  ;;  %v7372_v58 = vsub.f32 %v7258_v59, %v808_v45 }
 0x17c   : > { %v722_v61 = vpop.xlane.xlu0 %721  ;;  %v7381_v11 = vsub.f32 %v7260_v60, %v809_v54  ;;  %5792 = vmatpush3.bf16.msra.mxu0 %v6037_v41  ;;  %v6038_v54 = vld [vmem:[%s6898_s23 + $0x30] sm:$0xff]  }
 0x17d   : > { %v904_v8 = vmul.f32 %v7372_v58, %v7372_v58  ;;  %v724_v17 = vpop.xlane.xlu1 %723  ;;  %v810_v20 = vmul.f32 0.0078125, %v722_v61  ;;  %v5717_v61 = vld [vmem:[%s10399_s7 + $0x78] sm:$0xff]   ;;  %5793 = vmatprep.subr.bf16.mxu0 %v6038_v54 }
 0x17e   : > { %v905_v18 = vmul.f32 %v7381_v11, %v7381_v11  ;;  %v811_v28 = vmul.f32 0.0078125, %v724_v17  ;;  %v6039_v17 = vld [vmem:[%s6898_s23 + $0x38] sm:$0xff]   ;;  %v7436_v21 = vunpack.c.h.bf16 %v5717_v61 }
 0x17f   : > { %753 = vadd.xlane.f32.xlu0 %v7354_v42  ;;  %751 = vadd.xlane.f32.xlu1 %v7357_v43  ;;  %v7400_v30 = vsub.f32 %v7267_v62, %v810_v20 }
 0x180   : > { %v726_v25 = vpop.xlane.xlu0 %725  ;;  %v7410_v39 = vsub.f32 %v7269_v63, %v811_v28  ;;  %5794 = vmatpush3.bf16.msra.mxu0 %v6038_v54 }
 0x181   : > { %v812_v29 = vmul.f32 0.0078125, %v726_v25  ;;  %v728_v34 = vpop.xlane.xlu1 %727  ;;  %v906_v36 = vmul.f32 %v7400_v30, %v7400_v30  ;;  %5795 = vmatprep.subr.bf16.mxu0 %v6039_v17 }
 0x182   : > { %v813_v38 = vmul.f32 0.0078125, %v728_v34  ;;  %v907_v45 = vmul.f32 %v7410_v39, %v7410_v39 }
 0x183   : > { %755 = vadd.xlane.f32.xlu1 %v7362_v48  ;;  %954 = vadd.xlane.f32.xlu0 %v902_v49  ;;  %v7413_v40 = vsub.f32 %v7276_v1, %v812_v29 }
 0x184   : > { %v730_v44 = vpop.xlane.xlu0 %729  ;;  %v7422_v49 = vsub.f32 %v7278_v2, %v813_v38  ;;  %5796 = vmatpush3.bf16.msra.mxu0 %v6039_v17 }
 0x185   : > { %v908_v47 = vmul.f32 %v7413_v40, %v7413_v40  ;;  %v732_v0 = vpop.xlane.xlu1 %731  ;;  %v814_v12 = vmul.f32 0.0078125, %v730_v44 }
 0x186   : > { %v815_v25 = vmul.f32 0.0078125, %v732_v0  ;;  %v5719_v0 = vld [vmem:[%s10399_s7 + $0x88] sm:$0xff]  }
 0x187   : > { %956 = vadd.xlane.f32.xlu1 %v903_v3  ;;  %958 = vadd.xlane.f32.xlu0 %v904_v8  ;;  %v909_v3 = vmul.f32 %v7422_v49, %v7422_v49  ;;  %v7430_v8 = vunpack.c.l.bf16 %v5717_v61  ;;  %v7442_v29 = vsub.f32 %v7285_v4, %v814_v12  ;;  %v7469_v17 = vunpack.c.l.bf16 %v5719_v0 }
 0x188   : > { %v734_v20 = vpop.xlane.xlu0 %733  ;;  %v7451_v41 = vsub.f32 %v7287_v5, %v815_v25 }
 0x189   : > { %v816_v28 = vmul.f32 0.0078125, %v734_v20  ;;  %v736_v33 = vpop.xlane.xlu1 %735  ;;  %v5720_v20 = vld [vmem:[%s10399_s7 + $0x90] sm:$0xff]  }
 0x18a   : > { %v817_v38 = vmul.f32 0.0078125, %v736_v33  ;;  %v7477_v33 = vunpack.c.l.bf16 %v5720_v20 }
 0x18b   : > { %960 = vadd.xlane.f32.xlu1 %v905_v18  ;;  %757 = vadd.xlane.f32.xlu0 %v7388_v19  ;;  %v5718_v18 = vld [vmem:[%s10399_s7 + $0x80] sm:$0xff]   ;;  %v7454_v44 = vsub.f32 %v7291_v6, %v816_v28  ;;  %v7474_v28 = vunpack.c.h.bf16 %v5719_v0 }
 0x18c   : > { %v7439_v22 = vunpack.c.l.bf16 %v5718_v18  ;;  %v7444_v34 = vunpack.c.h.bf16 %v5718_v18  ;;  %v7462_v61 = vsub.f32 %v7293_v7, %v817_v38  ;;  %v7482_v7 = vunpack.c.h.bf16 %v5720_v20 }
 0x18d   : > { %v912_v54 = vmul.f32 %v7454_v44, %v7454_v44 }
 0x18e   : > { %v913_v12 = vmul.f32 %v7462_v61, %v7462_v61 }
 0x18f   : > { %759 = vadd.xlane.f32.xlu1 %v7394_v26  ;;  %761 = vadd.xlane.f32.xlu0 %v7397_v27 }
 0x193   : > { %763 = vadd.xlane.f32.xlu1 %v7403_v35  ;;  %962 = vadd.xlane.f32.xlu0 %v906_v36  ;;  %v910_v36 = vmul.f32 %v7442_v29, %v7442_v29 }
 0x197   : > { %964 = vadd.xlane.f32.xlu1 %v907_v45  ;;  %966 = vadd.xlane.f32.xlu0 %v908_v47  ;;  %v738_v45 = vpop.xlane.xlu0 %737  ;;  %v911_v47 = vmul.f32 %v7451_v41, %v7451_v41 }
 0x198   : > { %v818_v18 = vmul.f32 0.0078125, %v738_v45 }
 0x19b   : > { %968 = vadd.xlane.f32.xlu1 %v909_v3  ;;  %765 = vadd.xlane.f32.xlu0 %v7430_v8  ;;  %v740_v3 = vpop.xlane.xlu1 %739  ;;  %v742_v25 = vpop.xlane.xlu0 %741 }
 0x19c   : > { %v820_v38 = vmul.f32 0.0078125, %v742_v25 }
 0x19f   : > { %767 = vadd.xlane.f32.xlu1 %v7436_v21  ;;  %769 = vadd.xlane.f32.xlu0 %v7439_v22 }
 0x1a3   : > { %771 = vadd.xlane.f32.xlu1 %v7444_v34  ;;  %970 = vadd.xlane.f32.xlu0 %v910_v36  ;;  %v819_v36 = vmul.f32 0.0078125, %v740_v3  ;;  %v7492_v3 = vsub.f32 %v7312_v13, %v820_v38 }
 0x1a5   : > { %v916_v20 = vmul.f32 %v7492_v3, %v7492_v3 }
 0x1a7   : > { %972 = vadd.xlane.f32.xlu1 %v911_v47  ;;  %974 = vadd.xlane.f32.xlu0 %v912_v54  ;;  %v7480_v47 = vsub.f32 %v7300_v9, %v818_v18  ;;  %v744_v54 = vpop.xlane.xlu1 %743 }
 0x1a8   : > { %v821_v0 = vmul.f32 0.0078125, %v744_v54  ;;  %v746_v54 = vpop.xlane.xlu0 %745 }
 0x1a9   : > { %v914_v45 = vmul.f32 %v7480_v47, %v7480_v47  ;;  %v822_v13 = vmul.f32 0.0078125, %v746_v54 }
 0x1aa   : > { %v7500_v25 = vsub.f32 %v7314_v14, %v821_v0 }
 0x1ab   : > { %976 = vadd.xlane.f32.xlu1 %v913_v12  ;;  %773 = vadd.xlane.f32.xlu0 %v7469_v17  ;;  %v7489_v12 = vsub.f32 %v7302_v10, %v819_v36  ;;  %v5721_v36 = vld [vmem:[%s10399_s7 + $0x98] sm:$0xff]   ;;  %v5722_v10 = vld [vmem:[%s10399_s7 + $0xa0] sm:$0xff]   ;;  %v748_v9 = vpop.xlane.xlu1 %747 }
 0x1ac   : > { %v917_v38 = vmul.f32 %v7500_v25, %v7500_v25  ;;  %v7513_v0 = vunpack.c.h.bf16 %v5721_v36  ;;  %v7515_v14 = vunpack.c.l.bf16 %v5722_v10  ;;  %v7522_v54 = vunpack.c.h.bf16 %v5722_v10 }
 0x1ad   : > { %v915_v18 = vmul.f32 %v7489_v12, %v7489_v12 }
 0x1af   : > { %775 = vadd.xlane.f32.xlu1 %v7474_v28  ;;  %777 = vadd.xlane.f32.xlu0 %v7477_v33 }
 0x1b3   : > { %779 = vadd.xlane.f32.xlu1 %v7482_v7  ;;  %978 = vadd.xlane.f32.xlu0 %v914_v45  ;;  %v7507_v45 = vunpack.c.l.bf16 %v5721_v36 }
 0x1b7   : > { %980 = vadd.xlane.f32.xlu1 %v915_v18  ;;  %982 = vadd.xlane.f32.xlu0 %v916_v20  ;;  %v823_v18 = vmul.f32 0.0078125, %v748_v9  ;;  %v7518_v20 = vsub.f32 %v7318_v15, %v822_v13 }
 0x1b9   : > { %v918_v6 = vmul.f32 %v7518_v20, %v7518_v20 }
 0x1bb   : > { %984 = vadd.xlane.f32.xlu1 %v917_v38  ;;  %781 = vadd.xlane.f32.xlu0 %v7507_v45  ;;  %v7527_v38 = vsub.f32 %v7320_v16, %v823_v18 }
 0x1bd   : > { %v919_v9 = vmul.f32 %v7527_v38, %v7527_v38 }
 0x1bf   : > { %783 = vadd.xlane.f32.xlu1 %v7513_v0  ;;  %785 = vadd.xlane.f32.xlu0 %v7515_v14 }
 0x1c3   : > { %787 = vadd.xlane.f32.xlu1 %v7522_v54  ;;  %986 = vadd.xlane.f32.xlu0 %v918_v6 }
 0x1c7   : > { %988 = vadd.xlane.f32.xlu1 %v919_v9 }
 0x200   : > { %v947_v13 = vpop.xlane.xlu0 %946 }
 0x201   : > { %v1042_v36 = vmul.f32 0.0078125, %v947_v13 }
 0x203   : > { %v1090_v15 = vadd.f32 1e-05, %v1042_v36 }
 0x204   : > { %v949_v5 = vpop.xlane.xlu1 %948  ;;  %v951_v4 = vpop.xlane.xlu0 %950 }
 0x205   : > { %v1043_v10 = vmul.f32 0.0078125, %v949_v5  ;;  %v1044_v2 = vmul.f32 0.0078125, %v951_v4  ;;  %6120 = vrsqrt.f32 %v1090_v15  ;;  %v5723_v5 = vld [vmem:[%s10399_s7 + $0xa8] sm:$0xff]   ;;  %v5724_v15 = vld [vmem:[%s10399_s7 + $0xb0] sm:$0xff]  }
 0x207   : > { %v1091_v1 = vadd.f32 1e-05, %v1043_v10  ;;  %v1092_v63 = vadd.f32 1e-05, %v1044_v2 }
 0x208   : > { %v953_v62 = vpop.xlane.xlu1 %952  ;;  %v750_v18 = vpop.xlane.xlu0 %749 }
 0x209   : > { %6122 = vrsqrt.f32 %v1091_v1  ;;  %v1045_v16 = vmul.f32 0.0078125, %v953_v62  ;;  %v824_v60 = vmul.f32 0.0078125, %v750_v18 }
 0x20a   : > { %6124 = vrsqrt.f32 %v1092_v63  ;;  %v7543_v63 = vunpack.c.l.bf16 %v5723_v5 }
 0x20b   : > { %v1093_v6 = vadd.f32 1e-05, %v1045_v16  ;;  %v7533_v59 = vsub.f32 %v7347_v37, %v824_v60 }
 0x20c   : > { %v752_v9 = vpop.xlane.xlu1 %751  ;;  %v754_v13 = vpop.xlane.xlu0 %753 }
 0x20d   : > { %6126 = vrsqrt.f32 %v1093_v6  ;;  %v825_v4 = vmul.f32 0.0078125, %v752_v9  ;;  %v920_v2 = vmul.f32 %v7533_v59, %v7533_v59  ;;  %v826_v36 = vmul.f32 0.0078125, %v754_v13 }
 0x20f   : > { %990 = vadd.xlane.f32.xlu0 %v920_v2  ;;  %v7541_v62 = vsub.f32 %v7357_v43, %v825_v4  ;;  %v6121_v16 = vpop.eup %6120  ;;  %v7551_v4 = vunpack.c.h.bf16 %v5723_v5  ;;  %v7553_v2 = vunpack.c.l.bf16 %v5724_v15  ;;  %v7558_v52 = vsub.f32 %v7354_v42, %v826_v36 }
 0x210   : > { %v756_v1 = vpop.xlane.xlu1 %755  ;;  %v955_v60 = vpop.xlane.xlu0 %954  ;;  %v1186_v56 = vmul.f32 %v6121_v16, %v7327_v23 }
 0x211   : > { %v1046_v10 = vmul.f32 0.0078125, %v955_v60  ;;  %v921_v18 = vmul.f32 %v7541_v62, %v7541_v62  ;;  %v827_v43 = vmul.f32 0.0078125, %v756_v1  ;;  %v7562_v1 = vunpack.c.h.bf16 %v5724_v15 }
 0x213   : > { %v6123_v6 = vpop.eup %6122  ;;  %v1094_v9 = vadd.f32 1e-05, %v1046_v10  ;;  %992 = vadd.xlane.f32.xlu1 %v921_v18  ;;  %789 = vadd.xlane.f32.xlu0 %v7543_v63  ;;  %v7567_v16 = vsub.f32 %v7362_v48, %v827_v43 }
 0x214   : > { %v957_v37 = vpop.xlane.xlu1 %956  ;;  %v959_v57 = vpop.xlane.xlu0 %958  ;;  %v1187_v13 = vmul.f32 %v6123_v6, %v7337_v31 }
 0x215   : > { %v6125_v60 = vpop.eup %6124  ;;  %v1047_v53 = vmul.f32 0.0078125, %v957_v37  ;;  %v1048_v51 = vmul.f32 0.0078125, %v959_v57  ;;  %6128 = vrsqrt.f32 %v1094_v9  ;;  %v923_v43 = vmul.f32 %v7567_v16, %v7567_v16  ;;  %v5725_v9 = vld [vmem:[%s10399_s7 + $0xb8] sm:$0xff]  }
 0x216   : > { %v1234_v10 = vpack.c.bf16 %v1187_v13, %v1186_v56  ;;  %v1188_v37 = vmul.f32 %v6125_v60, %v7330_v24 }
 0x217   : > { %v6127_v18 = vpop.eup %6126  ;;  %v1095_v5 = vadd.f32 1e-05, %v1047_v53  ;;  %v1096_v50 = vadd.f32 1e-05, %v1048_v51  ;;  %791 = vadd.xlane.f32.xlu1 %v7551_v4  ;;  %793 = vadd.xlane.f32.xlu0 %v7553_v2  ;;  %v922_v51 = vmul.f32 %v7558_v52, %v7558_v52 }
 0x218   : > { %v961_v23 = vpop.xlane.xlu1 %960  ;;  %5797 = vmatprep.mubr.bf16.mxu0 %v1234_v10  ;;  %v758_v31 = vpop.xlane.xlu0 %757  ;;  %v1189_v57 = vmul.f32 %v6127_v18, %v7340_v32  ;;  %v7585_v18 = vunpack.c.l.bf16 %v5725_v9 }
 0x219   : > { %6130 = vrsqrt.f32 %v1095_v5  ;;  %v1049_v56 = vmul.f32 0.0078125, %v961_v23  ;;  %v828_v53 = vmul.f32 0.0078125, %v758_v31 }
 0x21a   : > { %v1235_v36 = vpack.c.bf16 %v1189_v57, %v1188_v37  ;;  %6132 = vrsqrt.f32 %v1096_v50 }
 0x21b   : > { %v1097_v15 = vadd.f32 1e-05, %v1049_v56  ;;  %795 = vadd.xlane.f32.xlu1 %v7562_v1  ;;  %994 = vadd.xlane.f32.xlu0 %v922_v51  ;;  %v7573_v6 = vsub.f32 %v7388_v19, %v828_v53 }
 0x21c   : > { %v760_v24 = vpop.xlane.xlu1 %759  ;;  %5798 = vmatmul.mubr.bf16.vlgmr.msra.gmra.mrb[0].mxu0 %v1235_v36  ;;  %v762_v32 = vpop.xlane.xlu0 %761 }
 0x21d   : > { %6134 = vrsqrt.f32 %v1097_v15  ;;  %v829_v13 = vmul.f32 0.0078125, %v760_v24  ;;  %v830_v50 = vmul.f32 0.0078125, %v762_v32  ;;  %v924_v60 = vmul.f32 %v7573_v6, %v7573_v6 }
 0x21e   : > { %v7593_v15 = vunpack.c.h.bf16 %v5725_v9 }
 0x21f   : > { %996 = vadd.xlane.f32.xlu1 %v923_v43  ;;  %998 = vadd.xlane.f32.xlu0 %v924_v60  ;;  %v7583_v10 = vsub.f32 %v7394_v26, %v829_v13  ;;  %v7588_v5 = vsub.f32 %v7397_v27, %v830_v50  ;;  %v6129_v37 = vpop.eup %6128 }
 0x220   : > { %v764_v23 = vpop.xlane.xlu1 %763  ;;  %v963_v31 = vpop.xlane.xlu0 %962  ;;  %v1190_v50 = vmul.f32 %v6129_v37, %v7360_v46 }
 0x221   : > { %v831_v57 = vmul.f32 0.0078125, %v764_v23  ;;  %v1050_v56 = vmul.f32 0.0078125, %v963_v31  ;;  %v925_v53 = vmul.f32 %v7583_v10, %v7583_v10  ;;  %v926_v24 = vmul.f32 %v7588_v5, %v7588_v5 }
 0x223   : > { %v6131_v51 = vpop.eup %6130  ;;  %v1098_v36 = vadd.f32 1e-05, %v1050_v56  ;;  %1000 = vadd.xlane.f32.xlu1 %v925_v53  ;;  %797 = vadd.xlane.f32.xlu0 %v7585_v18  ;;  %v7598_v32 = vsub.f32 %v7403_v35, %v831_v57 }
 0x224   : > { %v965_v43 = vpop.xlane.xlu1 %964  ;;  %v967_v13 = vpop.xlane.xlu0 %966  ;;  %v1191_v60 = vmul.f32 %v6131_v51, %v7369_v55 }
 0x225   : > { %v6133_v23 = vpop.eup %6132  ;;  %v1051_v31 = vmul.f32 0.0078125, %v965_v43  ;;  %v1052_v56 = vmul.f32 0.0078125, %v967_v13  ;;  %6136 = vrsqrt.f32 %v1098_v36  ;;  %v927_v57 = vmul.f32 %v7598_v32, %v7598_v32 }
 0x226   : > { %v1236_v53 = vpack.c.bf16 %v1191_v60, %v1190_v50  ;;  %v1192_v46 = vmul.f32 %v6133_v23, %v7372_v58 }
 0x227   : > { %v6135_v27 = vpop.eup %6134  ;;  %v1099_v9 = vadd.f32 1e-05, %v1051_v31  ;;  %v1100_v26 = vadd.f32 1e-05, %v1052_v56  ;;  %799 = vadd.xlane.f32.xlu1 %v7593_v15  ;;  %1002 = vadd.xlane.f32.xlu0 %v926_v24 }
 0x228   : > { %v969_v35 = vpop.xlane.xlu1 %968  ;;  %5801 = vmatprep.mubr.bf16.mxu0 %v1236_v53  ;;  %v766_v19 = vpop.xlane.xlu0 %765  ;;  %v1193_v55 = vmul.f32 %v6135_v27, %v7381_v11 }
 0x229   : > { %6138 = vrsqrt.f32 %v1099_v9  ;;  %v1053_v37 = vmul.f32 0.0078125, %v969_v35  ;;  %v832_v51 = vmul.f32 0.0078125, %v766_v19 }
 0x22a   : > { %v1237_v43 = vpack.c.bf16 %v1193_v55, %v1192_v46  ;;  %6140 = vrsqrt.f32 %v1100_v26 }
 0x22b   : > { %v1101_v36 = vadd.f32 1e-05, %v1053_v37  ;;  %1004 = vadd.xlane.f32.xlu1 %v927_v57  ;;  %v7608_v13 = vsub.f32 %v7430_v8, %v832_v51 }
 0x22c   : > { %v768_v24 = vpop.xlane.xlu1 %767  ;;  %5802 = vmatmul.mubr.bf16.gmra.mrb[4].mxu0 %v1237_v43  ;;  %v770_v50 = vpop.xlane.xlu0 %769 }
 0x22d   : > { %6142 = vrsqrt.f32 %v1101_v36  ;;  %v833_v60 = vmul.f32 0.0078125, %v768_v24  ;;  %v834_v31 = vmul.f32 0.0078125, %v770_v50  ;;  %v928_v58 = vmul.f32 %v7608_v13, %v7608_v13 }
 0x22f   : > { %1006 = vadd.xlane.f32.xlu0 %v928_v58  ;;  %v7613_v11 = vsub.f32 %v7436_v21, %v833_v60  ;;  %v7616_v19 = vsub.f32 %v7439_v22, %v834_v31  ;;  %v6137_v35 = vpop.eup %6136 }
 0x230   : > { %v772_v26 = vpop.xlane.xlu1 %771  ;;  %v971_v27 = vpop.xlane.xlu0 %970  ;;  %v1194_v43 = vmul.f32 %v6137_v35, %v7400_v30 }
 0x231   : > { %v835_v23 = vmul.f32 0.0078125, %v772_v26  ;;  %v1054_v56 = vmul.f32 0.0078125, %v971_v27  ;;  %v929_v53 = vmul.f32 %v7613_v11, %v7613_v11  ;;  %v930_v9 = vmul.f32 %v7616_v19, %v7616_v19 }
 0x233   : > { %v6139_v57 = vpop.eup %6138  ;;  %v1102_v46 = vadd.f32 1e-05, %v1054_v56  ;;  %1008 = vadd.xlane.f32.xlu1 %v929_v53  ;;  %1010 = vadd.xlane.f32.xlu0 %v930_v9  ;;  %v7623_v55 = vsub.f32 %v7444_v34, %v835_v23 }
 0x234   : > { %v973_v37 = vpop.xlane.xlu1 %972  ;;  %v975_v51 = vpop.xlane.xlu0 %974  ;;  %v1195_v36 = vmul.f32 %v6139_v57, %v7410_v39 }
 0x235   : > { %v6141_v24 = vpop.eup %6140  ;;  %v1055_v50 = vmul.f32 0.0078125, %v973_v37  ;;  %v1056_v60 = vmul.f32 0.0078125, %v975_v51  ;;  %v931_v31 = vmul.f32 %v7623_v55, %v7623_v55  ;;  %6144 = vrsqrt.f32 %v1102_v46 }
 0x236   : > { %v1238_v58 = vpack.c.bf16 %v1195_v36, %v1194_v43  ;;  %v1196_v9 = vmul.f32 %v6141_v24, %v7413_v40 }
 0x237   : > { %v6143_v26 = vpop.eup %6142  ;;  %v1103_v27 = vadd.f32 1e-05, %v1055_v50  ;;  %v1104_v56 = vadd.f32 1e-05, %v1056_v60  ;;  %1012 = vadd.xlane.f32.xlu1 %v931_v31 }
 0x238   : > { %v977_v23 = vpop.xlane.xlu1 %976  ;;  %5805 = vmatprep.mubr.bf16.mxu0 %v1238_v58  ;;  %v774_v53 = vpop.xlane.xlu0 %773  ;;  %v1197_v30 = vmul.f32 %v6143_v26, %v7422_v49 }
 0x239   : > { %6146 = vrsqrt.f32 %v1103_v27  ;;  %v1057_v39 = vmul.f32 0.0078125, %v977_v23  ;;  %v836_v35 = vmul.f32 0.0078125, %v774_v53 }
 0x23a   : > { %v1239_v57 = vpack.c.bf16 %v1197_v30, %v1196_v9  ;;  %6148 = vrsqrt.f32 %v1104_v56 }
 0x23b   : > { %v1105_v37 = vadd.f32 1e-05, %v1057_v39  ;;  %v7632_v51 = vsub.f32 %v7469_v17, %v836_v35 }
 0x23c   : > { %v776_v46 = vpop.xlane.xlu1 %775  ;;  %5806 = vmatmul.mubr.bf16.gmra.mrb[8].mxu0 %v1239_v57  ;;  %v778_v43 = vpop.xlane.xlu0 %777 }
 0x23d   : > { %6150 = vrsqrt.f32 %v1105_v37  ;;  %v837_v36 = vmul.f32 0.0078125, %v776_v46  ;;  %v838_v50 = vmul.f32 0.0078125, %v778_v43  ;;  %v932_v40 = vmul.f32 %v7632_v51, %v7632_v51 }
 0x23f   : > { %1014 = vadd.xlane.f32.xlu0 %v932_v40  ;;  %v7637_v49 = vsub.f32 %v7474_v28, %v837_v36  ;;  %v7640_v24 = vsub.f32 %v7477_v33, %v838_v50  ;;  %v6145_v58 = vpop.eup %6144 }
 0x240   : > { %v780_v60 = vpop.xlane.xlu1 %779  ;;  %v979_v31 = vpop.xlane.xlu0 %978  ;;  %v1198_v57 = vmul.f32 %v6145_v58, %v7442_v29 }
 0x241   : > { %v839_v26 = vmul.f32 0.0078125, %v780_v60  ;;  %v1058_v27 = vmul.f32 0.0078125, %v979_v31  ;;  %v933_v56 = vmul.f32 %v7637_v49, %v7637_v49  ;;  %v934_v23 = vmul.f32 %v7640_v24, %v7640_v24 }
 0x243   : > { %v6147_v53 = vpop.eup %6146  ;;  %v1106_v9 = vadd.f32 1e-05, %v1058_v27  ;;  %1016 = vadd.xlane.f32.xlu1 %v933_v56  ;;  %1018 = vadd.xlane.f32.xlu0 %v934_v23  ;;  %v7647_v30 = vsub.f32 %v7482_v7, %v839_v26 }
 0x244   : > { %v981_v39 = vpop.xlane.xlu1 %980  ;;  %v983_v35 = vpop.xlane.xlu0 %982  ;;  %v1199_v37 = vmul.f32 %v6147_v53, %v7451_v41 }
 0x245   : > { %v6149_v46 = vpop.eup %6148  ;;  %v1059_v43 = vmul.f32 0.0078125, %v981_v39  ;;  %v1060_v36 = vmul.f32 0.0078125, %v983_v35  ;;  %v935_v50 = vmul.f32 %v7647_v30, %v7647_v30  ;;  %6152 = vrsqrt.f32 %v1106_v9 }
 0x246   : > { %v1240_v40 = vpack.c.bf16 %v1199_v37, %v1198_v57  ;;  %v1200_v23 = vmul.f32 %v6149_v46, %v7454_v44 }
 0x247   : > { %v6151_v60 = vpop.eup %6150  ;;  %v1107_v31 = vadd.f32 1e-05, %v1059_v43  ;;  %v1108_v27 = vadd.f32 1e-05, %v1060_v36  ;;  %1020 = vadd.xlane.f32.xlu1 %v935_v50 }
 0x248   : > { %v985_v26 = vpop.xlane.xlu1 %984  ;;  %5809 = vmatprep.mubr.bf16.mxu0 %v1240_v40  ;;  %v782_v56 = vpop.xlane.xlu0 %781  ;;  %v1201_v29 = vmul.f32 %v6151_v60, %v7462_v61 }
 0x249   : > { %6154 = vrsqrt.f32 %v1107_v31  ;;  %v1061_v41 = vmul.f32 0.0078125, %v985_v26  ;;  %v840_v58 = vmul.f32 0.0078125, %v782_v56 }
 0x24a   : > { %v1241_v53 = vpack.c.bf16 %v1201_v29, %v1200_v23  ;;  %6156 = vrsqrt.f32 %v1108_v27 }
 0x24b   : > { %v1109_v39 = vadd.f32 1e-05, %v1061_v41  ;;  %v7656_v35 = vsub.f32 %v7507_v45, %v840_v58 }
 0x24c   : > { %v784_v9 = vpop.xlane.xlu1 %783  ;;  %5810 = vmatmul.mubr.bf16.gmra.mrb[12].mxu0 %v1241_v53  ;;  %v786_v57 = vpop.xlane.xlu0 %785 }
 0x24d   : > { %6158 = vrsqrt.f32 %v1109_v39  ;;  %v841_v37 = vmul.f32 0.0078125, %v784_v9  ;;  %v842_v43 = vmul.f32 0.0078125, %v786_v57  ;;  %v936_v44 = vmul.f32 %v7656_v35, %v7656_v35 }
 0x24f   : > { %1022 = vadd.xlane.f32.xlu0 %v936_v44  ;;  %v7661_v61 = vsub.f32 %v7513_v0, %v841_v37  ;;  %v7664_v46 = vsub.f32 %v7515_v14, %v842_v43  ;;  %v6153_v40 = vpop.eup %6152 }
 0x250   : > { %v788_v36 = vpop.xlane.xlu1 %787  ;;  %v987_v50 = vpop.xlane.xlu0 %986  ;;  %v1202_v58 = vmul.f32 %v6153_v40, %v7480_v47 }
 0x251   : > { %v843_v60 = vmul.f32 0.0078125, %v788_v36  ;;  %v1062_v31 = vmul.f32 0.0078125, %v987_v50  ;;  %v937_v27 = vmul.f32 %v7661_v61, %v7661_v61  ;;  %v938_v26 = vmul.f32 %v7664_v46, %v7664_v46 }
 0x253   : > { %v6155_v56 = vpop.eup %6154  ;;  %v1110_v23 = vadd.f32 1e-05, %v1062_v31  ;;  %1024 = vadd.xlane.f32.xlu1 %v937_v27  ;;  %1026 = vadd.xlane.f32.xlu0 %v938_v26  ;;  %v7671_v29 = vsub.f32 %v7522_v54, %v843_v60 }
 0x254   : > { %v989_v41 = vpop.xlane.xlu1 %988  ;;  %v1203_v53 = vmul.f32 %v6155_v56, %v7489_v12  ;;  %v6157_v39 = vpop.eup %6156 }
 0x255   : > { %v1063_v9 = vmul.f32 0.0078125, %v989_v41  ;;  %v939_v57 = vmul.f32 %v7671_v29, %v7671_v29  ;;  %6160 = vrsqrt.f32 %v1110_v23  ;;  %v1204_v36 = vmul.f32 %v6157_v39, %v7492_v3 }
 0x256   : > { %v1242_v37 = vpack.c.bf16 %v1203_v53, %v1202_v58 }
 0x257   : > { %v6159_v43 = vpop.eup %6158  ;;  %v1111_v44 = vadd.f32 1e-05, %v1063_v9  ;;  %1028 = vadd.xlane.f32.xlu1 %v939_v57 }
 0x258   : > { %5813 = vmatprep.mubr.bf16.mxu0 %v1242_v37  ;;  %v1205_v50 = vmul.f32 %v6159_v43, %v7500_v25 }
 0x259   : > { %6162 = vrsqrt.f32 %v1111_v44 }
 0x25a   : > { %v1243_v60 = vpack.c.bf16 %v1205_v50, %v1204_v36 }
 0x25c   : > { %5814 = vmatmul.mubr.bf16.gmra.mrb[16].mxu0 %v1243_v60 }
 0x25f   : > { %v6161_v47 = vpop.eup %6160 }
 0x260   : > { %v1206_v40 = vmul.f32 %v6161_v47, %v7518_v20 }
 0x263   : > { %v6163_v12 = vpop.eup %6162 }
 0x264   : > { %v1207_v31 = vmul.f32 %v6163_v12, %v7527_v38 }
 0x266   : > { %v1244_v27 = vpack.c.bf16 %v1207_v31, %v1206_v40 }
 0x268   : > { %5817 = vmatprep.mubr.bf16.mxu0 %v1244_v27 }
 0x29c   : > { %v991_v26 = vpop.xlane.xlu0 %990 }
 0x29d   : > { %v1064_v56 = vmul.f32 0.0078125, %v991_v26 }
 0x29f   : > { %v1112_v23 = vadd.f32 1e-05, %v1064_v56 }
 0x2a0   : > { %v993_v41 = vpop.xlane.xlu1 %992  ;;  %v790_v58 = vpop.xlane.xlu0 %789 }
 0x2a1   : > { %v1065_v53 = vmul.f32 0.0078125, %v993_v41  ;;  %v844_v3 = vmul.f32 0.0078125, %v790_v58  ;;  %6164 = vrsqrt.f32 %v1112_v23 }
 0x2a3   : > { %v1113_v25 = vadd.f32 1e-05, %v1065_v53  ;;  %v7682_v39 = vsub.f32 %v7543_v63, %v844_v3 }
 0x2a4   : > { %v792_v9 = vpop.xlane.xlu1 %791  ;;  %v794_v57 = vpop.xlane.xlu0 %793 }
 0x2a5   : > { %6166 = vrsqrt.f32 %v1113_v25  ;;  %v845_v20 = vmul.f32 0.0078125, %v792_v9  ;;  %v846_v37 = vmul.f32 0.0078125, %v794_v57  ;;  %v940_v38 = vmul.f32 %v7682_v39, %v7682_v39 }
 0x2a7   : > { %1030 = vadd.xlane.f32.xlu0 %v940_v38  ;;  %v7687_v43 = vsub.f32 %v7551_v4, %v845_v20  ;;  %v7690_v44 = vsub.f32 %v7553_v2, %v846_v37 }
 0x2a8   : > { %v796_v36 = vpop.xlane.xlu1 %795  ;;  %v995_v50 = vpop.xlane.xlu0 %994 }
 0x2a9   : > { %v847_v60 = vmul.f32 0.0078125, %v796_v36  ;;  %v1066_v47 = vmul.f32 0.0078125, %v995_v50  ;;  %v941_v12 = vmul.f32 %v7687_v43, %v7687_v43  ;;  %v942_v40 = vmul.f32 %v7690_v44, %v7690_v44 }
 0x2ab   : > { %v1114_v31 = vadd.f32 1e-05, %v1066_v47  ;;  %1032 = vadd.xlane.f32.xlu1 %v941_v12  ;;  %1034 = vadd.xlane.f32.xlu0 %v942_v40  ;;  %v7697_v27 = vsub.f32 %v7562_v1, %v847_v60  ;;  %v6165_v23 = vpop.eup %6164 }
 0x2ac   : > { %v997_v26 = vpop.xlane.xlu1 %996  ;;  %v999_v56 = vpop.xlane.xlu0 %998  ;;  %v1208_v37 = vmul.f32 %v6165_v23, %v7533_v59 }
 0x2ad   : > { %v1067_v41 = vmul.f32 0.0078125, %v997_v26  ;;  %v1068_v58 = vmul.f32 0.0078125, %v999_v56  ;;  %v943_v53 = vmul.f32 %v7697_v27, %v7697_v27  ;;  %6168 = vrsqrt.f32 %v1114_v31 }
 0x2af   : > { %v6167_v3 = vpop.eup %6166  ;;  %v1115_v25 = vadd.f32 1e-05, %v1067_v41  ;;  %v1116_v9 = vadd.f32 1e-05, %v1068_v58  ;;  %1036 = vadd.xlane.f32.xlu1 %v943_v53 }
 0x2b0   : > { %v1001_v57 = vpop.xlane.xlu1 %1000  ;;  %v798_v20 = vpop.xlane.xlu0 %797  ;;  %v1209_v38 = vmul.f32 %v6167_v3, %v7541_v62 }
 0x2b1   : > { %6170 = vrsqrt.f32 %v1115_v25  ;;  %v1069_v36 = vmul.f32 0.0078125, %v1001_v57  ;;  %v848_v50 = vmul.f32 0.0078125, %v798_v20 }
 0x2b2   : > { %v1245_v60 = vpack.c.bf16 %v1209_v38, %v1208_v37  ;;  %6172 = vrsqrt.f32 %v1116_v9 }
 0x2b3   : > { %v1117_v47 = vadd.f32 1e-05, %v1069_v36  ;;  %v7704_v12 = vsub.f32 %v7585_v18, %v848_v50 }
 0x2b4   : > { %v800_v40 = vpop.xlane.xlu1 %799  ;;  %5818 = vmatmul.mubr.bf16.gmra.mrb[20].mxu0 %v1245_v60  ;;  %v1003_v31 = vpop.xlane.xlu0 %1002 }
 0x2b5   : > { %6174 = vrsqrt.f32 %v1117_v47  ;;  %v849_v26 = vmul.f32 0.0078125, %v800_v40  ;;  %v1070_v56 = vmul.f32 0.0078125, %v1003_v31  ;;  %v944_v59 = vmul.f32 %v7704_v12, %v7704_v12 }
 0x2b7   : > { %v1118_v23 = vadd.f32 1e-05, %v1070_v56  ;;  %1038 = vadd.xlane.f32.xlu0 %v944_v59  ;;  %v7709_v62 = vsub.f32 %v7593_v15, %v849_v26  ;;  %v6169_v58 = vpop.eup %6168 }
 0x2b8   : > { %v1005_v41 = vpop.xlane.xlu1 %1004  ;;  %v1210_v20 = vmul.f32 %v6169_v58, %v7558_v52 }
 0x2b9   : > { %v1071_v53 = vmul.f32 0.0078125, %v1005_v41  ;;  %v945_v3 = vmul.f32 %v7709_v62, %v7709_v62  ;;  %6176 = vrsqrt.f32 %v1118_v23 }
 0x2bb   : > { %v6171_v25 = vpop.eup %6170  ;;  %v1119_v9 = vadd.f32 1e-05, %v1071_v53  ;;  %1040 = vadd.xlane.f32.xlu1 %v945_v3 }
 0x2bc   : > { %v1007_v57 = vpop.xlane.xlu0 %1006  ;;  %v1211_v37 = vmul.f32 %v6171_v25, %v7567_v16  ;;  %v6173_v38 = vpop.eup %6172 }
 0x2bd   : > { %6178 = vrsqrt.f32 %v1119_v9  ;;  %v1072_v36 = vmul.f32 0.0078125, %v1007_v57  ;;  %v1212_v26 = vmul.f32 %v6173_v38, %v7573_v6 }
 0x2be   : > { %v1246_v50 = vpack.c.bf16 %v1211_v37, %v1210_v20 }
 0x2bf   : > { %v6175_v60 = vpop.eup %6174  ;;  %v1120_v47 = vadd.f32 1e-05, %v1072_v36 }
 0x2c0   : > { %v1009_v40 = vpop.xlane.xlu1 %1008  ;;  %5821 = vmatprep.mubr.bf16.mxu0 %v1246_v50  ;;  %v1011_v31 = vpop.xlane.xlu0 %1010  ;;  %v1213_v56 = vmul.f32 %v6175_v60, %v7583_v10 }
 0x2c1   : > { %v1073_v59 = vmul.f32 0.0078125, %v1009_v40  ;;  %v1074_v23 = vmul.f32 0.0078125, %v1011_v31  ;;  %6180 = vrsqrt.f32 %v1120_v47 }
 0x2c2   : > { %v1247_v41 = vpack.c.bf16 %v1213_v56, %v1212_v26 }
 0x2c3   : > { %v1121_v52 = vadd.f32 1e-05, %v1073_v59  ;;  %v1122_v58 = vadd.f32 1e-05, %v1074_v23  ;;  %v6177_v53 = vpop.eup %6176 }
 0x2c4   : > { %v1013_v16 = vpop.xlane.xlu1 %1012  ;;  %5822 = vmatmul.mubr.bf16.gmra.mrb[24].mxu0 %v1247_v41  ;;  %v1214_v57 = vmul.f32 %v6177_v53, %v7588_v5 }
 0x2c5   : > { %6182 = vrsqrt.f32 %v1121_v52  ;;  %v1075_v3 = vmul.f32 0.0078125, %v1013_v16 }
 0x2c6   : > { %6184 = vrsqrt.f32 %v1122_v58 }
 0x2c7   : > { %v6179_v25 = vpop.eup %6178  ;;  %v1123_v9 = vadd.f32 1e-05, %v1075_v3 }
 0x2c8   : > { %v1215_v6 = vmul.f32 %v6179_v25, %v7598_v32 }
 0x2c9   : > { %6186 = vrsqrt.f32 %v1123_v9 }
 0x2ca   : > { %v1248_v10 = vpack.c.bf16 %v1215_v6, %v1214_v57 }
 0x2cb   : > { %v6181_v37 = vpop.eup %6180 }
 0x2cc   : > { %5825 = vmatprep.mubr.bf16.mxu0 %v1248_v10  ;;  %v1015_v20 = vpop.xlane.xlu0 %1014  ;;  %v1216_v40 = vmul.f32 %v6181_v37, %v7608_v13 }
 0x2cd   : > { %v1076_v38 = vmul.f32 0.0078125, %v1015_v20 }
 0x2cf   : > { %v6183_v36 = vpop.eup %6182  ;;  %v1124_v50 = vadd.f32 1e-05, %v1076_v38 }
 0x2d0   : > { %v1017_v60 = vpop.xlane.xlu1 %1016  ;;  %v1019_v47 = vpop.xlane.xlu0 %1018  ;;  %v1217_v31 = vmul.f32 %v6183_v36, %v7613_v11 }
 0x2d1   : > { %v6185_v26 = vpop.eup %6184  ;;  %v1077_v56 = vmul.f32 0.0078125, %v1017_v60  ;;  %v1078_v59 = vmul.f32 0.0078125, %v1019_v47  ;;  %6188 = vrsqrt.f32 %v1124_v50 }
 0x2d2   : > { %v1249_v5 = vpack.c.bf16 %v1217_v31, %v1216_v40  ;;  %v1218_v58 = vmul.f32 %v6185_v26, %v7616_v19 }
 0x2d3   : > { %v6187_v23 = vpop.eup %6186  ;;  %v1125_v32 = vadd.f32 1e-05, %v1077_v56  ;;  %v1126_v41 = vadd.f32 1e-05, %v1078_v59 }
 0x2d4   : > { %v1021_v52 = vpop.xlane.xlu1 %1020  ;;  %5826 = vmatmul.mubr.bf16.gmra.mrb[28].mxu0 %v1249_v5  ;;  %v1219_v16 = vmul.f32 %v6187_v23, %v7623_v55  ;;  %v7732_v23 = vld [vmem:[%s376_s12] ss:$0 sm:$0xff] }
 0x2d5   : > { %6190 = vrsqrt.f32 %v1125_v32  ;;  %v1079_v53 = vmul.f32 0.0078125, %v1021_v52 }
 0x2d6   : > { %v1250_v3 = vpack.c.bf16 %v1219_v16, %v1218_v58  ;;  %6192 = vrsqrt.f32 %v1126_v41 }
 0x2d7   : > { %v1127_v13 = vadd.f32 1e-05, %v1079_v53 }
 0x2d8   : > { %5829 = vmatprep.mubr.bf16.mxu0 %v1250_v3 }
 0x2d9   : > { %6194 = vrsqrt.f32 %v1127_v13 }
 0x2db   : > { %v6189_v25 = vpop.eup %6188 }
 0x2dc   : > { %v1023_v11 = vpop.xlane.xlu0 %1022  ;;  %v1220_v37 = vmul.f32 %v6189_v25, %v7632_v51 }
 0x2dd   : > { %v1080_v9 = vmul.f32 0.0078125, %v1023_v11 }
 0x2df   : > { %v6191_v57 = vpop.eup %6190  ;;  %v1128_v6 = vadd.f32 1e-05, %v1080_v9  ;;  %v10574_v9 = vld [vmem:[#allocation8_spill] sm:$0xff] }
 0x2e0   : > { %v1025_v10 = vpop.xlane.xlu1 %1024  ;;  %v1027_v20 = vpop.xlane.xlu0 %1026  ;;  %v1221_v19 = vmul.f32 %v6191_v57, %v7637_v49 }
 0x2e1   : > { %v6193_v38 = vpop.eup %6192  ;;  %v1081_v55 = vmul.f32 0.0078125, %v1025_v10  ;;  %v1082_v36 = vmul.f32 0.0078125, %v1027_v20  ;;  %6196 = vrsqrt.f32 %v1128_v6  ;;  %v10576_v20 = vld [vmem:[#allocation10_spill] sm:$0xff] }
 0x2e2   : > { %v1251_v50 = vpack.c.bf16 %v1221_v19, %v1220_v37  ;;  %v1222_v26 = vmul.f32 %v6193_v38, %v7640_v24  ;;  %v10578_v38 = vld [vmem:[#allocation9_spill] sm:$0xff] }
 0x2e3   : > { %v6195_v60 = vpop.eup %6194  ;;  %v1129_v47 = vadd.f32 1e-05, %v1081_v55  ;;  %v1130_v40 = vadd.f32 1e-05, %v1082_v36  ;;  %v10580_v36 = vld [vmem:[#allocation11_spill] sm:$0xff] }
 0x2e4   : > { %v1029_v31 = vpop.xlane.xlu1 %1028  ;;  %5830 = vmatmul.mubr.bf16.gmra.mrb[32].mxu0 %v1251_v50  ;;  %v1223_v56 = vmul.f32 %v6195_v60, %v7647_v30 }
 0x2e5   : > { %6198 = vrsqrt.f32 %v1129_v47  ;;  %v1083_v59 = vmul.f32 0.0078125, %v1029_v31 }
 0x2e6   : > { %v1252_v51 = vpack.c.bf16 %v1223_v56, %v1222_v26  ;;  %6200 = vrsqrt.f32 %v1130_v40  ;;  %v10582_v26 = vld [vmem:[#allocation12_spill] sm:$0xff] }
 0x2e7   : > { %v1131_v49 = vadd.f32 1e-05, %v1083_v59 }
 0x2e8   : > { %5833 = vmatprep.mubr.bf16.mxu0 %v1252_v51 }
 0x2e9   : > { %6202 = vrsqrt.f32 %v1131_v49  ;;  %v10584_v49 = vld [vmem:[#allocation13_spill] sm:$0xff] }
 0x2eb   : > { %v6197_v5 = vpop.eup %6196 }
 0x2ec   : > { %v1224_v24 = vmul.f32 %v6197_v5, %v7656_v35 }
 0x2ef   : > { %v6199_v32 = vpop.eup %6198  ;;  %v5799_v41 = vpop.f32.mrb[0].mxu0 }
 0x2f0   : > { %v1346_v52 = vpop.f32.mrb[1].mxu0  ;;  %v1225_v30 = vmul.f32 %v6199_v32, %v7661_v61  ;;  %v6201_v58 = vpop.eup %6200  ;;  %v1355_v25 = vadd.f32 %v5799_v41, %v7732_v23  ;;  %v10586_v32 = vld [vmem:[#allocation14_spill] sm:$0xff] }
 0x2f1   : > { %v1347_v16 = vadd.f32 %v7732_v23, %v1346_v52  ;;  %v5800_v53 = vpop.f32.mrb[2].mxu0  ;;  %v1226_v10 = vmul.f32 %v6201_v58, %v7664_v46  ;;  %v10588_v52 = vld [vmem:[#allocation15_spill] sm:$0xff] }
 0x2f2   : > { %v1349_v3 = vpop.f32.mrb[3].mxu0  ;;  %v1253_v13 = vpack.c.bf16 %v1225_v30, %v1224_v24  ;;  %v1358_v61 = vadd.f32 %v5800_v53, %v7732_v23  ;;  %v7750_v55 = vadd.f32 %v10578_v38, %v1355_v25 }
 0x2f3   : > { %v6203_v11 = vpop.eup %6202  ;;  %v7739_v57 = vadd.f32 %v10574_v9, %v1347_v16  ;;  %v1350_v6 = vadd.f32 %v7732_v23, %v1349_v3 }
 0x2f4   : > { %5834 = vmatmul.mubr.bf16.gmra.mrb[36].mxu0 %v1253_v13  ;;  %v1227_v35 = vmul.f32 %v6203_v11, %v7671_v29  ;;  %10579 = vst [vmem:[#allocation9_spill] sm:$0xff] %v7750_v55  ;;  %v7754_v50 = vadd.f32 %v10580_v36, %v1358_v61  ;;  %v10590_v11 = vld [vmem:[#allocation16_spill] sm:$0xff]  ;;  %v10594_v61 = vld [vmem:[#allocation18_spill] sm:$0xff] }
 0x2f5   : > { %10575 = vst [vmem:[#allocation8_spill] sm:$0xff] %v7739_v57  ;;  %v7746_v37 = vadd.f32 %v10576_v20, %v1350_v6  ;;  %1585 = vadd.xlane.f32.xlu0 %v7739_v57 }
 0x2f6   : > { %v1254_v19 = vpack.c.bf16 %v1227_v35, %v1226_v10  ;;  %10581 = vst [vmem:[#allocation11_spill] sm:$0xff] %v7754_v50  ;;  %v10592_v10 = vld [vmem:[#allocation17_spill] sm:$0xff] }
 0x2f7   : > { %10577 = vst [vmem:[#allocation10_spill] sm:$0xff] %v7746_v37  ;;  %1587 = vadd.xlane.f32.xlu1 %v7746_v37 }
 0x2f8   : > { %5837 = vmatprep.mubr.bf16.mxu0 %v1254_v19  ;;  %v10596_v19 = vld [vmem:[#allocation19_spill] sm:$0xff] }
 0x2f9   : > { %1589 = vadd.xlane.f32.xlu0 %v7750_v55 }
 0x2fb   : > { %1591 = vadd.xlane.f32.xlu1 %v7754_v50 }
 0x2ff   : > { %v5803_v46 = vpop.f32.mrb[4].mxu0 }
 0x300   : > { %v1362_v29 = vpop.f32.mrb[5].mxu0  ;;  %v1371_v31 = vadd.f32 %v5803_v46, %v7732_v23 }
 0x301   : > { %v1363_v60 = vadd.f32 %v7732_v23, %v1362_v29  ;;  %v5804_v47 = vpop.f32.mrb[6].mxu0 }
 0x302   : > { %v1365_v40 = vpop.f32.mrb[7].mxu0  ;;  %v1374_v51 = vadd.f32 %v5804_v47, %v7732_v23  ;;  %v7770_v41 = vadd.f32 %v10586_v32, %v1371_v31  ;;  %v10598_v31 = vld [vmem:[#allocation20_spill] sm:$0xff] }
 0x303   : > { %v7761_v56 = vadd.f32 %v10582_v26, %v1363_v60  ;;  %v1366_v59 = vadd.f32 %v7732_v23, %v1365_v40 }
 0x304   : > { %10587 = vst [vmem:[#allocation14_spill] sm:$0xff] %v7770_v41  ;;  %v7774_v24 = vadd.f32 %v10588_v52, %v1374_v51  ;;  %v10602_v52 = vld [vmem:[#allocation22_spill] sm:$0xff] }
 0x305   : > { %10583 = vst [vmem:[#allocation12_spill] sm:$0xff] %v7761_v56  ;;  %v7766_v5 = vadd.f32 %v10584_v49, %v1366_v59  ;;  %1593 = vadd.xlane.f32.xlu0 %v7761_v56  ;;  %v10600_v49 = vld [vmem:[#allocation21_spill] sm:$0xff] }
 0x306   : > { %10589 = vst [vmem:[#allocation15_spill] sm:$0xff] %v7774_v24 }
 0x307   : > { %10585 = vst [vmem:[#allocation13_spill] sm:$0xff] %v7766_v5  ;;  %1595 = vadd.xlane.f32.xlu1 %v7766_v5 }
 0x309   : > { %1597 = vadd.xlane.f32.xlu0 %v7770_v41 }
 0x30b   : > { %1599 = vadd.xlane.f32.xlu1 %v7774_v24 }
 0x30f   : > { %v5807_v30 = vpop.f32.mrb[8].mxu0 }
 0x310   : > { %v1378_v58 = vpop.f32.mrb[9].mxu0  ;;  %v1387_v13 = vadd.f32 %v5807_v30, %v7732_v23 }
 0x311   : > { %v1379_v16 = vadd.f32 %v7732_v23, %v1378_v58  ;;  %v5808_v53 = vpop.f32.mrb[10].mxu0  ;;  %v10604_v58 = vld [vmem:[#allocation23_spill] sm:$0xff] }
 0x312   : > { %v1381_v3 = vpop.f32.mrb[11].mxu0  ;;  %v1390_v6 = vadd.f32 %v5808_v53, %v7732_v23  ;;  %v7790_v20 = vadd.f32 %v10594_v61, %v1387_v13 }
 0x313   : > { %v7781_v25 = vadd.f32 %v10590_v11, %v1379_v16  ;;  %v1382_v9 = vadd.f32 %v7732_v23, %v1381_v3 }
 0x314   : > { %10595 = vst [vmem:[#allocation18_spill] sm:$0xff] %v7790_v20  ;;  %v7794_v38 = vadd.f32 %v10596_v19, %v1390_v6 }
 0x315   : > { %10591 = vst [vmem:[#allocation16_spill] sm:$0xff] %v7781_v25  ;;  %v7786_v35 = vadd.f32 %v10592_v10, %v1382_v9  ;;  %1601 = vadd.xlane.f32.xlu0 %v7781_v25  ;;  %v10606_v10 = vld [vmem:[#allocation24_spill] sm:$0xff] }
 0x316   : > { %10597 = vst [vmem:[#allocation19_spill] sm:$0xff] %v7794_v38 }
 0x317   : > { %10593 = vst [vmem:[#allocation17_spill] sm:$0xff] %v7786_v35  ;;  %1603 = vadd.xlane.f32.xlu1 %v7786_v35 }
 0x319   : > { %1605 = vadd.xlane.f32.xlu0 %v7790_v20 }
 0x31b   : > { %1607 = vadd.xlane.f32.xlu1 %v7794_v38 }
 0x31f   : > { %v5811_v36 = vpop.f32.mrb[12].mxu0 }
 0x320   : > { %v1394_v46 = vpop.f32.mrb[13].mxu0  ;;  %v1403_v40 = vadd.f32 %v5811_v36, %v7732_v23 }
 0x321   : > { %v1395_v29 = vadd.f32 %v7732_v23, %v1394_v46  ;;  %v5812_v60 = vpop.f32.mrb[14].mxu0 }
 0x322   : > { %v1397_v47 = vpop.f32.mrb[15].mxu0  ;;  %v1406_v51 = vadd.f32 %v5812_v60, %v7732_v23  ;;  %v7810_v30 = vadd.f32 %v10602_v52, %v1403_v40  ;;  %v10610_v40 = vld [vmem:[#allocation26_spill] sm:$0xff]  ;;  %v10612_v52 = vld [vmem:[#allocation27_spill] sm:$0xff] }
 0x323   : > { %v7801_v26 = vadd.f32 %v10598_v31, %v1395_v29  ;;  %v1398_v59 = vadd.f32 %v7732_v23, %v1397_v47  ;;  %v10608_v29 = vld [vmem:[#allocation25_spill] sm:$0xff] }
 0x324   : > { %10603 = vst [vmem:[#allocation22_spill] sm:$0xff] %v7810_v30  ;;  %v7814_v16 = vadd.f32 %v10604_v58, %v1406_v51 }
 0x325   : > { %10599 = vst [vmem:[#allocation20_spill] sm:$0xff] %v7801_v26  ;;  %v7806_v32 = vadd.f32 %v10600_v49, %v1398_v59  ;;  %1609 = vadd.xlane.f32.xlu0 %v7801_v26 }
 0x326   : > { %10605 = vst [vmem:[#allocation23_spill] sm:$0xff] %v7814_v16 }
 0x327   : > { %10601 = vst [vmem:[#allocation21_spill] sm:$0xff] %v7806_v32  ;;  %1611 = vadd.xlane.f32.xlu1 %v7806_v32 }
 0x329   : > { %1613 = vadd.xlane.f32.xlu0 %v7810_v30 }
 0x32b   : > { %1615 = vadd.xlane.f32.xlu1 %v7814_v16 }
 0x32f   : > { %v5815_v53 = vpop.f32.mrb[16].mxu0 }
 0x330   : > { %v1410_v3 = vpop.f32.mrb[17].mxu0  ;;  %v1419_v6 = vadd.f32 %v5815_v53, %v7732_v23 }
 0x331   : > { %v1411_v13 = vadd.f32 %v7732_v23, %v1410_v3  ;;  %v5816_v11 = vpop.f32.mrb[18].mxu0 }
 0x332   : > { %v1413_v9 = vpop.f32.mrb[19].mxu0  ;;  %v1422_v46 = vadd.f32 %v5816_v11, %v7732_v23  ;;  %v7830_v31 = vadd.f32 %v10610_v40, %v1419_v6 }
 0x333   : > { %v7821_v61 = vadd.f32 %v10606_v10, %v1411_v13  ;;  %v1414_v19 = vadd.f32 %v7732_v23, %v1413_v9 }
 0x334   : > { %v1031_v36 = vpop.xlane.xlu0 %1030  ;;  %10611 = vst [vmem:[#allocation26_spill] sm:$0xff] %v7830_v31  ;;  %v7834_v58 = vadd.f32 %v10612_v52, %v1422_v46 }
 0x335   : > { %10607 = vst [vmem:[#allocation24_spill] sm:$0xff] %v7821_v61  ;;  %v7826_v60 = vadd.f32 %v10608_v29, %v1414_v19  ;;  %v1084_v47 = vmul.f32 0.0078125, %v1031_v36  ;;  %1617 = vadd.xlane.f32.xlu0 %v7821_v61 }
 0x336   : > { %10613 = vst [vmem:[#allocation27_spill] sm:$0xff] %v7834_v58 }
 0x337   : > { %10609 = vst [vmem:[#allocation25_spill] sm:$0xff] %v7826_v60  ;;  %v1132_v59 = vadd.f32 1e-05, %v1084_v47  ;;  %1619 = vadd.xlane.f32.xlu1 %v7826_v60 }
 0x338   : > { %v1033_v51 = vpop.xlane.xlu1 %1032  ;;  %v1035_v49 = vpop.xlane.xlu0 %1034 }
 0x339   : > { %v1085_v53 = vmul.f32 0.0078125, %v1033_v51  ;;  %v1086_v3 = vmul.f32 0.0078125, %v1035_v49  ;;  %1621 = vadd.xlane.f32.xlu0 %v7830_v31  ;;  %6204 = vrsqrt.f32 %v1132_v59 }
 0x33b   : > { %v1133_v13 = vadd.f32 1e-05, %v1085_v53  ;;  %v1134_v11 = vadd.f32 1e-05, %v1086_v3  ;;  %1623 = vadd.xlane.f32.xlu1 %v7834_v58 }
 0x33c   : > { %v1037_v9 = vpop.xlane.xlu1 %1036 }
 0x33d   : > { %6206 = vrsqrt.f32 %v1133_v13  ;;  %v1087_v6 = vmul.f32 0.0078125, %v1037_v9 }
 0x33e   : > { %6208 = vrsqrt.f32 %v1134_v11 }
 0x33f   : > { %v1135_v10 = vadd.f32 1e-05, %v1087_v6 }
 0x341   : > { %6210 = vrsqrt.f32 %v1135_v10  ;;  %v6040_v10 = vld [vmem:[%s6922_s8 + $0x4] ss:$16 sps:$4 sm:$0xff]  }
 0x342   : > { %2318 = vmatprep.subr.bf16.mxu1 %v6040_v10 }
 0x343   : > { %v6205_v36 = vpop.eup %6204 }
 0x344   : > { %v1039_v19 = vpop.xlane.xlu0 %1038  ;;  %v1228_v51 = vmul.f32 %v6205_v36, %v7682_v39  ;;  %v6044_v36 = vld [vmem:[%s6922_s8 + $0xc] ss:$16 sps:$4 sm:$0xff]  }
 0x345   : > { %v1088_v29 = vmul.f32 0.0078125, %v1039_v19  ;;  %v6042_v19 = vld [vmem:[%s6922_s8 + $0x8] ss:$16 sps:$4 sm:$0xff]   ;;  %2591 = vmatprep.subr.bf16.mxu0 %v6044_v36 }
 0x346   : > { %2592 = vmatpush1.bf16.msra.mxu0 %v6042_v19 }
 0x347   : > { %v6207_v46 = vpop.eup %6206  ;;  %v1136_v47 = vadd.f32 1e-05, %v1088_v29 }
 0x348   : > { %v1041_v40 = vpop.xlane.xlu1 %1040  ;;  %v1229_v59 = vmul.f32 %v6207_v46, %v7687_v43  ;;  %v6209_v49 = vpop.eup %6208 }
 0x349   : > { %v1089_v52 = vmul.f32 0.0078125, %v1041_v40  ;;  %6212 = vrsqrt.f32 %v1136_v47  ;;  %v1230_v11 = vmul.f32 %v6209_v49, %v7690_v44  ;;  %v6045_v44 = vld [vmem:[%s6922_s8] ss:$16 sps:$4 sm:$0xff]   ;;  %v6046_v47 = vld [vmem:[%s6922_s8 + $0x24] ss:$16 sps:$4 sm:$0xff]  }
 0x34a   : > { %v1255_v53 = vpack.c.bf16 %v1229_v59, %v1228_v51  ;;  %2319 = vmatpush1.bf16.msra.mxu1 %v6045_v44  ;;  %v6048_v51 = vld [vmem:[%s6922_s8 + $0x28] ss:$16 sps:$4 sm:$0xff]   ;;  %v6051_v59 = vld [vmem:[%s6922_s8 + $0x20] ss:$16 sps:$4 sm:$0xff]   ;;  %v6052_v49 = vld [vmem:[%s6922_s8 + $0x44] ss:$16 sps:$4 sm:$0xff]  }
 0x34b   : > { %v6211_v3 = vpop.eup %6210  ;;  %v1137_v13 = vadd.f32 1e-05, %v1089_v52  ;;  %2320 = vmatprep.subr.bf16.mxu1 %v6046_v47  ;;  %v6056_v52 = vld [vmem:[%s6922_s8 + $0x4c] ss:$16 sps:$4 sm:$0xff]  }
 0x34c   : > { %5838 = vmatmul.mubr.bf16.gmra.mrb[40].mxu0 %v1255_v53  ;;  %v1231_v9 = vmul.f32 %v6211_v3, %v7697_v27  ;;  %v6050_v27 = vld [vmem:[%s6922_s8 + $0x2c] ss:$16 sps:$4 sm:$0xff]  }
 0x34d   : > { %6214 = vrsqrt.f32 %v1137_v13  ;;  %2593 = vmatprep.subr.bf16.mxu0 %v6050_v27 }
 0x34e   : > { %v1256_v39 = vpack.c.bf16 %v1231_v9, %v1230_v11  ;;  %2321 = vmatpush1.bf16.msra.mxu1 %v6051_v59  ;;  %2594 = vmatpush1.bf16.msra.mxu0 %v6048_v51  ;;  %v10614_v59 = vld [vmem:[#allocation28_spill] sm:$0xff] }
 0x34f   : > { %2322 = vmatprep.subr.bf16.mxu1 %v6052_v49  ;;  %2595 = vmatprep.subr.bf16.mxu0 %v6056_v52 }
 0x350   : > { %5841 = vmatprep.mubr.bf16.mxu0 %v1256_v39 }
 0x353   : > { %v6213_v43 = vpop.eup %6212 }
 0x354   : > { %v1232_v29 = vmul.f32 %v6213_v43, %v7704_v12  ;;  %v6054_v12 = vld [vmem:[%s6922_s8 + $0x48] ss:$16 sps:$4 sm:$0xff]  }
 0x355   : > { %2596 = vmatpush1.bf16.msra.mxu0 %v6054_v12 }
 0x357   : > { %v6215_v6 = vpop.eup %6214 }
 0x358   : > { %v1233_v46 = vmul.f32 %v6215_v6, %v7709_v62  ;;  %v6057_v62 = vld [vmem:[%s6922_s8 + $0x40] ss:$16 sps:$4 sm:$0xff]  }
 0x359   : > { %2323 = vmatpush1.bf16.msra.mxu1 %v6057_v62  ;;  %v10616_v62 = vld [vmem:[#allocation29_spill] sm:$0xff] }
 0x35a   : > { %v1257_v40 = vpack.c.bf16 %v1233_v46, %v1232_v29 }
 0x35c   : > { %5842 = vmatmul.mubr.bf16.gmra.mrb[44].mxu0 %v1257_v40 }
 0x382   : > { %v1586_v53 = vpop.xlane.xlu0 %1585 }
 0x383   : > { %v1681_v3 = vmul.f32 0.0078125, %v1586_v53 }
 0x384   : > { %v1588_v13 = vpop.xlane.xlu1 %1587 }
 0x385   : > { %v7857_v11 = vsub.f32 %v7739_v57, %v1681_v3  ;;  %v1682_v9 = vmul.f32 0.0078125, %v1588_v13 }
 0x386   : > { %v1590_v39 = vpop.xlane.xlu0 %1589 }
 0x387   : > { %v7860_v43 = vsub.f32 %v7746_v37, %v1682_v9  ;;  %v1683_v6 = vmul.f32 0.0078125, %v1590_v39  ;;  %v5819_v10 = vpop.f32.mrb[20].mxu0  ;;  %v1777_v19 = vmul.f32 %v7857_v11, %v7857_v11 }
 0x388   : > { %v1592_v36 = vpop.xlane.xlu1 %1591  ;;  %v1426_v29 = vpop.f32.mrb[21].mxu0  ;;  %v1435_v3 = vadd.f32 %v5819_v10, %v7732_v23 }
 0x389   : > { %v1684_v46 = vmul.f32 0.0078125, %v1592_v36  ;;  %v1427_v44 = vadd.f32 %v7732_v23, %v1426_v29  ;;  %v5820_v47 = vpop.f32.mrb[22].mxu0  ;;  %1825 = vadd.xlane.f32.xlu0 %v1777_v19  ;;  %v1778_v27 = vmul.f32 %v7860_v43, %v7860_v43  ;;  %v7868_v51 = vsub.f32 %v7750_v55, %v1683_v6  ;;  %v10618_v19 = vld [vmem:[#allocation30_spill] sm:$0xff] }
 0x38a   : > { %v1429_v40 = vpop.f32.mrb[23].mxu0  ;;  %v1438_v9 = vadd.f32 %v5820_v47, %v7732_v23  ;;  %v7889_v36 = vadd.f32 %v10618_v19, %v1435_v3 }
 0x38b   : > { %v7871_v49 = vadd.f32 %v10614_v59, %v1427_v44  ;;  %v1430_v52 = vadd.f32 %v7732_v23, %v1429_v40  ;;  %1827 = vadd.xlane.f32.xlu1 %v1778_v27  ;;  %v7875_v12 = vsub.f32 %v7754_v50, %v1684_v46  ;;  %v1779_v13 = vmul.f32 %v7868_v51, %v7868_v51  ;;  %v10620_v46 = vld [vmem:[#allocation31_spill] sm:$0xff] }
 0x38c   : > { %10619 = vst [vmem:[#allocation30_spill] sm:$0xff] %v7889_v36  ;;  %v7892_v44 = vadd.f32 %v10620_v46, %v1438_v9  ;;  %v6068_v50 = vld [vmem:[%s6922_s8 + $0x8c] ss:$16 sps:$4 sm:$0xff]  }
 0x38d   : > { %10615 = vst [vmem:[#allocation28_spill] sm:$0xff] %v7871_v49  ;;  %v7878_v53 = vadd.f32 %v10616_v62, %v1430_v52  ;;  %1625 = vadd.xlane.f32.xlu0 %v7871_v49  ;;  %v1780_v39 = vmul.f32 %v7875_v12, %v7875_v12 }
 0x38e   : > { %10621 = vst [vmem:[#allocation31_spill] sm:$0xff] %v7892_v44 }
 0x38f   : > { %10617 = vst [vmem:[#allocation29_spill] sm:$0xff] %v7878_v53  ;;  %1627 = vadd.xlane.f32.xlu1 %v7878_v53 }
 0x391   : > { %1829 = vadd.xlane.f32.xlu0 %v1779_v13 }
 0x392   : > { %v1594_v6 = vpop.xlane.xlu0 %1593 }
 0x393   : > { %v1685_v29 = vmul.f32 0.0078125, %v1594_v6  ;;  %1831 = vadd.xlane.f32.xlu1 %v1780_v39  ;;  %v6058_v39 = vld [vmem:[%s6922_s8 + $0x64] ss:$16 sps:$4 sm:$0xff]   ;;  %v6062_v6 = vld [vmem:[%s6922_s8 + $0x6c] ss:$16 sps:$4 sm:$0xff]  }
 0x394   : > { %v1596_v10 = vpop.xlane.xlu1 %1595  ;;  %2324 = vmatprep.subr.bf16.mxu1 %v6058_v39  ;;  %2597 = vmatprep.subr.bf16.mxu0 %v6062_v6 }
 0x395   : > { %v7895_v27 = vsub.f32 %v7761_v56, %v1685_v29  ;;  %v1686_v47 = vmul.f32 0.0078125, %v1596_v10  ;;  %1629 = vadd.xlane.f32.xlu0 %v7889_v36 }
 0x396   : > { %v1598_v40 = vpop.xlane.xlu0 %1597 }
 0x397   : > { %v7899_v59 = vsub.f32 %v7766_v5, %v1686_v47  ;;  %v1687_v52 = vmul.f32 0.0078125, %v1598_v40  ;;  %1631 = vadd.xlane.f32.xlu1 %v7892_v44  ;;  %v5823_v62 = vpop.f32.mrb[24].mxu0  ;;  %v1781_v3 = vmul.f32 %v7895_v27, %v7895_v27  ;;  %v6060_v47 = vld [vmem:[%s6922_s8 + $0x68] ss:$16 sps:$4 sm:$0xff]   ;;  %v6063_v40 = vld [vmem:[%s6922_s8 + $0x60] ss:$16 sps:$4 sm:$0xff]  }
 0x398   : > { %v1600_v13 = vpop.xlane.xlu1 %1599  ;;  %v1442_v9 = vpop.f32.mrb[25].mxu0  ;;  %2325 = vmatpush1.bf16.msra.mxu1 %v6063_v40  ;;  %2598 = vmatpush1.bf16.msra.mxu0 %v6060_v47  ;;  %v6075_v47 = vld [vmem:[%s6922_s8 + $0xa0] ss:$16 sps:$4 sm:$0xff]  }
 0x399   : > { %v1688_v19 = vmul.f32 0.0078125, %v1600_v13  ;;  %v1443_v29 = vadd.f32 %v7732_v23, %v1442_v9  ;;  %v5824_v10 = vpop.f32.mrb[26].mxu0  ;;  %1833 = vadd.xlane.f32.xlu0 %v1781_v3  ;;  %v1782_v46 = vmul.f32 %v7899_v59, %v7899_v59  ;;  %v7912_v56 = vsub.f32 %v7770_v41, %v1687_v52  ;;  %v6064_v3 = vld [vmem:[%s6922_s8 + $0x84] ss:$16 sps:$4 sm:$0xff]   ;;  %v6069_v52 = vld [vmem:[%s6922_s8 + $0x80] ss:$16 sps:$4 sm:$0xff]   ;;  %2599 = vmatprep.subr.bf16.mxu0 %v6068_v50 }
 0x39a   : > { %v1445_v5 = vpop.f32.mrb[27].mxu0  ;;  %2326 = vmatprep.subr.bf16.mxu1 %v6064_v3  ;;  %v6072_v50 = vld [vmem:[%s6922_s8 + $0xa8] ss:$16 sps:$4 sm:$0xff]   ;;  %v10624_v40 = vld [vmem:[#allocation32_spill] sm:$0xff] }
 0x39b   : > { %v7915_v13 = vadd.f32 %v7354_v42, %v1443_v29  ;;  %v1446_v9 = vadd.f32 %v7732_v23, %v1445_v5  ;;  %1835 = vadd.xlane.f32.xlu1 %v1782_v46  ;;  %v7921_v55 = vsub.f32 %v7774_v24, %v1688_v19  ;;  %v6066_v42 = vld [vmem:[%s6922_s8 + $0x88] ss:$16 sps:$4 sm:$0xff]   ;;  %v1451_v5 = vadd.f32 %v5823_v62, %v7732_v23  ;;  %v6070_v19 = vld [vmem:[%s6922_s8 + $0xa4] ss:$16 sps:$4 sm:$0xff]  }
 0x39c   : > { %v1783_v6 = vmul.f32 %v7912_v56, %v7912_v56  ;;  %2327 = vmatpush1.bf16.msra.mxu1 %v6069_v52  ;;  %2600 = vmatpush1.bf16.msra.mxu0 %v6066_v42  ;;  %v1454_v29 = vadd.f32 %v5824_v10, %v7732_v23  ;;  %v6076_v10 = vld [vmem:[%s6922_s8 + $0xc4] ss:$16 sps:$4 sm:$0xff]   ;;  %v6080_v52 = vld [vmem:[%s6922_s8 + $0xcc] ss:$16 sps:$4 sm:$0xff]  }
 0x39d   : > { %10622 = vst [vmem:[#allocation36_spill] sm:$0xff] %v7915_v13  ;;  %v7924_v39 = vadd.f32 %v7362_v48, %v1446_v9  ;;  %1633 = vadd.xlane.f32.xlu0 %v7915_v13  ;;  %v6074_v48 = vld [vmem:[%s6922_s8 + $0xac] ss:$16 sps:$4 sm:$0xff]   ;;  %v1784_v46 = vmul.f32 %v7921_v55, %v7921_v55  ;;  %2328 = vmatprep.subr.bf16.mxu1 %v6070_v19  ;;  %v6081_v19 = vld [vmem:[%s6922_s8 + $0xc0] ss:$16 sps:$4 sm:$0xff]  }
 0x39e   : > { %2601 = vmatprep.subr.bf16.mxu0 %v6074_v48  ;;  %v7941_v9 = vadd.f32 %v10624_v40, %v1451_v5  ;;  %v6078_v5 = vld [vmem:[%s6922_s8 + $0xc8] ss:$16 sps:$4 sm:$0xff]  }
 0x39f   : > { %10623 = vst [vmem:[#allocation37_spill] sm:$0xff] %v7924_v39  ;;  %1635 = vadd.xlane.f32.xlu1 %v7924_v39 }
 0x3a0   : > { %10625 = vst [vmem:[#allocation32_spill] sm:$0xff] %v7941_v9  ;;  %2329 = vmatpush1.bf16.msra.mxu1 %v6075_v47  ;;  %2602 = vmatpush1.bf16.msra.mxu0 %v6072_v50 }
 0x3a1   : > { %1837 = vadd.xlane.f32.xlu0 %v1783_v6  ;;  %v10626_v6 = vld [vmem:[#allocation33_spill] sm:$0xff]  ;;  %2330 = vmatprep.subr.bf16.mxu1 %v6076_v10 }
 0x3a2   : > { %v1602_v62 = vpop.xlane.xlu0 %1601  ;;  %v7946_v24 = vadd.f32 %v10626_v6, %v1454_v29  ;;  %2603 = vmatprep.subr.bf16.mxu0 %v6080_v52 }
 0x3a3   : > { %v1689_v3 = vmul.f32 0.0078125, %v1602_v62  ;;  %1839 = vadd.xlane.f32.xlu1 %v1784_v46 }
 0x3a4   : > { %v1604_v42 = vpop.xlane.xlu1 %1603  ;;  %10627 = vst [vmem:[#allocation33_spill] sm:$0xff] %v7946_v24  ;;  %2331 = vmatpush1.bf16.msra.mxu1 %v6081_v19  ;;  %2604 = vmatpush1.bf16.msra.mxu0 %v6078_v5  ;;  %v10629_v19 = vld [vmem:[#allocation34_spill] sm:$0xff] }
 0x3a5   : > { %v7949_v41 = vsub.f32 %v7781_v25, %v1689_v3  ;;  %v1690_v37 = vmul.f32 0.0078125, %v1604_v42  ;;  %1637 = vadd.xlane.f32.xlu0 %v7941_v9  ;;  %v6082_v3 = vld [vmem:[%s6922_s8 + $0xe4] ss:$16 sps:$4 sm:$0xff]   ;;  %v6086_v42 = vld [vmem:[%s6922_s8 + $0xec] ss:$16 sps:$4 sm:$0xff]  }
 0x3a6   : > { %v1606_v48 = vpop.xlane.xlu0 %1605  ;;  %2332 = vmatprep.subr.bf16.mxu1 %v6082_v3  ;;  %2605 = vmatprep.subr.bf16.mxu0 %v6086_v42  ;;  %v10440_v3 = vmov 0  }
 0x3a7   : > { %v7955_v46 = vsub.f32 %v7786_v35, %v1690_v37  ;;  %v1691_v50 = vmul.f32 0.0078125, %v1606_v48  ;;  %1639 = vadd.xlane.f32.xlu1 %v7946_v24  ;;  %v5827_v29 = vpop.f32.mrb[28].mxu0  ;;  %v1785_v47 = vmul.f32 %v7949_v41, %v7949_v41  ;;  %v6084_v48 = vld [vmem:[%s6922_s8 + $0xe8] ss:$16 sps:$4 sm:$0xff]   ;;  %v6087_v35 = vld [vmem:[%s6922_s8 + $0xe0] ss:$16 sps:$4 sm:$0xff]   ;;  %2350 = vmatprep.mubr.bf16.mxu1 %v10440_v3 }
 0x3a8   : > { %v1608_v62 = vpop.xlane.xlu1 %1607  ;;  %v1458_v40 = vpop.f32.mrb[29].mxu0  ;;  %2333 = vmatpush1.bf16.msra.mxu1 %v6087_v35  ;;  %2606 = vmatpush1.bf16.msra.mxu0 %v6084_v48 }
 0x3a9   : > { %10628 = vst [vmem:[#allocation38_spill] sm:$0xff] %v7955_v46  ;;  %v1692_v10 = vmul.f32 0.0078125, %v1608_v62  ;;  %v1459_v52 = vadd.f32 %v7732_v23, %v1458_v40  ;;  %v5828_v37 = vpop.f32.mrb[30].mxu0  ;;  %1841 = vadd.xlane.f32.xlu0 %v1785_v47  ;;  %v1786_v6 = vmul.f32 %v7955_v46, %v7955_v46  ;;  %v7968_v57 = vsub.f32 %v7790_v20, %v1691_v50  ;;  %v10631_v40 = vld [vmem:[#allocation35_spill] sm:$0xff] }
 0x3aa   : > { %v1461_v25 = vpop.f32.mrb[31].mxu0  ;;  %2623 = vmatprep.mubr.bf16.mxu0 %v10440_v3  ;;  %4022 = vmatprep.subr.bf16.mxu1 %v10440_v3  ;;  %v1470_v50 = vadd.f32 %v5828_v37, %v7732_v23 }
 0x3ab   : > { %v7971_v5 = vadd.f32 %v10629_v19, %v1459_v52  ;;  %v1462_v62 = vadd.f32 %v7732_v23, %v1461_v25  ;;  %1843 = vadd.xlane.f32.xlu1 %v1786_v6  ;;  %v7975_v47 = vsub.f32 %v7794_v38, %v1692_v10  ;;  %v1467_v25 = vadd.f32 %v5827_v29, %v7732_v23 }
 0x3ac   : > { %v1787_v35 = vmul.f32 %v7968_v57, %v7968_v57  ;;  %4247 = vmatprep.subr.bf16.mxu0 %v10440_v3  ;;  %v7996_v48 = vadd.f32 %v7436_v21, %v1470_v50 }
 0x3ad   : > { %10630 = vst [vmem:[#allocation34_spill] sm:$0xff] %v7971_v5  ;;  %v7978_v46 = vadd.f32 %v10631_v40, %v1462_v62  ;;  %1641 = vadd.xlane.f32.xlu0 %v7971_v5  ;;  %v1788_v42 = vmul.f32 %v7975_v47, %v7975_v47  ;;  %v7993_v52 = vadd.f32 %v7430_v8, %v1467_v25 }
 0x3ae   : > { %10634 = vst [vmem:[#allocation40_spill] sm:$0xff] %v7996_v48 }
 0x3af   : > { %10632 = vst [vmem:[#allocation35_spill] sm:$0xff] %v7978_v46  ;;  %1643 = vadd.xlane.f32.xlu1 %v7978_v46  ;;  %10633 = vst [vmem:[#allocation39_spill] sm:$0xff] %v7993_v52 }
 0x3b1   : > { %1845 = vadd.xlane.f32.xlu0 %v1787_v35 }
 0x3b2   : > { %v1610_v10 = vpop.xlane.xlu0 %1609 }
 0x3b3   : > { %v1693_v6 = vmul.f32 0.0078125, %v1610_v10  ;;  %1847 = vadd.xlane.f32.xlu1 %v1788_v42 }
 0x3b4   : > { %v1612_v29 = vpop.xlane.xlu1 %1611 }
 0x3b5   : > { %v7999_v19 = vsub.f32 %v7801_v26, %v1693_v6  ;;  %v1694_v62 = vmul.f32 0.0078125, %v1612_v29  ;;  %1645 = vadd.xlane.f32.xlu0 %v7993_v52 }
 0x3b6   : > { %v1614_v37 = vpop.xlane.xlu0 %1613 }
 0x3b7   : > { %v8003_v40 = vsub.f32 %v7806_v32, %v1694_v62  ;;  %v1695_v35 = vmul.f32 0.0078125, %v1614_v37  ;;  %1647 = vadd.xlane.f32.xlu1 %v7996_v48  ;;  %v5831_v8 = vpop.f32.mrb[32].mxu0  ;;  %v1789_v25 = vmul.f32 %v7999_v19, %v7999_v19 }
 0x3b8   : > { %v1616_v42 = vpop.xlane.xlu1 %1615  ;;  %v1474_v21 = vpop.f32.mrb[33].mxu0 }
 0x3b9   : > { %v1696_v50 = vmul.f32 0.0078125, %v1616_v42  ;;  %v1475_v10 = vadd.f32 %v7732_v23, %v1474_v21  ;;  %v5832_v6 = vpop.f32.mrb[34].mxu0  ;;  %1849 = vadd.xlane.f32.xlu0 %v1789_v25  ;;  %v1790_v29 = vmul.f32 %v8003_v40, %v8003_v40  ;;  %v8012_v62 = vsub.f32 %v7810_v30, %v1695_v35 }
 0x3ba   : > { %v1477_v3 = vpop.f32.mrb[35].mxu0  ;;  %v1483_v25 = vadd.f32 %v5831_v8, %v7732_v23 }
 0x3bb   : > { %v8015_v37 = vadd.f32 %v7439_v22, %v1475_v10  ;;  %v1478_v32 = vadd.f32 %v7732_v23, %v1477_v3  ;;  %1851 = vadd.xlane.f32.xlu1 %v1790_v29  ;;  %v8019_v26 = vsub.f32 %v7814_v16, %v1696_v50  ;;  %v1791_v35 = vmul.f32 %v8012_v62, %v8012_v62 }
 0x3bc   : > { %v1486_v22 = vadd.f32 %v5832_v6, %v7732_v23  ;;  %v8033_v50 = vadd.f32 %v7469_v17, %v1483_v25 }
 0x3bd   : > { %10635 = vst [vmem:[#allocation41_spill] sm:$0xff] %v8015_v37  ;;  %v8022_v42 = vadd.f32 %v7444_v34, %v1478_v32  ;;  %1649 = vadd.xlane.f32.xlu0 %v8015_v37  ;;  %v1792_v3 = vmul.f32 %v8019_v26, %v8019_v26 }
 0x3be   : > { %10637 = vst [vmem:[#allocation43_spill] sm:$0xff] %v8033_v50  ;;  %v8036_v8 = vadd.f32 %v7474_v28, %v1486_v22 }
 0x3bf   : > { %10636 = vst [vmem:[#allocation42_spill] sm:$0xff] %v8022_v42  ;;  %1651 = vadd.xlane.f32.xlu1 %v8022_v42 }
 0x3c0   : > { %10638 = vst [vmem:[#allocation44_spill] sm:$0xff] %v8036_v8 }
 0x3c1   : > { %1853 = vadd.xlane.f32.xlu0 %v1791_v35 }
 0x3c2   : > { %v1618_v21 = vpop.xlane.xlu0 %1617 }
 0x3c3   : > { %v1697_v34 = vmul.f32 0.0078125, %v1618_v21  ;;  %1855 = vadd.xlane.f32.xlu1 %v1792_v3 }
 0x3c4   : > { %v1620_v32 = vpop.xlane.xlu1 %1619 }
 0x3c5   : > { %v8039_v10 = vsub.f32 %v7821_v61, %v1697_v34  ;;  %v1698_v29 = vmul.f32 0.0078125, %v1620_v32  ;;  %1653 = vadd.xlane.f32.xlu0 %v8033_v50 }
 0x3c6   : > { %v1622_v6 = vpop.xlane.xlu0 %1621 }
 0x3c7   : > { %v8043_v35 = vsub.f32 %v7826_v60, %v1698_v29  ;;  %v1699_v16 = vmul.f32 0.0078125, %v1622_v6  ;;  %1655 = vadd.xlane.f32.xlu1 %v8036_v8  ;;  %v5835_v17 = vpop.f32.mrb[36].mxu0  ;;  %v1793_v25 = vmul.f32 %v8039_v10, %v8039_v10 }
 0x3c8   : > { %v1624_v3 = vpop.xlane.xlu1 %1623  ;;  %v1490_v28 = vpop.f32.mrb[37].mxu0 }
 0x3c9   : > { %v1700_v22 = vmul.f32 0.0078125, %v1624_v3  ;;  %v1491_v21 = vadd.f32 %v7732_v23, %v1490_v28  ;;  %v5836_v34 = vpop.f32.mrb[38].mxu0  ;;  %1857 = vadd.xlane.f32.xlu0 %v1793_v25  ;;  %v1794_v32 = vmul.f32 %v8043_v35, %v8043_v35  ;;  %v8052_v29 = vsub.f32 %v7830_v31, %v1699_v16 }
 0x3ca   : > { %v1493_v61 = vpop.f32.mrb[39].mxu0  ;;  %v1499_v25 = vadd.f32 %v5835_v17, %v7732_v23 }
 0x3cb   : > { %v8055_v6 = vadd.f32 %v7477_v33, %v1491_v21  ;;  %v1494_v60 = vadd.f32 %v7732_v23, %v1493_v61  ;;  %1859 = vadd.xlane.f32.xlu1 %v1794_v32  ;;  %v8059_v30 = vsub.f32 %v7834_v58, %v1700_v22  ;;  %v1795_v16 = vmul.f32 %v8052_v29, %v8052_v29 }
 0x3cc   : > { %v1502_v33 = vadd.f32 %v5836_v34, %v7732_v23  ;;  %v8073_v28 = vadd.f32 %v7507_v45, %v1499_v25 }
 0x3cd   : > { %10639 = vst [vmem:[#allocation45_spill] sm:$0xff] %v8055_v6  ;;  %v8062_v3 = vadd.f32 %v7482_v7, %v1494_v60  ;;  %1657 = vadd.xlane.f32.xlu0 %v8055_v6  ;;  %v1796_v61 = vmul.f32 %v8059_v30, %v8059_v30 }
 0x3ce   : > { %10641 = vst [vmem:[#allocation47_spill] sm:$0xff] %v8073_v28  ;;  %v8076_v7 = vadd.f32 %v7513_v0, %v1502_v33 }
 0x3cf   : > { %10640 = vst [vmem:[#allocation46_spill] sm:$0xff] %v8062_v3  ;;  %1659 = vadd.xlane.f32.xlu1 %v8062_v3 }
 0x3d0   : > { %10642 = vst [vmem:[#allocation48_spill] sm:$0xff] %v8076_v7 }
 0x3d1   : > { %1861 = vadd.xlane.f32.xlu0 %v1795_v16 }
 0x3d3   : > { %1863 = vadd.xlane.f32.xlu1 %v1796_v61 }
 0x3d5   : > { %1661 = vadd.xlane.f32.xlu0 %v8073_v28 }
 0x3d7   : > { %1663 = vadd.xlane.f32.xlu1 %v8076_v7 }
 0x416   : > { %v1826_v60 = vpop.xlane.xlu0 %1825 }
 0x417   : > { %v1921_v17 = vmul.f32 0.0078125, %v1826_v60 }
 0x418   : > { %v1828_v22 = vpop.xlane.xlu1 %1827 }
 0x419   : > { %v1969_v21 = vadd.f32 1e-05, %v1921_v17  ;;  %v1922_v34 = vmul.f32 0.0078125, %v1828_v22 }
 0x41a   : > { %v1626_v32 = vpop.xlane.xlu0 %1625 }
 0x41b   : > { %6216 = vrsqrt.f32 %v1969_v21  ;;  %v1970_v16 = vadd.f32 1e-05, %v1922_v34  ;;  %v1701_v58 = vmul.f32 0.0078125, %v1626_v32 }
 0x41c   : > { %v1628_v31 = vpop.xlane.xlu1 %1627 }
 0x41d   : > { %6218 = vrsqrt.f32 %v1970_v16  ;;  %v8081_v45 = vsub.f32 %v7871_v49, %v1701_v58  ;;  %v1702_v0 = vmul.f32 0.0078125, %v1628_v31 }
 0x41e   : > { %v1830_v25 = vpop.xlane.xlu0 %1829 }
 0x41f   : > { %v8084_v33 = vsub.f32 %v7878_v53, %v1702_v0  ;;  %v1923_v61 = vmul.f32 0.0078125, %v1830_v25  ;;  %v5839_v38 = vpop.f32.mrb[40].mxu0  ;;  %v1797_v60 = vmul.f32 %v8081_v45, %v8081_v45 }
 0x420   : > { %v1832_v17 = vpop.xlane.xlu1 %1831  ;;  %v1506_v22 = vpop.f32.mrb[41].mxu0 }
 0x421   : > { %10643 = vst [vmem:[#allocation49_spill] sm:$0xff] %v8084_v33  ;;  %v1971_v21 = vadd.f32 1e-05, %v1923_v61  ;;  %v1924_v34 = vmul.f32 0.0078125, %v1832_v17  ;;  %v1507_v32 = vadd.f32 %v7732_v23, %v1506_v22  ;;  %v5840_v16 = vpop.f32.mrb[42].mxu0  ;;  %1865 = vadd.xlane.f32.xlu0 %v1797_v60  ;;  %v1798_v31 = vmul.f32 %v8084_v33, %v8084_v33 }
 0x422   : > { %v1509_v58 = vpop.f32.mrb[43].mxu0  ;;  %v1630_v49 = vpop.xlane.xlu0 %1629 }
 0x423   : > { %6220 = vrsqrt.f32 %v1971_v21  ;;  %v1972_v0 = vadd.f32 1e-05, %v1924_v34  ;;  %v8092_v25 = vadd.f32 %v7515_v14, %v1507_v32  ;;  %v1510_v53 = vadd.f32 %v7732_v23, %v1509_v58  ;;  %1867 = vadd.xlane.f32.xlu1 %v1798_v31 }
 0x424   : > { %v1703_v20 = vmul.f32 0.0078125, %v1630_v49  ;;  %v1632_v61 = vpop.xlane.xlu1 %1631  ;;  %v1515_v49 = vadd.f32 %v5839_v38, %v7732_v23 }
 0x425   : > { %10644 = vst [vmem:[#allocation50_spill] sm:$0xff] %v8092_v25  ;;  %v6217_v17 = vpop.eup %6216  ;;  %6222 = vrsqrt.f32 %v1972_v0  ;;  %v8096_v22 = vadd.f32 %v7522_v54, %v1510_v53  ;;  %v1704_v60 = vmul.f32 0.0078125, %v1632_v61  ;;  %1665 = vadd.xlane.f32.xlu0 %v8092_v25 }
 0x426   : > { %v8100_v33 = vsub.f32 %v7889_v36, %v1703_v20  ;;  %v1834_v21 = vpop.xlane.xlu0 %1833  ;;  %v2065_v53 = vmul.f32 %v6217_v17, %v7857_v11  ;;  %v1518_v20 = vadd.f32 %v5840_v16, %v7732_v23 }
 0x427   : > { %10645 = vst [vmem:[#allocation51_spill] sm:$0xff] %v8096_v22  ;;  %v6219_v34 = vpop.eup %6218  ;;  %v8103_v14 = vsub.f32 %v7892_v44, %v1704_v60  ;;  %v1925_v32 = vmul.f32 0.0078125, %v1834_v21  ;;  %1667 = vadd.xlane.f32.xlu1 %v8096_v22 }
 0x428   : > { %10646 = vst [vmem:[#allocation52_spill] sm:$0xff] %v8100_v33  ;;  %v1836_v31 = vpop.xlane.xlu1 %1835  ;;  %v1799_v54 = vmul.f32 %v8100_v33, %v8100_v33  ;;  %v2066_v58 = vmul.f32 %v6219_v34, %v7860_v43  ;;  %v8115_v33 = vadd.f32 %v7543_v63, %v1515_v49  ;;  %v8118_v16 = vadd.f32 %v7551_v4, %v1518_v20 }
 0x429   : > { %v1973_v0 = vadd.f32 1e-05, %v1925_v32  ;;  %v1926_v61 = vmul.f32 0.0078125, %v1836_v31  ;;  %v1800_v60 = vmul.f32 %v8103_v14, %v8103_v14  ;;  %v10649_v32 = vmov 0  }
 0x42a   : > { %1869 = vadd.xlane.f32.xlu0 %v1799_v54  ;;  %v1634_v21 = vpop.xlane.xlu0 %1633  ;;  %v2113_v44 = vpack.c.bf16 %v2066_v58, %v2065_v53  ;;  %10647 = vst [vmem:[#allocation53_spill] sm:$0xff] %v8115_v33  ;;  %10648 = vst [vmem:[#allocation54_spill] sm:$0xff] %v8118_v16 }
 0x42b   : > { %6224 = vrsqrt.f32 %v1973_v0  ;;  %v1974_v38 = vadd.f32 1e-05, %v1926_v61  ;;  %v1705_v36 = vmul.f32 0.0078125, %v1634_v21  ;;  %1871 = vadd.xlane.f32.xlu1 %v1800_v60 }
 0x42c   : > { %v1636_v11 = vpop.xlane.xlu1 %1635  ;;  %2351 = vmatmul.mubr.bf16.vlgmr.msra.gmra.mrb[0].mxu1 %v2113_v44  ;;  %2624 = vmatmul.mubr.bf16.vlgmr.msra.gmra.mrb[48].mxu0 %v2113_v44 }
 0x42d   : > { %v6221_v43 = vpop.eup %6220  ;;  %6226 = vrsqrt.f32 %v1974_v38  ;;  %v8121_v17 = vsub.f32 %v7915_v13, %v1705_v36  ;;  %v1706_v34 = vmul.f32 0.0078125, %v1636_v11  ;;  %2360 = vmatprep.mubr.bf16.mxu1 %v10649_v32  ;;  %2633 = vmatprep.mubr.bf16.mxu0 %v10649_v32 }
 0x42e   : > { %1669 = vadd.xlane.f32.xlu0 %v8115_v33  ;;  %v1838_v63 = vpop.xlane.xlu0 %1837  ;;  %v2067_v58 = vmul.f32 %v6221_v43, %v7868_v51 }
 0x42f   : > { %v6223_v49 = vpop.eup %6222  ;;  %v8127_v31 = vsub.f32 %v7924_v39, %v1706_v34  ;;  %v1927_v44 = vmul.f32 0.0078125, %v1838_v63  ;;  %1671 = vadd.xlane.f32.xlu1 %v8118_v16  ;;  %v5843_v4 = vpop.f32.mrb[44].mxu0  ;;  %v1801_v36 = vmul.f32 %v8121_v17, %v8121_v17 }
 0x430   : > { %v1840_v54 = vpop.xlane.xlu1 %1839  ;;  %v1522_v53 = vpop.f32.mrb[45].mxu0  ;;  %v2068_v20 = vmul.f32 %v6223_v49, %v7875_v12 }
 0x431   : > { %v1975_v0 = vadd.f32 1e-05, %v1927_v44  ;;  %v1928_v61 = vmul.f32 0.0078125, %v1840_v54  ;;  %v1523_v60 = vadd.f32 %v7732_v23, %v1522_v53  ;;  %v5844_v21 = vpop.f32.mrb[46].mxu0  ;;  %v1802_v38 = vmul.f32 %v8127_v31, %v8127_v31 }
 0x432   : > { %1873 = vadd.xlane.f32.xlu0 %v1801_v36  ;;  %v1525_v11 = vpop.f32.mrb[47].mxu0  ;;  %v1638_v34 = vpop.xlane.xlu0 %1637  ;;  %v2114_v63 = vpack.c.bf16 %v2068_v20, %v2067_v58 }
 0x433   : > { %6228 = vrsqrt.f32 %v1975_v0  ;;  %v1976_v39 = vadd.f32 1e-05, %v1928_v61  ;;  %v8138_v13 = vadd.f32 %v7553_v2, %v1523_v60  ;;  %v1526_v51 = vadd.f32 %v7732_v23, %v1525_v11  ;;  %1875 = vadd.xlane.f32.xlu1 %v1802_v38 }
 0x434   : > { %v1707_v12 = vmul.f32 0.0078125, %v1638_v34  ;;  %v1640_v43 = vpop.xlane.xlu1 %1639  ;;  %2361 = vmatmul.mubr.bf16.gmra.mrb[4].mxu1 %v2114_v63  ;;  %2634 = vmatmul.mubr.bf16.gmra.mrb[52].mxu0 %v2114_v63  ;;  %v1534_v38 = vadd.f32 %v5844_v21, %v7732_v23 }
 0x435   : > { %10650 = vst [vmem:[#allocation55_spill] sm:$0xff] %v8138_v13  ;;  %v6225_v49 = vpop.eup %6224  ;;  %6230 = vrsqrt.f32 %v1976_v39  ;;  %v8142_v44 = vadd.f32 %v7562_v1, %v1526_v51  ;;  %v1708_v36 = vmul.f32 0.0078125, %v1640_v43  ;;  %2370 = vmatprep.mubr.bf16.mxu1 %v10649_v32  ;;  %2643 = vmatprep.mubr.bf16.mxu0 %v10649_v32  ;;  %v1531_v1 = vadd.f32 %v5843_v4, %v7732_v23 }
 0x436   : > { %v8147_v2 = vsub.f32 %v7941_v9, %v1707_v12  ;;  %1673 = vadd.xlane.f32.xlu0 %v8138_v13  ;;  %v1842_v54 = vpop.xlane.xlu0 %1841  ;;  %v2069_v61 = vmul.f32 %v6225_v49, %v7895_v27  ;;  %v8166_v23 = vadd.f32 %v7593_v15, %v1534_v38 }
 0x437   : > { %10651 = vst [vmem:[#allocation56_spill] sm:$0xff] %v8142_v44  ;;  %v6227_v53 = vpop.eup %6226  ;;  %v8151_v58 = vsub.f32 %v7946_v24, %v1708_v36  ;;  %v1929_v20 = vmul.f32 0.0078125, %v1842_v54  ;;  %1675 = vadd.xlane.f32.xlu1 %v8142_v44  ;;  %v8163_v36 = vadd.f32 %v7585_v18, %v1531_v1 }
 0x438   : > { %v1844_v39 = vpop.xlane.xlu1 %1843  ;;  %v1803_v0 = vmul.f32 %v8147_v2, %v8147_v2  ;;  %v2070_v60 = vmul.f32 %v6227_v53, %v7899_v59  ;;  %10653 = vst [vmem:[#allocation58_spill] sm:$0xff] %v8166_v23 }
 0x439   : > { %v1977_v11 = vadd.f32 1e-05, %v1929_v20  ;;  %v1930_v34 = vmul.f32 0.0078125, %v1844_v39  ;;  %v1804_v63 = vmul.f32 %v8151_v58, %v8151_v58  ;;  %10652 = vst [vmem:[#allocation57_spill] sm:$0xff] %v8163_v36 }
 0x43a   : > { %1877 = vadd.xlane.f32.xlu0 %v1803_v0  ;;  %v1642_v51 = vpop.xlane.xlu0 %1641  ;;  %v2115_v12 = vpack.c.bf16 %v2070_v60, %v2069_v61 }
 0x43b   : > { %6232 = vrsqrt.f32 %v1977_v11  ;;  %v1978_v4 = vadd.f32 1e-05, %v1930_v34  ;;  %v1709_v43 = vmul.f32 0.0078125, %v1642_v51  ;;  %1879 = vadd.xlane.f32.xlu1 %v1804_v63 }
 0x43c   : > { %v1644_v27 = vpop.xlane.xlu1 %1643  ;;  %2371 = vmatmul.mubr.bf16.gmra.mrb[8].mxu1 %v2115_v12  ;;  %2644 = vmatmul.mubr.bf16.gmra.mrb[56].mxu0 %v2115_v12 }
 0x43d   : > { %v6229_v59 = vpop.eup %6228  ;;  %6234 = vrsqrt.f32 %v1978_v4  ;;  %v8169_v21 = vsub.f32 %v7971_v5, %v1709_v43  ;;  %v1710_v49 = vmul.f32 0.0078125, %v1644_v27  ;;  %2380 = vmatprep.mubr.bf16.mxu1 %v10649_v32  ;;  %2653 = vmatprep.mubr.bf16.mxu0 %v10649_v32 }
 0x43e   : > { %1677 = vadd.xlane.f32.xlu0 %v8163_v36  ;;  %v1846_v18 = vpop.xlane.xlu0 %1845  ;;  %v2071_v39 = vmul.f32 %v6229_v59, %v7912_v56 }
 0x43f   : > { %v6231_v54 = vpop.eup %6230  ;;  %v8175_v53 = vsub.f32 %v7978_v46, %v1710_v49  ;;  %v1931_v20 = vmul.f32 0.0078125, %v1846_v18  ;;  %1679 = vadd.xlane.f32.xlu1 %v8166_v23  ;;  %v1805_v15 = vmul.f32 %v8169_v21, %v8169_v21 }
 0x440   : > { %v1848_v1 = vpop.xlane.xlu1 %1847  ;;  %v2072_v0 = vmul.f32 %v6231_v54, %v7921_v55 }
 0x441   : > { %v1979_v61 = vadd.f32 1e-05, %v1931_v20  ;;  %v1932_v60 = vmul.f32 0.0078125, %v1848_v1  ;;  %v1806_v38 = vmul.f32 %v8175_v53, %v8175_v53 }
 0x442   : > { %1881 = vadd.xlane.f32.xlu0 %v1805_v15  ;;  %v1646_v11 = vpop.xlane.xlu0 %1645  ;;  %v2116_v34 = vpack.c.bf16 %v2072_v0, %v2071_v39  ;;  %v10654_v15 = vld [vmem:[#allocation38_spill] sm:$0xff] }
 0x443   : > { %6236 = vrsqrt.f32 %v1979_v61  ;;  %v1980_v63 = vadd.f32 1e-05, %v1932_v60  ;;  %v1711_v51 = vmul.f32 0.0078125, %v1646_v11  ;;  %1883 = vadd.xlane.f32.xlu1 %v1806_v38 }
 0x444   : > { %v1648_v12 = vpop.xlane.xlu1 %1647  ;;  %2381 = vmatmul.mubr.bf16.gmra.mrb[12].mxu1 %v2116_v34  ;;  %2654 = vmatmul.mubr.bf16.gmra.mrb[60].mxu0 %v2116_v34 }
 0x445   : > { %v6233_v4 = vpop.eup %6232  ;;  %6238 = vrsqrt.f32 %v1980_v63  ;;  %v8185_v56 = vsub.f32 %v7993_v52, %v1711_v51  ;;  %v1712_v55 = vmul.f32 0.0078125, %v1648_v12  ;;  %2390 = vmatprep.mubr.bf16.mxu1 %v10649_v32  ;;  %2663 = vmatprep.mubr.bf16.mxu0 %v10649_v32 }
 0x446   : > { %v1850_v43 = vpop.xlane.xlu0 %1849  ;;  %v2073_v20 = vmul.f32 %v6233_v4, %v7949_v41 }
 0x447   : > { %v6235_v27 = vpop.eup %6234  ;;  %v8190_v59 = vsub.f32 %v7996_v48, %v1712_v55  ;;  %v1933_v49 = vmul.f32 0.0078125, %v1850_v43  ;;  %v1807_v18 = vmul.f32 %v8185_v56, %v8185_v56 }
 0x448   : > { %v1852_v54 = vpop.xlane.xlu1 %1851  ;;  %v2074_v1 = vmul.f32 %v6235_v27, %v10654_v15 }
 0x449   : > { %v1981_v39 = vadd.f32 1e-05, %v1933_v49  ;;  %v1934_v0 = vmul.f32 0.0078125, %v1852_v54  ;;  %1885 = vadd.xlane.f32.xlu0 %v1807_v18  ;;  %v1808_v61 = vmul.f32 %v8190_v59, %v8190_v59 }
 0x44a   : > { %v1650_v60 = vpop.xlane.xlu0 %1649  ;;  %v2117_v38 = vpack.c.bf16 %v2074_v1, %v2073_v20 }
 0x44b   : > { %6240 = vrsqrt.f32 %v1981_v39  ;;  %v1982_v11 = vadd.f32 1e-05, %v1934_v0  ;;  %v1713_v34 = vmul.f32 0.0078125, %v1650_v60  ;;  %1887 = vadd.xlane.f32.xlu1 %v1808_v61 }
 0x44c   : > { %v1652_v63 = vpop.xlane.xlu1 %1651  ;;  %2391 = vmatmul.mubr.bf16.gmra.mrb[16].mxu1 %v2117_v38  ;;  %2664 = vmatmul.mubr.bf16.gmra.mrb[64].mxu0 %v2117_v38 }
 0x44d   : > { %v6237_v51 = vpop.eup %6236  ;;  %6242 = vrsqrt.f32 %v1982_v11  ;;  %v8199_v41 = vsub.f32 %v8015_v37, %v1713_v34  ;;  %v1714_v12 = vmul.f32 0.0078125, %v1652_v63  ;;  %2400 = vmatprep.mubr.bf16.mxu1 %v10649_v32  ;;  %2673 = vmatprep.mubr.bf16.mxu0 %v10649_v32 }
 0x44e   : > { %v1854_v4 = vpop.xlane.xlu0 %1853  ;;  %v2075_v54 = vmul.f32 %v6237_v51, %v7968_v57 }
 0x44f   : > { %v6239_v55 = vpop.eup %6238  ;;  %v8204_v43 = vsub.f32 %v8022_v42, %v1714_v12  ;;  %v1935_v27 = vmul.f32 0.0078125, %v1854_v4  ;;  %v1809_v49 = vmul.f32 %v8199_v41, %v8199_v41 }
 0x450   : > { %v1856_v18 = vpop.xlane.xlu1 %1855  ;;  %v2076_v20 = vmul.f32 %v6239_v55, %v7975_v47 }
 0x451   : > { %v1983_v15 = vadd.f32 1e-05, %v1935_v27  ;;  %v1936_v1 = vmul.f32 0.0078125, %v1856_v18  ;;  %1889 = vadd.xlane.f32.xlu0 %v1809_v49  ;;  %v1810_v39 = vmul.f32 %v8204_v43, %v8204_v43 }
 0x452   : > { %v1654_v0 = vpop.xlane.xlu0 %1653  ;;  %v2118_v61 = vpack.c.bf16 %v2076_v20, %v2075_v54 }
 0x453   : > { %6244 = vrsqrt.f32 %v1983_v15  ;;  %v1984_v60 = vadd.f32 1e-05, %v1936_v1  ;;  %v1715_v38 = vmul.f32 0.0078125, %v1654_v0  ;;  %1891 = vadd.xlane.f32.xlu1 %v1810_v39 }
 0x454   : > { %v1656_v11 = vpop.xlane.xlu1 %1655  ;;  %2401 = vmatmul.mubr.bf16.gmra.mrb[20].mxu1 %v2118_v61  ;;  %2674 = vmatmul.mubr.bf16.gmra.mrb[68].mxu0 %v2118_v61 }
 0x455   : > { %v6241_v34 = vpop.eup %6240  ;;  %6246 = vrsqrt.f32 %v1984_v60  ;;  %v8213_v57 = vsub.f32 %v8033_v50, %v1715_v38  ;;  %v1716_v47 = vmul.f32 0.0078125, %v1656_v11  ;;  %2410 = vmatprep.mubr.bf16.mxu1 %v10649_v32  ;;  %2683 = vmatprep.mubr.bf16.mxu0 %v10649_v32 }
 0x456   : > { %v1858_v63 = vpop.xlane.xlu0 %1857  ;;  %v2077_v49 = vmul.f32 %v6241_v34, %v7999_v19 }
 0x457   : > { %v6243_v51 = vpop.eup %6242  ;;  %v8218_v12 = vsub.f32 %v8036_v8, %v1716_v47  ;;  %v1937_v4 = vmul.f32 0.0078125, %v1858_v63  ;;  %v1811_v55 = vmul.f32 %v8213_v57, %v8213_v57 }
 0x458   : > { %v1860_v27 = vpop.xlane.xlu1 %1859  ;;  %v2078_v18 = vmul.f32 %v6243_v51, %v8003_v40 }
 0x459   : > { %v1985_v54 = vadd.f32 1e-05, %v1937_v4  ;;  %v1938_v20 = vmul.f32 0.0078125, %v1860_v27  ;;  %1893 = vadd.xlane.f32.xlu0 %v1811_v55  ;;  %v1812_v15 = vmul.f32 %v8218_v12, %v8218_v12 }
 0x45a   : > { %v1658_v1 = vpop.xlane.xlu0 %1657  ;;  %v2119_v39 = vpack.c.bf16 %v2078_v18, %v2077_v49 }
 0x45b   : > { %6248 = vrsqrt.f32 %v1985_v54  ;;  %v1986_v0 = vadd.f32 1e-05, %v1938_v20  ;;  %v1717_v61 = vmul.f32 0.0078125, %v1658_v1  ;;  %1895 = vadd.xlane.f32.xlu1 %v1812_v15 }
 0x45c   : > { %v1660_v60 = vpop.xlane.xlu1 %1659  ;;  %2411 = vmatmul.mubr.bf16.gmra.mrb[24].mxu1 %v2119_v39  ;;  %2684 = vmatmul.mubr.bf16.gmra.mrb[72].mxu0 %v2119_v39 }
 0x45d   : > { %v6245_v38 = vpop.eup %6244  ;;  %6250 = vrsqrt.f32 %v1986_v0  ;;  %v8227_v19 = vsub.f32 %v8055_v6, %v1717_v61  ;;  %v1718_v40 = vmul.f32 0.0078125, %v1660_v60  ;;  %2420 = vmatprep.mubr.bf16.mxu1 %v10649_v32  ;;  %2693 = vmatprep.mubr.bf16.mxu0 %v10649_v32 }
 0x45e   : > { %v1862_v11 = vpop.xlane.xlu0 %1861  ;;  %v2079_v55 = vmul.f32 %v6245_v38, %v8012_v62 }
 0x45f   : > { %v6247_v34 = vpop.eup %6246  ;;  %v8232_v47 = vsub.f32 %v8062_v3, %v1718_v40  ;;  %v1939_v63 = vmul.f32 0.0078125, %v1862_v11  ;;  %v1813_v51 = vmul.f32 %v8227_v19, %v8227_v19 }
 0x460   : > { %v1864_v4 = vpop.xlane.xlu1 %1863  ;;  %v2080_v27 = vmul.f32 %v6247_v34, %v8019_v26 }
 0x461   : > { %v1987_v49 = vadd.f32 1e-05, %v1939_v63  ;;  %v1940_v18 = vmul.f32 0.0078125, %v1864_v4  ;;  %1897 = vadd.xlane.f32.xlu0 %v1813_v51  ;;  %v1814_v54 = vmul.f32 %v8232_v47, %v8232_v47 }
 0x462   : > { %v1662_v20 = vpop.xlane.xlu0 %1661  ;;  %v2120_v15 = vpack.c.bf16 %v2080_v27, %v2079_v55 }
 0x463   : > { %6252 = vrsqrt.f32 %v1987_v49  ;;  %v1988_v1 = vadd.f32 1e-05, %v1940_v18  ;;  %v1719_v39 = vmul.f32 0.0078125, %v1662_v20  ;;  %1899 = vadd.xlane.f32.xlu1 %v1814_v54  ;;  %v6088_v49 = vld [vmem:[%s6904_s30] sm:$0xff]   ;;  %v6089_v18 = vld [vmem:[%s6904_s30 + $0x8] sm:$0xff]   ;;  %v6090_v54 = vld [vmem:[%s6904_s30 + $0x10] sm:$0xff]  }
 0x464   : > { %v1664_v0 = vpop.xlane.xlu1 %1663  ;;  %2421 = vmatmul.mubr.bf16.gmra.mrb[28].mxu1 %v2120_v15  ;;  %2694 = vmatmul.mubr.bf16.gmra.mrb[76].mxu0 %v2120_v15 }
 0x465   : > { %v6249_v61 = vpop.eup %6248  ;;  %6254 = vrsqrt.f32 %v1988_v1  ;;  %v8241_v62 = vsub.f32 %v8073_v28, %v1719_v39  ;;  %v1720_v26 = vmul.f32 0.0078125, %v1664_v0  ;;  %2430 = vmatprep.mubr.bf16.mxu1 %v10649_v32  ;;  %2703 = vmatprep.mubr.bf16.mxu0 %v10649_v32 }
 0x466   : > { %v2081_v11 = vmul.f32 %v6249_v61, %v8039_v10  ;;  %4023 = vmatpush1.bf16.msra.mxu1 %v6088_v49 }
 0x467   : > { %v6251_v60 = vpop.eup %6250  ;;  %v8246_v38 = vsub.f32 %v8076_v7, %v1720_v26  ;;  %v1815_v40 = vmul.f32 %v8241_v62, %v8241_v62  ;;  %4024 = vmatprep.subr.bf16.mxu1 %v10649_v32 }
 0x468   : > { %v2082_v34 = vmul.f32 %v6251_v60, %v8043_v35 }
 0x469   : > { %1901 = vadd.xlane.f32.xlu0 %v1815_v40  ;;  %v1816_v63 = vmul.f32 %v8246_v38, %v8246_v38  ;;  %v6093_v40 = vld [vmem:[%s6904_s30 + $0x28] sm:$0xff]  }
 0x46a   : > { %v2121_v51 = vpack.c.bf16 %v2082_v34, %v2081_v11  ;;  %4025 = vmatpush1.bf16.msra.mxu1 %v6089_v18 }
 0x46b   : > { %1903 = vadd.xlane.f32.xlu1 %v1816_v63  ;;  %4026 = vmatprep.subr.bf16.mxu1 %v10649_v32 }
 0x46c   : > { %2431 = vmatmul.mubr.bf16.gmra.mrb[32].mxu1 %v2121_v51  ;;  %2704 = vmatmul.mubr.bf16.gmra.mrb[80].mxu0 %v2121_v51 }
 0x46d   : > { %v6253_v4 = vpop.eup %6252  ;;  %2440 = vmatprep.mubr.bf16.mxu1 %v10649_v32  ;;  %2713 = vmatprep.mubr.bf16.mxu0 %v10649_v32 }
 0x46e   : > { %v2083_v10 = vmul.f32 %v6253_v4, %v8052_v29  ;;  %4027 = vmatpush1.bf16.msra.mxu1 %v6090_v54  ;;  %v6091_v29 = vld [vmem:[%s6904_s30 + $0x18] sm:$0xff]  }
 0x46f   : > { %v6255_v55 = vpop.eup %6254  ;;  %4028 = vmatprep.subr.bf16.mxu1 %v10649_v32 }
 0x470   : > { %v2084_v35 = vmul.f32 %v6255_v55, %v8059_v30  ;;  %v6092_v30 = vld [vmem:[%s6904_s30 + $0x20] sm:$0xff]  }
 0x472   : > { %v2122_v27 = vpack.c.bf16 %v2084_v35, %v2083_v10  ;;  %4029 = vmatpush1.bf16.msra.mxu1 %v6091_v29 }
 0x473   : > { %4030 = vmatprep.subr.bf16.mxu1 %v10649_v32 }
 0x474   : > { %2441 = vmatmul.mubr.bf16.gmra.mrb[36].mxu1 %v2122_v27  ;;  %2714 = vmatmul.mubr.bf16.gmra.mrb[84].mxu0 %v2122_v27 }
 0x475   : > { %2450 = vmatprep.mubr.bf16.mxu1 %v10649_v32  ;;  %2723 = vmatprep.mubr.bf16.mxu0 %v10649_v32 }
 0x476   : > { %4031 = vmatpush1.bf16.msra.mxu1 %v6092_v30 }
 0x477   : > { %4032 = vmatprep.subr.bf16.mxu1 %v10649_v32 }
 0x47a   : > { %4033 = vmatpush1.bf16.msra.mxu1 %v6093_v40 }
 0x47b   : > { %4034 = vmatprep.subr.bf16.mxu1 %v10649_v32 }
 0x4ae   : > { %v1866_v20 = vpop.xlane.xlu0 %1865 }
 0x4af   : > { %v1941_v15 = vmul.f32 0.0078125, %v1866_v20 }
 0x4b0   : > { %v1868_v1 = vpop.xlane.xlu1 %1867 }
 0x4b1   : > { %v1989_v39 = vadd.f32 1e-05, %v1941_v15  ;;  %v1942_v0 = vmul.f32 0.0078125, %v1868_v1 }
 0x4b2   : > { %v1666_v61 = vpop.xlane.xlu0 %1665 }
 0x4b3   : > { %6256 = vrsqrt.f32 %v1989_v39  ;;  %v1990_v26 = vadd.f32 1e-05, %v1942_v0  ;;  %v1721_v60 = vmul.f32 0.0078125, %v1666_v61 }
 0x4b4   : > { %v1668_v11 = vpop.xlane.xlu1 %1667 }
 0x4b5   : > { %6258 = vrsqrt.f32 %v1990_v26  ;;  %v8272_v34 = vsub.f32 %v8092_v25, %v1721_v60  ;;  %v1722_v63 = vmul.f32 0.0078125, %v1668_v11 }
 0x4b7   : > { %v8276_v51 = vsub.f32 %v8096_v22, %v1722_v63  ;;  %v1870_v4 = vpop.xlane.xlu0 %1869  ;;  %v1817_v55 = vmul.f32 %v8272_v34, %v8272_v34 }
 0x4b8   : > { %v1943_v10 = vmul.f32 0.0078125, %v1870_v4  ;;  %v1872_v35 = vpop.xlane.xlu1 %1871  ;;  %v10655_v4 = vld [vmem:[#allocation49_spill] sm:$0xff] }
 0x4b9   : > { %v1944_v27 = vmul.f32 0.0078125, %v1872_v35  ;;  %1905 = vadd.xlane.f32.xlu0 %v1817_v55  ;;  %v1818_v49 = vmul.f32 %v8276_v51, %v8276_v51 }
 0x4ba   : > { %v1991_v18 = vadd.f32 1e-05, %v1943_v10  ;;  %v6095_v10 = vld [vmem:[%s6904_s30 + $0x80] sm:$0xff]  }
 0x4bb   : > { %v1992_v54 = vadd.f32 1e-05, %v1944_v27  ;;  %v1670_v29 = vpop.xlane.xlu0 %1669  ;;  %1907 = vadd.xlane.f32.xlu1 %v1818_v49  ;;  %4248 = vmatpush1.bf16.msra.mxu0 %v6095_v10  ;;  %v10658_v10 = vld [vmem:[#allocation52_spill] sm:$0xff] }
 0x4bc   : > { %6260 = vrsqrt.f32 %v1991_v18  ;;  %v1723_v30 = vmul.f32 0.0078125, %v1670_v29  ;;  %v1672_v20 = vpop.xlane.xlu1 %1671  ;;  %4249 = vmatprep.subr.bf16.mxu0 %v10649_v32 }
 0x4bd   : > { %v6257_v15 = vpop.eup %6256  ;;  %6262 = vrsqrt.f32 %v1992_v54  ;;  %v1724_v1 = vmul.f32 0.0078125, %v1672_v20 }
 0x4be   : > { %v8283_v39 = vsub.f32 %v8115_v33, %v1723_v30  ;;  %v2085_v63 = vmul.f32 %v6257_v15, %v8081_v45  ;;  %v6094_v30 = vld [vmem:[%s6904_s30 + $0x30] sm:$0xff]   ;;  %v6096_v15 = vld [vmem:[%s6904_s30 + $0x88] sm:$0xff]  }
 0x4bf   : > { %v6259_v0 = vpop.eup %6258  ;;  %v8286_v61 = vsub.f32 %v8118_v16, %v1724_v1  ;;  %v1874_v26 = vpop.xlane.xlu0 %1873  ;;  %4035 = vmatpush1.bf16.msra.mxu1 %v6094_v30  ;;  %4250 = vmatpush1.bf16.msra.mxu0 %v6096_v15 }
 0x4c0   : > { %v1945_v60 = vmul.f32 0.0078125, %v1874_v26  ;;  %v1876_v40 = vpop.xlane.xlu1 %1875  ;;  %v1819_v11 = vmul.f32 %v8283_v39, %v8283_v39  ;;  %v2086_v55 = vmul.f32 %v6259_v0, %v10655_v4  ;;  %4251 = vmatprep.subr.bf16.mxu0 %v10649_v32  ;;  %4036 = vmatprep.subr.bf16.mxu1 %v10649_v32 }
 0x4c1   : > { %v1946_v35 = vmul.f32 0.0078125, %v1876_v40  ;;  %v1820_v27 = vmul.f32 %v8286_v61, %v8286_v61 }
 0x4c2   : > { %v1993_v49 = vadd.f32 1e-05, %v1945_v60  ;;  %1909 = vadd.xlane.f32.xlu0 %v1819_v11  ;;  %v2123_v18 = vpack.c.bf16 %v2086_v55, %v2085_v63 }
 0x4c3   : > { %v1994_v54 = vadd.f32 1e-05, %v1946_v35  ;;  %v1674_v29 = vpop.xlane.xlu0 %1673  ;;  %1911 = vadd.xlane.f32.xlu1 %v1820_v27 }
 0x4c4   : > { %6264 = vrsqrt.f32 %v1993_v49  ;;  %v1725_v45 = vmul.f32 0.0078125, %v1674_v29  ;;  %v1676_v20 = vpop.xlane.xlu1 %1675  ;;  %2451 = vmatmul.mubr.bf16.gmra.mrb[40].mxu1 %v2123_v18  ;;  %2724 = vmatmul.mubr.bf16.gmra.mrb[88].mxu0 %v2123_v18  ;;  %v6097_v49 = vld [vmem:[%s6904_s30 + $0x90] sm:$0xff]  }
 0x4c5   : > { %6266 = vrsqrt.f32 %v1994_v54  ;;  %v1726_v1 = vmul.f32 0.0078125, %v1676_v20  ;;  %2460 = vmatprep.mubr.bf16.mxu1 %v10649_v32  ;;  %2733 = vmatprep.mubr.bf16.mxu0 %v10649_v32 }
 0x4c6   : > { %v6261_v0 = vpop.eup %6260  ;;  %v8301_v26 = vsub.f32 %v8138_v13, %v1725_v45  ;;  %4252 = vmatpush1.bf16.msra.mxu0 %v6097_v49 }
 0x4c7   : > { %v6263_v60 = vpop.eup %6262  ;;  %v8304_v40 = vsub.f32 %v8142_v44, %v1726_v1  ;;  %v1878_v11 = vpop.xlane.xlu0 %1877  ;;  %v2087_v35 = vmul.f32 %v6261_v0, %v10658_v10  ;;  %4253 = vmatprep.subr.bf16.mxu0 %v10649_v32 }
 0x4c8   : > { %10656 = vst [vmem:[#allocation38_spill] sm:$0xff] %v8301_v26  ;;  %v1947_v63 = vmul.f32 0.0078125, %v1878_v11  ;;  %v1880_v4 = vpop.xlane.xlu1 %1879  ;;  %v1821_v55 = vmul.f32 %v8301_v26, %v8301_v26  ;;  %v2088_v27 = vmul.f32 %v6263_v60, %v8103_v14  ;;  %v6099_v14 = vld [vmem:[%s6904_s30 + $0x98] sm:$0xff]  }
 0x4c9   : > { %10657 = vst [vmem:[#allocation49_spill] sm:$0xff] %v8304_v40  ;;  %v1948_v18 = vmul.f32 0.0078125, %v1880_v4  ;;  %v1822_v54 = vmul.f32 %v8304_v40, %v8304_v40  ;;  %v6098_v60 = vld [vmem:[%s6904_s30 + $0x38] sm:$0xff]  }
 0x4ca   : > { %v1995_v29 = vadd.f32 1e-05, %v1947_v63  ;;  %1913 = vadd.xlane.f32.xlu0 %v1821_v55  ;;  %v2124_v30 = vpack.c.bf16 %v2088_v27, %v2087_v35  ;;  %4254 = vmatpush1.bf16.msra.mxu0 %v6099_v14 }
 0x4cb   : > { %v1996_v45 = vadd.f32 1e-05, %v1948_v18  ;;  %v1678_v20 = vpop.xlane.xlu0 %1677  ;;  %1915 = vadd.xlane.f32.xlu1 %v1822_v54  ;;  %4037 = vmatpush1.bf16.msra.mxu1 %v6098_v60  ;;  %v6103_v60 = vld [vmem:[%s6904_s30 + $0xb0] sm:$0xff]  }
 0x4cc   : > { %6268 = vrsqrt.f32 %v1995_v29  ;;  %v1727_v15 = vmul.f32 0.0078125, %v1678_v20  ;;  %v1680_v1 = vpop.xlane.xlu1 %1679  ;;  %2461 = vmatmul.mubr.bf16.gmra.mrb[44].mxu1 %v2124_v30  ;;  %2734 = vmatmul.mubr.bf16.gmra.mrb[92].mxu0 %v2124_v30  ;;  %v6100_v29 = vld [vmem:[%s6904_s30 + $0xa0] sm:$0xff]  }
 0x4cd   : > { %6270 = vrsqrt.f32 %v1996_v45  ;;  %v1728_v0 = vmul.f32 0.0078125, %v1680_v1  ;;  %2470 = vmatprep.mubr.bf16.mxu1 %v10649_v32  ;;  %2743 = vmatprep.mubr.bf16.mxu0 %v10649_v32 }
 0x4ce   : > { %v6265_v11 = vpop.eup %6264  ;;  %v8321_v63 = vsub.f32 %v8163_v36, %v1727_v15  ;;  %4255 = vmatprep.subr.bf16.mxu0 %v10649_v32  ;;  %4038 = vmatprep.subr.bf16.mxu1 %v10649_v32 }
 0x4cf   : > { %v6267_v4 = vpop.eup %6266  ;;  %v8324_v55 = vsub.f32 %v8166_v23, %v1728_v0  ;;  %v1882_v10 = vpop.xlane.xlu0 %1881  ;;  %v2089_v18 = vmul.f32 %v6265_v11, %v8121_v17  ;;  %4256 = vmatpush1.bf16.msra.mxu0 %v6100_v29  ;;  %v6101_v17 = vld [vmem:[%s6904_s30 + $0xa8] sm:$0xff]  }
 0x4d0   : > { %10659 = vst [vmem:[#allocation52_spill] sm:$0xff] %v8321_v63  ;;  %v1949_v35 = vmul.f32 0.0078125, %v1882_v10  ;;  %v1884_v27 = vpop.xlane.xlu1 %1883  ;;  %v1823_v49 = vmul.f32 %v8321_v63, %v8321_v63  ;;  %v2090_v54 = vmul.f32 %v6267_v4, %v8127_v31  ;;  %4257 = vmatprep.subr.bf16.mxu0 %v10649_v32  ;;  %v6102_v31 = vld [vmem:[%s6904_s30 + $0x40] sm:$0xff]  }
 0x4d1   : > { %10660 = vst [vmem:[#allocation59_spill] sm:$0xff] %v8324_v55  ;;  %v1950_v30 = vmul.f32 0.0078125, %v1884_v27  ;;  %v1824_v45 = vmul.f32 %v8324_v55, %v8324_v55  ;;  %4039 = vmatpush1.bf16.msra.mxu1 %v6102_v31 }
 0x4d2   : > { %v1997_v20 = vadd.f32 1e-05, %v1949_v35  ;;  %1917 = vadd.xlane.f32.xlu0 %v1823_v49  ;;  %v2125_v15 = vpack.c.bf16 %v2090_v54, %v2089_v18  ;;  %4040 = vmatprep.subr.bf16.mxu1 %v10649_v32 }
 0x4d3   : > { %v1998_v1 = vadd.f32 1e-05, %v1950_v30  ;;  %1919 = vadd.xlane.f32.xlu1 %v1824_v45  ;;  %4258 = vmatpush1.bf16.msra.mxu0 %v6101_v17  ;;  %v6104_v30 = vld [vmem:[%s6904_s30 + $0xb8] sm:$0xff]   ;;  %v6105_v45 = vld [vmem:[%s6904_s30 + $0xc0] sm:$0xff]  }
 0x4d4   : > { %6272 = vrsqrt.f32 %v1997_v20  ;;  %2471 = vmatmul.mubr.bf16.gmra.mrb[48].mxu1 %v2125_v15  ;;  %2744 = vmatmul.mubr.bf16.gmra.mrb[96].mxu0 %v2125_v15 }
 0x4d5   : > { %6274 = vrsqrt.f32 %v1998_v1  ;;  %2480 = vmatprep.mubr.bf16.mxu1 %v10649_v32  ;;  %2753 = vmatprep.mubr.bf16.mxu0 %v10649_v32 }
 0x4d6   : > { %v6269_v14 = vpop.eup %6268  ;;  %v1886_v0 = vpop.xlane.xlu0 %1885  ;;  %4259 = vmatprep.subr.bf16.mxu0 %v10649_v32 }
 0x4d7   : > { %v6271_v11 = vpop.eup %6270  ;;  %v1951_v4 = vmul.f32 0.0078125, %v1886_v0  ;;  %v2091_v35 = vmul.f32 %v6269_v14, %v8147_v2  ;;  %4260 = vmatpush1.bf16.msra.mxu0 %v6103_v60 }
 0x4d8   : > { %v1888_v10 = vpop.xlane.xlu1 %1887  ;;  %v2092_v27 = vmul.f32 %v6271_v11, %v8151_v58  ;;  %4261 = vmatprep.subr.bf16.mxu0 %v10649_v32 }
 0x4d9   : > { %v1999_v49 = vadd.f32 1e-05, %v1951_v4  ;;  %v1952_v18 = vmul.f32 0.0078125, %v1888_v10  ;;  %v6106_v4 = vld [vmem:[%s6904_s30 + $0x48] sm:$0xff]  }
 0x4da   : > { %v2126_v54 = vpack.c.bf16 %v2092_v27, %v2091_v35  ;;  %v6107_v10 = vld [vmem:[%s6904_s30 + $0xc8] sm:$0xff]   ;;  %4041 = vmatpush1.bf16.msra.mxu1 %v6106_v4  ;;  %v6109_v27 = vld [vmem:[%s6904_s30 + $0xd0] sm:$0xff]  }
 0x4db   : > { %6276 = vrsqrt.f32 %v1999_v49  ;;  %v2000_v29 = vadd.f32 1e-05, %v1952_v18  ;;  %4262 = vmatpush1.bf16.msra.mxu0 %v6104_v30  ;;  %4042 = vmatprep.subr.bf16.mxu1 %v10649_v32 }
 0x4dc   : > { %2481 = vmatmul.mubr.bf16.gmra.mrb[52].mxu1 %v2126_v54  ;;  %2754 = vmatmul.mubr.bf16.gmra.mrb[100].mxu0 %v2126_v54 }
 0x4dd   : > { %6278 = vrsqrt.f32 %v2000_v29  ;;  %2490 = vmatprep.mubr.bf16.mxu1 %v10649_v32  ;;  %2763 = vmatprep.mubr.bf16.mxu0 %v10649_v32 }
 0x4de   : > { %v6273_v2 = vpop.eup %6272  ;;  %v1890_v58 = vpop.xlane.xlu0 %1889  ;;  %4263 = vmatprep.subr.bf16.mxu0 %v10649_v32 }
 0x4df   : > { %v6275_v20 = vpop.eup %6274  ;;  %v1953_v15 = vmul.f32 0.0078125, %v1890_v58  ;;  %v2093_v17 = vmul.f32 %v6273_v2, %v8169_v21  ;;  %4264 = vmatpush1.bf16.msra.mxu0 %v6105_v45 }
 0x4e0   : > { %v1892_v1 = vpop.xlane.xlu1 %1891  ;;  %v2094_v31 = vmul.f32 %v6275_v20, %v8175_v53  ;;  %4265 = vmatprep.subr.bf16.mxu0 %v10649_v32  ;;  %v6108_v53 = vld [vmem:[%s6904_s30 + $0x50] sm:$0xff]   ;;  %v6110_v20 = vld [vmem:[%s6904_s30 + $0x58] sm:$0xff]  }
 0x4e1   : > { %v2001_v14 = vadd.f32 1e-05, %v1953_v15  ;;  %v1954_v0 = vmul.f32 0.0078125, %v1892_v1  ;;  %4043 = vmatpush1.bf16.msra.mxu1 %v6108_v53  ;;  %v6111_v15 = vld [vmem:[%s6904_s30 + $0xd8] sm:$0xff]  }
 0x4e2   : > { %v2127_v60 = vpack.c.bf16 %v2094_v31, %v2093_v17  ;;  %4044 = vmatprep.subr.bf16.mxu1 %v10649_v32  ;;  %v6112_v17 = vld [vmem:[%s6904_s30 + $0x60] sm:$0xff]  }
 0x4e3   : > { %6280 = vrsqrt.f32 %v2001_v14  ;;  %v2002_v11 = vadd.f32 1e-05, %v1954_v0  ;;  %4266 = vmatpush1.bf16.msra.mxu0 %v6107_v10  ;;  %v6113_v31 = vld [vmem:[%s6904_s30 + $0xe0] sm:$0xff]  }
 0x4e4   : > { %2491 = vmatmul.mubr.bf16.gmra.mrb[56].mxu1 %v2127_v60  ;;  %2764 = vmatmul.mubr.bf16.gmra.mrb[104].mxu0 %v2127_v60 }
 0x4e5   : > { %v6277_v35 = vpop.eup %6276  ;;  %6282 = vrsqrt.f32 %v2002_v11  ;;  %2500 = vmatprep.mubr.bf16.mxu1 %v10649_v32  ;;  %2773 = vmatprep.mubr.bf16.mxu0 %v10649_v32 }
 0x4e6   : > { %v1894_v21 = vpop.xlane.xlu0 %1893  ;;  %4267 = vmatprep.subr.bf16.mxu0 %v10649_v32  ;;  %v2095_v29 = vmul.f32 %v6277_v35, %v8185_v56  ;;  %4045 = vmatpush1.bf16.msra.mxu1 %v6110_v20 }
 0x4e7   : > { %v6279_v49 = vpop.eup %6278  ;;  %v1955_v18 = vmul.f32 0.0078125, %v1894_v21  ;;  %4268 = vmatpush1.bf16.msra.mxu0 %v6109_v27  ;;  %4046 = vmatprep.subr.bf16.mxu1 %v10649_v32  ;;  %v2138_v21 = vlaneseq  ;;  %v6114_v27 = vld [vmem:[%s6904_s30 + $0x68] sm:$0xff]  }
 0x4e8   : > { %v1896_v54 = vpop.xlane.xlu1 %1895  ;;  %v2096_v30 = vmul.f32 %v6279_v49, %v8190_v59  ;;  %4269 = vmatprep.subr.bf16.mxu0 %v10649_v32  ;;  %v6115_v49 = vld [vmem:[%s6904_s30 + $0xe8] sm:$0xff]  }
 0x4e9   : > { %v2003_v2 = vadd.f32 1e-05, %v1955_v18  ;;  %v1956_v58 = vmul.f32 0.0078125, %v1896_v54 }
 0x4ea   : > { %v2128_v45 = vpack.c.bf16 %v2096_v30, %v2095_v29  ;;  %4047 = vmatpush1.bf16.msra.mxu1 %v6112_v17  ;;  %v6116_v29 = vld [vmem:[%s6904_s30 + $0x70] sm:$0xff]   ;;  %v639_v17 = vld [vmem:[%s6928_s18] sm:$0xf] }
 0x4eb   : > { %6284 = vrsqrt.f32 %v2003_v2  ;;  %v2004_v1 = vadd.f32 1e-05, %v1956_v58  ;;  %4270 = vmatpush1.bf16.msra.mxu0 %v6111_v15  ;;  %4048 = vmatprep.subr.bf16.mxu1 %v10649_v32  ;;  %v6117_v30 = vld [vmem:[%s6904_s30 + $0xf0] sm:$0xff]  }
 0x4ec   : > { %2501 = vmatmul.mubr.bf16.gmra.mrb[60].mxu1 %v2128_v45  ;;  %2774 = vmatmul.mubr.bf16.gmra.mrb[108].mxu0 %v2128_v45 }
 0x4ed   : > { %v6281_v56 = vpop.eup %6280  ;;  %6286 = vrsqrt.f32 %v2004_v1  ;;  %2510 = vmatprep.mubr.bf16.mxu1 %v10649_v32  ;;  %2783 = vmatprep.mubr.bf16.mxu0 %v10649_v32 }
 0x4ee   : > { %v1898_v59 = vpop.xlane.xlu0 %1897  ;;  %4271 = vmatprep.subr.bf16.mxu0 %v10649_v32  ;;  %v2097_v11 = vmul.f32 %v6281_v56, %v8199_v41  ;;  %4049 = vmatpush1.bf16.msra.mxu1 %v6114_v27 }
 0x4ef   : > { %v6283_v14 = vpop.eup %6282  ;;  %v1957_v0 = vmul.f32 0.0078125, %v1898_v59  ;;  %4272 = vmatpush1.bf16.msra.mxu0 %v6113_v31  ;;  %4050 = vmatprep.subr.bf16.mxu1 %v10649_v32 }
 0x4f0   : > { %v1900_v60 = vpop.xlane.xlu1 %1899  ;;  %v2098_v4 = vmul.f32 %v6283_v14, %v8204_v43  ;;  %4273 = vmatprep.subr.bf16.mxu0 %v10649_v32  ;;  %v2139_v43 = vshrl.u32 %v2138_v21, 7  ;;  %v6118_v14 = vld [vmem:[%s6904_s30 + $0x78] sm:$0xff]  }
 0x4f1   : > { %v2005_v10 = vadd.f32 1e-05, %v1957_v0  ;;  %v1958_v35 = vmul.f32 0.0078125, %v1900_v60  ;;  %v6119_v0 = vld [vmem:[%s6904_s30 + $0xf8] sm:$0xff]  }
 0x4f2   : > { %v2129_v53 = vpack.c.bf16 %v2098_v4, %v2097_v11  ;;  %v2140_v56 = vsub.s32 0, %v2139_v43  ;;  %v2148_v31 = vsub.s32 2, %v2139_v43  ;;  %4051 = vmatpush1.bf16.msra.mxu1 %v6116_v29  ;;  %v2144_v11 = vsub.s32 1, %v2139_v43 }
 0x4f3   : > { %6288 = vrsqrt.f32 %v2005_v10  ;;  %v2006_v18 = vadd.f32 1e-05, %v1958_v35  ;;  %4274 = vmatpush1.bf16.msra.mxu0 %v6115_v49  ;;  %v2152_v4 = vsub.s32 3, %v2139_v43  ;;  %4052 = vmatprep.subr.bf16.mxu1 %v10649_v32 }
 0x4f4   : > { %2511 = vmatmul.mubr.bf16.gmra.mrb[64].mxu1 %v2129_v53  ;;  %2784 = vmatmul.mubr.bf16.gmra.mrb[112].mxu0 %v2129_v53  ;;  %v8397_v35 = vrot.slane %v639_v17, %v2148_v31  ;;  %v8399_v49 = vrot.slane %v639_v17, %v2144_v11 }
 0x4f5   : > { %v6285_v41 = vpop.eup %6284  ;;  %6290 = vrsqrt.f32 %v2006_v18  ;;  %2520 = vmatprep.mubr.bf16.mxu1 %v10649_v32  ;;  %2793 = vmatprep.mubr.bf16.mxu0 %v10649_v32  ;;  %v8401_v18 = vrot.slane %v639_v17, %v2152_v4 }
 0x4f6   : > { %v1902_v54 = vpop.xlane.xlu0 %1901  ;;  %4275 = vmatprep.subr.bf16.mxu0 %v10649_v32  ;;  %v2099_v20 = vmul.f32 %v6285_v41, %v8213_v57  ;;  %10662 = vst [vmem:[#allocation61_spill] sm:$0xff] %v8397_v35  ;;  %4053 = vmatpush1.bf16.msra.mxu1 %v6118_v14  ;;  %10663 = vst [vmem:[#allocation62_spill] sm:$0xff] %v8399_v49 }
 0x4f7   : > { %v6287_v2 = vpop.eup %6286  ;;  %v1959_v58 = vmul.f32 0.0078125, %v1902_v54  ;;  %4276 = vmatpush1.bf16.msra.mxu0 %v6117_v30  ;;  %10664 = vst [vmem:[#allocation63_spill] sm:$0xff] %v8401_v18  ;;  %5845 = vmatprep.subr.bf16.mxu1 %v10649_v32 }
 0x4f8   : > { %v1904_v45 = vpop.xlane.xlu1 %1903  ;;  %v2100_v15 = vmul.f32 %v6287_v2, %v8218_v12  ;;  %4277 = vmatprep.subr.bf16.mxu0 %v10649_v32  ;;  %v8393_v12 = vrot.slane %v639_v17, %v2140_v56 }
 0x4f9   : > { %v1960_v1 = vmul.f32 0.0078125, %v1904_v45  ;;  %v2007_v60 = vadd.f32 1e-05, %v1959_v58 }
 0x4fa   : > { %v2130_v59 = vpack.c.bf16 %v2100_v15, %v2099_v20  ;;  %10661 = vst [vmem:[#allocation60_spill] sm:$0xff] %v8393_v12 }
 0x4fb   : > { %v2008_v10 = vadd.f32 1e-05, %v1960_v1  ;;  %4278 = vmatpush1.bf16.msra.mxu0 %v6119_v0  ;;  %6292 = vrsqrt.f32 %v2007_v60 }
 0x4fc   : > { %2521 = vmatmul.mubr.bf16.gmra.mrb[68].mxu1 %v2130_v59  ;;  %2794 = vmatmul.mubr.bf16.gmra.mrb[116].mxu0 %v2130_v59 }
 0x4fd   : > { %v6289_v57 = vpop.eup %6288  ;;  %2530 = vmatprep.mubr.bf16.mxu1 %v10649_v32  ;;  %2803 = vmatprep.mubr.bf16.mxu0 %v10649_v32  ;;  %6294 = vrsqrt.f32 %v2008_v10 }
 0x4fe   : > { %v2101_v54 = vmul.f32 %v6289_v57, %v8227_v19 }
 0x4ff   : > { %v6291_v21 = vpop.eup %6290  ;;  %v2352_v53 = vpop.f32.mrb[0].mxu1 }
 0x500   : > { %v2625_v27 = vpop.f32.mrb[48].mxu0  ;;  %v2354_v41 = vpop.f32.mrb[1].mxu1  ;;  %v2102_v29 = vmul.f32 %v6291_v21, %v8232_v47  ;;  %v2353_v30 = vadd.f32 %v2352_v53, %v8393_v12 }
 0x501   : > { %v2627_v43 = vpop.f32.mrb[49].mxu0  ;;  %v2356_v2 = vpop.f32.mrb[2].mxu1  ;;  %v2626_v45 = vadd.f32 %v2625_v27, %v8397_v35  ;;  %v2355_v17 = vadd.f32 %v2354_v41, %v8399_v49 }
 0x502   : > { %v2629_v58 = vpop.f32.mrb[50].mxu0  ;;  %v2357_v20 = vadd.f32 %v2356_v2, %v8393_v12  ;;  %v2358_v1 = vpop.f32.mrb[3].mxu1  ;;  %v2131_v59 = vpack.c.bf16 %v2102_v29, %v2101_v54  ;;  %v2628_v31 = vadd.f32 %v2627_v43, %v8401_v18 }
 0x503   : > { %v2630_v15 = vadd.f32 %v2629_v58, %v8397_v35  ;;  %v2631_v56 = vpop.f32.mrb[51].mxu0  ;;  %v2359_v19 = vadd.f32 %v2358_v1, %v8399_v49 }
 0x504   : > { %v2632_v47 = vadd.f32 %v2631_v56, %v8401_v18  ;;  %v8414_v14 = vpack.c.bf16 %v2357_v20, %v2353_v30  ;;  %2531 = vmatmul.mubr.bf16.gmra.mrb[72].mxu1 %v2131_v59  ;;  %2804 = vmatmul.mubr.bf16.gmra.mrb[120].mxu0 %v2131_v59 }
 0x505   : > { %v8416_v0 = vpack.c.bf16 %v2630_v15, %v2626_v45  ;;  %v8418_v60 = vpack.c.bf16 %v2359_v19, %v2355_v17  ;;  %2540 = vmatprep.mubr.bf16.mxu1 %v10649_v32  ;;  %2813 = vmatprep.mubr.bf16.mxu0 %v10649_v32  ;;  %v6293_v53 = vpop.eup %6292 }
 0x506   : > { %10665 = vst [vmem:[#allocation64_spill] sm:$0xff] %v8414_v14  ;;  %v8420_v11 = vpack.c.bf16 %v2632_v47, %v2628_v31  ;;  %v2103_v47 = vmul.f32 %v6293_v53, %v8241_v62 }
 0x507   : > { %10666 = vst [vmem:[#allocation65_spill] sm:$0xff] %v8416_v0  ;;  %v2362_v4 = vpop.f32.mrb[4].mxu1  ;;  %v2635_v10 = vpop.f32.mrb[52].mxu0 }
 0x508   : > { %10667 = vst [vmem:[#allocation66_spill] sm:$0xff] %v8420_v11  ;;  %v2364_v57 = vpop.f32.mrb[5].mxu1  ;;  %v2637_v21 = vpop.f32.mrb[53].mxu0  ;;  %v2363_v54 = vadd.f32 %v2362_v4, %v8393_v12  ;;  %v2636_v29 = vadd.f32 %v2635_v10, %v8397_v35 }
 0x509   : > { %v2366_v27 = vpop.f32.mrb[6].mxu1  ;;  %v2639_v41 = vpop.f32.mrb[54].mxu0  ;;  %v2365_v20 = vadd.f32 %v2364_v57, %v8399_v49  ;;  %v2638_v15 = vadd.f32 %v2637_v21, %v8401_v18 }
 0x50a   : > { %v6295_v43 = vpop.eup %6294  ;;  %v2367_v30 = vadd.f32 %v2366_v27, %v8393_v12  ;;  %v2640_v2 = vadd.f32 %v2639_v41, %v8397_v35  ;;  %v2368_v58 = vpop.f32.mrb[7].mxu1 }
 0x50b   : > { %v2641_v45 = vpop.f32.mrb[55].mxu0  ;;  %v2369_v1 = vadd.f32 %v2368_v58, %v8399_v49  ;;  %v2104_v4 = vmul.f32 %v6295_v43, %v8246_v38 }
 0x50c   : > { %v2642_v56 = vadd.f32 %v2641_v45, %v8401_v18  ;;  %v8432_v59 = vpack.c.bf16 %v2367_v30, %v2363_v54  ;;  %v8434_v17 = vpack.c.bf16 %v2640_v2, %v2636_v29 }
 0x50d   : > { %v8436_v31 = vpack.c.bf16 %v2369_v1, %v2365_v20  ;;  %v2132_v10 = vpack.c.bf16 %v2104_v4, %v2103_v47 }
 0x50e   : > { %10668 = vst [vmem:[#allocation67_spill] sm:$0xff] %v8432_v59  ;;  %10669 = vst [vmem:[#allocation68_spill] sm:$0xff] %v8434_v17  ;;  %v8438_v19 = vpack.c.bf16 %v2642_v56, %v2638_v15 }
 0x50f   : > { %10670 = vst [vmem:[#allocation69_spill] sm:$0xff] %v8436_v31  ;;  %v2372_v57 = vpop.f32.mrb[8].mxu1  ;;  %v2645_v27 = vpop.f32.mrb[56].mxu0  ;;  %2541 = vmatmul.mubr.bf16.gmra.mrb[76].mxu1 %v2132_v10  ;;  %2814 = vmatmul.mubr.bf16.gmra.mrb[124].mxu0 %v2132_v10 }
 0x510   : > { %10671 = vst [vmem:[#allocation70_spill] sm:$0xff] %v8438_v19  ;;  %v2374_v21 = vpop.f32.mrb[9].mxu1  ;;  %v2647_v41 = vpop.f32.mrb[57].mxu0  ;;  %2550 = vmatprep.mubr.bf16.mxu1 %v10649_v32  ;;  %2823 = vmatprep.mubr.bf16.mxu0 %v10649_v32  ;;  %v2373_v2 = vadd.f32 %v2372_v57, %v8393_v12  ;;  %v2646_v62 = vadd.f32 %v2645_v27, %v8397_v35 }
 0x511   : > { %v2376_v58 = vpop.f32.mrb[10].mxu1  ;;  %v2649_v54 = vpop.f32.mrb[58].mxu0  ;;  %v2375_v43 = vadd.f32 %v2374_v21, %v8399_v49  ;;  %v2648_v45 = vadd.f32 %v2647_v41, %v8401_v18 }
 0x512   : > { %v2378_v30 = vpop.f32.mrb[11].mxu1  ;;  %v2651_v29 = vpop.f32.mrb[59].mxu0  ;;  %v2377_v38 = vadd.f32 %v2376_v58, %v8393_v12  ;;  %v2650_v53 = vadd.f32 %v2649_v54, %v8397_v35 }
 0x513   : > { %v2379_v20 = vadd.f32 %v2378_v30, %v8399_v49  ;;  %v2652_v15 = vadd.f32 %v2651_v29, %v8401_v18 }
 0x514   : > { %v8452_v1 = vpack.c.bf16 %v2377_v38, %v2373_v2  ;;  %v8454_v56 = vpack.c.bf16 %v2650_v53, %v2646_v62 }
 0x515   : > { %v8456_v47 = vpack.c.bf16 %v2379_v20, %v2375_v43  ;;  %v8458_v4 = vpack.c.bf16 %v2652_v15, %v2648_v45 }
 0x516   : > { %10672 = vst [vmem:[#allocation71_spill] sm:$0xff] %v8452_v1  ;;  %10673 = vst [vmem:[#allocation72_spill] sm:$0xff] %v8454_v56 }
 0x517   : > { %10674 = vst [vmem:[#allocation73_spill] sm:$0xff] %v8456_v47  ;;  %10675 = vst [vmem:[#allocation74_spill] sm:$0xff] %v8458_v4  ;;  %v2382_v10 = vpop.f32.mrb[12].mxu1  ;;  %v2655_v57 = vpop.f32.mrb[60].mxu0 }
 0x518   : > { %v2384_v27 = vpop.f32.mrb[13].mxu1  ;;  %v2657_v58 = vpop.f32.mrb[61].mxu0  ;;  %v2383_v41 = vadd.f32 %v2382_v10, %v8393_v12  ;;  %v2656_v30 = vadd.f32 %v2655_v57, %v8397_v35 }
 0x519   : > { %v2386_v54 = vpop.f32.mrb[14].mxu1  ;;  %v2659_v21 = vpop.f32.mrb[62].mxu0  ;;  %v2385_v53 = vadd.f32 %v2384_v27, %v8399_v49  ;;  %v2658_v43 = vadd.f32 %v2657_v58, %v8401_v18  ;;  %v2962_v58 = vmul.bf16 %v8416_v0, %v8416_v0 }
 0x51a   : > { %v2387_v29 = vadd.f32 %v2386_v54, %v8393_v12  ;;  %v2660_v2 = vadd.f32 %v2659_v21, %v8397_v35  ;;  %v2388_v62 = vpop.f32.mrb[15].mxu1  ;;  %v2661_v38 = vpop.f32.mrb[63].mxu0  ;;  %v2960_v54 = vmul.bf16 %v8414_v14, %v8414_v14 }
 0x51b   : > { %v2389_v45 = vadd.f32 %v2388_v62, %v8399_v49  ;;  %v2662_v20 = vadd.f32 %v2661_v38, %v8401_v18 }
 0x51c   : > { %v8468_v15 = vpack.c.bf16 %v2387_v29, %v2383_v41  ;;  %v8470_v23 = vpack.c.bf16 %v2660_v2, %v2656_v30 }
 0x51d   : > { %v8472_v10 = vpack.c.bf16 %v2389_v45, %v2385_v53  ;;  %v8474_v57 = vpack.c.bf16 %v2662_v20, %v2658_v43  ;;  %v3056_v53 = vmul.bf16 %v2960_v54, %v8414_v14 }
 0x51e   : > { %10676 = vst [vmem:[#allocation75_spill] sm:$0xff] %v8468_v15  ;;  %10677 = vst [vmem:[#allocation76_spill] sm:$0xff] %v8470_v23 }
 0x51f   : > { %10678 = vst [vmem:[#allocation77_spill] sm:$0xff] %v8472_v10  ;;  %10679 = vst [vmem:[#allocation78_spill] sm:$0xff] %v8474_v57  ;;  %v2392_v21 = vpop.f32.mrb[16].mxu1  ;;  %v2665_v36 = vpop.f32.mrb[64].mxu0  ;;  %v3152_v7 = vmul.bf16 1027030327, %v3056_v53 }
 0x520   : > { %v2394_v27 = vpop.f32.mrb[17].mxu1  ;;  %v2667_v44 = vpop.f32.mrb[65].mxu0  ;;  %v2393_v41 = vadd.f32 %v2392_v21, %v8393_v12  ;;  %v2666_v43 = vadd.f32 %v2665_v36, %v8397_v35 }
 0x521   : > { %v2396_v62 = vpop.f32.mrb[18].mxu1  ;;  %v2669_v38 = vpop.f32.mrb[66].mxu0  ;;  %v2395_v45 = vadd.f32 %v2394_v27, %v8399_v49  ;;  %v2668_v13 = vadd.f32 %v2667_v44, %v8401_v18 }
 0x522   : > { %v2397_v30 = vadd.f32 %v2396_v62, %v8393_v12  ;;  %v2398_v29 = vpop.f32.mrb[19].mxu1  ;;  %v2671_v2 = vpop.f32.mrb[67].mxu0  ;;  %v2670_v20 = vadd.f32 %v2669_v38, %v8397_v35  ;;  %v3058_v62 = vmul.bf16 %v2962_v58, %v8416_v0 }
 0x523   : > { %v2399_v33 = vadd.f32 %v2398_v29, %v8399_v49  ;;  %v2672_v21 = vadd.f32 %v2671_v2, %v8401_v18 }
 0x524   : > { %v8487_v16 = vpack.c.bf16 %v2397_v30, %v2393_v41  ;;  %v8492_v22 = vpack.c.bf16 %v2670_v20, %v2666_v43  ;;  %v3154_v44 = vmul.bf16 1027030327, %v3058_v62  ;;  %v3248_v62 = vadd.bf16 %v3152_v7, %v8414_v14 }
 0x525   : > { %v8494_v25 = vpack.c.bf16 %v2399_v33, %v2395_v45  ;;  %v8496_v54 = vpack.c.bf16 %v2672_v21, %v2668_v13 }
 0x527   : > { %10680 = vst [vmem:[#allocation79_spill] sm:$0xff] %v8494_v25  ;;  %v2402_v36 = vpop.f32.mrb[20].mxu1  ;;  %v2675_v27 = vpop.f32.mrb[68].mxu0 }
 0x528   : > { %v2404_v38 = vpop.f32.mrb[21].mxu1  ;;  %v2677_v28 = vpop.f32.mrb[69].mxu0  ;;  %v2403_v29 = vadd.f32 %v2402_v36, %v8393_v12  ;;  %v2676_v2 = vadd.f32 %v2675_v27, %v8397_v35  ;;  %v2961_v36 = vmul.bf16 %v8418_v60, %v8418_v60 }
 0x529   : > { %v2406_v41 = vpop.f32.mrb[22].mxu1  ;;  %v2679_v30 = vpop.f32.mrb[70].mxu0  ;;  %v2405_v58 = vadd.f32 %v2404_v38, %v8399_v49  ;;  %v2678_v13 = vadd.f32 %v2677_v28, %v8401_v18  ;;  %v3250_v38 = vadd.bf16 %v3154_v44, %v8416_v0 }
 0x52a   : > { %v2407_v43 = vadd.f32 %v2406_v41, %v8393_v12  ;;  %v2408_v33 = vpop.f32.mrb[23].mxu1  ;;  %v2681_v45 = vpop.f32.mrb[71].mxu0  ;;  %v2680_v20 = vadd.f32 %v2679_v30, %v8397_v35  ;;  %v3057_v7 = vmul.bf16 %v2961_v36, %v8418_v60 }
 0x52b   : > { %v2409_v53 = vadd.f32 %v2408_v33, %v8399_v49  ;;  %v2682_v21 = vadd.f32 %v2681_v45, %v8401_v18  ;;  %v3344_v45 = vmul.bf16 1061961548, %v3248_v62  ;;  %v3346_v50 = vmul.bf16 1061961548, %v3250_v38 }
 0x52c   : > { %v8509_v27 = vpack.c.bf16 %v2407_v43, %v2403_v29  ;;  %v8512_v41 = vpack.c.bf16 %v2680_v20, %v2676_v2  ;;  %v2963_v29 = vmul.bf16 %v8420_v11, %v8420_v11  ;;  %v2967_v62 = vmul.bf16 %v8438_v19, %v8438_v19 }
 0x52d   : > { %v8514_v3 = vpack.c.bf16 %v2409_v53, %v2405_v58  ;;  %v8516_v28 = vpack.c.bf16 %v2682_v21, %v2678_v13  ;;  %v2965_v21 = vmul.bf16 %v8436_v31, %v8436_v31  ;;  %6296 = vtanh.bf16 %v3344_v45 }
 0x52e   : > { %v3059_v48 = vmul.bf16 %v2963_v29, %v8420_v11  ;;  %6298 = vtanh.bf16 %v3346_v50 }
 0x52f   : > { %v2412_v30 = vpop.f32.mrb[24].mxu1  ;;  %v2685_v6 = vpop.f32.mrb[72].mxu0 }
 0x530   : > { %v2414_v33 = vpop.f32.mrb[25].mxu1  ;;  %v2687_v8 = vpop.f32.mrb[73].mxu0  ;;  %v2413_v44 = vadd.f32 %v2412_v30, %v8393_v12  ;;  %v2686_v2 = vadd.f32 %v2685_v6, %v8397_v35  ;;  %v3155_v45 = vmul.bf16 1027030327, %v3059_v48 }
 0x531   : > { %v2416_v43 = vpop.f32.mrb[26].mxu1  ;;  %v2689_v42 = vpop.f32.mrb[74].mxu0  ;;  %v2415_v36 = vadd.f32 %v2414_v33, %v8399_v49  ;;  %v2688_v30 = vadd.f32 %v2687_v8, %v8401_v18  ;;  %v2964_v8 = vmul.bf16 %v8432_v59, %v8432_v59 }
 0x532   : > { %v2417_v58 = vadd.f32 %v2416_v43, %v8393_v12  ;;  %v2690_v13 = vadd.f32 %v2689_v42, %v8397_v35  ;;  %v2418_v20 = vpop.f32.mrb[27].mxu1  ;;  %v2691_v53 = vpop.f32.mrb[75].mxu0  ;;  %v3153_v43 = vmul.bf16 1027030327, %v3057_v7  ;;  %v2966_v7 = vmul.bf16 %v8434_v17, %v8434_v17 }
 0x533   : > { %v2419_v38 = vadd.f32 %v2418_v20, %v8399_v49  ;;  %v2692_v42 = vadd.f32 %v2691_v53, %v8401_v18 }
 0x534   : > { %v8532_v37 = vpack.c.bf16 %v2417_v58, %v2413_v44  ;;  %v8534_v6 = vpack.c.bf16 %v2690_v13, %v2686_v2  ;;  %v3061_v44 = vmul.bf16 %v2965_v21, %v8436_v31  ;;  %v3063_v2 = vmul.bf16 %v2967_v62, %v8438_v19 }
 0x535   : > { %v8538_v52 = vpack.c.bf16 %v2419_v38, %v2415_v36  ;;  %v8540_v46 = vpack.c.bf16 %v2692_v42, %v2688_v30  ;;  %v8549_v53 = vadd.bf16 %v3153_v43, %v8418_v60  ;;  %v3060_v43 = vmul.bf16 %v2964_v8, %v8432_v59 }
 0x536   : > { %10681 = vst [vmem:[#allocation80_spill] sm:$0xff] %v8532_v37  ;;  %10682 = vst [vmem:[#allocation81_spill] sm:$0xff] %v8534_v6  ;;  %v3157_v55 = vmul.bf16 1027030327, %v3061_v44 }
 0x537   : > { %10683 = vst [vmem:[#allocation82_spill] sm:$0xff] %v8540_v46  ;;  %v2422_v5 = vpop.f32.mrb[28].mxu1  ;;  %v2695_v33 = vpop.f32.mrb[76].mxu0  ;;  %v3345_v8 = vmul.bf16 1061961548, %v8549_v53  ;;  %v2971_v53 = vmul.bf16 %v8458_v4, %v8458_v4 }
 0x538   : > { %v2424_v58 = vpop.f32.mrb[29].mxu1  ;;  %v2697_v13 = vpop.f32.mrb[77].mxu0  ;;  %v2423_v50 = vadd.f32 %v2422_v5, %v8393_v12  ;;  %v2696_v36 = vadd.f32 %v2695_v33, %v8397_v35  ;;  %v3159_v5 = vmul.bf16 1027030327, %v3063_v2  ;;  %v2968_v33 = vmul.bf16 %v8452_v1, %v8452_v1 }
 0x539   : > { %v2426_v29 = vpop.f32.mrb[30].mxu1  ;;  %v2699_v20 = vpop.f32.mrb[78].mxu0  ;;  %v2425_v38 = vadd.f32 %v2424_v58, %v8399_v49  ;;  %v2698_v48 = vadd.f32 %v2697_v13, %v8401_v18  ;;  %v3156_v2 = vmul.bf16 1027030327, %v3060_v43  ;;  %6300 = vtanh.bf16 %v3345_v8 }
 0x53a   : > { %v2427_v21 = vadd.f32 %v2426_v29, %v8393_v12  ;;  %v2428_v62 = vpop.f32.mrb[31].mxu1  ;;  %v2701_v30 = vpop.f32.mrb[79].mxu0  ;;  %v2700_v42 = vadd.f32 %v2699_v20, %v8397_v35  ;;  %v2970_v20 = vmul.bf16 %v8454_v56, %v8454_v56 }
 0x53b   : > { %v2429_v24 = vadd.f32 %v2428_v62, %v8399_v49  ;;  %v2702_v9 = vadd.f32 %v2701_v30, %v8401_v18  ;;  %v6297_v44 = vpop.eup %6296 }
 0x53c   : > { %v8560_v63 = vpack.c.bf16 %v2427_v21, %v2423_v50  ;;  %v8564_v58 = vpack.c.bf16 %v2700_v42, %v2696_v36  ;;  %v8574_v50 = vmul.bf16 %v2966_v7, %v8434_v17  ;;  %v3251_v36 = vadd.bf16 %v3155_v45, %v8420_v11  ;;  %v6299_v11 = vpop.eup %6298 }
 0x53d   : > { %v8566_v29 = vpack.c.bf16 %v2429_v24, %v2425_v38  ;;  %v8568_v13 = vpack.c.bf16 %v2702_v9, %v2698_v48  ;;  %v8578_v24 = vadd.bf16 %v3157_v55, %v8436_v31  ;;  %v8581_v9 = vmul.bf16 %v2968_v33, %v8452_v1 }
 0x53e   : > { %10684 = vst [vmem:[#allocation83_spill] sm:$0xff] %v8560_v63  ;;  %10685 = vst [vmem:[#allocation84_spill] sm:$0xff] %v8564_v58  ;;  %v2969_v38 = vmul.bf16 %v8456_v47, %v8456_v47  ;;  %v8588_v7 = vadd.bf16 %v3159_v5, %v8438_v19  ;;  %v3538_v46 = vadd.bf16 1065369472, %v6299_v11 }
 0x53f   : > { %10686 = vst [vmem:[#allocation85_spill] sm:$0xff] %v8566_v29  ;;  %10687 = vst [vmem:[#allocation86_spill] sm:$0xff] %v8568_v13  ;;  %v2432_v62 = vpop.f32.mrb[32].mxu1  ;;  %v2705_v30 = vpop.f32.mrb[80].mxu0  ;;  %v3536_v13 = vadd.bf16 1065369472, %v6297_v44  ;;  %v8595_v29 = vmul.bf16 %v2970_v20, %v8454_v56 }
 0x540   : > { %v2434_v21 = vpop.f32.mrb[33].mxu1  ;;  %v2707_v40 = vpop.f32.mrb[81].mxu0  ;;  %v2433_v43 = vadd.f32 %v2432_v62, %v8393_v12  ;;  %v2706_v45 = vadd.f32 %v2705_v30, %v8397_v35  ;;  %v3347_v44 = vmul.bf16 1061961548, %v3251_v36 }
 0x541   : > { %v2436_v48 = vpop.f32.mrb[34].mxu1  ;;  %v2709_v42 = vpop.f32.mrb[82].mxu0  ;;  %v2435_v58 = vadd.f32 %v2434_v21, %v8399_v49  ;;  %v2708_v19 = vadd.f32 %v2707_v40, %v8401_v18  ;;  %v3349_v21 = vmul.bf16 1061961548, %v8578_v24 }
 0x542   : > { %v2437_v55 = vadd.f32 %v2436_v48, %v8393_v12  ;;  %v2710_v33 = vadd.f32 %v2709_v42, %v8397_v35  ;;  %v2438_v31 = vpop.f32.mrb[35].mxu1  ;;  %v2711_v26 = vpop.f32.mrb[83].mxu0  ;;  %v3158_v42 = vmul.bf16 1027030327, %v8574_v50  ;;  %v8623_v50 = vmul.bf16 %v2971_v53, %v8458_v4 }
 0x543   : > { %v2439_v5 = vadd.f32 %v2438_v31, %v8399_v49  ;;  %v2712_v48 = vadd.f32 %v2711_v26, %v8401_v18  ;;  %v8614_v26 = vadd.bf16 %v3156_v2, %v8432_v59  ;;  %6302 = vtanh.bf16 %v3347_v44 }
 0x544   : > { %v8600_v62 = vpack.c.bf16 %v2437_v55, %v2433_v43  ;;  %v8602_v30 = vpack.c.bf16 %v2710_v33, %v2706_v45  ;;  %v2975_v53 = vmul.bf16 %v8474_v57, %v8474_v57 }
 0x545   : > { %v8606_v63 = vpack.c.bf16 %v2439_v5, %v2435_v58  ;;  %v8608_v20 = vpack.c.bf16 %v2712_v48, %v2708_v19  ;;  %v8616_v58 = vmul.bf16 1056980736, %v3536_v13  ;;  %v8620_v19 = vmul.bf16 %v2969_v38, %v8456_v47 }
 0x546   : > { %10688 = vst [vmem:[#allocation87_spill] sm:$0xff] %v8600_v62  ;;  %10689 = vst [vmem:[#allocation88_spill] sm:$0xff] %v8602_v30  ;;  %v1906_v56 = vpop.xlane.xlu0 %1905  ;;  %v8627_v13 = vmul.bf16 1056980736, %v3538_v46  ;;  %v2974_v48 = vmul.bf16 %v8470_v23, %v8470_v23  ;;  %v2973_v38 = vmul.bf16 %v8472_v10, %v8472_v10 }
 0x547   : > { %10690 = vst [vmem:[#allocation89_spill] sm:$0xff] %v8606_v63  ;;  %10691 = vst [vmem:[#allocation90_spill] sm:$0xff] %v8608_v20  ;;  %v1961_v43 = vmul.f32 0.0078125, %v1906_v56  ;;  %v2442_v45 = vpop.f32.mrb[36].mxu1  ;;  %v2715_v55 = vpop.f32.mrb[84].mxu0  ;;  %v2972_v56 = vmul.bf16 %v8468_v15, %v8468_v15 }
 0x548   : > { %10692 = vst [vmem:[#allocation91_spill] sm:$0xff] %v8616_v58  ;;  %v1908_v36 = vpop.xlane.xlu1 %1907  ;;  %v2444_v24 = vpop.f32.mrb[37].mxu1  ;;  %10693 = vst [vmem:[#allocation92_spill] sm:$0xff] %v8627_v13  ;;  %v10707_v58 = vld [vmem:[#allocation72_spill] sm:$0xff] }
 0x549   : > { %v2009_v33 = vadd.f32 1e-05, %v1961_v43  ;;  %v1962_v8 = vmul.f32 0.0078125, %v1908_v36  ;;  %v2717_v5 = vpop.f32.mrb[85].mxu0  ;;  %v2446_v2 = vpop.f32.mrb[38].mxu1  ;;  %v2443_v43 = vadd.f32 %v2442_v45, %v8393_v12  ;;  %v2716_v36 = vadd.f32 %v2715_v55, %v8397_v35 }
 0x54a   : > { %v2719_v11 = vpop.f32.mrb[86].mxu0  ;;  %v2448_v40 = vpop.f32.mrb[39].mxu1  ;;  %v2445_v46 = vadd.f32 %v2444_v24, %v8399_v49  ;;  %v2447_v20 = vadd.f32 %v2446_v2, %v8393_v12  ;;  %v8642_v62 = vmul.bf16 %v2972_v56, %v8468_v15  ;;  %v3161_v55 = vmul.bf16 1027030327, %v8620_v19 }
 0x54b   : > { %6304 = vrsqrt.f32 %v2009_v33  ;;  %v2010_v31 = vadd.f32 1e-05, %v1962_v8  ;;  %v2721_v44 = vpop.f32.mrb[87].mxu0  ;;  %v2720_v63 = vadd.f32 %v2719_v11, %v8397_v35  ;;  %v2449_v30 = vadd.f32 %v2448_v40, %v8399_v49 }
 0x54c   : > { %v2718_v33 = vadd.f32 %v2717_v5, %v8401_v18  ;;  %v2722_v45 = vadd.f32 %v2721_v44, %v8401_v18  ;;  %v8647_v8 = vpack.c.bf16 %v2447_v20, %v2443_v43  ;;  %v3348_v5 = vmul.bf16 1061961548, %v8614_v26  ;;  %v6301_v26 = vpop.eup %6300 }
 0x54d   : > { %6306 = vrsqrt.f32 %v2010_v31  ;;  %v8649_v59 = vpack.c.bf16 %v2720_v63, %v2716_v36  ;;  %v8651_v24 = vpack.c.bf16 %v2449_v30, %v2445_v46  ;;  %v8660_v2 = vmul.bf16 %v2974_v48, %v8470_v23 }
 0x54e   : > { %10694 = vst [vmem:[#allocation93_spill] sm:$0xff] %v8647_v8  ;;  %v8656_v56 = vpack.c.bf16 %v2722_v45, %v2718_v33  ;;  %v8663_v20 = vmul.bf16 %v2973_v38, %v8472_v10  ;;  %v3254_v30 = vadd.bf16 %v3158_v42, %v8434_v17  ;;  %v8670_v44 = vmul.bf16 %v2975_v53, %v8474_v57 }
 0x54f   : > { %10695 = vst [vmem:[#allocation94_spill] sm:$0xff] %v8649_v59  ;;  %10696 = vst [vmem:[#allocation95_spill] sm:$0xff] %v8651_v24  ;;  %v1910_v31 = vpop.xlane.xlu0 %1909  ;;  %v2976_v48 = vmul.bf16 %v8487_v16, %v8487_v16  ;;  %v2978_v38 = vmul.bf16 %v8492_v22, %v8492_v22  ;;  %6308 = vtanh.bf16 %v3349_v21  ;;  %v2977_v42 = vmul.bf16 %v8494_v25, %v8494_v25 }
 0x550   : > { %10697 = vst [vmem:[#allocation96_spill] sm:$0xff] %v8656_v56  ;;  %v1963_v63 = vmul.f32 0.0078125, %v1910_v31  ;;  %v1912_v19 = vpop.xlane.xlu1 %1911  ;;  %v2979_v45 = vmul.bf16 %v8496_v54, %v8496_v54  ;;  %v10698_v53 = vmul.bf16 1061961548, %v8588_v7  ;;  %v3350_v36 = vmul.bf16 1061961548, %v3254_v30 }
 0x551   : > { %v1964_v46 = vmul.f32 0.0078125, %v1912_v19  ;;  %v6303_v19 = vpop.eup %6302  ;;  %v3257_v18 = vadd.bf16 %v3161_v55, %v8456_v47  ;;  %v8687_v49 = vmul.bf16 %v2976_v48, %v8487_v16  ;;  %v8690_v7 = vmul.bf16 %v2978_v38, %v8492_v22 }
 0x552   : > { %v2011_v33 = vadd.f32 1e-05, %v1963_v63  ;;  %6310 = vtanh.bf16 %v10698_v53  ;;  %v3537_v63 = vadd.bf16 1065369472, %v6301_v26  ;;  %v8697_v53 = vmul.bf16 %v2977_v42, %v8494_v25 }
 0x553   : > { %v2012_v31 = vadd.f32 1e-05, %v1964_v46  ;;  %v2980_v46 = vmul.bf16 %v8509_v27, %v8509_v27  ;;  %v8700_v26 = vmul.bf16 %v2979_v45, %v8496_v54  ;;  %v2981_v55 = vmul.bf16 %v8514_v3, %v8514_v3 }
 0x554   : > { %6312 = vrsqrt.f32 %v2011_v33  ;;  %v2982_v33 = vmul.bf16 %v8512_v41, %v8512_v41  ;;  %v2983_v11 = vmul.bf16 %v8516_v28, %v8516_v28  ;;  %v8708_v35 = vmul.bf16 1056980736, %v3537_v63 }
 0x555   : > { %v6305_v40 = vpop.eup %6304  ;;  %6314 = vrsqrt.f32 %v2012_v31  ;;  %v3539_v45 = vadd.bf16 1065369472, %v6303_v19  ;;  %v8711_v12 = vmul.bf16 %v2980_v46, %v8509_v27 }
 0x556   : > { %6316 = vtanh.bf16 %v3348_v5  ;;  %v2105_v43 = vmul.f32 %v6305_v40, %v8272_v34  ;;  %v8714_v56 = vmul.bf16 %v2982_v33, %v8512_v41  ;;  %v8724_v33 = vmul.bf16 %v2983_v11, %v8516_v28  ;;  %v10710_v34 = vld [vmem:[#allocation49_spill] sm:$0xff] }
 0x557   : > { %v6307_v30 = vpop.eup %6306  ;;  %v1914_v48 = vpop.xlane.xlu0 %1913  ;;  %6318 = vtanh.bf16 %v3350_v36  ;;  %v3353_v36 = vmul.bf16 1061961548, %v3257_v18  ;;  %v10701_v18 = vld [vmem:[#allocation82_spill] sm:$0xff] }
 0x558   : > { %v1965_v38 = vmul.f32 0.0078125, %v1914_v48  ;;  %v1916_v31 = vpop.xlane.xlu1 %1915  ;;  %v2106_v21 = vmul.f32 %v6307_v30, %v8276_v51  ;;  %v8718_v51 = vmul.bf16 %v2981_v55, %v8514_v3  ;;  %v2987_v19 = vmul.bf16 %v10701_v18, %v10701_v18 }
 0x559   : > { %v1966_v42 = vmul.f32 0.0078125, %v1916_v31 }
 0x55a   : > { %v2013_v5 = vadd.f32 1e-05, %v1965_v38  ;;  %v2133_v48 = vpack.c.bf16 %v2106_v21, %v2105_v43  ;;  %v6309_v46 = vpop.eup %6308  ;;  %v10699_v43 = vmul.bf16 1027030327, %v8623_v50  ;;  %v2984_v50 = vmul.bf16 %v8532_v37, %v8532_v37 }
 0x55b   : > { %v2014_v40 = vadd.f32 1e-05, %v1966_v42  ;;  %v8737_v42 = vmul.bf16 1056980736, %v3539_v45  ;;  %v2985_v45 = vmul.bf16 %v8538_v52, %v8538_v52 }
 0x55c   : > { %6320 = vrsqrt.f32 %v2013_v5  ;;  %2551 = vmatmul.mubr.bf16.gmra.mrb[80].mxu1 %v2133_v48  ;;  %2824 = vmatmul.mubr.bf16.gmra.mrb[128].mxu0 %v2133_v48  ;;  %v8733_v21 = vadd.bf16 %v10699_v43, %v8458_v4  ;;  %v10700_v5 = vmul.bf16 1027030327, %v8581_v9  ;;  %v2986_v43 = vmul.bf16 %v8534_v6, %v8534_v6 }
 0x55d   : > { %6322 = vrsqrt.f32 %v2014_v40  ;;  %2560 = vmatprep.mubr.bf16.mxu1 %v10649_v32  ;;  %2833 = vmatprep.mubr.bf16.mxu0 %v10649_v32  ;;  %v6311_v55 = vpop.eup %6310 }
 0x55e   : > { %v6313_v38 = vpop.eup %6312  ;;  %v8742_v48 = vadd.bf16 %v10700_v5, %v8452_v1  ;;  %6324 = vtanh.bf16 %v3353_v36  ;;  %v3541_v1 = vadd.bf16 1065369472, %v6309_v46  ;;  %v3543_v36 = vadd.bf16 1065369472, %v6311_v55  ;;  %v10703_v46 = vld [vmem:[#allocation84_spill] sm:$0xff]  ;;  %v10704_v55 = vld [vmem:[#allocation85_spill] sm:$0xff] }
 0x55f   : > { %v6315_v40 = vpop.eup %6314  ;;  %v1918_v30 = vpop.xlane.xlu0 %1917  ;;  %v2107_v9 = vmul.f32 %v6313_v38, %v8283_v39  ;;  %v3355_v8 = vmul.bf16 1061961548, %v8733_v21  ;;  %v8761_v39 = vmul.bf16 %v2986_v43, %v8534_v6  ;;  %v2989_v21 = vmul.bf16 %v10704_v55, %v10704_v55  ;;  %v10705_v43 = vld [vmem:[#allocation86_spill] sm:$0xff] }
 0x560   : > { %v1967_v11 = vmul.f32 0.0078125, %v1918_v30  ;;  %v1920_v31 = vpop.xlane.xlu1 %1919  ;;  %v2108_v5 = vmul.f32 %v6315_v40, %v8286_v61  ;;  %v8758_v30 = vmul.bf16 %v2984_v50, %v8532_v37  ;;  %v10702_v61 = vld [vmem:[#allocation83_spill] sm:$0xff]  ;;  %v8773_v50 = vmul.bf16 %v2987_v19, %v10701_v18 }
 0x561   : > { %v1968_v63 = vmul.f32 0.0078125, %v1920_v31  ;;  %v6317_v4 = vpop.eup %6316  ;;  %v2988_v38 = vmul.bf16 %v10702_v61, %v10702_v61  ;;  %v8766_v31 = vmul.bf16 %v2985_v45, %v8538_v52  ;;  %v8781_v0 = vmul.bf16 1056980736, %v3541_v1 }
 0x562   : > { %v2015_v24 = vadd.f32 1e-05, %v1967_v11  ;;  %v2134_v59 = vpack.c.bf16 %v2108_v5, %v2107_v9  ;;  %v6319_v47 = vpop.eup %6318  ;;  %v2990_v11 = vmul.bf16 %v10703_v46, %v10703_v46  ;;  %v2991_v9 = vmul.bf16 %v10705_v43, %v10705_v43  ;;  %v10706_v5 = vld [vmem:[#allocation66_spill] sm:$0xff] }
 0x563   : > { %v2016_v40 = vadd.f32 1e-05, %v1968_v63  ;;  %v3540_v63 = vadd.bf16 1065369472, %v6317_v4  ;;  %v10708_v4 = vmul.bf16 1027030327, %v8595_v29  ;;  %v8797_v1 = vmul.bf16 %v2989_v21, %v10704_v55 }
 0x564   : > { %6326 = vrsqrt.f32 %v2015_v24  ;;  %2561 = vmatmul.mubr.bf16.gmra.mrb[84].mxu1 %v2134_v59  ;;  %2834 = vmatmul.mubr.bf16.gmra.mrb[132].mxu0 %v2134_v59  ;;  %v8783_v24 = vmul.bf16 1056980736, %v3543_v36  ;;  %v3542_v59 = vadd.bf16 1065369472, %v6319_v47  ;;  %v8794_v37 = vmul.bf16 %v2990_v11, %v10703_v46  ;;  %v10709_v36 = vld [vmem:[#allocation38_spill] sm:$0xff] }
 0x565   : > { %6328 = vrsqrt.f32 %v2016_v40  ;;  %2570 = vmatprep.mubr.bf16.mxu1 %v10649_v32  ;;  %2843 = vmatprep.mubr.bf16.mxu0 %v10649_v32  ;;  %v8788_v40 = vmul.bf16 %v2988_v38, %v10702_v61  ;;  %v3258_v6 = vadd.bf16 %v10708_v4, %v10707_v58  ;;  %v8804_v38 = vmul.bf16 %v2991_v9, %v10705_v43  ;;  %v10725_v58 = vld [vmem:[#allocation89_spill] sm:$0xff] }
 0x566   : > { %v6321_v45 = vpop.eup %6320  ;;  %v8806_v61 = vmul.bf16 1056980736, %v3540_v63  ;;  %v8808_v11 = vmul.bf16 1056980736, %v3542_v59  ;;  %6330 = vtanh.bf16 %v3355_v8  ;;  %v10711_v21 = vmul.bf16 1027030327, %v8663_v20 }
 0x567   : > { %v6323_v19 = vpop.eup %6322  ;;  %v2109_v47 = vmul.f32 %v6321_v45, %v10709_v36  ;;  %v10712_v36 = vld [vmem:[#allocation69_spill] sm:$0xff]  ;;  %v3352_v9 = vmul.bf16 1061961548, %v8742_v48  ;;  %v10714_v63 = vmul.bf16 1027030327, %v8670_v44  ;;  %v10716_v44 = vld [vmem:[#allocation67_spill] sm:$0xff] }
 0x568   : > { %v2110_v18 = vmul.f32 %v6323_v19, %v10710_v34  ;;  %v3261_v45 = vadd.bf16 %v10711_v21, %v8472_v10  ;;  %v10713_v19 = vld [vmem:[#allocation70_spill] sm:$0xff]  ;;  %v10715_v20 = vmul.bf16 1027030327, %v8642_v62  ;;  %v10717_v8 = vmul.bf16 1027030327, %v8660_v2  ;;  %v10721_v48 = vld [vmem:[#allocation52_spill] sm:$0xff] }
 0x569   : > { %v6325_v29 = vpop.eup %6324  ;;  %v3263_v13 = vadd.bf16 %v10714_v63, %v8474_v57  ;;  %v3354_v63 = vmul.bf16 1061961548, %v3258_v6  ;;  %v10718_v21 = vmul.bf16 1027030327, %v8697_v53  ;;  %6332 = vtanh.bf16 %v3352_v9  ;;  %v10722_v10 = vld [vmem:[#allocation59_spill] sm:$0xff] }
 0x56a   : > { %v2135_v4 = vpack.c.bf16 %v2110_v18, %v2109_v47  ;;  %v3260_v47 = vadd.bf16 %v10715_v20, %v8468_v15  ;;  %v3262_v18 = vadd.bf16 %v10717_v8, %v8470_v23  ;;  %v3545_v62 = vadd.bf16 1065369472, %v6325_v29  ;;  %v10719_v15 = vld [vmem:[#allocation87_spill] sm:$0xff] }
 0x56b   : > { %v3357_v20 = vmul.bf16 1061961548, %v3261_v45  ;;  %v3265_v34 = vadd.bf16 %v10718_v21, %v8494_v25  ;;  %v2992_v57 = vmul.bf16 %v10719_v15, %v10719_v15  ;;  %v3359_v6 = vmul.bf16 1061961548, %v3263_v13  ;;  %v10724_v21 = vld [vmem:[#allocation88_spill] sm:$0xff] }
 0x56c   : > { %2571 = vmatmul.mubr.bf16.gmra.mrb[88].mxu1 %v2135_v4  ;;  %2844 = vmatmul.mubr.bf16.gmra.mrb[136].mxu0 %v2135_v4  ;;  %v10720_v2 = vmul.bf16 1027030327, %v8700_v26  ;;  %v3356_v29 = vmul.bf16 1061961548, %v3260_v47  ;;  %v10723_v45 = vmul.bf16 1027030327, %v8687_v49  ;;  %v2994_v25 = vmul.bf16 %v10724_v21, %v10724_v21 }
 0x56d   : > { %2580 = vmatprep.mubr.bf16.mxu1 %v10649_v32  ;;  %2853 = vmatprep.mubr.bf16.mxu0 %v10649_v32  ;;  %v2993_v9 = vmul.bf16 %v10725_v58, %v10725_v58  ;;  %6334 = vtanh.bf16 %v3354_v63  ;;  %v3358_v13 = vmul.bf16 1061961548, %v3262_v18  ;;  %v3361_v26 = vmul.bf16 1061961548, %v3265_v34 }
 0x56e   : > { %v6327_v14 = vpop.eup %6326  ;;  %v3267_v8 = vadd.bf16 %v10720_v2, %v8496_v54  ;;  %v3264_v53 = vadd.bf16 %v10723_v45, %v8487_v16  ;;  %6336 = vtanh.bf16 %v3357_v20  ;;  %v8862_v63 = vmul.bf16 1056980736, %v3545_v62  ;;  %v10735_v45 = vld [vmem:[#allocation82_spill] sm:$0xff] }
 0x56f   : > { %v6329_v59 = vpop.eup %6328  ;;  %v2111_v23 = vmul.f32 %v6327_v14, %v10721_v48  ;;  %v10726_v14 = vmul.bf16 1027030327, %v8690_v7  ;;  %6338 = vtanh.bf16 %v3359_v6  ;;  %v10728_v48 = vmul.bf16 1027030327, %v8718_v51 }
 0x570   : > { %v2112_v4 = vmul.f32 %v6329_v59, %v10722_v10  ;;  %v10727_v59 = vld [vmem:[#allocation90_spill] sm:$0xff]  ;;  %v3363_v49 = vmul.bf16 1061961548, %v3267_v8  ;;  %6340 = vtanh.bf16 %v3356_v29  ;;  %v10729_v34 = vmul.bf16 1027030327, %v8724_v33 }
 0x571   : > { %v3266_v10 = vadd.bf16 %v10726_v14, %v8492_v22  ;;  %v2995_v47 = vmul.bf16 %v10727_v59, %v10727_v59  ;;  %v3269_v2 = vadd.bf16 %v10728_v48, %v8514_v3  ;;  %v6331_v18 = vpop.eup %6330  ;;  %v8871_v20 = vmul.bf16 %v2994_v25, %v10724_v21  ;;  %v10737_v14 = vld [vmem:[#allocation80_spill] sm:$0xff] }
 0x572   : > { %v2136_v17 = vpack.c.bf16 %v2112_v4, %v2111_v23  ;;  %v3360_v23 = vmul.bf16 1061961548, %v3264_v53  ;;  %v3271_v7 = vadd.bf16 %v10729_v34, %v8516_v28  ;;  %v8868_v4 = vmul.bf16 %v2992_v57, %v10719_v15 }
 0x573   : > { %v10730_v51 = vmul.bf16 %v8708_v35, %v8418_v60  ;;  %6342 = vtanh.bf16 %v3358_v13  ;;  %v10732_v33 = vmul.bf16 1027030327, %v8711_v12  ;;  %v8883_v6 = vmul.bf16 %v2993_v9, %v10725_v58  ;;  %v6601_v13 = vld [vmem:[%s6904_s30 + $0x88] sm:$0xff]  }
 0x574   : > { %2581 = vmatmul.mubr.bf16.gmra.mrb[92].mxu1 %v2136_v17  ;;  %2854 = vmatmul.mubr.bf16.gmra.mrb[140].mxu0 %v2136_v17  ;;  %v10731_v17 = vmul.bf16 %v8737_v42, %v10706_v5  ;;  %6344 = vtanh.bf16 %v3361_v26  ;;  %v3362_v57 = vmul.bf16 1061961548, %v3266_v10  ;;  %v10733_v25 = vmul.bf16 1027030327, %v8714_v56 }
 0x575   : > { %4054 = vmatprep.mubr.bf16.mxu1 %v10730_v51  ;;  %v3268_v62 = vadd.bf16 %v10732_v33, %v8509_v27  ;;  %v8889_v35 = vmul.bf16 %v2995_v47, %v10727_v59  ;;  %6346 = vtanh.bf16 %v3363_v49  ;;  %v3365_v60 = vmul.bf16 1061961548, %v3269_v2  ;;  %v8902_v49 = vpop.eup %6332  ;;  %v10739_v2 = vld [vmem:[#allocation81_spill] sm:$0xff]  ;;  %v10743_v33 = vld [vmem:[#allocation64_spill] sm:$0xff] }
 0x576   : > { %4279 = vmatprep.mubr.bf16.mxu0 %v10731_v17  ;;  %v3270_v8 = vadd.bf16 %v10733_v25, %v8512_v41  ;;  %v10734_v42 = vmul.bf16 1027030327, %v8766_v31  ;;  %v3547_v12 = vadd.bf16 1065369472, %v6331_v18  ;;  %6348 = vtanh.bf16 %v3360_v23  ;;  %v10742_v17 = vld [vmem:[#allocation91_spill] sm:$0xff]  ;;  %v10746_v25 = vld [vmem:[#allocation65_spill] sm:$0xff] }
 0x577   : > { %v3367_v29 = vmul.bf16 1061961548, %v3271_v7  ;;  %v10736_v53 = vmul.bf16 1027030327, %v8773_v50  ;;  %v3364_v26 = vmul.bf16 1061961548, %v3268_v62  ;;  %6350 = vtanh.bf16 %v3362_v57 }
 0x578   : > { %v3273_v5 = vadd.bf16 %v10734_v42, %v8538_v52  ;;  %v10738_v10 = vmul.bf16 1027030327, %v8758_v30  ;;  %v3185_v31 = vmul.bf16 1027030327, %v8883_v6  ;;  %v3366_v48 = vmul.bf16 1061961548, %v3270_v8  ;;  %v8912_v30 = vpop.eup %6334 }
 0x579   : > { %v3275_v9 = vadd.bf16 %v10736_v53, %v10735_v45  ;;  %v10740_v23 = vmul.bf16 1027030327, %v8761_v39  ;;  %6352 = vtanh.bf16 %v3365_v60  ;;  %v10741_v18 = vmul.bf16 1027030327, %v8797_v1  ;;  %v10745_v57 = vld [vmem:[#allocation92_spill] sm:$0xff]  ;;  %v10748_v39 = vld [vmem:[#allocation73_spill] sm:$0xff]  ;;  %v6337_v53 = vpop.eup %6336 }
 0x57a   : > { %v3272_v47 = vadd.bf16 %v10738_v10, %v10737_v14  ;;  %v3369_v7 = vmul.bf16 1061961548, %v3273_v5  ;;  %v10744_v62 = vmul.bf16 %v10742_v17, %v10743_v33  ;;  %v10747_v8 = vmul.bf16 %v10745_v57, %v10746_v25  ;;  %v10749_v1 = vld [vmem:[#allocation93_spill] sm:$0xff]  ;;  %v10754_v57 = vld [vmem:[#allocation83_spill] sm:$0xff]  ;;  %v6600_v25 = vld [vmem:[%s6904_s30 + $0x80] sm:$0xff]  }
 0x57b   : > { %v3274_v50 = vadd.bf16 %v10740_v23, %v10739_v2  ;;  %v3277_v51 = vadd.bf16 %v10741_v18, %v10704_v55  ;;  %v3737_v42 = vmul.bf16 %v8862_v63, %v10748_v39  ;;  %v3643_v60 = vmul.bf16 1056980736, %v3547_v12  ;;  %v10759_v39 = vld [vmem:[#allocation74_spill] sm:$0xff]  ;;  %v6603_v6 = vld [vmem:[%s6904_s30 + $0x98] sm:$0xff]  }
 0x57c   : > { %4055 = vmatmul.mubr.bf16.vlgmr.msra.gmra.mrb[96].mxu1 %v10744_v62  ;;  %4280 = vmatmul.mubr.bf16.vlgmr.msra.gmra.mrb[144].mxu0 %v10747_v8  ;;  %6354 = vtanh.bf16 %v3367_v29  ;;  %v3371_v5 = vmul.bf16 1061961548, %v3275_v9  ;;  %v2996_v10 = vmul.bf16 %v10749_v1, %v10749_v1  ;;  %v10750_v23 = vmul.bf16 %v8781_v0, %v10712_v36  ;;  %v6339_v29 = vpop.eup %6338  ;;  %v10753_v9 = vld [vmem:[#allocation94_spill] sm:$0xff] }
 0x57d   : > { %v10751_v18 = vmul.bf16 %v8783_v24, %v10713_v19  ;;  %6356 = vtanh.bf16 %v3364_v26  ;;  %v3368_v17 = vmul.bf16 1061961548, %v3272_v47  ;;  %v10752_v63 = vmul.bf16 1027030327, %v8804_v38  ;;  %5861 = vmatpush1.bf16.msra.mxu1 %v6600_v25  ;;  %v6341_v24 = vpop.eup %6340  ;;  %v10756_v19 = vld [vmem:[#allocation95_spill] sm:$0xff] }
 0x57e   : > { %4062 = vmatprep.mubr.bf16.mxu1 %v10750_v23  ;;  %v2998_v33 = vmul.bf16 %v10753_v9, %v10753_v9  ;;  %6358 = vtanh.bf16 %v3366_v48  ;;  %v3370_v62 = vmul.bf16 1061961548, %v3274_v50  ;;  %v10755_v0 = vmul.bf16 1027030327, %v8788_v40  ;;  %5846 = vmatprep.subr.bf16.mxu1 %v10649_v32  ;;  %v6343_v48 = vpop.eup %6342  ;;  %v10758_v50 = vld [vmem:[#allocation96_spill] sm:$0xff] }
 0x57f   : > { %4287 = vmatprep.mubr.bf16.mxu0 %v10751_v18  ;;  %v3279_v12 = vadd.bf16 %v10752_v63, %v10705_v43  ;;  %v2997_v26 = vmul.bf16 %v10756_v19, %v10756_v19  ;;  %6360 = vtanh.bf16 %v3369_v7  ;;  %v3373_v47 = vmul.bf16 1061961548, %v3277_v51  ;;  %v6345_v63 = vpop.eup %6344 }
 0x580   : > { %v3276_v36 = vadd.bf16 %v10755_v0, %v10754_v57  ;;  %v10757_v38 = vmul.bf16 1027030327, %v8794_v37  ;;  %v2999_v40 = vmul.bf16 %v10758_v50, %v10758_v50  ;;  %v3739_v23 = vmul.bf16 %v3643_v60, %v10759_v39  ;;  %v6347_v0 = vpop.eup %6346 }
 0x581   : > { %v3544_v18 = vadd.bf16 1065369472, %v8902_v49  ;;  %6362 = vtanh.bf16 %v3371_v5  ;;  %v8950_v7 = vmul.bf16 %v2996_v10, %v10749_v1  ;;  %v3546_v51 = vadd.bf16 1065369472, %v8912_v30  ;;  %5862 = vmatpush1.bf16.msra.mxu1 %v6601_v13  ;;  %v6349_v34 = vpop.eup %6348  ;;  %v10761_v13 = vld [vmem:[#allocation68_spill] sm:$0xff] }
 0x582   : > { %v3278_v8 = vadd.bf16 %v10757_v38, %v10703_v46  ;;  %6364 = vtanh.bf16 %v3368_v17  ;;  %v3375_v37 = vmul.bf16 1061961548, %v3279_v12  ;;  %v3549_v25 = vadd.bf16 1065369472, %v6337_v53  ;;  %5847 = vmatprep.subr.bf16.mxu1 %v10649_v32 }
 0x583   : > { %v3551_v38 = vadd.bf16 1065369472, %v6339_v29  ;;  %6366 = vtanh.bf16 %v3370_v62  ;;  %v3372_v56 = vmul.bf16 1061961548, %v3276_v36  ;;  %v3548_v60 = vadd.bf16 1065369472, %v6341_v24  ;;  %v6351_v29 = vpop.eup %6350 }
 0x584   : > { %v3550_v39 = vadd.bf16 1065369472, %v6343_v48  ;;  %6368 = vtanh.bf16 %v3373_v47  ;;  %v3374_v49 = vmul.bf16 1061961548, %v3278_v8  ;;  %v8956_v5 = vmul.bf16 %v2998_v33, %v10753_v9  ;;  %v6353_v24 = vpop.eup %6352 }
 0x585   : > { %v8959_v30 = vmul.bf16 %v2997_v26, %v10756_v19  ;;  %v8962_v53 = vmul.bf16 %v2999_v40, %v10758_v50  ;;  %v10760_v10 = vmul.bf16 %v8806_v61, %v10716_v44  ;;  %v10762_v17 = vmul.bf16 %v8808_v11, %v10761_v13  ;;  %v6602_v61 = vld [vmem:[%s6904_s30 + $0x90] sm:$0xff]   ;;  %v10766_v13 = vld [vmem:[#allocation77_spill] sm:$0xff] }
 0x586   : > { %v3553_v12 = vadd.bf16 1065369472, %v6345_v63  ;;  %v3188_v33 = vmul.bf16 1027030327, %v8950_v7  ;;  %v3640_v62 = vmul.bf16 1056980736, %v3544_v18  ;;  %6370 = vtanh.bf16 %v3375_v37  ;;  %5863 = vmatpush1.bf16.msra.mxu1 %v6602_v61 }
 0x587   : > { %4063 = vmatmul.mubr.bf16.gmra.mrb[100].mxu1 %v10760_v10  ;;  %4288 = vmatmul.mubr.bf16.gmra.mrb[148].mxu0 %v10762_v17  ;;  %v3555_v36 = vadd.bf16 1065369472, %v6347_v0  ;;  %v3642_v26 = vmul.bf16 1056980736, %v3546_v51  ;;  %v3645_v47 = vmul.bf16 1056980736, %v3549_v25  ;;  %6372 = vtanh.bf16 %v3372_v56  ;;  %v6355_v44 = vpop.eup %6354 }
 0x588   : > { %4070 = vmatprep.mubr.bf16.mxu1 %v3737_v42  ;;  %4295 = vmatprep.mubr.bf16.mxu0 %v3739_v23  ;;  %v3552_v8 = vadd.bf16 1065369472, %v6349_v34  ;;  %v3647_v48 = vmul.bf16 1056980736, %v3551_v38  ;;  %v8972_v11 = vmul.bf16 1056980736, %v3548_v60  ;;  %6374 = vtanh.bf16 %v3374_v49  ;;  %v6357_v42 = vpop.eup %6356 }
 0x589   : > { %v8974_v40 = vmul.bf16 1056980736, %v3550_v39  ;;  %5848 = vmatprep.subr.bf16.mxu1 %v10649_v32  ;;  %v3189_v18 = vmul.bf16 1027030327, %v8959_v30  ;;  %v8979_v63 = vmul.bf16 1056980736, %v3553_v12  ;;  %v3281_v56 = vadd.bf16 %v3185_v31, %v10725_v58  ;;  %v6359_v34 = vpop.eup %6358 }
 0x58a   : > { %v3191_v51 = vmul.bf16 1027030327, %v8962_v53  ;;  %v8985_v37 = vmul.bf16 1056980736, %v3555_v36  ;;  %v3554_v0 = vadd.bf16 1065369472, %v6351_v29  ;;  %v6361_v60 = vpop.eup %6360  ;;  %v3741_v17 = vmul.bf16 %v3645_v47, %v10766_v13  ;;  %5864 = vmatpush1.bf16.msra.mxu1 %v6603_v6 }
 0x58b   : > { %v10763_v25 = vmul.bf16 1027030327, %v8889_v35  ;;  %v10764_v39 = vld [vmem:[#allocation71_spill] sm:$0xff]  ;;  %v10765_v30 = vld [vmem:[#allocation72_spill] sm:$0xff]  ;;  %v8993_v12 = vmul.bf16 1056980736, %v3552_v8  ;;  %5849 = vmatprep.subr.bf16.mxu1 %v10649_v32 }
 0x58c   : > { %v3736_v49 = vmul.bf16 %v3640_v62, %v10764_v39  ;;  %v3738_v10 = vmul.bf16 %v3642_v26, %v10765_v30  ;;  %v6363_v31 = vpop.eup %6362  ;;  %v10767_v53 = vld [vmem:[#allocation78_spill] sm:$0xff]  ;;  %v10768_v61 = vld [vmem:[#allocation75_spill] sm:$0xff]  ;;  %v10769_v23 = vld [vmem:[#allocation76_spill] sm:$0xff]  ;;  %v3559_v8 = vadd.bf16 1065369472, %v6355_v44 }
 0x58d   : > { %v3283_v38 = vadd.bf16 %v10763_v25, %v10727_v59  ;;  %v3743_v36 = vmul.bf16 %v3647_v48, %v10767_v53  ;;  %v3740_v29 = vmul.bf16 %v8972_v11, %v10768_v61  ;;  %v3742_v35 = vmul.bf16 %v8974_v40, %v10769_v23  ;;  %v6365_v62 = vpop.eup %6364  ;;  %v10770_v26 = vld [vmem:[#allocation79_spill] sm:$0xff]  ;;  %v6604_v6 = vld [vmem:[%s6904_s30 + $0xa0] sm:$0xff]  }
 0x58e   : > { %v3557_v25 = vadd.bf16 1065369472, %v6353_v24  ;;  %v3745_v47 = vmul.bf16 %v8979_v63, %v10770_v26  ;;  %v3377_v39 = vmul.bf16 1061961548, %v3281_v56  ;;  %v10771_v48 = vmul.bf16 1027030327, %v8868_v4  ;;  %v6367_v11 = vpop.eup %6366  ;;  %5865 = vmatpush1.bf16.msra.mxu1 %v6604_v6 }
 0x58f   : > { %4071 = vmatmul.mubr.bf16.gmra.mrb[104].mxu1 %v3736_v49  ;;  %4296 = vmatmul.mubr.bf16.gmra.mrb[152].mxu0 %v3738_v10  ;;  %v3747_v24 = vmul.bf16 %v8985_v37, %v8496_v54  ;;  %v9009_v40 = vmul.bf16 1056980736, %v3554_v0  ;;  %v3556_v23 = vadd.bf16 1065369472, %v6357_v42  ;;  %v3379_v49 = vmul.bf16 1061961548, %v3283_v38  ;;  %v6369_v10 = vpop.eup %6368 }
 0x590   : > { %v3280_v30 = vadd.bf16 %v10771_v48, %v10719_v15  ;;  %4078 = vmatprep.mubr.bf16.mxu1 %v3741_v17  ;;  %4303 = vmatprep.mubr.bf16.mxu0 %v3743_v36  ;;  %v3744_v63 = vmul.bf16 %v8993_v12, %v8487_v16  ;;  %v3558_v44 = vadd.bf16 1065369472, %v6359_v34  ;;  %v3561_v56 = vadd.bf16 1065369472, %v6361_v60 }
 0x591   : > { %v10772_v4 = vmul.bf16 1027030327, %v8871_v20  ;;  %v9017_v17 = vmul.bf16 1056980736, %v3557_v25  ;;  %v3563_v53 = vadd.bf16 1065369472, %v6363_v31  ;;  %v3285_v37 = vadd.bf16 %v3189_v18, %v10756_v19  ;;  %5850 = vmatprep.subr.bf16.mxu1 %v10649_v32  ;;  %v6371_v42 = vpop.eup %6370 }
 0x592   : > { %v3560_v54 = vadd.bf16 1065369472, %v6365_v62  ;;  %v9021_v0 = vmul.bf16 1056980736, %v3559_v8  ;;  %v3562_v34 = vadd.bf16 1065369472, %v6367_v11  ;;  %6376 = vtanh.bf16 %v3377_v39  ;;  %v6373_v60 = vpop.eup %6372 }
 0x593   : > { %v3282_v13 = vadd.bf16 %v10772_v4, %v10724_v21  ;;  %v3376_v38 = vmul.bf16 1061961548, %v3280_v30  ;;  %v9023_v20 = vmul.bf16 1056980736, %v3556_v23  ;;  %v3565_v36 = vadd.bf16 1065369472, %v6369_v10  ;;  %v6375_v31 = vpop.eup %6374 }
 0x594   : > { %6378 = vtanh.bf16 %v3379_v49  ;;  %v3287_v61 = vadd.bf16 %v3191_v51, %v10758_v50  ;;  %v3746_v18 = vmul.bf16 %v9009_v40, %v8492_v22  ;;  %v9028_v25 = vmul.bf16 1056980736, %v3558_v44  ;;  %v6605_v8 = vld [vmem:[%s6904_s30 + $0xa8] sm:$0xff]  }
 0x595   : > { %v9030_v62 = vmul.bf16 1056980736, %v3561_v56  ;;  %v3378_v26 = vmul.bf16 1061961548, %v3282_v13  ;;  %5866 = vmatpush1.bf16.msra.mxu1 %v6605_v8  ;;  %v3749_v39 = vmul.bf16 %v9017_v17, %v8514_v3  ;;  %v9035_v48 = vmul.bf16 1056980736, %v3563_v53 }
 0x596   : > { %v9037_v30 = vmul.bf16 1056980736, %v3560_v54  ;;  %v3381_v11 = vmul.bf16 1061961548, %v3285_v37  ;;  %5851 = vmatprep.subr.bf16.mxu1 %v10649_v32  ;;  %v9040_v51 = vmul.bf16 1056980736, %v3562_v34  ;;  %6380 = vtanh.bf16 %v3376_v38 }
 0x597   : > { %4079 = vmatmul.mubr.bf16.gmra.mrb[108].mxu1 %v3740_v29  ;;  %4304 = vmatmul.mubr.bf16.gmra.mrb[156].mxu0 %v3742_v35  ;;  %v3567_v23 = vadd.bf16 1065369472, %v6371_v42  ;;  %v3564_v49 = vadd.bf16 1065369472, %v6373_v60  ;;  %v9042_v10 = vmul.bf16 1056980736, %v3565_v36  ;;  %v9047_v4 = vadd.bf16 %v3188_v33, %v10749_v1 }
 0x598   : > { %4086 = vmatprep.mubr.bf16.mxu1 %v3745_v47  ;;  %4311 = vmatprep.mubr.bf16.mxu0 %v3747_v24  ;;  %v3566_v44 = vadd.bf16 1065369472, %v6375_v31  ;;  %v3383_v56 = vmul.bf16 1061961548, %v3287_v61  ;;  %v3751_v29 = vmul.bf16 %v9021_v0, %v8516_v28  ;;  %6382 = vtanh.bf16 %v3378_v26  ;;  %v6606_v47 = vld [vmem:[%s6904_s30 + $0xb0] sm:$0xff]   ;;  %v2452_v24 = vpop.f32.mrb[40].mxu1 }
 0x599   : > { %5867 = vmatpush1.bf16.msra.mxu1 %v6606_v47  ;;  %v2725_v6 = vpop.f32.mrb[88].mxu0  ;;  %6384 = vtanh.bf16 %v3381_v11  ;;  %v2454_v33 = vpop.f32.mrb[41].mxu1  ;;  %v9065_v42 = vmul.bf16 1056980736, %v3567_v23  ;;  %v9067_v0 = vmul.bf16 1056980736, %v3564_v49 }
 0x59a   : > { %5852 = vmatprep.subr.bf16.mxu1 %v10649_v32  ;;  %v2727_v54 = vpop.f32.mrb[89].mxu0  ;;  %v10773_v34 = vmul.bf16 1027030327, %v8956_v5  ;;  %v2456_v60 = vpop.f32.mrb[42].mxu1  ;;  %v9074_v31 = vmul.bf16 1056980736, %v3566_v44  ;;  %6386 = vtanh.bf16 %v3383_v56 }
 0x59b   : > { %v2729_v36 = vpop.f32.mrb[90].mxu0  ;;  %v3380_v26 = vmul.bf16 1061961548, %v9047_v4  ;;  %v10774_v8 = vld [vmem:[#allocation60_spill] sm:$0xff]  ;;  %v10775_v23 = vld [vmem:[#allocation61_spill] sm:$0xff]  ;;  %v2458_v5 = vpop.f32.mrb[43].mxu1 }
 0x59c   : > { %v3286_v38 = vadd.bf16 %v10773_v34, %v10753_v9  ;;  %v2453_v11 = vadd.f32 %v2452_v24, %v10774_v8  ;;  %v2726_v47 = vadd.f32 %v2725_v6, %v10775_v23  ;;  %v2457_v49 = vadd.f32 %v2456_v60, %v10774_v8  ;;  %v2731_v34 = vpop.f32.mrb[91].mxu0  ;;  %v6607_v28 = vld [vmem:[%s6904_s30 + $0xb8] sm:$0xff]   ;;  %v10776_v61 = vld [vmem:[#allocation62_spill] sm:$0xff] }
 0x59d   : > { %v2730_v37 = vadd.f32 %v2729_v36, %v10775_v23  ;;  %5868 = vmatpush1.bf16.msra.mxu1 %v6607_v28  ;;  %v9082_v7 = vpop.eup %6376  ;;  %v2455_v44 = vadd.f32 %v2454_v33, %v10776_v61  ;;  %v10777_v53 = vld [vmem:[#allocation63_spill] sm:$0xff]  ;;  %v2459_v4 = vadd.f32 %v2458_v5, %v10776_v61  ;;  %6388 = vtanh.bf16 %v3380_v26 }
 0x59e   : > { %v2728_v56 = vadd.f32 %v2727_v54, %v10777_v53  ;;  %v2732_v24 = vadd.f32 %v2731_v34, %v10777_v53  ;;  %5853 = vmatprep.subr.bf16.mxu1 %v10649_v32  ;;  %v9091_v60 = vpack.c.bf16 %v2457_v49, %v2453_v11  ;;  %v3382_v33 = vmul.bf16 1061961548, %v3286_v38 }
 0x59f   : > { %v9089_v6 = vpop.eup %6378  ;;  %v9093_v36 = vpack.c.bf16 %v2730_v37, %v2726_v47  ;;  %4087 = vmatmul.mubr.bf16.gmra.mrb[112].mxu1 %v3744_v63  ;;  %4312 = vmatmul.mubr.bf16.gmra.mrb[160].mxu0 %v3746_v18  ;;  %v9103_v54 = vpack.c.bf16 %v2459_v4, %v2455_v44  ;;  %v3569_v63 = vadd.bf16 1065369472, %v9082_v7  ;;  %v6608_v18 = vld [vmem:[%s6904_s30 + $0xc0] sm:$0xff]  }
 0x5a0   : > { %v9105_v5 = vpack.c.bf16 %v2732_v24, %v2728_v56  ;;  %4094 = vmatprep.mubr.bf16.mxu1 %v3749_v39  ;;  %4319 = vmatprep.mubr.bf16.mxu0 %v3751_v29  ;;  %v3000_v22 = vmul.bf16 %v9091_v60, %v9091_v60  ;;  %v2462_v39 = vpop.f32.mrb[44].mxu1  ;;  %v2735_v29 = vpop.f32.mrb[92].mxu0  ;;  %v3571_v38 = vadd.bf16 1065369472, %v9089_v6  ;;  %6390 = vtanh.bf16 %v3382_v33 }
 0x5a1   : > { %10778 = vst [vmem:[#allocation84_spill] sm:$0xff] %v9093_v36  ;;  %v3002_v12 = vmul.bf16 %v9093_v36, %v9093_v36  ;;  %5869 = vmatpush1.bf16.msra.mxu1 %v6608_v18  ;;  %v9120_v37 = vpop.eup %6380  ;;  %v3001_v3 = vmul.bf16 %v9103_v54, %v9103_v54  ;;  %v2463_v47 = vadd.f32 %v2462_v39, %v10774_v8  ;;  %v2464_v49 = vpop.f32.mrb[45].mxu1 }
 0x5a2   : > { %v3003_v17 = vmul.bf16 %v9105_v5, %v9105_v5  ;;  %5854 = vmatprep.subr.bf16.mxu1 %v10649_v32  ;;  %v3096_v11 = vmul.bf16 %v3000_v22, %v9091_v60  ;;  %v2737_v34 = vpop.f32.mrb[93].mxu0  ;;  %v2736_v26 = vadd.f32 %v2735_v29, %v10775_v23  ;;  %v2465_v24 = vadd.f32 %v2464_v49, %v10776_v61  ;;  %v2466_v6 = vpop.f32.mrb[46].mxu1 }
 0x5a3   : > { %v3098_v7 = vmul.bf16 %v3002_v12, %v9093_v36  ;;  %v9131_v44 = vpop.eup %6382  ;;  %v3097_v56 = vmul.bf16 %v3001_v3, %v9103_v54  ;;  %v2739_v22 = vpop.f32.mrb[94].mxu0  ;;  %v2738_v39 = vadd.f32 %v2737_v34, %v10777_v53  ;;  %v2467_v40 = vadd.f32 %v2466_v6, %v10774_v8  ;;  %v6609_v3 = vld [vmem:[%s6904_s30 + $0xc8] sm:$0xff]  }
 0x5a4   : > { %v3099_v4 = vmul.bf16 %v3003_v17, %v9105_v5  ;;  %v9137_v18 = vpop.eup %6384  ;;  %v3192_v12 = vmul.bf16 1027030327, %v3096_v11  ;;  %v2740_v33 = vadd.f32 %v2739_v22, %v10775_v23  ;;  %v2468_v16 = vpop.f32.mrb[47].mxu1  ;;  %v10779_v22 = vmul.bf16 %v9023_v20, %v8509_v27 }
 0x5a5   : > { %v2741_v28 = vpop.f32.mrb[95].mxu0  ;;  %5870 = vmatpush1.bf16.msra.mxu1 %v6609_v3  ;;  %v3194_v17 = vmul.bf16 1027030327, %v3098_v7  ;;  %v3193_v13 = vmul.bf16 1027030327, %v3097_v56  ;;  %v2469_v29 = vadd.f32 %v2468_v16, %v10776_v61  ;;  %v9146_v35 = vpop.eup %6386  ;;  %v9148_v34 = vpack.c.bf16 %v2467_v40, %v2463_v47 }
 0x5a6   : > { %v2742_v49 = vadd.f32 %v2741_v28, %v10777_v53  ;;  %5855 = vmatprep.subr.bf16.mxu1 %v10649_v32  ;;  %v3195_v11 = vmul.bf16 1027030327, %v3099_v4  ;;  %v9150_v6 = vpack.c.bf16 %v2740_v33, %v2736_v26  ;;  %v10780_v7 = vmul.bf16 %v9028_v25, %v8512_v41 }
 0x5a7   : > { %4095 = vmatmul.mubr.bf16.gmra.mrb[116].mxu1 %v10779_v22  ;;  %v3288_v28 = vadd.bf16 %v3192_v12, %v9091_v60  ;;  %v9159_v16 = vpack.c.bf16 %v2469_v29, %v2465_v24  ;;  %v10781_v40 = vmul.bf16 %v9030_v62, %v8538_v52  ;;  %v10782_v47 = vmul.bf16 %v9035_v48, %v10735_v45  ;;  %v6610_v24 = vld [vmem:[%s6904_s30 + $0xd0] sm:$0xff]   ;;  %v2472_v62 = vpop.f32.mrb[48].mxu1  ;;  %v2745_v48 = vpop.f32.mrb[96].mxu0 }
 0x5a8   : > { %4320 = vmatmul.mubr.bf16.gmra.mrb[164].mxu0 %v10780_v7  ;;  %v9161_v56 = vpack.c.bf16 %v2742_v49, %v2738_v39  ;;  %v9169_v27 = vmul.bf16 1056980736, %v3569_v63  ;;  %v3289_v20 = vadd.bf16 %v3193_v13, %v9103_v54  ;;  %v3004_v41 = vmul.bf16 %v9148_v34, %v9148_v34  ;;  %v9194_v7 = vpop.eup %6388 }
 0x5a9   : > { %4102 = vmatprep.mubr.bf16.mxu1 %v10781_v40  ;;  %4327 = vmatprep.mubr.bf16.mxu0 %v10782_v47  ;;  %v9174_v25 = vmul.bf16 1056980736, %v3571_v38  ;;  %v3568_v4 = vadd.bf16 1065369472, %v9120_v37  ;;  %v3570_v26 = vadd.bf16 1065369472, %v9131_v44  ;;  %v3005_v52 = vmul.bf16 %v9159_v16, %v9159_v16 }
 0x5aa   : > { %5871 = vmatpush1.bf16.msra.mxu1 %v6610_v24  ;;  %v3007_v45 = vmul.bf16 %v9161_v56, %v9161_v56  ;;  %v3573_v13 = vadd.bf16 1065369472, %v9137_v18  ;;  %v3575_v63 = vadd.bf16 1065369472, %v9146_v35  ;;  %v2474_v38 = vpop.f32.mrb[49].mxu1  ;;  %v2747_v37 = vpop.f32.mrb[97].mxu0  ;;  %v3291_v44 = vadd.bf16 %v3195_v11, %v9105_v5 }
 0x5ab   : > { %5856 = vmatprep.subr.bf16.mxu1 %v10649_v32  ;;  %v3385_v12 = vmul.bf16 1061961548, %v3289_v20  ;;  %v3384_v39 = vmul.bf16 1061961548, %v3288_v28  ;;  %v3290_v33 = vadd.bf16 %v3194_v17, %v9093_v36  ;;  %v9189_v3 = vmul.bf16 %v3004_v41, %v9148_v34  ;;  %v2476_v49 = vpop.f32.mrb[50].mxu1  ;;  %v2749_v22 = vpop.f32.mrb[98].mxu0 }
 0x5ac   : > { %v3101_v29 = vmul.bf16 %v3005_v52, %v9159_v16  ;;  %v3103_v18 = vmul.bf16 %v3007_v45, %v9161_v56  ;;  %v2473_v35 = vadd.f32 %v2472_v62, %v10774_v8  ;;  %v2746_v40 = vadd.f32 %v2745_v48, %v10775_v23  ;;  %v2478_v47 = vpop.f32.mrb[51].mxu1  ;;  %v2751_v20 = vpop.f32.mrb[99].mxu0  ;;  %v6611_v41 = vld [vmem:[%s6904_s30 + $0xd8] sm:$0xff]  }
 0x5ad   : > { %v2475_v11 = vadd.f32 %v2474_v38, %v10776_v61  ;;  %v2477_v28 = vadd.f32 %v2476_v49, %v10774_v8  ;;  %v2750_v17 = vadd.f32 %v2749_v22, %v10775_v23  ;;  %v9201_v24 = vpop.eup %6390  ;;  %v2748_v45 = vadd.f32 %v2747_v37, %v10777_v53 }
 0x5ae   : > { %5872 = vmatpush1.bf16.msra.mxu1 %v6611_v41  ;;  %v3197_v52 = vmul.bf16 1027030327, %v3101_v29  ;;  %v2479_v62 = vadd.f32 %v2478_v47, %v10776_v61  ;;  %v2752_v36 = vadd.f32 %v2751_v20, %v10777_v53  ;;  %v3199_v48 = vmul.bf16 1027030327, %v3103_v18 }
 0x5af   : > { %5857 = vmatprep.subr.bf16.mxu1 %v10649_v32  ;;  %v9207_v38 = vpack.c.bf16 %v2477_v28, %v2473_v35  ;;  %v9209_v49 = vpack.c.bf16 %v2750_v17, %v2746_v40  ;;  %v10783_v22 = vmul.bf16 %v9037_v30, %v10737_v14  ;;  %v10784_v29 = vmul.bf16 %v9040_v51, %v10739_v2  ;;  %v2755_v40 = vpop.f32.mrb[100].mxu0 }
 0x5b0   : > { %v3387_v37 = vmul.bf16 1061961548, %v3291_v44  ;;  %v9217_v47 = vpack.c.bf16 %v2479_v62, %v2475_v11  ;;  %v9219_v20 = vpack.c.bf16 %v2752_v36, %v2748_v45  ;;  %v10785_v18 = vmul.bf16 %v9042_v10, %v10704_v55  ;;  %v6612_v36 = vld [vmem:[%s6904_s30 + $0xe0] sm:$0xff]   ;;  %v2482_v44 = vpop.f32.mrb[52].mxu1 }
 0x5b1   : > { %4103 = vmatmul.mubr.bf16.gmra.mrb[120].mxu1 %v10783_v22  ;;  %4328 = vmatmul.mubr.bf16.gmra.mrb[168].mxu0 %v10784_v29  ;;  %v10786_v35 = vmul.bf16 %v9065_v42, %v10705_v43  ;;  %6392 = vtanh.bf16 %v3385_v12  ;;  %v3386_v14 = vmul.bf16 1061961548, %v3290_v33  ;;  %v3761_v30 = vmul.bf16 %v9169_v27, %v10725_v58  ;;  %v2484_v42 = vpop.f32.mrb[53].mxu1  ;;  %v2757_v27 = vpop.f32.mrb[101].mxu0 }
 0x5b2   : > { %4110 = vmatprep.mubr.bf16.mxu1 %v10785_v18  ;;  %v9229_v2 = vmul.bf16 1056980736, %v3568_v4  ;;  %v9231_v51 = vmul.bf16 1056980736, %v3570_v26  ;;  %6394 = vtanh.bf16 %v3384_v39  ;;  %5873 = vmatpush1.bf16.msra.mxu1 %v6612_v36  ;;  %v3763_v55 = vmul.bf16 %v9174_v25, %v10727_v59  ;;  %v2759_v39 = vpop.f32.mrb[102].mxu0 }
 0x5b3   : > { %4335 = vmatprep.mubr.bf16.mxu0 %v10786_v35  ;;  %v9236_v10 = vmul.bf16 1056980736, %v3573_v13  ;;  %v3572_v43 = vadd.bf16 1065369472, %v9194_v7  ;;  %6396 = vtanh.bf16 %v3387_v37  ;;  %5858 = vmatprep.subr.bf16.mxu1 %v10649_v32  ;;  %v3006_v58 = vmul.bf16 %v9150_v6, %v9150_v6  ;;  %v2486_v13 = vpop.f32.mrb[54].mxu1  ;;  %v2761_v41 = vpop.f32.mrb[103].mxu0 }
 0x5b4   : > { %v9242_v4 = vmul.bf16 1056980736, %v3575_v63  ;;  %v3574_v26 = vadd.bf16 1065369472, %v9201_v24  ;;  %v3293_v12 = vadd.bf16 %v3197_v52, %v9159_v16  ;;  %v3196_v59 = vmul.bf16 1027030327, %v9189_v3 }
 0x5b5   : > { %v3008_v25 = vmul.bf16 %v9207_v38, %v9207_v38  ;;  %6398 = vtanh.bf16 %v3386_v14  ;;  %v3295_v33 = vadd.bf16 %v3199_v48, %v9161_v56  ;;  %v2483_v7 = vadd.f32 %v2482_v44, %v10774_v8  ;;  %v2488_v17 = vpop.f32.mrb[55].mxu1  ;;  %v6613_v24 = vld [vmem:[%s6904_s30 + $0xe8] sm:$0xff]  }
 0x5b6   : > { %v2756_v11 = vadd.f32 %v2755_v40, %v10775_v23  ;;  %v2487_v63 = vadd.f32 %v2486_v13, %v10774_v8  ;;  %v2760_v28 = vadd.f32 %v2759_v39, %v10775_v23  ;;  %5874 = vmatpush1.bf16.msra.mxu1 %v6613_v24  ;;  %v2485_v3 = vadd.f32 %v2484_v42, %v10776_v61 }
 0x5b7   : > { %v2758_v52 = vadd.f32 %v2757_v27, %v10777_v53  ;;  %v2489_v45 = vadd.f32 %v2488_v17, %v10776_v61  ;;  %v2762_v62 = vadd.f32 %v2761_v41, %v10777_v53  ;;  %5859 = vmatprep.subr.bf16.mxu1 %v10649_v32  ;;  %v3010_v48 = vmul.bf16 %v9209_v49, %v9209_v49 }
 0x5b8   : > { %v9262_v22 = vpack.c.bf16 %v2487_v63, %v2483_v7  ;;  %v9264_v29 = vpack.c.bf16 %v2760_v28, %v2756_v11  ;;  %v10787_v37 = vmul.bf16 %v9067_v0, %v10754_v57  ;;  %v10788_v18 = vmul.bf16 %v9074_v31, %v10703_v46  ;;  %v6614_v57 = vld [vmem:[%s6904_s30 + $0xf0] sm:$0xff]   ;;  %v2492_v0 = vpop.f32.mrb[56].mxu1  ;;  %v2765_v46 = vpop.f32.mrb[104].mxu0  ;;  %v6615_v28 = vld [vmem:[%s6904_s30 + $0xf8] sm:$0xff]  }
 0x5b9   : > { %v3389_v35 = vmul.bf16 1061961548, %v3293_v12  ;;  %v3009_v14 = vmul.bf16 %v9217_v47, %v9217_v47  ;;  %v9274_v36 = vpack.c.bf16 %v2489_v45, %v2485_v3  ;;  %v9276_v44 = vpack.c.bf16 %v2762_v62, %v2758_v52  ;;  %v2767_v13 = vpop.f32.mrb[105].mxu0 }
 0x5ba   : > { %4111 = vmatmul.mubr.bf16.gmra.mrb[124].mxu1 %v10787_v37  ;;  %4336 = vmatmul.mubr.bf16.gmra.mrb[172].mxu0 %v10788_v18  ;;  %v3391_v40 = vmul.bf16 1061961548, %v3295_v33  ;;  %v3760_v42 = vmul.bf16 %v9229_v2, %v10719_v15  ;;  %v3762_v31 = vmul.bf16 %v9231_v51, %v10724_v21  ;;  %v3765_v27 = vmul.bf16 %v9236_v10, %v10756_v19  ;;  %v2494_v51 = vpop.f32.mrb[57].mxu1 }
 0x5bb   : > { %4118 = vmatprep.mubr.bf16.mxu1 %v3761_v30  ;;  %4343 = vmatprep.mubr.bf16.mxu0 %v3763_v55  ;;  %6400 = vtanh.bf16 %v3389_v35  ;;  %v3767_v12 = vmul.bf16 %v9242_v4, %v10758_v50  ;;  %v9287_v30 = vmul.bf16 1056980736, %v3572_v43  ;;  %v9291_v15 = vmul.bf16 %v3006_v58, %v9150_v6  ;;  %v2496_v43 = vpop.f32.mrb[58].mxu1  ;;  %v2769_v58 = vpop.f32.mrb[106].mxu0 }
 0x5bc   : > { %5875 = vmatpush1.bf16.msra.mxu1 %v6614_v57  ;;  %v6393_v55 = vpop.eup %6392  ;;  %v9294_v2 = vmul.bf16 %v3008_v25, %v9207_v38  ;;  %v3011_v21 = vmul.bf16 %v9219_v20, %v9219_v20  ;;  %v9298_v19 = vmul.bf16 1056980736, %v3574_v26  ;;  %v9301_v10 = vmul.bf16 %v3010_v48, %v9209_v49  ;;  %v2498_v11 = vpop.f32.mrb[59].mxu1 }
 0x5bd   : > { %5860 = vmatprep.subr.bf16.mxu1 %v10649_v32  ;;  %v6395_v50 = vpop.eup %6394  ;;  %v9304_v32 = vmul.bf16 %v3009_v14, %v9217_v47  ;;  %6402 = vtanh.bf16 %v3391_v40  ;;  %v9307_v4 = vadd.bf16 %v3196_v59, %v9148_v34  ;;  %v2493_v39 = vadd.f32 %v2492_v0, %v10774_v8  ;;  %v2771_v63 = vpop.f32.mrb[107].mxu0 }
 0x5be   : > { %v6397_v25 = vpop.eup %6396  ;;  %v2766_v33 = vadd.f32 %v2765_v46, %v10775_v23  ;;  %v2497_v26 = vadd.f32 %v2496_v43, %v10774_v8  ;;  %v2770_v7 = vadd.f32 %v2769_v58, %v10775_v23  ;;  %v2495_v17 = vadd.f32 %v2494_v51, %v10776_v61 }
 0x5bf   : > { %v2768_v41 = vadd.f32 %v2767_v13, %v10777_v53  ;;  %v2499_v59 = vadd.f32 %v2498_v11, %v10776_v61  ;;  %v2772_v24 = vadd.f32 %v2771_v63, %v10777_v53  ;;  %v3577_v62 = vadd.bf16 1065369472, %v6393_v55  ;;  %v2775_v55 = vpop.f32.mrb[108].mxu0 }
 0x5c0   : > { %5876 = vmatpush1.bf16.msra.mxu1 %v6615_v28  ;;  %v6399_v3 = vpop.eup %6398  ;;  %v9318_v52 = vpack.c.bf16 %v2497_v26, %v2493_v39  ;;  %v9320_v45 = vpack.c.bf16 %v2770_v7, %v2766_v33  ;;  %v3579_v18 = vadd.bf16 1065369472, %v6397_v25  ;;  %v3576_v35 = vadd.bf16 1065369472, %v6395_v50 }
 0x5c1   : > { %v9322_v48 = vpack.c.bf16 %v2499_v59, %v2495_v17  ;;  %v9324_v37 = vpack.c.bf16 %v2772_v24, %v2768_v41  ;;  %v3198_v14 = vmul.bf16 1027030327, %v9291_v15  ;;  %v3200_v40 = vmul.bf16 1027030327, %v9294_v2 }
 0x5c2   : > { %4119 = vmatmul.mubr.bf16.gmra.mrb[128].mxu1 %v3760_v42  ;;  %4344 = vmatmul.mubr.bf16.gmra.mrb[176].mxu0 %v3762_v31  ;;  %v3764_v0 = vmul.bf16 %v9287_v30, %v10749_v1  ;;  %v3201_v42 = vmul.bf16 1027030327, %v9304_v32  ;;  %v9333_v46 = vmul.bf16 %v3011_v21, %v9219_v20  ;;  %v2502_v31 = vpop.f32.mrb[60].mxu1  ;;  %v3012_v15 = vmul.bf16 %v9262_v22, %v9262_v22  ;;  %v2777_v1 = vpop.f32.mrb[109].mxu0 }
 0x5c3   : > { %4126 = vmatprep.mubr.bf16.mxu1 %v3765_v27  ;;  %4351 = vmatprep.mubr.bf16.mxu0 %v3767_v12  ;;  %v3766_v27 = vmul.bf16 %v9298_v19, %v10753_v9  ;;  %v3388_v12 = vmul.bf16 1061961548, %v9307_v4  ;;  %v3014_v51 = vmul.bf16 %v9264_v29, %v9264_v29  ;;  %v2504_v13 = vpop.f32.mrb[61].mxu1  ;;  %v3673_v30 = vmul.bf16 1056980736, %v3577_v62  ;;  %v2779_v19 = vpop.f32.mrb[110].mxu0 }
 0x5c4   : > { %v3578_v50 = vadd.bf16 1065369472, %v6399_v3  ;;  %v3013_v21 = vmul.bf16 %v9274_v36, %v9274_v36  ;;  %v3015_v58 = vmul.bf16 %v9276_v44, %v9276_v44  ;;  %v2506_v9 = vpop.f32.mrb[62].mxu1  ;;  %v3675_v4 = vmul.bf16 1056980736, %v3579_v18  ;;  %v2781_v63 = vpop.f32.mrb[111].mxu0 }
 0x5c5   : > { %v3672_v25 = vmul.bf16 1056980736, %v3576_v35  ;;  %v2503_v39 = vadd.f32 %v2502_v31, %v10774_v8  ;;  %v2776_v33 = vadd.f32 %v2775_v55, %v10775_v23  ;;  %v2507_v26 = vadd.f32 %v2506_v9, %v10774_v8  ;;  %v2508_v11 = vpop.f32.mrb[63].mxu1 }
 0x5c6   : > { %v6401_v43 = vpop.eup %6400  ;;  %v2780_v7 = vadd.f32 %v2779_v19, %v10775_v23  ;;  %v2505_v28 = vadd.f32 %v2504_v13, %v10776_v61  ;;  %v2778_v17 = vadd.f32 %v2777_v1, %v10777_v53  ;;  %v2509_v41 = vadd.f32 %v2508_v11, %v10776_v61  ;;  %v10790_v11 = vld [vmem:[#allocation84_spill] sm:$0xff] }
 0x5c7   : > { %v2782_v59 = vadd.f32 %v2781_v63, %v10777_v53  ;;  %v9354_v3 = vpack.c.bf16 %v2507_v26, %v2503_v39  ;;  %v3769_v18 = vmul.bf16 %v3673_v30, %v9103_v54  ;;  %v3581_v35 = vadd.bf16 1065369472, %v6401_v43  ;;  %v2512_v30 = vpop.f32.mrb[64].mxu1 }
 0x5c8   : > { %v6403_v24 = vpop.eup %6402  ;;  %v9356_v62 = vpack.c.bf16 %v2780_v7, %v2776_v33  ;;  %v9359_v31 = vpack.c.bf16 %v2509_v41, %v2505_v28  ;;  %v3771_v13 = vmul.bf16 %v3675_v4, %v9105_v5  ;;  %v3674_v1 = vmul.bf16 1056980736, %v3578_v50  ;;  %v2785_v50 = vpop.f32.mrb[112].mxu0 }
 0x5c9   : > { %v9361_v55 = vpack.c.bf16 %v2782_v59, %v2778_v17  ;;  %v3203_v9 = vmul.bf16 1027030327, %v9333_v46  ;;  %v9366_v19 = vmul.bf16 %v3012_v15, %v9262_v22  ;;  %v9369_v39 = vmul.bf16 %v3014_v51, %v9264_v29  ;;  %v2787_v43 = vpop.f32.mrb[113].mxu0 }
 0x5ca   : > { %10789 = vst [vmem:[#allocation85_spill] sm:$0xff] %v9356_v62  ;;  %4127 = vmatmul.mubr.bf16.gmra.mrb[132].mxu1 %v3764_v0  ;;  %4352 = vmatmul.mubr.bf16.gmra.mrb[180].mxu0 %v3766_v27  ;;  %v3294_v0 = vadd.bf16 %v3198_v14, %v9150_v6  ;;  %v9373_v54 = vmul.bf16 %v3013_v21, %v9274_v36  ;;  %6404 = vtanh.bf16 %v3388_v12  ;;  %v2514_v14 = vpop.f32.mrb[65].mxu1  ;;  %v3677_v21 = vmul.bf16 1056980736, %v3581_v35  ;;  %v2789_v7 = vpop.f32.mrb[114].mxu0 }
 0x5cb   : > { %4134 = vmatprep.mubr.bf16.mxu1 %v3769_v18  ;;  %v9376_v27 = vmul.bf16 %v3015_v58, %v9276_v44  ;;  %v3016_v5 = vmul.bf16 %v9318_v52, %v9318_v52  ;;  %4359 = vmatprep.mubr.bf16.mxu0 %v3771_v13  ;;  %v3018_v15 = vmul.bf16 %v9320_v45, %v9320_v45  ;;  %v3583_v4 = vadd.bf16 1065369472, %v6403_v24  ;;  %v2516_v26 = vpop.f32.mrb[66].mxu1  ;;  %v2791_v18 = vpop.f32.mrb[115].mxu0 }
 0x5cc   : > { %v3017_v51 = vmul.bf16 %v9322_v48, %v9322_v48  ;;  %v3019_v58 = vmul.bf16 %v9324_v37, %v9324_v37  ;;  %v3020_v33 = vmul.bf16 %v9354_v3, %v9354_v3  ;;  %v3768_v12 = vmul.bf16 %v3672_v25, %v9091_v60  ;;  %v2518_v24 = vpop.f32.mrb[67].mxu1 }
 0x5cd   : > { %v3770_v63 = vmul.bf16 %v3674_v1, %v10790_v11  ;;  %v2513_v28 = vadd.f32 %v2512_v30, %v10774_v8  ;;  %v2786_v17 = vadd.f32 %v2785_v50, %v10775_v23  ;;  %v2517_v41 = vadd.f32 %v2516_v26, %v10774_v8 }
 0x5ce   : > { %v2790_v59 = vadd.f32 %v2789_v7, %v10775_v23  ;;  %v2515_v35 = vadd.f32 %v2514_v14, %v10776_v61  ;;  %v2788_v13 = vadd.f32 %v2787_v43, %v10777_v53  ;;  %v2519_v57 = vadd.f32 %v2518_v24, %v10776_v61 }
 0x5cf   : > { %v2792_v60 = vadd.f32 %v2791_v18, %v10777_v53  ;;  %v9398_v25 = vpack.c.bf16 %v2517_v41, %v2513_v28  ;;  %v3773_v30 = vmul.bf16 %v3677_v21, %v9159_v16  ;;  %v3679_v50 = vmul.bf16 1056980736, %v3583_v4  ;;  %v2522_v21 = vpop.f32.mrb[68].mxu1  ;;  %v2795_v32 = vpop.f32.mrb[116].mxu0 }
 0x5d0   : > { %v9400_v1 = vpack.c.bf16 %v2790_v59, %v2786_v17  ;;  %v9403_v26 = vpack.c.bf16 %v2519_v57, %v2515_v35  ;;  %v3390_v14 = vmul.bf16 1061961548, %v3294_v0  ;;  %v3297_v43 = vadd.bf16 %v3201_v42, %v9217_v47  ;;  %v2797_v41 = vpop.f32.mrb[117].mxu0 }
 0x5d1   : > { %v9405_v7 = vpack.c.bf16 %v2792_v60, %v2788_v13  ;;  %v9416_v57 = vmul.bf16 %v3016_v5, %v9318_v52  ;;  %v9419_v0 = vmul.bf16 %v3018_v15, %v9320_v45  ;;  %v9422_v42 = vmul.bf16 %v3017_v51, %v9322_v48  ;;  %v2799_v18 = vpop.f32.mrb[118].mxu0 }
 0x5d2   : > { %4135 = vmatmul.mubr.bf16.gmra.mrb[136].mxu1 %v3768_v12  ;;  %4360 = vmatmul.mubr.bf16.gmra.mrb[184].mxu0 %v3770_v63  ;;  %v3775_v12 = vmul.bf16 %v3679_v50, %v9161_v56  ;;  %6406 = vtanh.bf16 %v3390_v14  ;;  %v9425_v4 = vmul.bf16 %v3019_v58, %v9324_v37  ;;  %v3022_v56 = vmul.bf16 %v9356_v62, %v9356_v62  ;;  %v2524_v63 = vpop.f32.mrb[69].mxu1  ;;  %v2801_v14 = vpop.f32.mrb[119].mxu0 }
 0x5d3   : > { %4142 = vmatprep.mubr.bf16.mxu1 %v3773_v30  ;;  %v3393_v5 = vmul.bf16 1061961548, %v3297_v43  ;;  %v9430_v59 = vmul.bf16 %v3020_v33, %v9354_v3  ;;  %v3021_v15 = vmul.bf16 %v9359_v31, %v9359_v31  ;;  %v3023_v51 = vmul.bf16 %v9361_v55, %v9361_v55  ;;  %v2526_v24 = vpop.f32.mrb[70].mxu1 }
 0x5d4   : > { %4367 = vmatprep.mubr.bf16.mxu0 %v3775_v12  ;;  %v3299_v58 = vadd.bf16 %v3203_v9, %v9219_v20  ;;  %v2523_v13 = vadd.f32 %v2522_v21, %v10774_v8  ;;  %v2796_v60 = vadd.f32 %v2795_v32, %v10775_v23  ;;  %v2527_v33 = vadd.f32 %v2526_v24, %v10774_v8  ;;  %v2528_v50 = vpop.f32.mrb[71].mxu1 }
 0x5d5   : > { %10791 = vst [vmem:[#allocation86_spill] sm:$0xff] %v9430_v59  ;;  %v6405_v35 = vpop.eup %6404  ;;  %v2800_v30 = vadd.f32 %v2799_v18, %v10775_v23  ;;  %v2525_v43 = vadd.f32 %v2524_v63, %v10776_v61  ;;  %v2798_v12 = vadd.f32 %v2797_v41, %v10777_v53  ;;  %v2529_v28 = vadd.f32 %v2528_v50, %v10776_v61 }
 0x5d6   : > { %v2802_v46 = vadd.f32 %v2801_v14, %v10777_v53  ;;  %v9447_v9 = vpack.c.bf16 %v2527_v33, %v2523_v13  ;;  %v3580_v21 = vadd.bf16 1065369472, %v6405_v35  ;;  %6408 = vtanh.bf16 %v3393_v5 }
 0x5d7   : > { %v9449_v11 = vpack.c.bf16 %v2800_v30, %v2796_v60  ;;  %v9451_v32 = vpack.c.bf16 %v2529_v28, %v2525_v43  ;;  %v3395_v18 = vmul.bf16 1061961548, %v3299_v58  ;;  %v3296_v63 = vadd.bf16 %v3200_v40, %v9207_v38  ;;  %v2532_v28 = vpop.f32.mrb[72].mxu1  ;;  %v2805_v35 = vpop.f32.mrb[120].mxu0 }
 0x5d8   : > { %v9453_v24 = vpack.c.bf16 %v2802_v46, %v2798_v12  ;;  %v3676_v14 = vmul.bf16 1056980736, %v3580_v21  ;;  %v9463_v5 = vmul.bf16 %v3022_v56, %v9356_v62  ;;  %v9466_v58 = vmul.bf16 %v3021_v15, %v9359_v31  ;;  %v2534_v33 = vpop.f32.mrb[73].mxu1  ;;  %v2807_v30 = vpop.f32.mrb[121].mxu0 }
 0x5d9   : > { %6410 = vtanh.bf16 %v3395_v18  ;;  %v9469_v2 = vmul.bf16 %v3023_v51, %v9361_v55  ;;  %v3392_v43 = vmul.bf16 1061961548, %v3296_v63  ;;  %v3024_v56 = vmul.bf16 %v9398_v25, %v9398_v25  ;;  %v2536_v21 = vpop.f32.mrb[74].mxu1  ;;  %v2809_v18 = vpop.f32.mrb[122].mxu0 }
 0x5da   : > { %v3772_v40 = vmul.bf16 %v3676_v14, %v9148_v34  ;;  %v3026_v46 = vmul.bf16 %v9400_v1, %v9400_v1  ;;  %v10792_v15 = vmul.bf16 1027030327, %v9301_v10  ;;  %v3025_v34 = vmul.bf16 %v9403_v26, %v9403_v26  ;;  %v2538_v41 = vpop.f32.mrb[75].mxu1  ;;  %v2811_v60 = vpop.f32.mrb[123].mxu0 }
 0x5db   : > { %v2533_v63 = vadd.f32 %v2532_v28, %v10774_v8  ;;  %v2806_v14 = vadd.f32 %v2805_v35, %v10775_v23  ;;  %v2537_v12 = vadd.f32 %v2536_v21, %v10774_v8  ;;  %v2535_v16 = vadd.f32 %v2534_v33, %v10776_v61 }
 0x5dc   : > { %v3298_v51 = vadd.bf16 %v10792_v15, %v9209_v49  ;;  %4143 = vmatmul.mubr.bf16.gmra.mrb[140].mxu1 %v3772_v40  ;;  %v2808_v17 = vadd.f32 %v2807_v30, %v10777_v53  ;;  %v2810_v10 = vadd.f32 %v2809_v18, %v10775_v23  ;;  %v2539_v62 = vadd.f32 %v2538_v41, %v10776_v61 }
 0x5dd   : > { %v6407_v50 = vpop.eup %6406  ;;  %v9488_v15 = vpack.c.bf16 %v2537_v12, %v2533_v63  ;;  %v2812_v40 = vadd.f32 %v2811_v60, %v10777_v53  ;;  %6412 = vtanh.bf16 %v3392_v43  ;;  %v3027_v33 = vmul.bf16 %v9405_v7, %v9405_v7 }
 0x5de   : > { %v3582_v13 = vadd.bf16 1065369472, %v6407_v50  ;;  %v9492_v35 = vpack.c.bf16 %v2810_v10, %v2806_v14  ;;  %v3394_v21 = vmul.bf16 1061961548, %v3298_v51  ;;  %v10793_v50 = vmul.bf16 1027030327, %v9373_v54 }
 0x5df   : > { %v9499_v30 = vpack.c.bf16 %v2539_v62, %v2535_v16  ;;  %v9501_v12 = vpack.c.bf16 %v2812_v40, %v2808_v17  ;;  %v10795_v41 = vmul.bf16 1027030327, %v9376_v27  ;;  %v10796_v27 = vmul.bf16 1027030327, %v9366_v19 }
 0x5e0   : > { %v3678_v28 = vmul.bf16 1056980736, %v3582_v13  ;;  %v3301_v59 = vadd.bf16 %v10793_v50, %v9274_v36  ;;  %v9507_v13 = vmul.bf16 %v3024_v56, %v9398_v25  ;;  %6414 = vtanh.bf16 %v3394_v21 }
 0x5e1   : > { %10794 = vst [vmem:[#allocation66_spill] sm:$0xff] %v9501_v12  ;;  %v3303_v60 = vadd.bf16 %v10795_v41, %v9276_v44  ;;  %v6409_v43 = vpop.eup %6408  ;;  %v3300_v14 = vadd.bf16 %v10796_v27, %v9262_v22  ;;  %v9517_v10 = vmul.bf16 %v3026_v46, %v9400_v1  ;;  %v3028_v19 = vmul.bf16 %v9447_v9, %v9447_v9 }
 0x5e2   : > { %v3774_v18 = vmul.bf16 %v3678_v28, %v9150_v6  ;;  %v3397_v54 = vmul.bf16 1061961548, %v3301_v59  ;;  %v3585_v62 = vadd.bf16 1065369472, %v6409_v43  ;;  %v9520_v6 = vmul.bf16 %v3025_v34, %v9403_v26  ;;  %v2815_v34 = vpop.f32.mrb[124].mxu0 }
 0x5e3   : > { %v3399_v16 = vmul.bf16 1061961548, %v3303_v60  ;;  %v9523_v59 = vmul.bf16 %v3027_v33, %v9405_v7  ;;  %v3396_v50 = vmul.bf16 1061961548, %v3300_v14  ;;  %v3030_v41 = vmul.bf16 %v9449_v11, %v9449_v11  ;;  %v2542_v60 = vpop.f32.mrb[76].mxu1  ;;  %v2817_v14 = vpop.f32.mrb[125].mxu0 }
 0x5e4   : > { %4368 = vmatmul.mubr.bf16.gmra.mrb[188].mxu0 %v3774_v18  ;;  %6416 = vtanh.bf16 %v3397_v54  ;;  %v6411_v56 = vpop.eup %6410  ;;  %v3681_v40 = vmul.bf16 1056980736, %v3585_v62  ;;  %v10797_v33 = vmul.bf16 1027030327, %v9369_v39  ;;  %v3029_v18 = vmul.bf16 %v9451_v32, %v9451_v32  ;;  %v2544_v27 = vpop.f32.mrb[77].mxu1 }
 0x5e5   : > { %v3587_v21 = vadd.bf16 1065369472, %v6411_v56  ;;  %6418 = vtanh.bf16 %v3399_v16  ;;  %v3031_v54 = vmul.bf16 %v9453_v24, %v9453_v24  ;;  %v2543_v16 = vadd.f32 %v2542_v60, %v10774_v8  ;;  %v2819_v28 = vpop.f32.mrb[126].mxu0 }
 0x5e6   : > { %v3777_v46 = vmul.bf16 %v3681_v40, %v9217_v47  ;;  %v3302_v43 = vadd.bf16 %v10797_v33, %v9264_v29  ;;  %v2816_v47 = vadd.f32 %v2815_v34, %v10775_v23  ;;  %v2545_v56 = vadd.f32 %v2544_v27, %v10776_v61  ;;  %v2546_v40 = vpop.f32.mrb[78].mxu1  ;;  %v2821_v12 = vpop.f32.mrb[127].mxu0 }
 0x5e7   : > { %v3683_v62 = vmul.bf16 1056980736, %v3587_v21  ;;  %6420 = vtanh.bf16 %v3396_v50  ;;  %v2818_v17 = vadd.f32 %v2817_v14, %v10777_v53  ;;  %v2547_v21 = vadd.f32 %v2546_v40, %v10774_v8  ;;  %v2548_v63 = vpop.f32.mrb[79].mxu1 }
 0x5e8   : > { %4150 = vmatprep.mubr.bf16.mxu1 %v3777_v46  ;;  %v3398_v39 = vmul.bf16 1061961548, %v3302_v43  ;;  %v6413_v33 = vpop.eup %6412  ;;  %v2820_v60 = vadd.f32 %v2819_v28, %v10775_v23  ;;  %v2549_v34 = vadd.f32 %v2548_v63, %v10776_v61  ;;  %v2822_v27 = vadd.f32 %v2821_v12, %v10777_v53 }
 0x5e9   : > { %v3779_v51 = vmul.bf16 %v3683_v62, %v9219_v20  ;;  %v3584_v46 = vadd.bf16 1065369472, %v6413_v33  ;;  %v9548_v50 = vmul.bf16 %v3028_v19, %v9447_v9  ;;  %v9550_v43 = vpack.c.bf16 %v2547_v21, %v2543_v16 }
 0x5ea   : > { %6422 = vtanh.bf16 %v3398_v39  ;;  %v9552_v20 = vpack.c.bf16 %v2820_v60, %v2816_v47  ;;  %v10798_v62 = vmul.bf16 1027030327, %v9422_v42  ;;  %v9557_v33 = vpack.c.bf16 %v2549_v34, %v2545_v56 }
 0x5eb   : > { %4375 = vmatprep.mubr.bf16.mxu0 %v3779_v51  ;;  %v6415_v14 = vpop.eup %6414  ;;  %v3680_v40 = vmul.bf16 1056980736, %v3584_v46  ;;  %v9559_v63 = vpack.c.bf16 %v2822_v27, %v2818_v17  ;;  %v10799_v12 = vmul.bf16 1027030327, %v9425_v4  ;;  %v3218_v51 = vmul.bf16 1027030327, %v9517_v10 }
 0x5ec   : > { %v3305_v28 = vadd.bf16 %v10798_v62, %v9322_v48  ;;  %v9566_v16 = vmul.bf16 %v3030_v41, %v9449_v11  ;;  %v3586_v47 = vadd.bf16 1065369472, %v6415_v14  ;;  %v9569_v42 = vmul.bf16 %v3029_v18, %v9451_v32 }
 0x5ed   : > { %v3307_v19 = vadd.bf16 %v10799_v12, %v9324_v37  ;;  %v9572_v56 = vmul.bf16 %v3031_v54, %v9453_v24  ;;  %v3776_v17 = vmul.bf16 %v3680_v40, %v9207_v38  ;;  %v3217_v4 = vmul.bf16 1027030327, %v9520_v6 }
 0x5ee   : > { %v3401_v39 = vmul.bf16 1061961548, %v3305_v28  ;;  %v3682_v46 = vmul.bf16 1056980736, %v3586_v47  ;;  %v3219_v41 = vmul.bf16 1027030327, %v9523_v59  ;;  %v3033_v59 = vmul.bf16 %v9499_v30, %v9499_v30 }
 0x5ef   : > { %v6417_v21 = vpop.eup %6416  ;;  %v3403_v60 = vmul.bf16 1061961548, %v3307_v19  ;;  %v3220_v62 = vmul.bf16 1027030327, %v9548_v50  ;;  %4151 = vmatmul.mubr.bf16.gmra.mrb[144].mxu1 %v3776_v17  ;;  %v10800_v18 = vmul.bf16 1027030327, %v9416_v57 }
 0x5f0   : > { %v3589_v34 = vadd.bf16 1065369472, %v6417_v21  ;;  %v6419_v27 = vpop.eup %6418  ;;  %6424 = vtanh.bf16 %v3401_v39  ;;  %v3222_v54 = vmul.bf16 1027030327, %v9566_v16  ;;  %v3778_v38 = vmul.bf16 %v3682_v46, %v9209_v49 }
 0x5f1   : > { %v3304_v28 = vadd.bf16 %v10800_v18, %v9318_v52  ;;  %v3591_v40 = vadd.bf16 1065369472, %v6419_v27  ;;  %v3221_v6 = vmul.bf16 1027030327, %v9569_v42  ;;  %v3223_v12 = vmul.bf16 1027030327, %v9572_v56 }
 0x5f2   : > { %v3685_v14 = vmul.bf16 1056980736, %v3589_v34  ;;  %6426 = vtanh.bf16 %v3403_v60  ;;  %v6421_v19 = vpop.eup %6420  ;;  %4376 = vmatmul.mubr.bf16.gmra.mrb[192].mxu0 %v3778_v38  ;;  %v10801_v21 = vmul.bf16 1027030327, %v9419_v0  ;;  %v10802_v42 = vmul.bf16 1027030327, %v9466_v58 }
 0x5f3   : > { %v3687_v57 = vmul.bf16 1056980736, %v3591_v40  ;;  %v3400_v39 = vmul.bf16 1061961548, %v3304_v28  ;;  %v3588_v17 = vadd.bf16 1065369472, %v6421_v19  ;;  %v3319_v10 = vadd.bf16 %v3223_v12, %v9453_v24 }
 0x5f4   : > { %v3781_v47 = vmul.bf16 %v3685_v14, %v9274_v36  ;;  %v3306_v49 = vadd.bf16 %v10801_v21, %v9320_v45  ;;  %v3309_v46 = vadd.bf16 %v10802_v42, %v9359_v31  ;;  %v10803_v56 = vmul.bf16 1027030327, %v9469_v2  ;;  %v10804_v60 = vld [vmem:[#allocation86_spill] sm:$0xff]  ;;  %v10806_v38 = vld [vmem:[#allocation85_spill] sm:$0xff] }
 0x5f5   : > { %v10805_v27 = vmul.bf16 1027030327, %v10804_v60  ;;  %v6423_v36 = vpop.eup %6422  ;;  %v3783_v28 = vmul.bf16 %v3687_v57, %v9276_v44  ;;  %6428 = vtanh.bf16 %v3400_v39  ;;  %v10807_v14 = vmul.bf16 1027030327, %v9463_v5 }
 0x5f6   : > { %v3311_v34 = vadd.bf16 %v10803_v56, %v9361_v55  ;;  %4158 = vmatprep.mubr.bf16.mxu1 %v3781_v47  ;;  %v3402_v0 = vmul.bf16 1061961548, %v3306_v49  ;;  %v3684_v58 = vmul.bf16 1056980736, %v3588_v17  ;;  %v3590_v19 = vadd.bf16 1065369472, %v6423_v36 }
 0x5f7   : > { %v3308_v18 = vadd.bf16 %v10805_v27, %v9354_v3  ;;  %v3310_v40 = vadd.bf16 %v10807_v14, %v10806_v38  ;;  %v3405_v21 = vmul.bf16 1061961548, %v3309_v46  ;;  %v3313_v2 = vadd.bf16 %v3217_v4, %v9403_v26  ;;  %4383 = vmatprep.mubr.bf16.mxu0 %v3783_v28 }
 0x5f8   : > { %v3129_v42 = vmul.bf16 %v3033_v59, %v9499_v30  ;;  %6430 = vtanh.bf16 %v3402_v0  ;;  %v3407_v56 = vmul.bf16 1061961548, %v3311_v34  ;;  %v3780_v47 = vmul.bf16 %v3684_v58, %v9262_v22 }
 0x5f9   : > { %v3404_v60 = vmul.bf16 1061961548, %v3308_v18  ;;  %v3686_v44 = vmul.bf16 1056980736, %v3590_v19  ;;  %6432 = vtanh.bf16 %v3405_v21  ;;  %v3406_v57 = vmul.bf16 1061961548, %v3310_v40 }
 0x5fa   : > { %v3032_v5 = vmul.bf16 %v9488_v15, %v9488_v15  ;;  %6434 = vtanh.bf16 %v3407_v56  ;;  %v3409_v39 = vmul.bf16 1061961548, %v3313_v2  ;;  %v3315_v49 = vadd.bf16 %v3219_v41, %v9405_v7  ;;  %4159 = vmatmul.mubr.bf16.gmra.mrb[148].mxu1 %v3780_v47 }
 0x5fb   : > { %v3782_v4 = vmul.bf16 %v3686_v44, %v9264_v29  ;;  %6436 = vtanh.bf16 %v3404_v60  ;;  %v10808_v59 = vmul.bf16 1027030327, %v9507_v13  ;;  %v3314_v22 = vadd.bf16 %v3218_v51, %v9400_v1  ;;  %v6425_v46 = vpop.eup %6424 }
 0x5fc   : > { %v3037_v34 = vmul.bf16 %v9557_v33, %v9557_v33  ;;  %6438 = vtanh.bf16 %v3406_v57  ;;  %v3411_v27 = vmul.bf16 1061961548, %v3315_v49  ;;  %v3317_v41 = vadd.bf16 %v3221_v6, %v9451_v32 }
 0x5fd   : > { %v3312_v17 = vadd.bf16 %v10808_v59, %v9398_v25  ;;  %v3225_v18 = vmul.bf16 1027030327, %v3129_v42  ;;  %4384 = vmatmul.mubr.bf16.gmra.mrb[196].mxu0 %v3782_v4  ;;  %v3593_v29 = vadd.bf16 1065369472, %v6425_v46  ;;  %6440 = vtanh.bf16 %v3409_v39  ;;  %v6427_v28 = vpop.eup %6426 }
 0x5fe   : > { %6442 = vtanh.bf16 %v3411_v27  ;;  %v3410_v13 = vmul.bf16 1061961548, %v3314_v22  ;;  %v3413_v0 = vmul.bf16 1061961548, %v3317_v41  ;;  %v3128_v51 = vmul.bf16 %v3032_v5, %v9488_v15 }
 0x5ff   : > { %v3408_v36 = vmul.bf16 1061961548, %v3312_v17  ;;  %v3689_v14 = vmul.bf16 1056980736, %v3593_v29  ;;  %v3595_v40 = vadd.bf16 1065369472, %v6427_v28  ;;  %v3133_v58 = vmul.bf16 %v3037_v34, %v9557_v33 }
 0x600   : > { %v3415_v19 = vmul.bf16 1061961548, %v3319_v10  ;;  %v3316_v6 = vadd.bf16 %v3220_v62, %v9447_v9  ;;  %v6429_v21 = vpop.eup %6428  ;;  %v3321_v56 = vadd.bf16 %v3225_v18, %v9499_v30  ;;  %v3318_v60 = vadd.bf16 %v3222_v54, %v9449_v11 }
 0x601   : > { %6444 = vtanh.bf16 %v3408_v36  ;;  %v3785_v2 = vmul.bf16 %v3689_v14, %v9322_v48  ;;  %v3691_v42 = vmul.bf16 1056980736, %v3595_v40  ;;  %v3592_v12 = vadd.bf16 1065369472, %v6429_v21 }
 0x602   : > { %6446 = vtanh.bf16 %v3413_v0  ;;  %v3224_v44 = vmul.bf16 1027030327, %v3128_v51  ;;  %v3036_v57 = vmul.bf16 %v9550_v43, %v9550_v43  ;;  %v3412_v39 = vmul.bf16 1061961548, %v3316_v6 }
 0x603   : > { %6448 = vtanh.bf16 %v3410_v13  ;;  %v6431_v47 = vpop.eup %6430  ;;  %4166 = vmatprep.mubr.bf16.mxu1 %v3785_v2  ;;  %v3787_v50 = vmul.bf16 %v3691_v42, %v9324_v37  ;;  %v3688_v62 = vmul.bf16 1056980736, %v3592_v12  ;;  %v3229_v4 = vmul.bf16 1027030327, %v3133_v58 }
 0x604   : > { %6450 = vtanh.bf16 %v3415_v19  ;;  %v6433_v48 = vpop.eup %6432  ;;  %v3594_v5 = vadd.bf16 1065369472, %v6431_v47  ;;  %v3417_v17 = vmul.bf16 1061961548, %v3321_v56  ;;  %v3414_v34 = vmul.bf16 1061961548, %v3318_v60 }
 0x605   : > { %v6435_v49 = vpop.eup %6434  ;;  %4391 = vmatprep.mubr.bf16.mxu0 %v3787_v50  ;;  %v3597_v59 = vadd.bf16 1065369472, %v6433_v48  ;;  %v3784_v54 = vmul.bf16 %v3688_v62, %v9318_v52  ;;  %v3132_v41 = vmul.bf16 %v3036_v57, %v9550_v43  ;;  %v3320_v29 = vadd.bf16 %v3224_v44, %v9488_v15 }
 0x606   : > { %v6437_v16 = vpop.eup %6436  ;;  %v3690_v22 = vmul.bf16 1056980736, %v3594_v5  ;;  %v3599_v46 = vadd.bf16 1065369472, %v6435_v49  ;;  %6452 = vtanh.bf16 %v3412_v39  ;;  %v3325_v14 = vadd.bf16 %v3229_v4, %v9557_v33 }
 0x607   : > { %v6439_v27 = vpop.eup %6438  ;;  %v3693_v37 = vmul.bf16 1056980736, %v3597_v59  ;;  %v3596_v18 = vadd.bf16 1065369472, %v6437_v16  ;;  %4167 = vmatmul.mubr.bf16.gmra.mrb[152].mxu1 %v3784_v54  ;;  %6454 = vtanh.bf16 %v3417_v17  ;;  %v3228_v2 = vmul.bf16 1027030327, %v3132_v41 }
 0x608   : > { %v6441_v36 = vpop.eup %6440  ;;  %v3786_v28 = vmul.bf16 %v3690_v22, %v9320_v45  ;;  %v3695_v13 = vmul.bf16 1056980736, %v3599_v46  ;;  %v3598_v0 = vadd.bf16 1065369472, %v6439_v27  ;;  %6456 = vtanh.bf16 %v3414_v34 }
 0x609   : > { %v6443_v10 = vpop.eup %6442  ;;  %v3789_v52 = vmul.bf16 %v3693_v37, %v9359_v31  ;;  %v3601_v51 = vadd.bf16 1065369472, %v6441_v36  ;;  %v3692_v58 = vmul.bf16 1056980736, %v3596_v18  ;;  %v3416_v56 = vmul.bf16 1061961548, %v3320_v29 }
 0x60a   : > { %4392 = vmatmul.mubr.bf16.gmra.mrb[200].mxu0 %v3786_v28  ;;  %v3791_v40 = vmul.bf16 %v3695_v13, %v9361_v55  ;;  %v3603_v19 = vadd.bf16 1065369472, %v6443_v10  ;;  %v3694_v42 = vmul.bf16 1056980736, %v3598_v0  ;;  %v3421_v60 = vmul.bf16 1061961548, %v3325_v14 }
 0x60b   : > { %4174 = vmatprep.mubr.bf16.mxu1 %v3789_v52  ;;  %v3697_v21 = vmul.bf16 1056980736, %v3601_v51  ;;  %v3788_v44 = vmul.bf16 %v3692_v58, %v9354_v3  ;;  %6458 = vtanh.bf16 %v3416_v56  ;;  %v3324_v5 = vadd.bf16 %v3228_v2, %v9550_v43  ;;  %v10809_v51 = vld [vmem:[#allocation66_spill] sm:$0xff] }
 0x60c   : > { %v6445_v6 = vpop.eup %6444  ;;  %4399 = vmatprep.mubr.bf16.mxu0 %v3791_v40  ;;  %v3699_v31 = vmul.bf16 1056980736, %v3603_v19  ;;  %v3790_v48 = vmul.bf16 %v3694_v42, %v10806_v38  ;;  %6460 = vtanh.bf16 %v3421_v60  ;;  %v3034_v37 = vmul.bf16 %v9492_v35, %v9492_v35 }
 0x60d   : > { %v6447_v45 = vpop.eup %6446  ;;  %v3600_v57 = vadd.bf16 1065369472, %v6445_v6  ;;  %v3793_v55 = vmul.bf16 %v3697_v21, %v9403_v26  ;;  %v3420_v16 = vmul.bf16 1061961548, %v3324_v5  ;;  %v3035_v14 = vmul.bf16 %v10809_v51, %v10809_v51 }
 0x60e   : > { %v6449_v12 = vpop.eup %6448  ;;  %v3605_v50 = vadd.bf16 1065369472, %v6447_v45  ;;  %v3795_v39 = vmul.bf16 %v3699_v31, %v9405_v7  ;;  %v3039_v2 = vmul.bf16 %v9559_v63, %v9559_v63  ;;  %v3038_v60 = vmul.bf16 %v9552_v20, %v9552_v20 }
 0x60f   : > { %v6451_v47 = vpop.eup %6450  ;;  %4175 = vmatmul.mubr.bf16.gmra.mrb[156].mxu1 %v3788_v44  ;;  %v3602_v62 = vadd.bf16 1065369472, %v6449_v12  ;;  %v3696_v4 = vmul.bf16 1056980736, %v3600_v57  ;;  %6462 = vtanh.bf16 %v3420_v16  ;;  %v3131_v21 = vmul.bf16 %v3035_v14, %v10809_v51 }
 0x610   : > { %4182 = vmatprep.mubr.bf16.mxu1 %v3793_v55  ;;  %v3607_v49 = vadd.bf16 1065369472, %v6451_v47  ;;  %v3701_v3 = vmul.bf16 1056980736, %v3605_v50  ;;  %v3135_v31 = vmul.bf16 %v3039_v2, %v9559_v63  ;;  %v3134_v57 = vmul.bf16 %v3038_v60, %v9552_v20 }
 0x611   : > { %v6453_v59 = vpop.eup %6452  ;;  %v3698_v26 = vmul.bf16 1056980736, %v3602_v62  ;;  %v3792_v38 = vmul.bf16 %v3696_v4, %v9398_v25  ;;  %v3227_v56 = vmul.bf16 1027030327, %v3131_v21 }
 0x612   : > { %4400 = vmatmul.mubr.bf16.gmra.mrb[204].mxu0 %v3790_v48  ;;  %v6455_v17 = vpop.eup %6454  ;;  %v3703_v22 = vmul.bf16 1056980736, %v3607_v49  ;;  %v3604_v46 = vadd.bf16 1065369472, %v6453_v59  ;;  %v3797_v34 = vmul.bf16 %v3701_v3, %v9451_v32  ;;  %v3130_v32 = vmul.bf16 %v3034_v37, %v9492_v35 }
 0x613   : > { %4407 = vmatprep.mubr.bf16.mxu0 %v3795_v39  ;;  %v6457_v54 = vpop.eup %6456  ;;  %v3609_v27 = vadd.bf16 1065369472, %v6455_v17  ;;  %v3794_v7 = vmul.bf16 %v3698_v26, %v9400_v1  ;;  %v3323_v47 = vadd.bf16 %v3227_v56, %v10809_v51  ;;  %v3231_v44 = vmul.bf16 1027030327, %v3135_v31 }
 0x614   : > { %v3606_v41 = vadd.bf16 1065369472, %v6457_v54  ;;  %v3799_v18 = vmul.bf16 %v3703_v22, %v9453_v24  ;;  %v3700_v29 = vmul.bf16 1056980736, %v3604_v46  ;;  %v3226_v40 = vmul.bf16 1027030327, %v3130_v32 }
 0x615   : > { %v3705_v25 = vmul.bf16 1056980736, %v3609_v27  ;;  %v3327_v5 = vadd.bf16 %v3231_v44, %v9559_v63  ;;  %v3230_v39 = vmul.bf16 1027030327, %v3134_v57 }
 0x616   : > { %v6459_v36 = vpop.eup %6458  ;;  %v3702_v13 = vmul.bf16 1056980736, %v3606_v41  ;;  %v3796_v0 = vmul.bf16 %v3700_v29, %v9447_v9  ;;  %v3322_v9 = vadd.bf16 %v3226_v40, %v9492_v35 }
 0x617   : > { %4183 = vmatmul.mubr.bf16.gmra.mrb[160].mxu1 %v3792_v38  ;;  %v6461_v28 = vpop.eup %6460  ;;  %v3608_v1 = vadd.bf16 1065369472, %v6459_v36  ;;  %v3801_v10 = vmul.bf16 %v3705_v25, %v9499_v30  ;;  %v3326_v29 = vadd.bf16 %v3230_v39, %v9552_v20 }
 0x618   : > { %4190 = vmatprep.mubr.bf16.mxu1 %v3797_v34  ;;  %v3613_v52 = vadd.bf16 1065369472, %v6461_v28  ;;  %v3798_v24 = vmul.bf16 %v3702_v13, %v9449_v11  ;;  %v3418_v11 = vmul.bf16 1061961548, %v3322_v9 }
 0x619   : > { %v3704_v58 = vmul.bf16 1056980736, %v3608_v1 }
 0x61a   : > { %4408 = vmatmul.mubr.bf16.gmra.mrb[208].mxu0 %v3794_v7  ;;  %v6463_v19 = vpop.eup %6462  ;;  %v3709_v6 = vmul.bf16 1056980736, %v3613_v52  ;;  %6464 = vtanh.bf16 %v3418_v11  ;;  %v3423_v7 = vmul.bf16 1061961548, %v3327_v5 }
 0x61b   : > { %4415 = vmatprep.mubr.bf16.mxu0 %v3799_v18  ;;  %v3800_v45 = vmul.bf16 %v3704_v58, %v9488_v15  ;;  %v3612_v30 = vadd.bf16 1065369472, %v6463_v19 }
 0x61c   : > { %v3805_v42 = vmul.bf16 %v3709_v6, %v9557_v33  ;;  %v3419_v33 = vmul.bf16 1061961548, %v3323_v47  ;;  %v3422_v6 = vmul.bf16 1061961548, %v3326_v29 }
 0x61d   : > { %v3708_v12 = vmul.bf16 1056980736, %v3612_v30 }
 0x61e   : > { %6466 = vtanh.bf16 %v3419_v33 }
 0x61f   : > { %4191 = vmatmul.mubr.bf16.gmra.mrb[164].mxu1 %v3796_v0  ;;  %v3804_v15 = vmul.bf16 %v3708_v12, %v9550_v43  ;;  %6468 = vtanh.bf16 %v3423_v7 }
 0x620   : > { %4198 = vmatprep.mubr.bf16.mxu1 %v3801_v10  ;;  %6470 = vtanh.bf16 %v3422_v6 }
 0x622   : > { %4416 = vmatmul.mubr.bf16.gmra.mrb[212].mxu0 %v3798_v24 }
 0x625   : > { %v6465_v41 = vpop.eup %6464 }
 0x626   : > { %v3610_v32 = vadd.bf16 1065369472, %v6465_v41 }
 0x627   : > { %4199 = vmatmul.mubr.bf16.gmra.mrb[168].mxu1 %v3800_v45 }
 0x628   : > { %4206 = vmatprep.mubr.bf16.mxu1 %v3805_v42  ;;  %v9719_v5 = vmul.bf16 1056980736, %v3610_v32 }
 0x629   : > { %v6467_v60 = vpop.eup %6466 }
 0x62f   : > { %4207 = vmatmul.mubr.bf16.gmra.mrb[172].mxu1 %v3804_v15  ;;  %v2552_v55 = vpop.f32.mrb[80].mxu1  ;;  %v2825_v50 = vpop.f32.mrb[128].mxu0 }
 0x630   : > { %v2554_v48 = vpop.f32.mrb[81].mxu1  ;;  %v2827_v62 = vpop.f32.mrb[129].mxu0  ;;  %v2553_v59 = vadd.f32 %v2552_v55, %v10774_v8  ;;  %v2826_v3 = vadd.f32 %v2825_v50, %v10775_v23 }
 0x631   : > { %v2556_v49 = vpop.f32.mrb[82].mxu1  ;;  %v2829_v4 = vpop.f32.mrb[130].mxu0  ;;  %v2555_v54 = vadd.f32 %v2554_v48, %v10776_v61  ;;  %v2828_v22 = vadd.f32 %v2827_v62, %v10777_v53 }
 0x632   : > { %v2557_v43 = vadd.f32 %v2556_v49, %v10774_v8  ;;  %v2830_v17 = vadd.f32 %v2829_v4, %v10775_v23  ;;  %v2558_v26 = vpop.f32.mrb[83].mxu1  ;;  %v2831_v16 = vpop.f32.mrb[131].mxu0 }
 0x633   : > { %v2559_v38 = vadd.f32 %v2558_v26, %v10776_v61  ;;  %v2832_v46 = vadd.f32 %v2831_v16, %v10777_v53 }
 0x634   : > { %v9679_v34 = vpack.c.bf16 %v2557_v43, %v2553_v59  ;;  %v9681_v27 = vpack.c.bf16 %v2830_v17, %v2826_v3  ;;  %v3611_v59 = vadd.bf16 1065369472, %v6467_v60 }
 0x635   : > { %v9683_v37 = vpack.c.bf16 %v2559_v38, %v2555_v54  ;;  %v9685_v18 = vpack.c.bf16 %v2832_v46, %v2828_v22 }
 0x636   : > { %v3040_v36 = vmul.bf16 %v9679_v34, %v9679_v34  ;;  %v3042_v1 = vmul.bf16 %v9681_v27, %v9681_v27 }
 0x637   : > { %v3041_v25 = vmul.bf16 %v9683_v37, %v9683_v37  ;;  %v2562_v28 = vpop.f32.mrb[84].mxu1  ;;  %v2835_v13 = vpop.f32.mrb[132].mxu0  ;;  %v3043_v15 = vmul.bf16 %v9685_v18, %v9685_v18 }
 0x638   : > { %v3136_v0 = vmul.bf16 %v3040_v36, %v9679_v34  ;;  %v2564_v10 = vpop.f32.mrb[85].mxu1  ;;  %v2837_v52 = vpop.f32.mrb[133].mxu0  ;;  %v2563_v24 = vadd.f32 %v2562_v28, %v10774_v8  ;;  %v2836_v40 = vadd.f32 %v2835_v13, %v10775_v23  ;;  %v3138_v47 = vmul.bf16 %v3042_v1, %v9681_v27 }
 0x639   : > { %v3137_v14 = vmul.bf16 %v3041_v25, %v9683_v37  ;;  %v2566_v58 = vpop.f32.mrb[86].mxu1  ;;  %v2839_v19 = vpop.f32.mrb[134].mxu0  ;;  %v2565_v9 = vadd.f32 %v2564_v10, %v10776_v61  ;;  %v2838_v11 = vadd.f32 %v2837_v52, %v10777_v53  ;;  %v9724_v43 = vmul.bf16 %v3043_v15, %v9685_v18 }
 0x63a   : > { %v3232_v21 = vmul.bf16 1027030327, %v3136_v0  ;;  %v2567_v45 = vadd.f32 %v2566_v58, %v10774_v8  ;;  %v2840_v30 = vadd.f32 %v2839_v19, %v10775_v23  ;;  %v2568_v2 = vpop.f32.mrb[87].mxu1  ;;  %v2841_v42 = vpop.f32.mrb[135].mxu0  ;;  %v3234_v3 = vmul.bf16 1027030327, %v3138_v47 }
 0x63b   : > { %v3233_v56 = vmul.bf16 1027030327, %v3137_v14  ;;  %v2569_v12 = vadd.f32 %v2568_v2, %v10776_v61  ;;  %v2842_v31 = vadd.f32 %v2841_v42, %v10777_v53  ;;  %v6469_v1 = vpop.eup %6468  ;;  %v3802_v2 = vmul.bf16 %v9719_v5, %v9492_v35 }
 0x63c   : > { %v9707_v44 = vpack.c.bf16 %v2567_v45, %v2563_v24  ;;  %v9709_v57 = vpack.c.bf16 %v2840_v30, %v2836_v40  ;;  %v3328_v48 = vadd.bf16 %v3232_v21, %v9679_v34  ;;  %v9748_v30 = vmul.bf16 1056980736, %v3611_v59 }
 0x63d   : > { %v9711_v33 = vpack.c.bf16 %v2569_v12, %v2565_v9  ;;  %v9713_v55 = vpack.c.bf16 %v2842_v31, %v2838_v11  ;;  %v3329_v50 = vadd.bf16 %v3233_v56, %v9683_v37  ;;  %v3235_v42 = vmul.bf16 1027030327, %v9724_v43 }
 0x63e   : > { %v3044_v62 = vmul.bf16 %v9707_v44, %v9707_v44  ;;  %v3424_v29 = vmul.bf16 1061961548, %v3328_v48  ;;  %v3615_v31 = vadd.bf16 1065369472, %v6469_v1  ;;  %v3046_v60 = vmul.bf16 %v9709_v57, %v9709_v57 }
 0x63f   : > { %v3045_v39 = vmul.bf16 %v9711_v33, %v9711_v33  ;;  %v2572_v49 = vpop.f32.mrb[88].mxu1  ;;  %v2845_v4 = vpop.f32.mrb[136].mxu0  ;;  %v3425_v54 = vmul.bf16 1061961548, %v3329_v50 }
 0x640   : > { %v3140_v17 = vmul.bf16 %v3044_v62, %v9707_v44  ;;  %v2574_v26 = vpop.f32.mrb[89].mxu1  ;;  %v2847_v16 = vpop.f32.mrb[137].mxu0  ;;  %v2573_v38 = vadd.f32 %v2572_v49, %v10774_v8  ;;  %v2846_v46 = vadd.f32 %v2845_v4, %v10775_v23  ;;  %v9759_v62 = vadd.bf16 %v3234_v3, %v9681_v27 }
 0x641   : > { %v3141_v22 = vmul.bf16 %v3045_v39, %v9711_v33  ;;  %v2576_v7 = vpop.f32.mrb[90].mxu1  ;;  %v2849_v41 = vpop.f32.mrb[138].mxu0  ;;  %v2575_v25 = vadd.f32 %v2574_v26, %v10776_v61  ;;  %v2848_v52 = vadd.f32 %v2847_v16, %v10777_v53  ;;  %6472 = vtanh.bf16 %v3425_v54 }
 0x642   : > { %v3236_v36 = vmul.bf16 1027030327, %v3140_v17  ;;  %v2577_v28 = vadd.f32 %v2576_v7, %v10774_v8  ;;  %v2850_v13 = vadd.f32 %v2849_v41, %v10775_v23  ;;  %v2578_v32 = vpop.f32.mrb[91].mxu1  ;;  %v2851_v0 = vpop.f32.mrb[139].mxu0  ;;  %6474 = vtanh.bf16 %v3424_v29 }
 0x643   : > { %v3237_v10 = vmul.bf16 1027030327, %v3141_v22  ;;  %v2579_v14 = vadd.f32 %v2578_v32, %v10776_v61  ;;  %v2852_v24 = vadd.f32 %v2851_v0, %v10777_v53  ;;  %v6471_v26 = vpop.eup %6470 }
 0x644   : > { %v9736_v40 = vpack.c.bf16 %v2577_v28, %v2573_v38  ;;  %v9738_v58 = vpack.c.bf16 %v2850_v13, %v2846_v46  ;;  %v3332_v19 = vadd.bf16 %v3236_v36, %v9707_v44  ;;  %v3614_v1 = vadd.bf16 1065369472, %v6471_v26 }
 0x645   : > { %v9741_v6 = vpack.c.bf16 %v2579_v14, %v2575_v25  ;;  %v9743_v21 = vpack.c.bf16 %v2852_v24, %v2848_v52  ;;  %v3333_v9 = vadd.bf16 %v3237_v10, %v9711_v33  ;;  %v3331_v10 = vadd.bf16 %v3235_v42, %v9685_v18 }
 0x646   : > { %v3048_v45 = vmul.bf16 %v9736_v40, %v9736_v40  ;;  %v3428_v17 = vmul.bf16 1061961548, %v3332_v19  ;;  %v3426_v42 = vmul.bf16 1061961548, %v9759_v62  ;;  %v3047_v62 = vmul.bf16 %v9713_v55, %v9713_v55 }
 0x647   : > { %v3049_v56 = vmul.bf16 %v9741_v6, %v9741_v6  ;;  %v2582_v11 = vpop.f32.mrb[92].mxu1  ;;  %v2855_v12 = vpop.f32.mrb[140].mxu0  ;;  %v3429_v48 = vmul.bf16 1061961548, %v3333_v9 }
 0x648   : > { %v3144_v47 = vmul.bf16 %v3048_v45, %v9736_v40  ;;  %v2584_v15 = vpop.f32.mrb[93].mxu1  ;;  %v2857_v50 = vpop.f32.mrb[141].mxu0  ;;  %v2583_v49 = vadd.f32 %v2582_v11, %v10774_v8  ;;  %v2856_v4 = vadd.f32 %v2855_v12, %v10775_v23 }
 0x649   : > { %v3145_v39 = vmul.bf16 %v3049_v56, %v9741_v6  ;;  %v2586_v59 = vpop.f32.mrb[94].mxu1  ;;  %v2859_v43 = vpop.f32.mrb[142].mxu0  ;;  %v2585_v54 = vadd.f32 %v2584_v15, %v10776_v61  ;;  %v2858_v41 = vadd.f32 %v2857_v50, %v10777_v53  ;;  %6476 = vtanh.bf16 %v3429_v48 }
 0x64a   : > { %v3240_v16 = vmul.bf16 1027030327, %v3144_v47  ;;  %v2587_v22 = vadd.f32 %v2586_v59, %v10774_v8  ;;  %v2860_v38 = vadd.f32 %v2859_v43, %v10775_v23  ;;  %v2588_v3 = vpop.f32.mrb[95].mxu1  ;;  %v2861_v46 = vpop.f32.mrb[143].mxu0  ;;  %v9780_v23 = vld [vmem:[%s6934_s11] ss:$0 sm:$0xff]  ;;  %6478 = vtanh.bf16 %v3428_v17 }
 0x64b   : > { %v3241_v7 = vmul.bf16 1027030327, %v3145_v39  ;;  %v2589_v29 = vadd.f32 %v2588_v3, %v10776_v61  ;;  %v2862_v36 = vadd.f32 %v2861_v46, %v10777_v53  ;;  %v9785_v53 = vmul.bf16 1056980736, %v3615_v31 }
 0x64c   : > { %v9770_v25 = vpack.c.bf16 %v2587_v22, %v2583_v49  ;;  %v9772_v28 = vpack.c.bf16 %v2860_v38, %v2856_v4  ;;  %v3336_v13 = vadd.bf16 %v3240_v16, %v9736_v40  ;;  %v6473_v52 = vpop.eup %6472  ;;  %v3803_v56 = vmul.bf16 %v9748_v30, %v10809_v51 }
 0x64d   : > { %v9775_v32 = vpack.c.bf16 %v2589_v29, %v2585_v54  ;;  %v9777_v8 = vpack.c.bf16 %v2862_v36, %v2858_v41  ;;  %v3337_v0 = vadd.bf16 %v3241_v7, %v9741_v6  ;;  %v6475_v11 = vpop.eup %6474  ;;  %v3617_v50 = vadd.bf16 1065369472, %v6473_v52 }
 0x64e   : > { %v3052_v61 = vmul.bf16 %v9770_v25, %v9770_v25  ;;  %v3432_v45 = vmul.bf16 1061961548, %v3336_v13  ;;  %v9796_v48 = vmul.bf16 %v3046_v60, %v9709_v57  ;;  %v3616_v59 = vadd.bf16 1065369472, %v6475_v11 }
 0x64f   : > { %v3053_v14 = vmul.bf16 %v9775_v32, %v9775_v32  ;;  %v4056_v24 = vpop.f32.mrb[96].mxu1  ;;  %v4281_v19 = vpop.f32.mrb[144].mxu0  ;;  %v3433_v9 = vmul.bf16 1061961548, %v3337_v0  ;;  %v3427_v22 = vmul.bf16 1061961548, %v3331_v10 }
 0x650   : > { %v3148_v12 = vmul.bf16 %v3052_v61, %v9770_v25  ;;  %v4057_v31 = vadd.f32 %v9780_v23, %v4056_v24  ;;  %v4058_v47 = vpop.f32.mrb[97].mxu1  ;;  %v4283_v15 = vpop.f32.mrb[145].mxu0  ;;  %v3713_v60 = vmul.bf16 1056980736, %v3617_v50  ;;  %v3712_v7 = vmul.bf16 1056980736, %v3616_v59 }
 0x651   : > { %v3149_v39 = vmul.bf16 %v3053_v14, %v9775_v32  ;;  %v4059_v49 = vpop.f32.mrb[98].mxu1  ;;  %v4284_v4 = vpop.f32.mrb[146].mxu0  ;;  %6480 = vtanh.bf16 %v3433_v9  ;;  %v3238_v29 = vmul.bf16 1027030327, %v9796_v48  ;;  %v9812_v0 = vmul.bf16 1056980736, %v3614_v1 }
 0x652   : > { %v3244_v43 = vmul.bf16 1027030327, %v3148_v12  ;;  %v9799_v17 = vadd.f32 %v4281_v19, %v4057_v31  ;;  %v4060_v26 = vadd.f32 %v9780_v23, %v4059_v49  ;;  %v4061_v16 = vpop.f32.mrb[99].mxu1  ;;  %v4286_v54 = vpop.f32.mrb[147].mxu0  ;;  %6482 = vtanh.bf16 %v3432_v45 }
 0x653   : > { %v3245_v38 = vmul.bf16 1027030327, %v3149_v39  ;;  %v3809_v36 = vmul.bf16 %v3713_v60, %v9683_v37  ;;  %v3808_v52 = vmul.bf16 %v3712_v7, %v9679_v34  ;;  %6484 = vtanh.bf16 %v3427_v22 }
 0x654   : > { %v4472_v3 = vmul.f32 %v9799_v17, %v9799_v17  ;;  %v9806_v46 = vadd.f32 %v4284_v4, %v4060_v26  ;;  %v3340_v41 = vadd.bf16 %v3244_v43, %v9770_v25  ;;  %v6477_v14 = vpop.eup %6476  ;;  %v9819_v24 = vmul.bf16 %v3047_v62, %v9713_v55 }
 0x655   : > { %v3341_v13 = vadd.bf16 %v3245_v38, %v9775_v32  ;;  %4214 = vmatprep.mubr.bf16.mxu1 %v3809_v36  ;;  %6486 = vtanh.bf16 %v3426_v42  ;;  %v6479_v1 = vpop.eup %6478  ;;  %v3621_v15 = vadd.bf16 1065369472, %v6477_v14  ;;  %v3050_v50 = vmul.bf16 %v9738_v58, %v9738_v58 }
 0x656   : > { %v4520_v61 = vmul.f32 %v4472_v3, %v9799_v17  ;;  %v4473_v10 = vmul.f32 %v9806_v46, %v9806_v46  ;;  %v3436_v45 = vmul.bf16 1061961548, %v3340_v41  ;;  %4215 = vmatmul.mubr.bf16.gmra.mrb[176].mxu1 %v3808_v52  ;;  %v3051_v39 = vmul.bf16 %v9743_v21, %v9743_v21 }
 0x657   : > { %v3437_v37 = vmul.bf16 1061961548, %v3341_v13  ;;  %v3620_v59 = vadd.bf16 1065369472, %v6479_v1  ;;  %v3054_v62 = vmul.bf16 %v9772_v28, %v9772_v28  ;;  %v3717_v38 = vmul.bf16 1056980736, %v3621_v15 }
 0x658   : > { %v4568_v11 = vmul.f32 0.044715, %v4520_v61  ;;  %v4521_v12 = vmul.f32 %v4473_v10, %v9806_v46  ;;  %v3055_v61 = vmul.bf16 %v9777_v8, %v9777_v8  ;;  %v9846_v1 = vmul.bf16 %v3050_v50, %v9738_v58 }
 0x659   : > { %6488 = vtanh.bf16 %v3437_v37  ;;  %v3716_v60 = vmul.bf16 1056980736, %v3620_v59  ;;  %v3813_v10 = vmul.bf16 %v3717_v38, %v9711_v33  ;;  %v9856_v50 = vmul.bf16 %v3054_v62, %v9772_v28 }
 0x65a   : > { %v4064_v19 = vpop.f32.mrb[100].mxu1  ;;  %v4289_v9 = vpop.f32.mrb[148].mxu0  ;;  %v4616_v42 = vadd.f32 %v4568_v11, %v9799_v17  ;;  %v4569_v43 = vmul.f32 0.044715, %v4521_v12  ;;  %6490 = vtanh.bf16 %v3436_v45  ;;  %v9849_v11 = vmul.bf16 %v3051_v39, %v9743_v21 }
 0x65b   : > { %v4065_v31 = vadd.f32 %v9780_v23, %v4064_v19  ;;  %v4066_v47 = vpop.f32.mrb[101].mxu1  ;;  %v4291_v34 = vpop.f32.mrb[149].mxu0  ;;  %v3812_v52 = vmul.bf16 %v3716_v60, %v9707_v44  ;;  %4222 = vmatprep.mubr.bf16.mxu1 %v3813_v10  ;;  %v9859_v39 = vmul.bf16 %v3055_v61, %v9777_v8  ;;  %v3242_v61 = vmul.bf16 1027030327, %v9846_v1 }
 0x65c   : > { %v4067_v49 = vpop.f32.mrb[102].mxu1  ;;  %v4292_v4 = vpop.f32.mrb[150].mxu0  ;;  %v4664_v7 = vmul.f32 0.7978846, %v4616_v42  ;;  %v4617_v41 = vadd.f32 %v4569_v43, %v9806_v46  ;;  %v3243_v10 = vmul.bf16 1027030327, %v9849_v11 }
 0x65d   : > { %v9828_v26 = vadd.f32 %v4289_v9, %v4065_v31  ;;  %v4068_v16 = vadd.f32 %v9780_v23, %v4067_v49  ;;  %v4069_v54 = vpop.f32.mrb[103].mxu1  ;;  %v4294_v22 = vpop.f32.mrb[151].mxu0 }
 0x65e   : > { %v6481_v3 = vpop.eup %6480  ;;  %6492 = vtanh.f32 %v4664_v7  ;;  %v4665_v9 = vmul.f32 0.7978846, %v4617_v41  ;;  %4223 = vmatmul.mubr.bf16.gmra.mrb[180].mxu1 %v3812_v52 }
 0x65f   : > { %v4474_v36 = vmul.f32 %v9828_v26, %v9828_v26  ;;  %v9836_v13 = vadd.f32 %v4292_v4, %v4068_v16  ;;  %v3625_v14 = vadd.bf16 1065369472, %v6481_v3  ;;  %v6483_v19 = vpop.eup %6482 }
 0x660   : > { %v3624_v44 = vadd.bf16 1065369472, %v6483_v19  ;;  %6494 = vtanh.f32 %v4665_v9  ;;  %v9853_v59 = vpop.eup %6484 }
 0x661   : > { %v4522_v37 = vmul.f32 %v4474_v36, %v9828_v26  ;;  %v4475_v45 = vmul.f32 %v9836_v13, %v9836_v13  ;;  %v3721_v31 = vmul.bf16 1056980736, %v3625_v14  ;;  %v9862_v22 = vpop.eup %6486  ;;  %v3239_v36 = vmul.bf16 1027030327, %v9819_v24 }
 0x662   : > { %v4072_v12 = vpop.f32.mrb[104].mxu1  ;;  %v4297_v33 = vpop.f32.mrb[152].mxu0  ;;  %v3720_v54 = vmul.bf16 1056980736, %v3624_v44  ;;  %v3247_v24 = vmul.bf16 1027030327, %v9859_v39 }
 0x663   : > { %v4570_v47 = vmul.f32 0.044715, %v4522_v37  ;;  %v4523_v34 = vmul.f32 %v4475_v45, %v9836_v13  ;;  %v4073_v15 = vadd.f32 %v9780_v23, %v4072_v12  ;;  %v4074_v49 = vpop.f32.mrb[105].mxu1  ;;  %v4299_v4 = vpop.f32.mrb[153].mxu0  ;;  %v3817_v16 = vmul.bf16 %v3721_v31, %v9741_v6  ;;  %v10812_v39 = vld [vmem:[#allocation9_spill] sm:$0xff] }
 0x664   : > { %v4075_v42 = vpop.f32.mrb[106].mxu1  ;;  %v4300_v43 = vpop.f32.mrb[154].mxu0  ;;  %v3807_v6 = vmul.bf16 %v9785_v53, %v9559_v63  ;;  %v3246_v45 = vmul.bf16 1027030327, %v9856_v50  ;;  %v3816_v12 = vmul.bf16 %v3720_v54, %v9736_v40 }
 0x665   : > { %v4618_v38 = vadd.f32 %v4570_v47, %v9828_v26  ;;  %v4571_v60 = vmul.f32 0.044715, %v4523_v34  ;;  %v9865_v3 = vadd.f32 %v4297_v33, %v4073_v15  ;;  %v4076_v7 = vadd.f32 %v9780_v23, %v4075_v42  ;;  %v4077_v41 = vpop.f32.mrb[107].mxu1  ;;  %v4302_v62 = vpop.f32.mrb[155].mxu0  ;;  %4230 = vmatprep.mubr.bf16.mxu1 %v3817_v16 }
 0x666   : > { %v6489_v52 = vpop.eup %6488  ;;  %v3335_v16 = vadd.bf16 %v3239_v36, %v9713_v55  ;;  %4231 = vmatmul.mubr.bf16.gmra.mrb[184].mxu1 %v3816_v12  ;;  %v9893_v36 = vadd.bf16 %v3238_v29, %v9709_v57 }
 0x667   : > { %v4666_v14 = vmul.f32 0.7978846, %v4618_v38  ;;  %v4619_v19 = vadd.f32 %v4571_v60, %v9836_v13  ;;  %v4476_v9 = vmul.f32 %v9865_v3, %v9865_v3  ;;  %v9876_v37 = vadd.f32 %v4300_v43, %v4076_v7  ;;  %v6491_v31 = vpop.eup %6490 }
 0x668   : > { %v3629_v33 = vadd.bf16 1065369472, %v6489_v52  ;;  %v3628_v42 = vadd.bf16 1065369472, %v6491_v31  ;;  %v3806_v43 = vmul.bf16 %v9812_v0, %v9552_v20  ;;  %v6493_v38 = vpop.eup %6492 }
 0x669   : > { %6496 = vtanh.f32 %v4666_v14  ;;  %v4667_v44 = vmul.f32 0.7978846, %v4619_v19  ;;  %v4524_v47 = vmul.f32 %v4476_v9, %v9865_v3  ;;  %v4477_v34 = vmul.f32 %v9876_v37, %v9876_v37 }
 0x66a   : > { %v4080_v15 = vpop.f32.mrb[108].mxu1  ;;  %v4305_v49 = vpop.f32.mrb[156].mxu0  ;;  %v3725_v4 = vmul.bf16 1056980736, %v3629_v33  ;;  %v4760_v62 = vadd.f32 1.0, %v6493_v38 }
 0x66b   : > { %6498 = vtanh.f32 %v4667_v44  ;;  %v4572_v40 = vmul.f32 0.044715, %v4524_v47  ;;  %v4525_v54 = vmul.f32 %v4477_v34, %v9876_v37  ;;  %v4081_v60 = vadd.f32 %v9780_v23, %v4080_v15  ;;  %v4082_v7 = vpop.f32.mrb[109].mxu1  ;;  %v4307_v41 = vpop.f32.mrb[157].mxu0 }
 0x66c   : > { %v4083_v52 = vpop.f32.mrb[110].mxu1  ;;  %v4308_v14 = vpop.f32.mrb[158].mxu0  ;;  %v3821_v19 = vmul.bf16 %v3725_v4, %v9775_v32  ;;  %v3724_v9 = vmul.bf16 1056980736, %v3628_v42  ;;  %v4808_v38 = vmul.f32 0.5, %v4760_v62 }
 0x66d   : > { %v6495_v33 = vpop.eup %6494  ;;  %v4620_v31 = vadd.f32 %v4572_v40, %v9865_v3  ;;  %v4573_v44 = vmul.f32 0.044715, %v4525_v54  ;;  %v9896_v12 = vadd.f32 %v4305_v49, %v4081_v60  ;;  %v4084_v47 = vadd.f32 %v9780_v23, %v4083_v52  ;;  %v4085_v34 = vpop.f32.mrb[111].mxu1 }
 0x66e   : > { %v4310_v15 = vpop.f32.mrb[159].mxu0  ;;  %v4761_v7 = vadd.f32 1.0, %v6495_v33  ;;  %4238 = vmatprep.mubr.bf16.mxu1 %v3821_v19  ;;  %v3619_v32 = vadd.bf16 1065369472, %v9853_v59  ;;  %v3618_v4 = vadd.bf16 1065369472, %v9862_v22  ;;  %v4856_v49 = vmul.f32 %v4808_v38, %v9799_v17 }
 0x66f   : > { %v4668_v48 = vmul.f32 0.7978846, %v4620_v31  ;;  %v4621_v29 = vadd.f32 %v4573_v44, %v9876_v37  ;;  %v4478_v42 = vmul.f32 %v9896_v12, %v9896_v12  ;;  %v9904_v40 = vadd.f32 %v4308_v14, %v4084_v47  ;;  %v10810_v15 = vld [vmem:[#allocation8_spill] sm:$0xff] }
 0x670   : > { %v4809_v54 = vmul.f32 0.5, %v4761_v7  ;;  %v3820_v60 = vmul.bf16 %v3724_v9, %v9770_v25  ;;  %v3431_v41 = vmul.bf16 1061961548, %v3335_v16  ;;  %v9912_v44 = vmul.bf16 1056980736, %v3619_v32  ;;  %v10811_v7 = vld [vmem:[#allocation10_spill] sm:$0xff] }
 0x671   : > { %6500 = vtanh.f32 %v4668_v48  ;;  %v4669_v62 = vmul.f32 0.7978846, %v4621_v29  ;;  %v4526_v59 = vmul.f32 %v4478_v42, %v9896_v12  ;;  %v4479_v52 = vmul.f32 %v9904_v40, %v9904_v40 }
 0x672   : > { %v4857_v19 = vmul.f32 %v4809_v54, %v9806_v46  ;;  %v4088_v33 = vpop.f32.mrb[112].mxu1  ;;  %v4313_v31 = vpop.f32.mrb[160].mxu0  ;;  %v3339_v17 = vadd.bf16 %v3243_v10, %v9743_v21  ;;  %v9920_v25 = vadd.bf16 %v3242_v61, %v9738_v58  ;;  %4239 = vmatmul.mubr.bf16.gmra.mrb[188].mxu1 %v3820_v60  ;;  %v4904_v38 = vadd.f32 %v4856_v49, %v10810_v15 }
 0x673   : > { %v6497_v16 = vpop.eup %6496  ;;  %6502 = vtanh.f32 %v4669_v62  ;;  %v4574_v14 = vmul.f32 0.044715, %v4526_v59  ;;  %v4527_v9 = vmul.f32 %v4479_v52, %v9904_v40  ;;  %v4089_v46 = vadd.f32 %v9780_v23, %v4088_v33  ;;  %v4090_v47 = vpop.f32.mrb[113].mxu1  ;;  %4423 = vmatprep.mubr.bf16.mxu1 %v3803_v56 }
 0x674   : > { %v4315_v34 = vpop.f32.mrb[161].mxu0  ;;  %v4905_v11 = vadd.f32 %v4857_v19, %v10811_v7  ;;  %v4762_v10 = vadd.f32 1.0, %v6497_v16  ;;  %v4091_v1 = vpop.f32.mrb[114].mxu1  ;;  %6504 = vtanh.bf16 %v3431_v41  ;;  %v3430_v19 = vmul.bf16 1061961548, %v9893_v36 }
 0x675   : > { %v4316_v61 = vpop.f32.mrb[162].mxu0  ;;  %v6499_v32 = vpop.eup %6498  ;;  %v4622_v48 = vadd.f32 %v4574_v14, %v9896_v12  ;;  %v4575_v29 = vmul.f32 0.044715, %v4527_v9  ;;  %v9930_v42 = vadd.f32 %v4313_v31, %v4089_v46  ;;  %v4092_v54 = vadd.f32 %v9780_v23, %v4091_v1 }
 0x676   : > { %v4093_v60 = vpop.f32.mrb[115].mxu1  ;;  %v4318_v49 = vpop.f32.mrb[163].mxu0  ;;  %v5586_v62 = vpack.c.bf16 %v4905_v11, %v4904_v38  ;;  %v4810_v59 = vmul.f32 0.5, %v4762_v10  ;;  %v4763_v52 = vadd.f32 1.0, %v6499_v32  ;;  %v3811_v16 = vmul.bf16 %v9912_v44, %v9685_v18 }
 0x677   : > { %v4670_v51 = vmul.f32 0.7978846, %v4622_v48  ;;  %v4623_v30 = vadd.f32 %v4575_v29, %v9904_v40  ;;  %v4480_v56 = vmul.f32 %v9930_v42, %v9930_v42  ;;  %v9937_v41 = vadd.f32 %v4316_v61, %v4092_v54  ;;  %v10813_v61 = vld [vmem:[#allocation11_spill] sm:$0xff] }
 0x678   : > { %5587 = vst [vmem:[%s10399_s7] sm:$0xff] %v5586_v62   ;;  %v4858_v33 = vmul.f32 %v4810_v59, %v9828_v26  ;;  %v4811_v31 = vmul.f32 0.5, %v4763_v52  ;;  %v3435_v14 = vmul.bf16 1061961548, %v3339_v17  ;;  %v3343_v26 = vadd.bf16 %v3247_v24, %v9777_v8 }
 0x679   : > { %6506 = vtanh.f32 %v4670_v51  ;;  %v4671_v36 = vmul.f32 0.7978846, %v4623_v30  ;;  %v4528_v9 = vmul.f32 %v4480_v56, %v9930_v42  ;;  %v4481_v46 = vmul.f32 %v9937_v41, %v9937_v41 }
 0x67a   : > { %v4859_v47 = vmul.f32 %v4811_v31, %v9836_v13  ;;  %v4096_v34 = vpop.f32.mrb[116].mxu1  ;;  %6508 = vtanh.bf16 %v3430_v19  ;;  %v9955_v17 = vadd.bf16 %v3246_v45, %v9772_v28  ;;  %4424 = vmatmul.mubr.bf16.vlgmr.msra.gmra.mrb[168].mxu1 %v3802_v2  ;;  %v4906_v24 = vadd.f32 %v4858_v33, %v10812_v39 }
 0x67b   : > { %v4321_v15 = vpop.f32.mrb[164].mxu0  ;;  %v6501_v38 = vpop.eup %6500  ;;  %6510 = vtanh.f32 %v4671_v36  ;;  %v4576_v7 = vmul.f32 0.044715, %v4528_v9  ;;  %v4529_v11 = vmul.f32 %v4481_v46, %v9937_v41  ;;  %v4097_v13 = vadd.f32 %v9780_v23, %v4096_v34  ;;  %4431 = vmatprep.mubr.bf16.mxu1 %v3807_v6 }
 0x67c   : > { %v4098_v10 = vpop.f32.mrb[117].mxu1  ;;  %v4323_v1 = vpop.f32.mrb[165].mxu0  ;;  %v4907_v32 = vadd.f32 %v4859_v47, %v10813_v61  ;;  %v4764_v50 = vadd.f32 1.0, %v6501_v38  ;;  %6512 = vtanh.bf16 %v3435_v14  ;;  %v3434_v19 = vmul.bf16 1061961548, %v9920_v25 }
 0x67d   : > { %v4099_v45 = vpop.f32.mrb[118].mxu1  ;;  %v4324_v48 = vpop.f32.mrb[166].mxu0  ;;  %v4624_v35 = vadd.f32 %v4576_v7, %v9930_v42  ;;  %v4577_v5 = vmul.f32 0.044715, %v4529_v11  ;;  %v9968_v2 = vadd.f32 %v4321_v15, %v4097_v13  ;;  %v9983_v31 = vmul.bf16 1056980736, %v3618_v4 }
 0x67e   : > { %v6503_v29 = vpop.eup %6502  ;;  %v4100_v54 = vadd.f32 %v9780_v23, %v4099_v45  ;;  %v4101_v60 = vpop.f32.mrb[119].mxu1  ;;  %v5591_v62 = vpack.c.bf16 %v4907_v32, %v4906_v24  ;;  %v4812_v59 = vmul.f32 0.5, %v4764_v50  ;;  %v3439_v25 = vmul.bf16 1061961548, %v3343_v26  ;;  %v10815_v10 = vld [vmem:[#allocation13_spill] sm:$0xff] }
 0x67f   : > { %v4326_v49 = vpop.f32.mrb[167].mxu0  ;;  %v4765_v52 = vadd.f32 1.0, %v6503_v29  ;;  %v6505_v63 = vpop.eup %6504  ;;  %v4672_v53 = vmul.f32 0.7978846, %v4624_v35  ;;  %v4625_v6 = vadd.f32 %v4577_v5, %v9937_v41  ;;  %v4482_v51 = vmul.f32 %v9968_v2, %v9968_v2 }
 0x680   : > { %v9975_v30 = vadd.f32 %v4324_v48, %v4100_v54  ;;  %5726 = vst [vmem:[%s10399_s7 + $0x8] sm:$0xff] %v5591_v62   ;;  %v4860_v56 = vmul.f32 %v4812_v59, %v9865_v3  ;;  %v3623_v15 = vadd.bf16 1065369472, %v6505_v63  ;;  %v3438_v3 = vmul.bf16 1061961548, %v9955_v17 }
 0x681   : > { %v4813_v33 = vmul.f32 0.5, %v4765_v52  ;;  %6514 = vtanh.f32 %v4672_v53  ;;  %v4673_v14 = vmul.f32 0.7978846, %v4625_v6  ;;  %v4530_v36 = vmul.f32 %v4482_v51, %v9968_v2 }
 0x682   : > { %v4483_v9 = vmul.f32 %v9975_v30, %v9975_v30  ;;  %6516 = vtanh.bf16 %v3434_v19  ;;  %4432 = vmatmul.mubr.bf16.gmra.mrb[172].mxu1 %v3806_v43  ;;  %v3719_v54 = vmul.bf16 1056980736, %v3623_v15  ;;  %v3810_v52 = vmul.bf16 %v9983_v31, %v9681_v27  ;;  %v10817_v15 = vld [vmem:[#allocation15_spill] sm:$0xff] }
 0x683   : > { %v4861_v46 = vmul.f32 %v4813_v33, %v9876_v37  ;;  %v6507_v38 = vpop.eup %6506  ;;  %6518 = vtanh.f32 %v4673_v14  ;;  %v4578_v22 = vmul.f32 0.044715, %v4530_v36  ;;  %v10814_v37 = vld [vmem:[#allocation12_spill] sm:$0xff]  ;;  %4439 = vmatprep.mubr.bf16.mxu1 %v3811_v16 }
 0x684   : > { %v4104_v47 = vpop.f32.mrb[120].mxu1  ;;  %v4329_v34 = vpop.f32.mrb[168].mxu0  ;;  %v4531_v4 = vmul.f32 %v4483_v9, %v9975_v30  ;;  %v4908_v13 = vadd.f32 %v4860_v56, %v10814_v37  ;;  %v4766_v39 = vadd.f32 1.0, %v6507_v38  ;;  %6520 = vtanh.bf16 %v3439_v25 }
 0x685   : > { %v4105_v26 = vadd.f32 %v9780_v23, %v4104_v47  ;;  %v4106_v7 = vpop.f32.mrb[121].mxu1  ;;  %v4331_v11 = vpop.f32.mrb[169].mxu0  ;;  %v4909_v1 = vadd.f32 %v4861_v46, %v10815_v10  ;;  %v4626_v20 = vadd.f32 %v4578_v22, %v9968_v2  ;;  %v3815_v56 = vmul.bf16 %v3719_v54, %v9713_v55  ;;  %v10816_v47 = vld [vmem:[#allocation14_spill] sm:$0xff] }
 0x686   : > { %v4107_v17 = vpop.f32.mrb[122].mxu1  ;;  %v4332_v24 = vpop.f32.mrb[170].mxu0  ;;  %v4579_v0 = vmul.f32 0.044715, %v4531_v4  ;;  %v4814_v35 = vmul.f32 0.5, %v4766_v39 }
 0x687   : > { %v6509_v61 = vpop.eup %6508  ;;  %v10001_v43 = vadd.f32 %v4329_v34, %v4105_v26  ;;  %v4108_v50 = vadd.f32 %v9780_v23, %v4107_v17  ;;  %v4109_v45 = vpop.f32.mrb[123].mxu1  ;;  %v5596_v29 = vpack.c.bf16 %v4909_v1, %v4908_v13  ;;  %v4674_v44 = vmul.f32 0.7978846, %v4626_v20 }
 0x688   : > { %v6511_v32 = vpop.eup %6510  ;;  %v4334_v48 = vpop.f32.mrb[171].mxu0  ;;  %v4627_v16 = vadd.f32 %v4579_v0, %v9975_v30  ;;  %v4862_v62 = vmul.f32 %v4814_v35, %v9896_v12  ;;  %v3622_v19 = vadd.bf16 1065369472, %v6509_v61 }
 0x689   : > { %v4767_v5 = vadd.f32 1.0, %v6511_v32  ;;  %v6513_v18 = vpop.eup %6512  ;;  %v4484_v60 = vmul.f32 %v10001_v43, %v10001_v43  ;;  %v10007_v49 = vadd.f32 %v4332_v24, %v4108_v50  ;;  %5727 = vst [vmem:[%s10399_s7 + $0x10] sm:$0xff] %v5596_v29   ;;  %6522 = vtanh.f32 %v4674_v44 }
 0x68a   : > { %v4675_v63 = vmul.f32 0.7978846, %v4627_v16  ;;  %v3627_v14 = vadd.bf16 1065369472, %v6513_v18  ;;  %6524 = vtanh.bf16 %v3438_v3  ;;  %4440 = vmatmul.mubr.bf16.gmra.mrb[176].mxu1 %v3810_v52  ;;  %v4910_v34 = vadd.f32 %v4862_v62, %v10816_v47 }
 0x68b   : > { %v4815_v59 = vmul.f32 0.5, %v4767_v5  ;;  %v4532_v53 = vmul.f32 %v4484_v60, %v10001_v43  ;;  %v4485_v6 = vmul.f32 %v10007_v49, %v10007_v49  ;;  %v6515_v12 = vpop.eup %6514  ;;  %4447 = vmatprep.mubr.bf16.mxu1 %v3815_v56  ;;  %v3718_v4 = vmul.bf16 1056980736, %v3622_v19 }
 0x68c   : > { %6526 = vtanh.f32 %v4675_v63  ;;  %v4768_v38 = vadd.f32 1.0, %v6515_v12  ;;  %v3723_v61 = vmul.bf16 1056980736, %v3627_v14 }
 0x68d   : > { %v4863_v51 = vmul.f32 %v4815_v59, %v9904_v40  ;;  %v4112_v33 = vpop.f32.mrb[124].mxu1  ;;  %v4337_v25 = vpop.f32.mrb[172].mxu0  ;;  %v4580_v36 = vmul.f32 0.044715, %v4532_v53  ;;  %v4533_v27 = vmul.f32 %v4485_v6, %v10007_v49  ;;  %v3814_v35 = vmul.bf16 %v3718_v4, %v9709_v57 }
 0x68e   : > { %v4113_v31 = vadd.f32 %v9780_v23, %v4112_v33  ;;  %v4114_v9 = vpop.f32.mrb[125].mxu1  ;;  %v4339_v46 = vpop.f32.mrb[173].mxu0  ;;  %v4816_v17 = vmul.f32 0.5, %v4768_v38  ;;  %v3819_v60 = vmul.bf16 %v3723_v61, %v9743_v21  ;;  %v10819_v33 = vld [vmem:[#allocation17_spill] sm:$0xff] }
 0x68f   : > { %v4911_v40 = vadd.f32 %v4863_v51, %v10817_v15  ;;  %v4115_v55 = vpop.f32.mrb[126].mxu1  ;;  %v4340_v22 = vpop.f32.mrb[174].mxu0  ;;  %v4628_v7 = vadd.f32 %v4580_v36, %v10001_v43  ;;  %v4581_v11 = vmul.f32 0.044715, %v4533_v27  ;;  %v10818_v51 = vld [vmem:[#allocation16_spill] sm:$0xff] }
 0x690   : > { %v6517_v3 = vpop.eup %6516  ;;  %v10025_v37 = vadd.f32 %v4337_v25, %v4113_v31  ;;  %v4116_v13 = vadd.f32 %v9780_v23, %v4115_v55  ;;  %v4117_v10 = vpop.f32.mrb[127].mxu1  ;;  %v4864_v48 = vmul.f32 %v4816_v17, %v9930_v42 }
 0x691   : > { %v6519_v26 = vpop.eup %6518  ;;  %v4342_v1 = vpop.f32.mrb[175].mxu0  ;;  %v5601_v39 = vpack.c.bf16 %v4911_v40, %v4910_v34  ;;  %v4676_v20 = vmul.f32 0.7978846, %v4628_v7  ;;  %v4629_v0 = vadd.f32 %v4581_v11, %v10007_v49  ;;  %v3626_v5 = vadd.bf16 1065369472, %v6517_v3 }
 0x692   : > { %v4769_v24 = vadd.f32 1.0, %v6519_v26  ;;  %v6521_v32 = vpop.eup %6520  ;;  %v4486_v50 = vmul.f32 %v10025_v37, %v10025_v37  ;;  %v10031_v45 = vadd.f32 %v4340_v22, %v4116_v13  ;;  %4448 = vmatmul.mubr.bf16.gmra.mrb[180].mxu1 %v3814_v35  ;;  %v4912_v56 = vadd.f32 %v4864_v48, %v10818_v51 }
 0x693   : > { %5728 = vst [vmem:[%s10399_s7 + $0x18] sm:$0xff] %v5601_v39   ;;  %6528 = vtanh.f32 %v4676_v20  ;;  %v4677_v54 = vmul.f32 0.7978846, %v4629_v0  ;;  %v3631_v52 = vadd.bf16 1065369472, %v6521_v32  ;;  %v6523_v19 = vpop.eup %6522  ;;  %4455 = vmatprep.mubr.bf16.mxu1 %v3819_v60 }
 0x694   : > { %v4817_v29 = vmul.f32 0.5, %v4769_v24  ;;  %v4534_v18 = vmul.f32 %v4486_v50, %v10025_v37  ;;  %v4487_v44 = vmul.f32 %v10031_v45, %v10031_v45  ;;  %v3722_v12 = vmul.bf16 1056980736, %v3626_v5  ;;  %v10820_v5 = vld [vmem:[#allocation18_spill] sm:$0xff] }
 0x695   : > { %v4120_v62 = vpop.f32.mrb[128].mxu1  ;;  %v4345_v59 = vpop.f32.mrb[176].mxu0  ;;  %6530 = vtanh.f32 %v4677_v54  ;;  %v3727_v22 = vmul.bf16 1056980736, %v3631_v52 }
 0x696   : > { %v4865_v16 = vmul.f32 %v4817_v29, %v9937_v41  ;;  %v4582_v42 = vmul.f32 0.044715, %v4534_v18  ;;  %v4535_v57 = vmul.f32 %v4487_v44, %v10031_v45  ;;  %v4121_v63 = vadd.f32 %v9780_v23, %v4120_v62  ;;  %v4122_v53 = vpop.f32.mrb[129].mxu1  ;;  %v4347_v6 = vpop.f32.mrb[177].mxu0  ;;  %v10821_v18 = vld [vmem:[#allocation19_spill] sm:$0xff] }
 0x697   : > { %v4770_v41 = vadd.f32 1.0, %v6523_v19  ;;  %v4123_v21 = vpop.f32.mrb[130].mxu1  ;;  %v4348_v14 = vpop.f32.mrb[178].mxu0  ;;  %v3818_v10 = vmul.bf16 %v3722_v12, %v9738_v58  ;;  %v3823_v32 = vmul.bf16 %v3727_v22, %v9777_v8  ;;  %v10822_v22 = vld [vmem:[#allocation20_spill] sm:$0xff] }
 0x698   : > { %v4913_v25 = vadd.f32 %v4865_v16, %v10819_v33  ;;  %v6525_v36 = vpop.eup %6524  ;;  %v4630_v31 = vadd.f32 %v4582_v42, %v10025_v37  ;;  %v4583_v9 = vmul.f32 0.044715, %v4535_v57  ;;  %v10048_v46 = vadd.f32 %v4345_v59, %v4121_v63  ;;  %v4125_v34 = vpop.f32.mrb[131].mxu1 }
 0x699   : > { %v6527_v27 = vpop.eup %6526  ;;  %v4124_v47 = vadd.f32 %v9780_v23, %v4123_v21  ;;  %v4350_v15 = vpop.f32.mrb[179].mxu0  ;;  %v4818_v38 = vmul.f32 0.5, %v4770_v41  ;;  %v3630_v1 = vadd.bf16 1065369472, %v6525_v36 }
 0x69a   : > { %v5606_v40 = vpack.c.bf16 %v4913_v25, %v4912_v56  ;;  %v4771_v55 = vadd.f32 1.0, %v6527_v27  ;;  %v4678_v4 = vmul.f32 0.7978846, %v4630_v31  ;;  %v4631_v3 = vadd.f32 %v4583_v9, %v10031_v45  ;;  %4456 = vmatmul.mubr.bf16.gmra.mrb[184].mxu1 %v3818_v10 }
 0x69b   : > { %v4488_v26 = vmul.f32 %v10048_v46, %v10048_v46  ;;  %v10054_v7 = vadd.f32 %v4348_v14, %v4124_v47  ;;  %v4866_v11 = vmul.f32 %v4818_v38, %v9968_v2  ;;  %4463 = vmatprep.mubr.bf16.mxu1 %v3823_v32  ;;  %v3726_v60 = vmul.bf16 1056980736, %v3630_v1 }
 0x69c   : > { %5729 = vst [vmem:[%s10399_s7 + $0x20] sm:$0xff] %v5606_v40   ;;  %v4819_v13 = vmul.f32 0.5, %v4771_v55  ;;  %6532 = vtanh.f32 %v4678_v4  ;;  %v4679_v39 = vmul.f32 0.7978846, %v4631_v3  ;;  %v10823_v3 = vld [vmem:[#allocation21_spill] sm:$0xff] }
 0x69d   : > { %v4536_v17 = vmul.f32 %v4488_v26, %v10048_v46  ;;  %v4489_v24 = vmul.f32 %v10054_v7, %v10054_v7  ;;  %v4128_v20 = vpop.f32.mrb[132].mxu1  ;;  %v4353_v0 = vpop.f32.mrb[180].mxu0  ;;  %v4914_v54 = vadd.f32 %v4866_v11, %v10820_v5  ;;  %v3822_v12 = vmul.bf16 %v3726_v60, %v9772_v28  ;;  %v10824_v60 = vld [vmem:[#allocation22_spill] sm:$0xff] }
 0x69e   : > { %v4867_v61 = vmul.f32 %v4819_v13, %v9975_v30  ;;  %v6529_v50 = vpop.eup %6528  ;;  %6534 = vtanh.f32 %v4679_v39  ;;  %v4129_v58 = vadd.f32 %v9780_v23, %v4128_v20  ;;  %v4130_v29 = vpop.f32.mrb[133].mxu1 }
 0x69f   : > { %v4584_v2 = vmul.f32 0.044715, %v4536_v17  ;;  %v4537_v48 = vmul.f32 %v4489_v24, %v10054_v7  ;;  %v4355_v35 = vpop.f32.mrb[181].mxu0  ;;  %v4772_v16 = vadd.f32 1.0, %v6529_v50  ;;  %v4131_v30 = vpop.f32.mrb[134].mxu1 }
 0x6a0   : > { %v4915_v44 = vadd.f32 %v4867_v61, %v10821_v18  ;;  %v4356_v8 = vpop.f32.mrb[182].mxu0  ;;  %v6531_v62 = vpop.eup %6530  ;;  %v10071_v19 = vadd.f32 %v4353_v0, %v4129_v58  ;;  %v4132_v42 = vadd.f32 %v9780_v23, %v4131_v30 }
 0x6a1   : > { %v4632_v59 = vadd.f32 %v4584_v2, %v10048_v46  ;;  %v4585_v52 = vmul.f32 0.044715, %v4537_v48  ;;  %v4133_v57 = vpop.f32.mrb[135].mxu1  ;;  %v4358_v63 = vpop.f32.mrb[183].mxu0  ;;  %v4820_v6 = vmul.f32 0.5, %v4772_v16  ;;  %v4773_v51 = vadd.f32 1.0, %v6531_v62 }
 0x6a2   : > { %v5611_v53 = vpack.c.bf16 %v4915_v44, %v4914_v54  ;;  %v4490_v25 = vmul.f32 %v10071_v19, %v10071_v19  ;;  %v10077_v41 = vadd.f32 %v4356_v8, %v4132_v42  ;;  %4464 = vmatmul.mubr.bf16.gmra.mrb[188].mxu1 %v3822_v12 }
 0x6a3   : > { %v4680_v56 = vmul.f32 0.7978846, %v4632_v59  ;;  %v4633_v33 = vadd.f32 %v4585_v52, %v10054_v7  ;;  %v4868_v21 = vmul.f32 %v4820_v6, %v10001_v43  ;;  %v4821_v14 = vmul.f32 0.5, %v4773_v51  ;;  %v10825_v59 = vld [vmem:[#allocation23_spill] sm:$0xff] }
 0x6a4   : > { %5730 = vst [vmem:[%s10399_s7 + $0x28] sm:$0xff] %v5611_v53   ;;  %v4538_v27 = vmul.f32 %v4490_v25, %v10071_v19  ;;  %v4491_v31 = vmul.f32 %v10077_v41, %v10077_v41 }
 0x6a5   : > { %6536 = vtanh.f32 %v4680_v56  ;;  %v4681_v36 = vmul.f32 0.7978846, %v4633_v33  ;;  %v4869_v9 = vmul.f32 %v4821_v14, %v10007_v49  ;;  %v4136_v47 = vpop.f32.mrb[136].mxu1  ;;  %v4361_v34 = vpop.f32.mrb[184].mxu0  ;;  %v4916_v4 = vadd.f32 %v4868_v21, %v10822_v22 }
 0x6a6   : > { %v6533_v15 = vpop.eup %6532  ;;  %v4586_v40 = vmul.f32 0.044715, %v4538_v27  ;;  %v4539_v38 = vmul.f32 %v4491_v31, %v10077_v41  ;;  %v4137_v43 = vadd.f32 %v9780_v23, %v4136_v47  ;;  %v4138_v28 = vpop.f32.mrb[137].mxu1  ;;  %v10826_v47 = vld [vmem:[#allocation24_spill] sm:$0xff] }
 0x6a7   : > { %6538 = vtanh.f32 %v4681_v36  ;;  %v4363_v55 = vpop.f32.mrb[185].mxu0  ;;  %v4917_v26 = vadd.f32 %v4869_v9, %v10823_v3  ;;  %v4774_v11 = vadd.f32 1.0, %v6533_v15  ;;  %v4139_v13 = vpop.f32.mrb[138].mxu1  ;;  %v10827_v15 = vld [vmem:[#allocation25_spill] sm:$0xff] }
 0x6a8   : > { %v4364_v10 = vpop.f32.mrb[186].mxu0  ;;  %v6535_v49 = vpop.eup %6534  ;;  %v4634_v1 = vadd.f32 %v4586_v40, %v10071_v19  ;;  %v4587_v39 = vmul.f32 0.044715, %v4539_v38  ;;  %v10093_v17 = vadd.f32 %v4361_v34, %v4137_v43  ;;  %v4140_v24 = vadd.f32 %v9780_v23, %v4139_v13  ;;  %v10122_v43 = vld [vmem:[%s6934_s11] ss:$0 sm:$0xff] }
 0x6a9   : > { %v4141_v61 = vpop.f32.mrb[139].mxu1  ;;  %v4366_v32 = vpop.f32.mrb[187].mxu0  ;;  %v5616_v20 = vpack.c.bf16 %v4917_v26, %v4916_v4  ;;  %v4822_v0 = vmul.f32 0.5, %v4774_v11  ;;  %v4775_v50 = vadd.f32 1.0, %v6535_v49 }
 0x6aa   : > { %v4682_v2 = vmul.f32 0.7978846, %v4634_v1  ;;  %v4635_v48 = vadd.f32 %v4587_v39, %v10077_v41  ;;  %v4492_v58 = vmul.f32 %v10093_v17, %v10093_v17  ;;  %v10099_v29 = vadd.f32 %v4364_v10, %v4140_v24 }
 0x6ab   : > { %5731 = vst [vmem:[%s10399_s7 + $0x30] sm:$0xff] %v5616_v20   ;;  %v4870_v35 = vmul.f32 %v4822_v0, %v10025_v37  ;;  %v4823_v23 = vmul.f32 0.5, %v4775_v50  ;;  %v10828_v20 = vld [vmem:[#allocation26_spill] sm:$0xff]  ;;  %v10829_v50 = vld [vmem:[#allocation27_spill] sm:$0xff] }
 0x6ac   : > { %6540 = vtanh.f32 %v4682_v2  ;;  %v4683_v5 = vmul.f32 0.7978846, %v4635_v48  ;;  %v4540_v54 = vmul.f32 %v4492_v58, %v10093_v17  ;;  %v4493_v18 = vmul.f32 %v10099_v29, %v10099_v29 }
 0x6ad   : > { %v4871_v44 = vmul.f32 %v4823_v23, %v10031_v45  ;;  %v4918_v62 = vadd.f32 %v4870_v35, %v10824_v60 }
 0x6ae   : > { %6542 = vtanh.f32 %v4683_v5  ;;  %v4588_v30 = vmul.f32 0.044715, %v4540_v54  ;;  %v4541_v8 = vmul.f32 %v4493_v18, %v10099_v29 }
 0x6af   : > { %v6537_v16 = vpop.eup %6536  ;;  %v4919_v52 = vadd.f32 %v4871_v44, %v10825_v59  ;;  %v4144_v21 = vpop.f32.mrb[140].mxu1 }
 0x6b0   : > { %v4776_v37 = vadd.f32 1.0, %v6537_v16  ;;  %v4636_v57 = vadd.f32 %v4588_v30, %v10093_v17  ;;  %v4589_v63 = vmul.f32 0.044715, %v4541_v8  ;;  %v4146_v12 = vpop.f32.mrb[141].mxu1 }
 0x6b1   : > { %v6539_v42 = vpop.eup %6538  ;;  %v5621_v53 = vpack.c.bf16 %v4919_v52, %v4918_v62  ;;  %v4147_v27 = vpop.f32.mrb[142].mxu1  ;;  %v10830_v52 = vld [vmem:[#allocation28_spill] sm:$0xff] }
 0x6b2   : > { %v4824_v6 = vmul.f32 0.5, %v4776_v37  ;;  %v4777_v51 = vadd.f32 1.0, %v6539_v42  ;;  %v4684_v56 = vmul.f32 0.7978846, %v4636_v57  ;;  %v4637_v45 = vadd.f32 %v4589_v63, %v10099_v29  ;;  %v4149_v9 = vpop.f32.mrb[143].mxu1  ;;  %v10831_v42 = vld [vmem:[#allocation29_spill] sm:$0xff] }
 0x6b3   : > { %5732 = vst [vmem:[%s10399_s7 + $0x38] sm:$0xff] %v5621_v53   ;;  %v4148_v3 = vadd.f32 %v10122_v43, %v4147_v27 }
 0x6b4   : > { %v4872_v33 = vmul.f32 %v4824_v6, %v10048_v46  ;;  %v4825_v25 = vmul.f32 0.5, %v4777_v51  ;;  %6544 = vtanh.f32 %v4684_v56  ;;  %v4685_v14 = vmul.f32 0.7978846, %v4637_v45 }
 0x6b5   : > { %v4145_v46 = vadd.f32 %v10122_v43, %v4144_v21 }
 0x6b6   : > { %v4873_v36 = vmul.f32 %v4825_v25, %v10054_v7  ;;  %v6541_v31 = vpop.eup %6540  ;;  %6546 = vtanh.f32 %v4685_v14  ;;  %v4920_v34 = vadd.f32 %v4872_v33, %v10826_v47 }
 0x6b7   : > { %v4778_v38 = vadd.f32 1.0, %v6541_v31  ;;  %v4369_v7 = vpop.f32.mrb[188].mxu0 }
 0x6b8   : > { %v4921_v40 = vadd.f32 %v4873_v36, %v10827_v15  ;;  %v6543_v28 = vpop.eup %6542  ;;  %v10130_v13 = vadd.f32 %v4369_v7, %v4145_v46  ;;  %v4371_v10 = vpop.f32.mrb[189].mxu0 }
 0x6b9   : > { %v4826_v22 = vmul.f32 0.5, %v4778_v38  ;;  %v4779_v4 = vadd.f32 1.0, %v6543_v28  ;;  %v4372_v49 = vpop.f32.mrb[190].mxu0 }
 0x6ba   : > { %v5626_v55 = vpack.c.bf16 %v4921_v40, %v4920_v34  ;;  %v4494_v39 = vmul.f32 %v10130_v13, %v10130_v13  ;;  %v10135_v24 = vadd.f32 %v4372_v49, %v4148_v3  ;;  %v4374_v61 = vpop.f32.mrb[191].mxu0 }
 0x6bb   : > { %v4874_v26 = vmul.f32 %v4826_v22, %v10071_v19  ;;  %v4827_v11 = vmul.f32 0.5, %v4779_v4 }
 0x6bc   : > { %5733 = vst [vmem:[%s10399_s7 + $0x40] sm:$0xff] %v5626_v55   ;;  %v4542_v19 = vmul.f32 %v4494_v39, %v10130_v13  ;;  %v4495_v58 = vmul.f32 %v10135_v24, %v10135_v24 }
 0x6bd   : > { %v4875_v1 = vmul.f32 %v4827_v11, %v10077_v41  ;;  %v4922_v0 = vadd.f32 %v4874_v26, %v10828_v20 }
 0x6be   : > { %v6545_v32 = vpop.eup %6544  ;;  %v4590_v54 = vmul.f32 0.044715, %v4542_v19  ;;  %v4543_v18 = vmul.f32 %v4495_v58, %v10135_v24 }
 0x6bf   : > { %v4923_v2 = vadd.f32 %v4875_v1, %v10829_v50  ;;  %v4780_v48 = vadd.f32 1.0, %v6545_v32 }
 0x6c0   : > { %v6547_v35 = vpop.eup %6546  ;;  %v4638_v30 = vadd.f32 %v4590_v54, %v10130_v13  ;;  %v4591_v8 = vmul.f32 0.044715, %v4543_v18  ;;  %v10832_v18 = vld [vmem:[#allocation30_spill] sm:$0xff] }
 0x6c1   : > { %v5631_v23 = vpack.c.bf16 %v4923_v2, %v4922_v0  ;;  %v4828_v41 = vmul.f32 0.5, %v4780_v48  ;;  %v4781_v5 = vadd.f32 1.0, %v6547_v35 }
 0x6c2   : > { %v4686_v62 = vmul.f32 0.7978846, %v4638_v30  ;;  %v4639_v59 = vadd.f32 %v4591_v8, %v10135_v24  ;;  %v4152_v63 = vpop.f32.mrb[144].mxu1 }
 0x6c3   : > { %5734 = vst [vmem:[%s10399_s7 + $0x48] sm:$0xff] %v5631_v23   ;;  %v4876_v44 = vmul.f32 %v4828_v41, %v10093_v17  ;;  %v4829_v16 = vmul.f32 0.5, %v4781_v5  ;;  %v4153_v6 = vadd.f32 %v10122_v43, %v4152_v63  ;;  %v4154_v51 = vpop.f32.mrb[145].mxu1 }
 0x6c4   : > { %6548 = vtanh.f32 %v4686_v62  ;;  %v4687_v53 = vmul.f32 0.7978846, %v4639_v59  ;;  %v4155_v56 = vpop.f32.mrb[146].mxu1 }
 0x6c5   : > { %v4877_v60 = vmul.f32 %v4829_v16, %v10099_v29  ;;  %v4924_v37 = vadd.f32 %v4876_v44, %v10830_v52  ;;  %v4377_v45 = vpop.f32.mrb[192].mxu0  ;;  %v4156_v33 = vadd.f32 %v10122_v43, %v4155_v56  ;;  %v4157_v29 = vpop.f32.mrb[147].mxu1  ;;  %v10833_v16 = vld [vmem:[#allocation31_spill] sm:$0xff] }
 0x6c6   : > { %6550 = vtanh.f32 %v4687_v53  ;;  %v10157_v25 = vadd.f32 %v4377_v45, %v4153_v6  ;;  %v4379_v21 = vpop.f32.mrb[193].mxu0 }
 0x6c7   : > { %v4925_v57 = vadd.f32 %v4877_v60, %v10831_v42  ;;  %v4380_v14 = vpop.f32.mrb[194].mxu0 }
 0x6c8   : > { %v4496_v12 = vmul.f32 %v10157_v25, %v10157_v25  ;;  %v10161_v36 = vadd.f32 %v4380_v14, %v4156_v33  ;;  %v4382_v27 = vpop.f32.mrb[195].mxu0 }
 0x6c9   : > { %v5636_v17 = vpack.c.bf16 %v4925_v57, %v4924_v37 }
 0x6ca   : > { %v4544_v31 = vmul.f32 %v4496_v12, %v10157_v25  ;;  %v4497_v9 = vmul.f32 %v10161_v36, %v10161_v36 }
 0x6cb   : > { %5735 = vst [vmem:[%s10399_s7 + $0x50] sm:$0xff] %v5636_v17  }
 0x6cc   : > { %v4592_v34 = vmul.f32 0.044715, %v4544_v31  ;;  %v4545_v15 = vmul.f32 %v4497_v9, %v10161_v36 }
 0x6cd   : > { %v4160_v40 = vpop.f32.mrb[148].mxu1 }
 0x6ce   : > { %v6549_v47 = vpop.eup %6548  ;;  %v4161_v46 = vadd.f32 %v10122_v43, %v4160_v40  ;;  %v4162_v28 = vpop.f32.mrb[149].mxu1  ;;  %v4640_v55 = vadd.f32 %v4592_v34, %v10157_v25  ;;  %v4593_v22 = vmul.f32 0.044715, %v4545_v15 }
 0x6cf   : > { %v4782_v38 = vadd.f32 1.0, %v6549_v47  ;;  %v4163_v3 = vpop.f32.mrb[150].mxu1 }
 0x6d0   : > { %v4385_v4 = vpop.f32.mrb[196].mxu0  ;;  %v6551_v7 = vpop.eup %6550  ;;  %v4164_v49 = vadd.f32 %v10122_v43, %v4163_v3  ;;  %v4688_v61 = vmul.f32 0.7978846, %v4640_v55  ;;  %v4641_v32 = vadd.f32 %v4593_v22, %v10161_v36 }
 0x6d1   : > { %v4830_v26 = vmul.f32 0.5, %v4782_v38  ;;  %v10169_v11 = vadd.f32 %v4385_v4, %v4161_v46  ;;  %v4387_v10 = vpop.f32.mrb[197].mxu0  ;;  %v4165_v1 = vpop.f32.mrb[151].mxu1  ;;  %v4783_v39 = vadd.f32 1.0, %v6551_v7 }
 0x6d2   : > { %v4388_v20 = vpop.f32.mrb[198].mxu0  ;;  %6552 = vtanh.f32 %v4688_v61  ;;  %v4689_v58 = vmul.f32 0.7978846, %v4641_v32  ;;  %v10834_v61 = vld [vmem:[#allocation36_spill] sm:$0xff] }
 0x6d3   : > { %v4498_v0 = vmul.f32 %v10169_v11, %v10169_v11  ;;  %v10175_v50 = vadd.f32 %v4388_v20, %v4164_v49  ;;  %v4390_v2 = vpop.f32.mrb[199].mxu0  ;;  %v4878_v48 = vmul.f32 %v4830_v26, %v10130_v13  ;;  %v4831_v19 = vmul.f32 0.5, %v4783_v39  ;;  %v10835_v20 = vld [vmem:[#allocation37_spill] sm:$0xff] }
 0x6d4   : > { %6554 = vtanh.f32 %v4689_v58 }
 0x6d5   : > { %v4546_v35 = vmul.f32 %v4498_v0, %v10169_v11  ;;  %v4499_v23 = vmul.f32 %v10175_v50, %v10175_v50  ;;  %v4879_v41 = vmul.f32 %v4831_v19, %v10135_v24  ;;  %v4926_v44 = vadd.f32 %v4878_v48, %v10832_v18 }
 0x6d7   : > { %v4594_v5 = vmul.f32 0.044715, %v4546_v35  ;;  %v4547_v54 = vmul.f32 %v4499_v23, %v10175_v50  ;;  %v4927_v30 = vadd.f32 %v4879_v41, %v10833_v16 }
 0x6d9   : > { %v4642_v13 = vadd.f32 %v4594_v5, %v10169_v11  ;;  %v4595_v8 = vmul.f32 0.044715, %v4547_v54  ;;  %v5641_v60 = vpack.c.bf16 %v4927_v30, %v4926_v44 }
 0x6da   : > { %v4168_v52 = vpop.f32.mrb[152].mxu1 }
 0x6db   : > { %v4690_v62 = vmul.f32 0.7978846, %v4642_v13  ;;  %v4643_v59 = vadd.f32 %v4595_v8, %v10175_v50  ;;  %5736 = vst [vmem:[%s10399_s7 + $0x58] sm:$0xff] %v5641_v60   ;;  %v4169_v24 = vadd.f32 %v10122_v43, %v4168_v52  ;;  %v4170_v37 = vpop.f32.mrb[153].mxu1 }
 0x6dc   : > { %v4171_v63 = vpop.f32.mrb[154].mxu1  ;;  %v6553_v53 = vpop.eup %6552 }
 0x6dd   : > { %6556 = vtanh.f32 %v4690_v62  ;;  %v4691_v42 = vmul.f32 0.7978846, %v4643_v59  ;;  %v4393_v57 = vpop.f32.mrb[200].mxu0  ;;  %v4172_v17 = vadd.f32 %v10122_v43, %v4171_v63  ;;  %v4173_v56 = vpop.f32.mrb[155].mxu1  ;;  %v4784_v45 = vadd.f32 1.0, %v6553_v53 }
 0x6de   : > { %v10191_v6 = vadd.f32 %v4393_v57, %v4169_v24  ;;  %v4395_v51 = vpop.f32.mrb[201].mxu0  ;;  %v6555_v29 = vpop.eup %6554 }
 0x6df   : > { %6558 = vtanh.f32 %v4691_v42  ;;  %v4396_v33 = vpop.f32.mrb[202].mxu0  ;;  %v4832_v27 = vmul.f32 0.5, %v4784_v45  ;;  %v4785_v31 = vadd.f32 1.0, %v6555_v29 }
 0x6e0   : > { %v4500_v21 = vmul.f32 %v10191_v6, %v10191_v6  ;;  %v10196_v14 = vadd.f32 %v4396_v33, %v4172_v17  ;;  %v4398_v12 = vpop.f32.mrb[203].mxu0  ;;  %v10836_v33 = vld [vmem:[#allocation32_spill] sm:$0xff] }
 0x6e1   : > { %v4880_v34 = vmul.f32 %v4832_v27, %v10157_v25  ;;  %v4833_v15 = vmul.f32 0.5, %v4785_v31 }
 0x6e2   : > { %v4548_v9 = vmul.f32 %v4500_v21, %v10191_v6  ;;  %v4501_v47 = vmul.f32 %v10196_v14, %v10196_v14  ;;  %v4176_v40 = vpop.f32.mrb[156].mxu1  ;;  %v10837_v21 = vld [vmem:[#allocation33_spill] sm:$0xff] }
 0x6e3   : > { %v4177_v28 = vadd.f32 %v10122_v43, %v4176_v40  ;;  %v4178_v55 = vpop.f32.mrb[157].mxu1  ;;  %v4881_v22 = vmul.f32 %v4833_v15, %v10161_v36  ;;  %v4928_v32 = vadd.f32 %v4880_v34, %v10834_v61 }
 0x6e4   : > { %v4596_v38 = vmul.f32 0.044715, %v4548_v9  ;;  %v4549_v46 = vmul.f32 %v4501_v47, %v10196_v14  ;;  %v4179_v3 = vpop.f32.mrb[158].mxu1 }
 0x6e5   : > { %v4401_v4 = vpop.f32.mrb[204].mxu0  ;;  %v4180_v25 = vadd.f32 %v10122_v43, %v4179_v3  ;;  %v4181_v1 = vpop.f32.mrb[159].mxu1  ;;  %v4929_v0 = vadd.f32 %v4881_v22, %v10835_v20 }
 0x6e6   : > { %v4644_v7 = vadd.f32 %v4596_v38, %v10191_v6  ;;  %v4597_v26 = vmul.f32 0.044715, %v4549_v46  ;;  %v10206_v10 = vadd.f32 %v4401_v4, %v4177_v28  ;;  %v4403_v49 = vpop.f32.mrb[205].mxu0 }
 0x6e7   : > { %v6557_v39 = vpop.eup %6556  ;;  %v4404_v2 = vpop.f32.mrb[206].mxu0  ;;  %v5646_v41 = vpack.c.bf16 %v4929_v0, %v4928_v32 }
 0x6e8   : > { %v4786_v48 = vadd.f32 1.0, %v6557_v39  ;;  %v4692_v19 = vmul.f32 0.7978846, %v4644_v7  ;;  %v4645_v36 = vadd.f32 %v4597_v26, %v10196_v14  ;;  %v4502_v58 = vmul.f32 %v10206_v10, %v10206_v10  ;;  %v4406_v35 = vpop.f32.mrb[207].mxu0 }
 0x6e9   : > { %v6559_v23 = vpop.eup %6558  ;;  %v10214_v5 = vadd.f32 %v4404_v2, %v4180_v25  ;;  %5737 = vst [vmem:[%s10399_s7 + $0x60] sm:$0xff] %v5646_v41  }
 0x6ea   : > { %v4834_v54 = vmul.f32 0.5, %v4786_v48  ;;  %v4787_v18 = vadd.f32 1.0, %v6559_v23  ;;  %6560 = vtanh.f32 %v4692_v19  ;;  %v4693_v44 = vmul.f32 0.7978846, %v4645_v36  ;;  %v4184_v13 = vpop.f32.mrb[160].mxu1 }
 0x6eb   : > { %v4550_v16 = vmul.f32 %v4502_v58, %v10206_v10  ;;  %v4503_v30 = vmul.f32 %v10214_v5, %v10214_v5  ;;  %v4185_v62 = vadd.f32 %v10122_v43, %v4184_v13  ;;  %v4186_v59 = vpop.f32.mrb[161].mxu1 }
 0x6ec   : > { %v4882_v8 = vmul.f32 %v4834_v54, %v10169_v11  ;;  %v4835_v60 = vmul.f32 0.5, %v4787_v18  ;;  %6562 = vtanh.f32 %v4693_v44  ;;  %v4187_v42 = vpop.f32.mrb[162].mxu1  ;;  %v10838_v59 = vld [vmem:[#allocation34_spill] sm:$0xff] }
 0x6ed   : > { %v4598_v52 = vmul.f32 0.044715, %v4550_v16  ;;  %v4551_v24 = vmul.f32 %v4503_v30, %v10214_v5  ;;  %v4409_v37 = vpop.f32.mrb[208].mxu0  ;;  %v4188_v51 = vadd.f32 %v10122_v43, %v4187_v42  ;;  %v4189_v17 = vpop.f32.mrb[163].mxu1 }
 0x6ee   : > { %v4883_v57 = vmul.f32 %v4835_v60, %v10175_v50  ;;  %v10226_v63 = vadd.f32 %v4409_v37, %v4185_v62  ;;  %v4411_v53 = vpop.f32.mrb[209].mxu0  ;;  %v4930_v29 = vadd.f32 %v4882_v8, %v10836_v33 }
 0x6ef   : > { %v4646_v11 = vadd.f32 %v4598_v52, %v10206_v10  ;;  %v4599_v56 = vmul.f32 0.044715, %v4551_v24  ;;  %v4412_v45 = vpop.f32.mrb[210].mxu0  ;;  %v10839_v24 = vld [vmem:[#allocation35_spill] sm:$0xff] }
 0x6f0   : > { %v4931_v12 = vadd.f32 %v4883_v57, %v10837_v21  ;;  %v4504_v27 = vmul.f32 %v10226_v63, %v10226_v63  ;;  %v10234_v31 = vadd.f32 %v4412_v45, %v4188_v51  ;;  %v4414_v50 = vpop.f32.mrb[211].mxu0 }
 0x6f1   : > { %v4694_v9 = vmul.f32 0.7978846, %v4646_v11  ;;  %v4647_v47 = vadd.f32 %v4599_v56, %v10214_v5 }
 0x6f2   : > { %v5651_v34 = vpack.c.bf16 %v4931_v12, %v4930_v29  ;;  %v4552_v15 = vmul.f32 %v4504_v27, %v10226_v63  ;;  %v4505_v40 = vmul.f32 %v10234_v31, %v10234_v31  ;;  %v4192_v46 = vpop.f32.mrb[164].mxu1 }
 0x6f3   : > { %6564 = vtanh.f32 %v4694_v9  ;;  %v4695_v38 = vmul.f32 0.7978846, %v4647_v47  ;;  %v4193_v4 = vadd.f32 %v10122_v43, %v4192_v46  ;;  %v4194_v3 = vpop.f32.mrb[165].mxu1  ;;  %v10840_v9 = vld [vmem:[#allocation39_spill] sm:$0xff] }
 0x6f4   : > { %v6561_v28 = vpop.eup %6560  ;;  %5738 = vst [vmem:[%s10399_s7 + $0x68] sm:$0xff] %v5651_v34   ;;  %v4600_v55 = vmul.f32 0.044715, %v4552_v15  ;;  %v4553_v22 = vmul.f32 %v4505_v40, %v10234_v31  ;;  %v4195_v49 = vpop.f32.mrb[166].mxu1  ;;  %v10841_v34 = vld [vmem:[#allocation40_spill] sm:$0xff]  ;;  %v10843_v3 = vld [vmem:[#allocation42_spill] sm:$0xff] }
 0x6f5   : > { %v4788_v7 = vadd.f32 1.0, %v6561_v28  ;;  %6566 = vtanh.f32 %v4695_v38  ;;  %v4417_v26 = vpop.f32.mrb[212].mxu0  ;;  %v4196_v20 = vadd.f32 %v10122_v43, %v4195_v49  ;;  %v4197_v0 = vpop.f32.mrb[167].mxu1 }
 0x6f6   : > { %v6563_v25 = vpop.eup %6562  ;;  %v4648_v1 = vadd.f32 %v4600_v55, %v10226_v63  ;;  %v4601_v39 = vmul.f32 0.044715, %v4553_v22  ;;  %v4418_v61 = vadd.f32 %v4417_v26, %v4193_v4  ;;  %v4419_v32 = vpop.f32.mrb[213].mxu0  ;;  %v10842_v22 = vld [vmem:[#allocation41_spill] sm:$0xff]  ;;  %v10844_v0 = vld [vmem:[#allocation43_spill] sm:$0xff] }
 0x6f7   : > { %v4836_v2 = vmul.f32 0.5, %v4788_v7  ;;  %v4789_v48 = vadd.f32 1.0, %v6563_v25  ;;  %v4420_v19 = vpop.f32.mrb[214].mxu0 }
 0x6f8   : > { %v4696_v36 = vmul.f32 0.7978846, %v4648_v1  ;;  %v4649_v58 = vadd.f32 %v4601_v39, %v10234_v31  ;;  %v4506_v35 = vmul.f32 %v4418_v61, %v4418_v61  ;;  %v4421_v23 = vadd.f32 %v4420_v19, %v4196_v20  ;;  %v4422_v41 = vpop.f32.mrb[215].mxu0 }
 0x6f9   : > { %v4884_v54 = vmul.f32 %v4836_v2, %v10191_v6  ;;  %v4837_v18 = vmul.f32 0.5, %v4789_v48 }
 0x6fa   : > { %6568 = vtanh.f32 %v4696_v36  ;;  %v4697_v44 = vmul.f32 0.7978846, %v4649_v58  ;;  %v4554_v16 = vmul.f32 %v4506_v35, %v4418_v61  ;;  %v4507_v30 = vmul.f32 %v4421_v23, %v4421_v23 }
 0x6fb   : > { %v4885_v13 = vmul.f32 %v4837_v18, %v10196_v14  ;;  %v4932_v52 = vadd.f32 %v4884_v54, %v10838_v59 }
 0x6fc   : > { %6570 = vtanh.f32 %v4697_v44  ;;  %v4602_v8 = vmul.f32 0.044715, %v4554_v16  ;;  %v4555_v60 = vmul.f32 %v4507_v30, %v4421_v23 }
 0x6fd   : > { %v6565_v62 = vpop.eup %6564  ;;  %v4933_v37 = vadd.f32 %v4885_v13, %v10839_v24 }
 0x6fe   : > { %v4790_v42 = vadd.f32 1.0, %v6565_v62  ;;  %v4650_v57 = vadd.f32 %v4602_v8, %v4418_v61  ;;  %v4603_v53 = vmul.f32 0.044715, %v4555_v60 }
 0x6ff   : > { %v6567_v51 = vpop.eup %6566  ;;  %v5656_v6 = vpack.c.bf16 %v4933_v37, %v4932_v52 }
 0x700   : > { %v4838_v17 = vmul.f32 0.5, %v4790_v42  ;;  %v4791_v11 = vadd.f32 1.0, %v6567_v51  ;;  %v4698_v56 = vmul.f32 0.7978846, %v4650_v57  ;;  %v4651_v45 = vadd.f32 %v4603_v53, %v4421_v23 }
 0x701   : > { %5739 = vst [vmem:[%s10399_s7 + $0x70] sm:$0xff] %v5656_v6  }
 0x702   : > { %v4886_v14 = vmul.f32 %v4838_v17, %v10206_v10  ;;  %v4839_v33 = vmul.f32 0.5, %v4791_v11  ;;  %6572 = vtanh.f32 %v4698_v56  ;;  %v4699_v29 = vmul.f32 0.7978846, %v4651_v45 }
 0x704   : > { %v6569_v21 = vpop.eup %6568  ;;  %v4887_v12 = vmul.f32 %v4839_v33, %v10214_v5  ;;  %6574 = vtanh.f32 %v4699_v29  ;;  %v4934_v47 = vadd.f32 %v4886_v14, %v10840_v9 }
 0x705   : > { %v4792_v27 = vadd.f32 1.0, %v6569_v21 }
 0x706   : > { %v6571_v50 = vpop.eup %6570  ;;  %v4935_v15 = vadd.f32 %v4887_v12, %v10841_v34 }
 0x707   : > { %v4840_v40 = vmul.f32 0.5, %v4792_v27  ;;  %v4793_v38 = vadd.f32 1.0, %v6571_v50 }
 0x708   : > { %v5661_v46 = vpack.c.bf16 %v4935_v15, %v4934_v47 }
 0x709   : > { %v4888_v28 = vmul.f32 %v4840_v40, %v10226_v63  ;;  %v4841_v55 = vmul.f32 0.5, %v4793_v38 }
 0x70a   : > { %5740 = vst [vmem:[%s10399_s7 + $0x78] sm:$0xff] %v5661_v46  }
 0x70b   : > { %v4889_v10 = vmul.f32 %v4841_v55, %v10234_v31  ;;  %v4936_v4 = vadd.f32 %v4888_v28, %v10842_v22  ;;  %v10845_v31 = vld [vmem:[#allocation44_spill] sm:$0xff] }
 0x70c   : > { %v6573_v5 = vpop.eup %6572 }
 0x70d   : > { %v4937_v7 = vadd.f32 %v4889_v10, %v10843_v3  ;;  %v4794_v26 = vadd.f32 1.0, %v6573_v5 }
 0x70e   : > { %v6575_v49 = vpop.eup %6574 }
 0x70f   : > { %v5666_v25 = vpack.c.bf16 %v4937_v7, %v4936_v4  ;;  %v4842_v1 = vmul.f32 0.5, %v4794_v26  ;;  %v4795_v39 = vadd.f32 1.0, %v6575_v49 }
 0x711   : > { %5741 = vst [vmem:[%s10399_s7 + $0x80] sm:$0xff] %v5666_v25   ;;  %v4890_v63 = vmul.f32 %v4842_v1, %v4418_v61  ;;  %v4843_v32 = vmul.f32 0.5, %v4795_v39 }
 0x713   : > { %v4891_v20 = vmul.f32 %v4843_v32, %v4421_v23  ;;  %v4938_v2 = vadd.f32 %v4890_v63, %v10844_v0 }
 0x715   : > { %v4939_v48 = vadd.f32 %v4891_v20, %v10845_v31 }
 0x717   : > { %v5671_v19 = vpack.c.bf16 %v4939_v48, %v4938_v2 }
 0x719   : > { %5742 = vst [vmem:[%s10399_s7 + $0x88] sm:$0xff] %v5671_v19  }
 0x74d   : > { %v4425_v36 = vpop.f32.mrb[168].mxu1 }
 0x74e   : > { %v5949_v58 = vadd.f32 %v10122_v43, %v4425_v36  ;;  %v4427_v35 = vpop.f32.mrb[169].mxu1 }
 0x74f   : > { %v4428_v41 = vpop.f32.mrb[170].mxu1 }
 0x750   : > { %v4508_v54 = vmul.f32 %v5949_v58, %v5949_v58  ;;  %v10276_v18 = vadd.f32 %v10122_v43, %v4428_v41  ;;  %v4430_v61 = vpop.f32.mrb[171].mxu1 }
 0x752   : > { %v4556_v23 = vmul.f32 %v5949_v58, %v4508_v54  ;;  %v4509_v44 = vmul.f32 %v10276_v18, %v10276_v18 }
 0x754   : > { %v4604_v16 = vmul.f32 0.044715, %v4556_v23  ;;  %v4557_v30 = vmul.f32 %v10276_v18, %v4509_v44  ;;  %v10846_v23 = vld [vmem:[#allocation45_spill] sm:$0xff] }
 0x755   : > { %v4433_v13 = vpop.f32.mrb[172].mxu1 }
 0x756   : > { %v4652_v8 = vadd.f32 %v5949_v58, %v4604_v16  ;;  %v4605_v60 = vmul.f32 0.044715, %v4557_v30  ;;  %v10282_v62 = vadd.f32 %v10122_v43, %v4433_v13  ;;  %v4435_v59 = vpop.f32.mrb[173].mxu1  ;;  %v10847_v16 = vld [vmem:[#allocation46_spill] sm:$0xff] }
 0x757   : > { %v4436_v52 = vpop.f32.mrb[174].mxu1 }
 0x758   : > { %v4700_v24 = vmul.f32 0.7978846, %v4652_v8  ;;  %v4653_v37 = vadd.f32 %v10276_v18, %v4605_v60  ;;  %v4510_v42 = vmul.f32 %v10282_v62, %v10282_v62  ;;  %v10288_v57 = vadd.f32 %v10122_v43, %v4436_v52  ;;  %v4438_v53 = vpop.f32.mrb[175].mxu1 }
 0x75a   : > { %6576 = vtanh.f32 %v4700_v24  ;;  %v4701_v51 = vmul.f32 0.7978846, %v4653_v37  ;;  %v4558_v6 = vmul.f32 %v10282_v62, %v4510_v42  ;;  %v4511_v17 = vmul.f32 %v10288_v57, %v10288_v57 }
 0x75c   : > { %6578 = vtanh.f32 %v4701_v51  ;;  %v4606_v11 = vmul.f32 0.044715, %v4558_v6  ;;  %v4559_v56 = vmul.f32 %v10288_v57, %v4511_v17 }
 0x75d   : > { %v4441_v45 = vpop.f32.mrb[176].mxu1 }
 0x75e   : > { %v4654_v14 = vadd.f32 %v10282_v62, %v4606_v11  ;;  %v4607_v33 = vmul.f32 0.044715, %v4559_v56  ;;  %v10296_v29 = vadd.f32 %v10122_v43, %v4441_v45  ;;  %v4443_v21 = vpop.f32.mrb[177].mxu1 }
 0x75f   : > { %v4444_v12 = vpop.f32.mrb[178].mxu1 }
 0x760   : > { %v4702_v27 = vmul.f32 0.7978846, %v4654_v14  ;;  %v4655_v50 = vadd.f32 %v10288_v57, %v4607_v33  ;;  %v4512_v9 = vmul.f32 %v10296_v29, %v10296_v29  ;;  %v10302_v47 = vadd.f32 %v10122_v43, %v4444_v12  ;;  %v4446_v34 = vpop.f32.mrb[179].mxu1 }
 0x762   : > { %6580 = vtanh.f32 %v4702_v27  ;;  %v4703_v15 = vmul.f32 0.7978846, %v4655_v50  ;;  %v4560_v40 = vmul.f32 %v10296_v29, %v4512_v9  ;;  %v4513_v38 = vmul.f32 %v10302_v47, %v10302_v47 }
 0x764   : > { %v6577_v46 = vpop.eup %6576  ;;  %6582 = vtanh.f32 %v4703_v15  ;;  %v4608_v28 = vmul.f32 0.044715, %v4560_v40  ;;  %v4561_v55 = vmul.f32 %v10302_v47, %v4513_v38  ;;  %v10848_v15 = vld [vmem:[#allocation47_spill] sm:$0xff]  ;;  %v10849_v38 = vld [vmem:[#allocation48_spill] sm:$0xff] }
 0x765   : > { %v4796_v10 = vadd.f32 1.0, %v6577_v46  ;;  %v4449_v5 = vpop.f32.mrb[180].mxu1 }
 0x766   : > { %v6579_v22 = vpop.eup %6578  ;;  %v4656_v4 = vadd.f32 %v10296_v29, %v4608_v28  ;;  %v4609_v3 = vmul.f32 0.044715, %v4561_v55  ;;  %v10310_v7 = vadd.f32 %v10122_v43, %v4449_v5  ;;  %v4451_v26 = vpop.f32.mrb[181].mxu1 }
 0x767   : > { %v4844_v49 = vmul.f32 0.5, %v4796_v10  ;;  %v4797_v25 = vadd.f32 1.0, %v6579_v22  ;;  %v4452_v1 = vpop.f32.mrb[182].mxu1 }
 0x768   : > { %v4704_v39 = vmul.f32 0.7978846, %v4656_v4  ;;  %v4657_v63 = vadd.f32 %v10302_v47, %v4609_v3  ;;  %v4514_v32 = vmul.f32 %v10310_v7, %v10310_v7  ;;  %v10316_v20 = vadd.f32 %v10122_v43, %v4452_v1  ;;  %v4454_v0 = vpop.f32.mrb[183].mxu1 }
 0x769   : > { %v4892_v2 = vmul.f32 %v5949_v58, %v4844_v49  ;;  %v4845_v31 = vmul.f32 0.5, %v4797_v25 }
 0x76a   : > { %6584 = vtanh.f32 %v4704_v39  ;;  %v4705_v48 = vmul.f32 0.7978846, %v4657_v63  ;;  %v4562_v19 = vmul.f32 %v10310_v7, %v4514_v32  ;;  %v4515_v36 = vmul.f32 %v10316_v20, %v10316_v20 }
 0x76b   : > { %v4893_v35 = vmul.f32 %v10276_v18, %v4845_v31  ;;  %v4940_v44 = vadd.f32 %v4892_v2, %v10846_v23  ;;  %v10851_v23 = vld [vmem:[#allocation51_spill] sm:$0xff] }
 0x76c   : > { %v6581_v41 = vpop.eup %6580  ;;  %6586 = vtanh.f32 %v4705_v48  ;;  %v4610_v54 = vmul.f32 0.044715, %v4562_v19  ;;  %v4563_v61 = vmul.f32 %v10316_v20, %v4515_v36 }
 0x76d   : > { %v4941_v30 = vadd.f32 %v4893_v35, %v10847_v16  ;;  %v4798_v58 = vadd.f32 1.0, %v6581_v41  ;;  %v4457_v13 = vpop.f32.mrb[184].mxu1 }
 0x76e   : > { %v6583_v8 = vpop.eup %6582  ;;  %v4658_v60 = vadd.f32 %v10310_v7, %v4610_v54  ;;  %v4611_v59 = vmul.f32 0.044715, %v4563_v61  ;;  %v10327_v52 = vadd.f32 %v10122_v43, %v4457_v13  ;;  %v4459_v24 = vpop.f32.mrb[185].mxu1  ;;  %v10850_v61 = vld [vmem:[#allocation50_spill] sm:$0xff] }
 0x76f   : > { %v5676_v18 = vpack.c.bf16 %v4941_v30, %v4940_v44  ;;  %v4846_v37 = vmul.f32 0.5, %v4798_v58  ;;  %v4799_v42 = vadd.f32 1.0, %v6583_v8  ;;  %v4460_v53 = vpop.f32.mrb[186].mxu1 }
 0x770   : > { %v4706_v51 = vmul.f32 0.7978846, %v4658_v60  ;;  %v4659_v6 = vadd.f32 %v10316_v20, %v4611_v59  ;;  %v4516_v17 = vmul.f32 %v10327_v52, %v10327_v52  ;;  %v10333_v11 = vadd.f32 %v10122_v43, %v4460_v53  ;;  %v4462_v56 = vpop.f32.mrb[187].mxu1 }
 0x771   : > { %5743 = vst [vmem:[%s10399_s7 + $0x90] sm:$0xff] %v5676_v18   ;;  %v4894_v45 = vmul.f32 %v10282_v62, %v4846_v37  ;;  %v4847_v14 = vmul.f32 0.5, %v4799_v42 }
 0x772   : > { %6588 = vtanh.f32 %v4706_v51  ;;  %v4707_v33 = vmul.f32 0.7978846, %v4659_v6  ;;  %v4564_v21 = vmul.f32 %v10327_v52, %v4516_v17  ;;  %v4517_v12 = vmul.f32 %v10333_v11, %v10333_v11  ;;  %v10852_v51 = vld [vmem:[#allocation53_spill] sm:$0xff]  ;;  %v10853_v17 = vld [vmem:[#allocation54_spill] sm:$0xff] }
 0x773   : > { %v4895_v27 = vmul.f32 %v10288_v57, %v4847_v14  ;;  %v4942_v40 = vadd.f32 %v4894_v45, %v10848_v15  ;;  %v10855_v15 = vld [vmem:[#allocation56_spill] sm:$0xff] }
 0x774   : > { %v6585_v50 = vpop.eup %6584  ;;  %6590 = vtanh.f32 %v4707_v33  ;;  %v4612_v9 = vmul.f32 0.044715, %v4564_v21  ;;  %v4565_v34 = vmul.f32 %v10333_v11, %v4517_v12 }
 0x775   : > { %v4943_v46 = vadd.f32 %v4895_v27, %v10849_v38  ;;  %v4800_v62 = vadd.f32 1.0, %v6585_v50  ;;  %v4465_v28 = vpop.f32.mrb[188].mxu1 }
 0x776   : > { %v6587_v55 = vpop.eup %6586  ;;  %v4660_v10 = vadd.f32 %v10327_v52, %v4612_v9  ;;  %v4613_v5 = vmul.f32 0.044715, %v4565_v34  ;;  %v5959_v22 = vadd.f32 %v10122_v43, %v4465_v28  ;;  %v4467_v4 = vpop.f32.mrb[189].mxu1  ;;  %v10854_v9 = vld [vmem:[#allocation55_spill] sm:$0xff] }
 0x777   : > { %v5681_v3 = vpack.c.bf16 %v4943_v46, %v4942_v40  ;;  %v4848_v57 = vmul.f32 0.5, %v4800_v62  ;;  %v4801_v26 = vadd.f32 1.0, %v6587_v55  ;;  %v4468_v49 = vpop.f32.mrb[190].mxu1  ;;  %v10856_v4 = vld [vmem:[#allocation57_spill] sm:$0xff] }
 0x778   : > { %v4708_v25 = vmul.f32 0.7978846, %v4660_v10  ;;  %v4661_v1 = vadd.f32 %v10333_v11, %v4613_v5  ;;  %v4518_v39 = vmul.f32 %v5959_v22, %v5959_v22  ;;  %v5960_v63 = vadd.f32 %v10122_v43, %v4468_v49  ;;  %v4470_v32 = vpop.f32.mrb[191].mxu1 }
 0x779   : > { %5744 = vst [vmem:[%s10399_s7 + $0x98] sm:$0xff] %v5681_v3   ;;  %v4896_v0 = vmul.f32 %v10296_v29, %v4848_v57  ;;  %v4849_v2 = vmul.f32 0.5, %v4801_v26 }
 0x77a   : > { %6592 = vtanh.f32 %v4708_v25  ;;  %v4709_v31 = vmul.f32 0.7978846, %v4661_v1  ;;  %v4566_v48 = vmul.f32 %v5959_v22, %v4518_v39  ;;  %v4519_v19 = vmul.f32 %v5960_v63, %v5960_v63 }
 0x77b   : > { %v4897_v36 = vmul.f32 %v10302_v47, %v4849_v2  ;;  %v4944_v43 = vadd.f32 %v4896_v0, %v10850_v61 }
 0x77c   : > { %v6589_v35 = vpop.eup %6588  ;;  %6594 = vtanh.f32 %v4709_v31  ;;  %v4614_v41 = vmul.f32 0.044715, %v4566_v48  ;;  %v4567_v54 = vmul.f32 %v5960_v63, %v4519_v19 }
 0x77d   : > { %v4945_v44 = vadd.f32 %v4897_v36, %v10851_v23  ;;  %v4802_v16 = vadd.f32 1.0, %v6589_v35 }
 0x77e   : > { %v6591_v30 = vpop.eup %6590  ;;  %v4662_v58 = vadd.f32 %v5959_v22, %v4614_v41  ;;  %v4615_v13 = vmul.f32 0.044715, %v4567_v54 }
 0x77f   : > { %v5686_v29 = vpack.c.bf16 %v4945_v44, %v4944_v43  ;;  %v4850_v8 = vmul.f32 0.5, %v4802_v16  ;;  %v4803_v60 = vadd.f32 1.0, %v6591_v30 }
 0x780   : > { %v4710_v59 = vmul.f32 0.7978846, %v4662_v58  ;;  %v4663_v24 = vadd.f32 %v5960_v63, %v4615_v13 }
 0x781   : > { %5745 = vst [vmem:[%s10399_s7 + $0xa0] sm:$0xff] %v5686_v29   ;;  %v4898_v47 = vmul.f32 %v10310_v7, %v4850_v8  ;;  %v4851_v18 = vmul.f32 0.5, %v4803_v60 }
 0x782   : > { %6596 = vtanh.f32 %v4710_v59  ;;  %v4711_v37 = vmul.f32 0.7978846, %v4663_v24 }
 0x783   : > { %v4899_v42 = vmul.f32 %v10316_v20, %v4851_v18  ;;  %v4946_v6 = vadd.f32 %v4898_v47, %v10852_v51 }
 0x784   : > { %v6593_v53 = vpop.eup %6592  ;;  %6598 = vtanh.f32 %v4711_v37 }
 0x785   : > { %v4947_v56 = vadd.f32 %v4899_v42, %v10853_v17  ;;  %v4804_v45 = vadd.f32 1.0, %v6593_v53 }
 0x786   : > { %v6595_v14 = vpop.eup %6594 }
 0x787   : > { %v5691_v33 = vpack.c.bf16 %v4947_v56, %v4946_v6  ;;  %v4852_v21 = vmul.f32 0.5, %v4804_v45  ;;  %v4805_v12 = vadd.f32 1.0, %v6595_v14 }
 0x789   : > { %5746 = vst [vmem:[%s10399_s7 + $0xa8] sm:$0xff] %v5691_v33   ;;  %v4900_v7 = vmul.f32 %v10327_v52, %v4852_v21  ;;  %v4853_v27 = vmul.f32 0.5, %v4805_v12 }
 0x78b   : > { %v4901_v20 = vmul.f32 %v10333_v11, %v4853_v27  ;;  %v4948_v34 = vadd.f32 %v4900_v7, %v10854_v9  ;;  %v10857_v11 = vld [vmem:[#allocation58_spill] sm:$0xff] }
 0x78c   : > { %v6597_v50 = vpop.eup %6596 }
 0x78d   : > { %v4949_v40 = vadd.f32 %v4901_v20, %v10855_v15  ;;  %v4806_v38 = vadd.f32 1.0, %v6597_v50 }
 0x78e   : > { %v6599_v46 = vpop.eup %6598 }
 0x78f   : > { %v5696_v62 = vpack.c.bf16 %v4949_v40, %v4948_v34  ;;  %v4854_v28 = vmul.f32 0.5, %v4806_v38  ;;  %v4807_v55 = vadd.f32 1.0, %v6599_v46 }
 0x791   : > { %5747 = vst [vmem:[%s10399_s7 + $0xb0] sm:$0xff] %v5696_v62   ;;  %v4902_v10 = vmul.f32 %v5959_v22, %v4854_v28  ;;  %v4855_v5 = vmul.f32 0.5, %v4807_v55 }
 0x793   : > { %v4903_v52 = vmul.f32 %v5960_v63, %v4855_v5  ;;  %v4950_v3 = vadd.f32 %v4902_v10, %v10856_v4 }
 0x795   : > { %v4951_v57 = vadd.f32 %v4903_v52, %v10857_v11 }
 0x797   : > { %v5701_v26 = vpack.c.bf16 %v4951_v57, %v4950_v3 }
 0x799   : > { %5748 = vst [vmem:[%s10399_s7 + $0xb8] sm:$0xff] %v5701_v26  }
 0x79a PF: > { %p20_p3 = scmp.ge.s32.totalorder %s6784_s29, 4   ;;  %s10858_s24 = smov %s6707_s25 }
 0x79b   : > { %s10859_s25 = smov %s6711_s26  ;;  %s10860_s26 = smov %s6794_s9 }
 0x79c   : > { %s10861_s27 = smov %s6784_s29  ;;  %22 = sbr.rel (!%p20_p3) target bundleno = 5 (0x5), region = 113 }
 0x7a3   :  { %5203 = vsyncpa [#allocation3], 1 }
 0x7a4   :  { %5205 = vsyncpa [#allocation3 + $0x1], 1 }
 0x7a5   :  { %5206 = vsyncpa [#allocation5], 1 }
 0x7a6   :  { %5208 = vsyncpa [#allocation5 + $0x1], 1 }

</bundles_post_ra>
